<compile_context>
chip_gen: v5e
topology: v5e:2x2
jax: 0.10.0
libtpu: 0.0.40
codegen_flags: <defaults>
</compile_context>

<pallas_src>
import functools

import jax
import jax.numpy as jnp
from jax.experimental import pallas as pl
from jax.experimental.pallas import tpu as pltpu


_SMEM = pl.BlockSpec(memory_space=pltpu.MemorySpace.SMEM)


def _compiler_params():
    return pltpu.CompilerParams(
        dimension_semantics=("parallel",),
        vmem_limit_bytes=32 * 1024 * 1024,
    )


# --------------------------------------------------------------------------
# Kernel-internal helpers
# --------------------------------------------------------------------------
def _conv3x3_into(pad_ref, w_ref, s_ref, b_ref, cin, cout, H, W, emit):
    """3x3 conv over a zero-padded (cin, H+2, W+2) VMEM scratch.

    Channels are tiny (<= 8), so the conv is cin*cout*9 scalar-broadcast FMAs on
    lane-dense (H, W) tiles (W on lanes).  Weights / folded-BN scale / shift are
    scalars in SMEM.  `emit(co, y)` receives the post-BN + LeakyReLU tile.
    """
    for co in range(cout):
        acc = jnp.zeros((H, W), jnp.float32)
        for ci in range(cin):
            base = (co * cin + ci) * 9
            for dh in range(3):
                for dw in range(3):
                    acc = acc + w_ref[base + dh * 3 + dw] * pad_ref[
                        ci, dh:dh + H, dw:dw + W]
        y = acc * s_ref[co] + b_ref[co]
        emit(co, jnp.where(y > 0.0, y, 0.01 * y))


# --------------------------------------------------------------------------
# Fused stage kernels
# --------------------------------------------------------------------------
def _stage_kernel(x_ref, w1_ref, s1_ref, b1_ref, w2_ref, s2_ref, b2_ref,
                  uh_ref, uw_ref, o_ref, xpad_ref, mid_ref, *, Ci, Co, H, W):
    """double_conv + 2x bilinear upsample (align_corners=True), one batch elem."""
    # Zero-pad the input inside VMEM (no HBM-side jnp.pad round trip).
    xpad_ref[...] = jnp.zeros_like(xpad_ref)
    xpad_ref[:, 1:H + 1, 1:W + 1] = x_ref[...]

    # conv1 -> BN -> LeakyReLU, written into the padded mid scratch.
    mid_ref[...] = jnp.zeros_like(mid_ref)

    def emit_mid(co, y):
        mid_ref[co, 1:H + 1, 1:W + 1] = y

    _conv3x3_into(xpad_ref, w1_ref, s1_ref, b1_ref, Ci, Co, H, W, emit_mid)

    # conv2 -> BN -> LeakyReLU -> 2x bilinear upsample, streamed to the output.
    uh = uh_ref[...]          # (2H, H)
    uw = uw_ref[...]          # (W, 2W)

    def emit_out(co, y):
        t = jnp.dot(uh, y, preferred_element_type=jnp.float32)        # (2H, W)
        o_ref[co, :, :] = jnp.dot(
            t, uw, preferred_element_type=jnp.float32).astype(o_ref.dtype)

    _conv3x3_into(mid_ref, w2_ref, s2_ref, b2_ref, Co, Co, H, W, emit_out)


def _final_kernel(x_ref, w1_ref, s1_ref, b1_ref, w2_ref, s2_ref, b2_ref,
                  wo_ref, bo_ref, o_ref, xpad_ref, mid_ref, y2_ref,
                  *, Ci, Co, Cf, H, W):
    """double_conv + outconv (1x1 conv), one batch element."""
    xpad_ref[...] = jnp.zeros_like(xpad_ref)
    xpad_ref[:, 1:H + 1, 1:W + 1] = x_ref[...]

    mid_ref[...] = jnp.zeros_like(mid_ref)

    def emit_mid(co, y):
        mid_ref[co, 1:H + 1, 1:W + 1] = y

    _conv3x3_into(xpad_ref, w1_ref, s1_ref, b1_ref, Ci, Co, H, W, emit_mid)

    def emit_y2(co, y):
        y2_ref[co, :, :] = y

    _conv3x3_into(mid_ref, w2_ref, s2_ref, b2_ref, Co, Co, H, W, emit_y2)

    # outconv: 1x1 conv over the tiny channel axis, again scalar-broadcast FMAs.
    for cf in range(Cf):
        acc = jnp.zeros((H, W), jnp.float32)
        for co in range(Co):
            acc = acc + wo_ref[cf * Co + co] * y2_ref[co, :, :]
        o_ref[cf, :, :] = (acc + bo_ref[cf]).astype(o_ref.dtype)


# --------------------------------------------------------------------------
# Pallas wrappers (grid over batch; full spatial tile per step)
# --------------------------------------------------------------------------
def _interp_matrix(h_in, h_out):
    """align_corners=True linear interpolation matrix (h_out, h_in)."""
    if h_in == 1:
        return jnp.ones((h_out, 1), jnp.float32)
    src = jnp.arange(h_out, dtype=jnp.float32) * (h_in - 1) / (h_out - 1)
    lo = jnp.clip(jnp.floor(src).astype(jnp.int32), 0, h_in - 2)
    frac = src - lo.astype(jnp.float32)
    m = jnp.zeros((h_out, h_in), jnp.float32)
    rows = jnp.arange(h_out)
    m = m.at[rows, lo].add(1.0 - frac)
    m = m.at[rows, lo + 1].add(frac)
    return m


def decode_stage(x, conv1, conv2):
    """Fused double_conv + 2x upsample: (N,Ci,H,W) -> (N,Co,2H,2W)."""
    N, Ci, H, W = x.shape
    (w1, s1, b1) = conv1
    (w2, s2, b2) = conv2
    Co = s1.shape[0]
    uh = _interp_matrix(H, 2 * H)            # (2H, H)
    uwT = _interp_matrix(W, 2 * W).T         # (W, 2W)
    kernel = functools.partial(_stage_kernel, Ci=Ci, Co=Co, H=H, W=W)
    return pl.pallas_call(
        kernel,
        out_shape=jax.ShapeDtypeStruct((N, Co, 2 * H, 2 * W), jnp.float32),
        grid=(N,),
        in_specs=[
            pl.BlockSpec((None, Ci, H, W), lambda n: (n, 0, 0, 0)),
            _SMEM, _SMEM, _SMEM, _SMEM, _SMEM, _SMEM,
            pl.BlockSpec((2 * H, H), lambda n: (0, 0)),
            pl.BlockSpec((W, 2 * W), lambda n: (0, 0)),
        ],
        out_specs=pl.BlockSpec((None, Co, 2 * H, 2 * W),
                               lambda n: (n, 0, 0, 0)),
        scratch_shapes=[pltpu.VMEM((Ci, H + 2, W + 2), jnp.float32),
                        pltpu.VMEM((Co, H + 2, W + 2), jnp.float32)],
        compiler_params=_compiler_params(),
    )(x, w1.reshape(-1), s1, b1, w2.reshape(-1), s2, b2, uh, uwT)


def decode_final(x, conv1, conv2, w_out, b_out):
    """Fused double_conv + 1x1 outconv: (N,Ci,H,W) -> (N,Cf,H,W)."""
    N, Ci, H, W = x.shape
    (w1, s1, b1) = conv1
    (w2, s2, b2) = conv2
    Co = s1.shape[0]
    Cf = b_out.shape[0]
    kernel = functools.partial(_final_kernel, Ci=Ci, Co=Co, Cf=Cf, H=H, W=W)
    return pl.pallas_call(
        kernel,
        out_shape=jax.ShapeDtypeStruct((N, Cf, H, W), jnp.float32),
        grid=(N,),
        in_specs=[
            pl.BlockSpec((None, Ci, H, W), lambda n: (n, 0, 0, 0)),
            _SMEM, _SMEM, _SMEM, _SMEM, _SMEM, _SMEM, _SMEM, _SMEM,
        ],
        out_specs=pl.BlockSpec((None, Cf, H, W), lambda n: (n, 0, 0, 0)),
        scratch_shapes=[pltpu.VMEM((Ci, H + 2, W + 2), jnp.float32),
                        pltpu.VMEM((Co, H + 2, W + 2), jnp.float32),
                        pltpu.VMEM((Co, H, W), jnp.float32)],
        compiler_params=_compiler_params(),
    )(x, w1.reshape(-1), s1, b1, w2.reshape(-1), s2, b2,
      w_out.reshape(-1), b_out)


# --------------------------------------------------------------------------
# Parameter initialization (deterministic, synthetic)
# --------------------------------------------------------------------------
def _init_conv_bn(key, cin, cout, use_bn):
    k1, k2, k3, k4 = jax.random.split(key, 4)
    w = 0.1 * jax.random.normal(k1, (cout, cin, 3, 3), jnp.float32)  # OIHW
    b = 0.1 * jax.random.normal(k2, (cout,), jnp.float32)
    if use_bn:
        gamma = 1.0 + 0.1 * jax.random.normal(k3, (cout,), jnp.float32)
        beta = 0.1 * jax.random.normal(k4, (cout,), jnp.float32)
        run_mean = jnp.zeros((cout,), jnp.float32)
        run_var = jnp.ones((cout,), jnp.float32)
        s = gamma / jnp.sqrt(run_var + 1e-5)
        scale = s
        shift = beta + (b - run_mean) * s
    else:
        scale = jnp.ones((cout,), jnp.float32)
        shift = b
    return w, scale, shift


def init_decode2d(key, in_ch, out_ch, use_bn):
    chans = [(max(in_ch, 1), max(in_ch // 2, 1)),
             (max(in_ch // 2, 1), max(in_ch // 4, 1)),
             (max(in_ch // 4, 1), max(in_ch // 8, 1)),
             (max(in_ch // 8, 1), max(out_ch, 1))]
    double_convs = []
    for (ci, co) in chans:
        layers = []
        for (a, b_) in [(ci, co), (co, co)]:
            key, sub = jax.random.split(key)
            layers.append(_init_conv_bn(sub, a, b_, use_bn))
        double_convs.append(layers)
    key, k1, k2 = jax.random.split(key, 3)
    co = max(out_ch, 1)
    w_out = 0.1 * jax.random.normal(k1, (co, co), jnp.float32)  # (Cout, Cin)
    b_out = 0.1 * jax.random.normal(k2, (co,), jnp.float32)
    return double_convs, (w_out, b_out)


# --------------------------------------------------------------------------
# Full forward (Pallas) and a pure-JAX reference for verification
# --------------------------------------------------------------------------
def decode2d_forward(x_nchw, params):
    double_convs, (w_out, b_out) = params
    x = x_nchw
    for dc in double_convs[:3]:
        x = decode_stage(x, dc[0], dc[1])
    x = decode_final(x, double_convs[3][0], double_convs[3][1], w_out, b_out)
    return x


def decode2d_reference(x_nchw, params):
    double_convs, (w_out, b_out) = params
    x = x_nchw

    def conv3(x, w, s, sh):
        y = jax.lax.conv_general_dilated(
            x, w, window_strides=(1, 1), padding='SAME',
            dimension_numbers=('NCHW', 'OIHW', 'NCHW'))
        y = y * s.reshape(1, -1, 1, 1) + sh.reshape(1, -1, 1, 1)
        return jnp.where(y > 0, y, 0.01 * y)

    def up(x):
        _, _, H, W = x.shape
        uh = _interp_matrix(H, 2 * H)
        uw = _interp_matrix(W, 2 * W)
        return jnp.einsum('oh,nchw,pw->ncop', uh, x, uw)

    for i, dc in enumerate(double_convs):
        for (w, s, sh) in dc:
            x = conv3(x, w, s, sh)
        if i < 3:
            x = up(x)
    x = jnp.einsum('nchw,fc->nfhw', x, w_out) + b_out.reshape(1, -1, 1, 1)
    return x


# --------------------------------------------------------------------------
if __name__ == "__main__":
    IN_CH, OUT_CH, BN = 8, 4, True
    N, H, W = 2, 8, 8

    key = jax.random.PRNGKey(0)
    key, kx, kp = jax.random.split(key, 3)
    x = jax.random.normal(kx, (N, IN_CH, H, W), jnp.float32)   # NCHW, like PyTorch
    params = init_decode2d(kp, IN_CH, OUT_CH, BN)

    out = jax.block_until_ready(decode2d_forward(x, params))
    ref = jax.block_until_ready(decode2d_reference(x, params))

    assert out.shape == (N, OUT_CH, H * 8, W * 8), out.shape
    err = float(jnp.max(jnp.abs(out - ref)))
    assert jnp.allclose(out, ref, rtol=1e-4, atol=1e-4), err

    print("KERNEL_OK")
</pallas_src>

<mosaic_0001>
module attributes {stable_mosaic.version = 11 : i64} {
  func.func @_stage_kernel(%arg0: i32, %arg1: memref<1x8x8x8xf32, #tpu.memory_space<vmem>>, %arg2: memref<288xf32, #tpu.memory_space<smem>>, %arg3: memref<4xf32, #tpu.memory_space<smem>>, %arg4: memref<4xf32, #tpu.memory_space<smem>>, %arg5: memref<144xf32, #tpu.memory_space<smem>>, %arg6: memref<4xf32, #tpu.memory_space<smem>>, %arg7: memref<4xf32, #tpu.memory_space<smem>>, %arg8: memref<16x8xf32, #tpu.memory_space<vmem>>, %arg9: memref<8x16xf32, #tpu.memory_space<vmem>>, %arg10: memref<1x4x16x16xf32, #tpu.memory_space<vmem>>, %arg11: memref<8x10x10xf32, #tpu.memory_space<vmem>>, %arg12: memref<4x10x10xf32, #tpu.memory_space<vmem>>) attributes {dimension_semantics = [#tpu.dimension_semantics<parallel>], iteration_bounds = array<i64: 2>, scalar_prefetch = 0 : i64, scratch_operands = 2 : i64, tpu.core_type = #tpu.core_type<tc>, window_params = [{transform_indices = @transform_0, window_bounds = array<i64: 1, 8, 8, 8>}, {transform_indices = @transform_1, window_bounds = array<i64: 288>}, {transform_indices = @transform_2, window_bounds = array<i64: 4>}, {transform_indices = @transform_3, window_bounds = array<i64: 4>}, {transform_indices = @transform_4, window_bounds = array<i64: 144>}, {transform_indices = @transform_5, window_bounds = array<i64: 4>}, {transform_indices = @transform_6, window_bounds = array<i64: 4>}, {pipeline_mode = #tpu.pipeline_mode<synchronous>, transform_indices = @transform_7, window_bounds = array<i64: 16, 8>}, {pipeline_mode = #tpu.pipeline_mode<synchronous>, transform_indices = @transform_8, window_bounds = array<i64: 8, 16>}, {transform_indices = @transform_9, window_bounds = array<i64: 1, 4, 16, 16>}]} {
    %cst = arith.constant 0.000000e+00 : f32
    %0 = vector.broadcast %cst : f32 to vector<8x10x10xf32>
    %c0 = arith.constant 0 : index
    %c0_0 = arith.constant 0 : index
    %c0_1 = arith.constant 0 : index
    %1 = vector.load %arg11[%c0, %c0_0, %c0_1] : memref<8x10x10xf32, #tpu.memory_space<vmem>>, vector<8x10x10xf32>
    tpu.vector_store %arg11[%c0, %c0_0, %c0_1], %0 {strides = array<i32>} : memref<8x10x10xf32, #tpu.memory_space<vmem>>, vector<8x10x10xf32>,
    %c0_2 = arith.constant 0 : index
    %c0_3 = arith.constant 0 : index
    %c0_4 = arith.constant 0 : index
    %c0_5 = arith.constant 0 : index
    %2 = vector.load %arg1[%c0_2, %c0_3, %c0_4, %c0_5] : memref<1x8x8x8xf32, #tpu.memory_space<vmem>>, vector<1x8x8x8xf32>
    %3 = vector.shape_cast %2 : vector<1x8x8x8xf32> to vector<8x8x8xf32>
    %c0_6 = arith.constant 0 : index
    %c1 = arith.constant 1 : index
    %c1_7 = arith.constant 1 : index
    %4 = vector.load %arg11[%c0_6, %c1, %c1_7] : memref<8x10x10xf32, #tpu.memory_space<vmem>>, vector<8x8x8xf32>
    tpu.vector_store %arg11[%c0_6, %c1, %c1_7], %3 {strides = array<i32>} : memref<8x10x10xf32, #tpu.memory_space<vmem>>, vector<8x8x8xf32>,
    %cst_8 = arith.constant 0.000000e+00 : f32
    %5 = vector.broadcast %cst_8 : f32 to vector<4x10x10xf32>
    %c0_9 = arith.constant 0 : index
    %c0_10 = arith.constant 0 : index
    %c0_11 = arith.constant 0 : index
    %6 = vector.load %arg12[%c0_9, %c0_10, %c0_11] : memref<4x10x10xf32, #tpu.memory_space<vmem>>, vector<4x10x10xf32>
    tpu.vector_store %arg12[%c0_9, %c0_10, %c0_11], %5 {strides = array<i32>} : memref<4x10x10xf32, #tpu.memory_space<vmem>>, vector<4x10x10xf32>,
    %cst_12 = arith.constant 0.000000e+00 : f32
    %7 = vector.broadcast %cst_12 : f32 to vector<8x8xf32>
    %c0_13 = arith.constant 0 : index
    %8 = memref.load %arg2[%c0_13] : memref<288xf32, #tpu.memory_space<smem>>
    %c0_14 = arith.constant 0 : index
    %c0_15 = arith.constant 0 : index
    %c0_16 = arith.constant 0 : index
    %9 = vector.load %arg11[%c0_14, %c0_15, %c0_16] : memref<8x10x10xf32, #tpu.memory_space<vmem>>, vector<1x8x8xf32>
    %10 = vector.shape_cast %9 : vector<1x8x8xf32> to vector<8x8xf32>
    %11 = vector.broadcast %8 : f32 to vector<8x8xf32>
    %12 = arith.mulf %11, %10 : vector<8x8xf32>
    %13 = arith.addf %7, %12 : vector<8x8xf32>
    %c1_17 = arith.constant 1 : index
    %14 = memref.load %arg2[%c1_17] : memref<288xf32, #tpu.memory_space<smem>>
    %c0_18 = arith.constant 0 : index
    %c0_19 = arith.constant 0 : index
    %c1_20 = arith.constant 1 : index
    %15 = vector.load %arg11[%c0_18, %c0_19, %c1_20] : memref<8x10x10xf32, #tpu.memory_space<vmem>>, vector<1x8x8xf32>
    %16 = vector.shape_cast %15 : vector<1x8x8xf32> to vector<8x8xf32>
    %17 = vector.broadcast %14 : f32 to vector<8x8xf32>
    %18 = arith.mulf %17, %16 : vector<8x8xf32>
    %19 = arith.addf %13, %18 : vector<8x8xf32>
    %c2 = arith.constant 2 : index
    %20 = memref.load %arg2[%c2] : memref<288xf32, #tpu.memory_space<smem>>
    %c0_21 = arith.constant 0 : index
    %c0_22 = arith.constant 0 : index
    %c2_23 = arith.constant 2 : index
    %21 = vector.load %arg11[%c0_21, %c0_22, %c2_23] : memref<8x10x10xf32, #tpu.memory_space<vmem>>, vector<1x8x8xf32>
    %22 = vector.shape_cast %21 : vector<1x8x8xf32> to vector<8x8xf32>
    %23 = vector.broadcast %20 : f32 to vector<8x8xf32>
    %24 = arith.mulf %23, %22 : vector<8x8xf32>
    %25 = arith.addf %19, %24 : vector<8x8xf32>
    %c3 = arith.constant 3 : index
    %26 = memref.load %arg2[%c3] : memref<288xf32, #tpu.memory_space<smem>>
    %c0_24 = arith.constant 0 : index
    %c1_25 = arith.constant 1 : index
    %c0_26 = arith.constant 0 : index
    %27 = vector.load %arg11[%c0_24, %c1_25, %c0_26] : memref<8x10x10xf32, #tpu.memory_space<vmem>>, vector<1x8x8xf32>
    %28 = vector.shape_cast %27 : vector<1x8x8xf32> to vector<8x8xf32>
    %29 = vector.broadcast %26 : f32 to vector<8x8xf32>
    %30 = arith.mulf %29, %28 : vector<8x8xf32>
    %31 = arith.addf %25, %30 : vector<8x8xf32>
    %c4 = arith.constant 4 : index
    %32 = memref.load %arg2[%c4] : memref<288xf32, #tpu.memory_space<smem>>
    %c0_27 = arith.constant 0 : index
    %c1_28 = arith.constant 1 : index
    %c1_29 = arith.constant 1 : index
    %33 = vector.load %arg11[%c0_27, %c1_28, %c1_29] : memref<8x10x10xf32, #tpu.memory_space<vmem>>, vector<1x8x8xf32>
    %34 = vector.shape_cast %33 : vector<1x8x8xf32> to vector<8x8xf32>
    %35 = vector.broadcast %32 : f32 to vector<8x8xf32>
    %36 = arith.mulf %35, %34 : vector<8x8xf32>
    %37 = arith.addf %31, %36 : vector<8x8xf32>
    %c5 = arith.constant 5 : index
    %38 = memref.load %arg2[%c5] : memref<288xf32, #tpu.memory_space<smem>>
    %c0_30 = arith.constant 0 : index
    %c1_31 = arith.constant 1 : index
    %c2_32 = arith.constant 2 : index
    %39 = vector.load %arg11[%c0_30, %c1_31, %c2_32] : memref<8x10x10xf32, #tpu.memory_space<vmem>>, vector<1x8x8xf32>
    %40 = vector.shape_cast %39 : vector<1x8x8xf32> to vector<8x8xf32>
    %41 = vector.broadcast %38 : f32 to vector<8x8xf32>
    %42 = arith.mulf %41, %40 : vector<8x8xf32>
    %43 = arith.addf %37, %42 : vector<8x8xf32>
    %c6 = arith.constant 6 : index
    %44 = memref.load %arg2[%c6] : memref<288xf32, #tpu.memory_space<smem>>
    %c0_33 = arith.constant 0 : index
    %c2_34 = arith.constant 2 : index
    %c0_35 = arith.constant 0 : index
    %45 = vector.load %arg11[%c0_33, %c2_34, %c0_35] : memref<8x10x10xf32, #tpu.memory_space<vmem>>, vector<1x8x8xf32>
    %46 = vector.shape_cast %45 : vector<1x8x8xf32> to vector<8x8xf32>
    %47 = vector.broadcast %44 : f32 to vector<8x8xf32>
    %48 = arith.mulf %47, %46 : vector<8x8xf32>
    %49 = arith.addf %43, %48 : vector<8x8xf32>
    %c7 = arith.constant 7 : index
    %50 = memref.load %arg2[%c7] : memref<288xf32, #tpu.memory_space<smem>>
    %c0_36 = arith.constant 0 : index
    %c2_37 = arith.constant 2 : index
    %c1_38 = arith.constant 1 : index
    %51 = vector.load %arg11[%c0_36, %c2_37, %c1_38] : memref<8x10x10xf32, #tpu.memory_space<vmem>>, vector<1x8x8xf32>
    %52 = vector.shape_cast %51 : vector<1x8x8xf32> to vector<8x8xf32>
    %53 = vector.broadcast %50 : f32 to vector<8x8xf32>
    %54 = arith.mulf %53, %52 : vector<8x8xf32>
    %55 = arith.addf %49, %54 : vector<8x8xf32>
    %c8 = arith.constant 8 : index
    %56 = memref.load %arg2[%c8] : memref<288xf32, #tpu.memory_space<smem>>
    %c0_39 = arith.constant 0 : index
    %c2_40 = arith.constant 2 : index
    %c2_41 = arith.constant 2 : index
    %57 = vector.load %arg11[%c0_39, %c2_40, %c2_41] : memref<8x10x10xf32, #tpu.memory_space<vmem>>, vector<1x8x8xf32>
    %58 = vector.shape_cast %57 : vector<1x8x8xf32> to vector<8x8xf32>
    %59 = vector.broadcast %56 : f32 to vector<8x8xf32>
    %60 = arith.mulf %59, %58 : vector<8x8xf32>
    %61 = arith.addf %55, %60 : vector<8x8xf32>
    %c9 = arith.constant 9 : index
    %62 = memref.load %arg2[%c9] : memref<288xf32, #tpu.memory_space<smem>>
    %c1_42 = arith.constant 1 : index
    %c0_43 = arith.constant 0 : index
    %c0_44 = arith.constant 0 : index
    %63 = vector.load %arg11[%c1_42, %c0_43, %c0_44] : memref<8x10x10xf32, #tpu.memory_space<vmem>>, vector<1x8x8xf32>
    %64 = vector.shape_cast %63 : vector<1x8x8xf32> to vector<8x8xf32>
    %65 = vector.broadcast %62 : f32 to vector<8x8xf32>
    %66 = arith.mulf %65, %64 : vector<8x8xf32>
    %67 = arith.addf %61, %66 : vector<8x8xf32>
    %c10 = arith.constant 10 : index
    %68 = memref.load %arg2[%c10] : memref<288xf32, #tpu.memory_space<smem>>
    %c1_45 = arith.constant 1 : index
    %c0_46 = arith.constant 0 : index
    %c1_47 = arith.constant 1 : index
    %69 = vector.load %arg11[%c1_45, %c0_46, %c1_47] : memref<8x10x10xf32, #tpu.memory_space<vmem>>, vector<1x8x8xf32>
    %70 = vector.shape_cast %69 : vector<1x8x8xf32> to vector<8x8xf32>
    %71 = vector.broadcast %68 : f32 to vector<8x8xf32>
    %72 = arith.mulf %71, %70 : vector<8x8xf32>
    %73 = arith.addf %67, %72 : vector<8x8xf32>
    %c11 = arith.constant 11 : index
    %74 = memref.load %arg2[%c11] : memref<288xf32, #tpu.memory_space<smem>>
    %c1_48 = arith.constant 1 : index
    %c0_49 = arith.constant 0 : index
    %c2_50 = arith.constant 2 : index
    %75 = vector.load %arg11[%c1_48, %c0_49, %c2_50] : memref<8x10x10xf32, #tpu.memory_space<vmem>>, vector<1x8x8xf32>
    %76 = vector.shape_cast %75 : vector<1x8x8xf32> to vector<8x8xf32>
    %77 = vector.broadcast %74 : f32 to vector<8x8xf32>
    %78 = arith.mulf %77, %76 : vector<8x8xf32>
    %79 = arith.addf %73, %78 : vector<8x8xf32>
    %c12 = arith.constant 12 : index
    %80 = memref.load %arg2[%c12] : memref<288xf32, #tpu.memory_space<smem>>
    %c1_51 = arith.constant 1 : index
    %c1_52 = arith.constant 1 : index
    %c0_53 = arith.constant 0 : index
    %81 = vector.load %arg11[%c1_51, %c1_52, %c0_53] : memref<8x10x10xf32, #tpu.memory_space<vmem>>, vector<1x8x8xf32>
    %82 = vector.shape_cast %81 : vector<1x8x8xf32> to vector<8x8xf32>
    %83 = vector.broadcast %80 : f32 to vector<8x8xf32>
    %84 = arith.mulf %83, %82 : vector<8x8xf32>
    %85 = arith.addf %79, %84 : vector<8x8xf32>
    %c13 = arith.constant 13 : index
    %86 = memref.load %arg2[%c13] : memref<288xf32, #tpu.memory_space<smem>>
    %c1_54 = arith.constant 1 : index
    %c1_55 = arith.constant 1 : index
    %c1_56 = arith.constant 1 : index
    %87 = vector.load %arg11[%c1_54, %c1_55, %c1_56] : memref<8x10x10xf32, #tpu.memory_space<vmem>>, vector<1x8x8xf32>
    %88 = vector.shape_cast %87 : vector<1x8x8xf32> to vector<8x8xf32>
    %89 = vector.broadcast %86 : f32 to vector<8x8xf32>
    %90 = arith.mulf %89, %88 : vector<8x8xf32>
    %91 = arith.addf %85, %90 : vector<8x8xf32>
    %c14 = arith.constant 14 : index
    %92 = memref.load %arg2[%c14] : memref<288xf32, #tpu.memory_space<smem>>
    %c1_57 = arith.constant 1 : index
    %c1_58 = arith.constant 1 : index
    %c2_59 = arith.constant 2 : index
    %93 = vector.load %arg11[%c1_57, %c1_58, %c2_59] : memref<8x10x10xf32, #tpu.memory_space<vmem>>, vector<1x8x8xf32>
    %94 = vector.shape_cast %93 : vector<1x8x8xf32> to vector<8x8xf32>
    %95 = vector.broadcast %92 : f32 to vector<8x8xf32>
    %96 = arith.mulf %95, %94 : vector<8x8xf32>
    %97 = arith.addf %91, %96 : vector<8x8xf32>
    %c15 = arith.constant 15 : index
    %98 = memref.load %arg2[%c15] : memref<288xf32, #tpu.memory_space<smem>>
    %c1_60 = arith.constant 1 : index
    %c2_61 = arith.constant 2 : index
    %c0_62 = arith.constant 0 : index
    %99 = vector.load %arg11[%c1_60, %c2_61, %c0_62] : memref<8x10x10xf32, #tpu.memory_space<vmem>>, vector<1x8x8xf32>
    %100 = vector.shape_cast %99 : vector<1x8x8xf32> to vector<8x8xf32>
    %101 = vector.broadcast %98 : f32 to vector<8x8xf32>
    %102 = arith.mulf %101, %100 : vector<8x8xf32>
    %103 = arith.addf %97, %102 : vector<8x8xf32>
    %c16 = arith.constant 16 : index
    %104 = memref.load %arg2[%c16] : memref<288xf32, #tpu.memory_space<smem>>
    %c1_63 = arith.constant 1 : index
    %c2_64 = arith.constant 2 : index
    %c1_65 = arith.constant 1 : index
    %105 = vector.load %arg11[%c1_63, %c2_64, %c1_65] : memref<8x10x10xf32, #tpu.memory_space<vmem>>, vector<1x8x8xf32>
    %106 = vector.shape_cast %105 : vector<1x8x8xf32> to vector<8x8xf32>
    %107 = vector.broadcast %104 : f32 to vector<8x8xf32>
    %108 = arith.mulf %107, %106 : vector<8x8xf32>
    %109 = arith.addf %103, %108 : vector<8x8xf32>
    %c17 = arith.constant 17 : index
    %110 = memref.load %arg2[%c17] : memref<288xf32, #tpu.memory_space<smem>>
    %c1_66 = arith.constant 1 : index
    %c2_67 = arith.constant 2 : index
    %c2_68 = arith.constant 2 : index
    %111 = vector.load %arg11[%c1_66, %c2_67, %c2_68] : memref<8x10x10xf32, #tpu.memory_space<vmem>>, vector<1x8x8xf32>
    %112 = vector.shape_cast %111 : vector<1x8x8xf32> to vector<8x8xf32>
    %113 = vector.broadcast %110 : f32 to vector<8x8xf32>
    %114 = arith.mulf %113, %112 : vector<8x8xf32>
    %115 = arith.addf %109, %114 : vector<8x8xf32>
    %c18 = arith.constant 18 : index
    %116 = memref.load %arg2[%c18] : memref<288xf32, #tpu.memory_space<smem>>
    %c2_69 = arith.constant 2 : index
    %c0_70 = arith.constant 0 : index
    %c0_71 = arith.constant 0 : index
    %117 = vector.load %arg11[%c2_69, %c0_70, %c0_71] : memref<8x10x10xf32, #tpu.memory_space<vmem>>, vector<1x8x8xf32>
    %118 = vector.shape_cast %117 : vector<1x8x8xf32> to vector<8x8xf32>
    %119 = vector.broadcast %116 : f32 to vector<8x8xf32>
    %120 = arith.mulf %119, %118 : vector<8x8xf32>
    %121 = arith.addf %115, %120 : vector<8x8xf32>
    %c19 = arith.constant 19 : index
    %122 = memref.load %arg2[%c19] : memref<288xf32, #tpu.memory_space<smem>>
    %c2_72 = arith.constant 2 : index
    %c0_73 = arith.constant 0 : index
    %c1_74 = arith.constant 1 : index
    %123 = vector.load %arg11[%c2_72, %c0_73, %c1_74] : memref<8x10x10xf32, #tpu.memory_space<vmem>>, vector<1x8x8xf32>
    %124 = vector.shape_cast %123 : vector<1x8x8xf32> to vector<8x8xf32>
    %125 = vector.broadcast %122 : f32 to vector<8x8xf32>
    %126 = arith.mulf %125, %124 : vector<8x8xf32>
    %127 = arith.addf %121, %126 : vector<8x8xf32>
    %c20 = arith.constant 20 : index
    %128 = memref.load %arg2[%c20] : memref<288xf32, #tpu.memory_space<smem>>
    %c2_75 = arith.constant 2 : index
    %c0_76 = arith.constant 0 : index
    %c2_77 = arith.constant 2 : index
    %129 = vector.load %arg11[%c2_75, %c0_76, %c2_77] : memref<8x10x10xf32, #tpu.memory_space<vmem>>, vector<1x8x8xf32>
    %130 = vector.shape_cast %129 : vector<1x8x8xf32> to vector<8x8xf32>
    %131 = vector.broadcast %128 : f32 to vector<8x8xf32>
    %132 = arith.mulf %131, %130 : vector<8x8xf32>
    %133 = arith.addf %127, %132 : vector<8x8xf32>
    %c21 = arith.constant 21 : index
    %134 = memref.load %arg2[%c21] : memref<288xf32, #tpu.memory_space<smem>>
    %c2_78 = arith.constant 2 : index
    %c1_79 = arith.constant 1 : index
    %c0_80 = arith.constant 0 : index
    %135 = vector.load %arg11[%c2_78, %c1_79, %c0_80] : memref<8x10x10xf32, #tpu.memory_space<vmem>>, vector<1x8x8xf32>
    %136 = vector.shape_cast %135 : vector<1x8x8xf32> to vector<8x8xf32>
    %137 = vector.broadcast %134 : f32 to vector<8x8xf32>
    %138 = arith.mulf %137, %136 : vector<8x8xf32>
    %139 = arith.addf %133, %138 : vector<8x8xf32>
    %c22 = arith.constant 22 : index
    %140 = memref.load %arg2[%c22] : memref<288xf32, #tpu.memory_space<smem>>
    %c2_81 = arith.constant 2 : index
    %c1_82 = arith.constant 1 : index
    %c1_83 = arith.constant 1 : index
    %141 = vector.load %arg11[%c2_81, %c1_82, %c1_83] : memref<8x10x10xf32, #tpu.memory_space<vmem>>, vector<1x8x8xf32>
    %142 = vector.shape_cast %141 : vector<1x8x8xf32> to vector<8x8xf32>
    %143 = vector.broadcast %140 : f32 to vector<8x8xf32>
    %144 = arith.mulf %143, %142 : vector<8x8xf32>
    %145 = arith.addf %139, %144 : vector<8x8xf32>
    %c23 = arith.constant 23 : index
    %146 = memref.load %arg2[%c23] : memref<288xf32, #tpu.memory_space<smem>>
    %c2_84 = arith.constant 2 : index
    %c1_85 = arith.constant 1 : index
    %c2_86 = arith.constant 2 : index
    %147 = vector.load %arg11[%c2_84, %c1_85, %c2_86] : memref<8x10x10xf32, #tpu.memory_space<vmem>>, vector<1x8x8xf32>
    %148 = vector.shape_cast %147 : vector<1x8x8xf32> to vector<8x8xf32>
    %149 = vector.broadcast %146 : f32 to vector<8x8xf32>
    %150 = arith.mulf %149, %148 : vector<8x8xf32>
    %151 = arith.addf %145, %150 : vector<8x8xf32>
    %c24 = arith.constant 24 : index
    %152 = memref.load %arg2[%c24] : memref<288xf32, #tpu.memory_space<smem>>
    %c2_87 = arith.constant 2 : index
    %c2_88 = arith.constant 2 : index
    %c0_89 = arith.constant 0 : index
    %153 = vector.load %arg11[%c2_87, %c2_88, %c0_89] : memref<8x10x10xf32, #tpu.memory_space<vmem>>, vector<1x8x8xf32>
    %154 = vector.shape_cast %153 : vector<1x8x8xf32> to vector<8x8xf32>
    %155 = vector.broadcast %152 : f32 to vector<8x8xf32>
    %156 = arith.mulf %155, %154 : vector<8x8xf32>
    %157 = arith.addf %151, %156 : vector<8x8xf32>
    %c25 = arith.constant 25 : index
    %158 = memref.load %arg2[%c25] : memref<288xf32, #tpu.memory_space<smem>>
    %c2_90 = arith.constant 2 : index
    %c2_91 = arith.constant 2 : index
    %c1_92 = arith.constant 1 : index
    %159 = vector.load %arg11[%c2_90, %c2_91, %c1_92] : memref<8x10x10xf32, #tpu.memory_space<vmem>>, vector<1x8x8xf32>
    %160 = vector.shape_cast %159 : vector<1x8x8xf32> to vector<8x8xf32>
    %161 = vector.broadcast %158 : f32 to vector<8x8xf32>
    %162 = arith.mulf %161, %160 : vector<8x8xf32>
    %163 = arith.addf %157, %162 : vector<8x8xf32>
    %c26 = arith.constant 26 : index
    %164 = memref.load %arg2[%c26] : memref<288xf32, #tpu.memory_space<smem>>
    %c2_93 = arith.constant 2 : index
    %c2_94 = arith.constant 2 : index
    %c2_95 = arith.constant 2 : index
    %165 = vector.load %arg11[%c2_93, %c2_94, %c2_95] : memref<8x10x10xf32, #tpu.memory_space<vmem>>, vector<1x8x8xf32>
    %166 = vector.shape_cast %165 : vector<1x8x8xf32> to vector<8x8xf32>
    %167 = vector.broadcast %164 : f32 to vector<8x8xf32>
    %168 = arith.mulf %167, %166 : vector<8x8xf32>
    %169 = arith.addf %163, %168 : vector<8x8xf32>
    %c27 = arith.constant 27 : index
    %170 = memref.load %arg2[%c27] : memref<288xf32, #tpu.memory_space<smem>>
    %c3_96 = arith.constant 3 : index
    %c0_97 = arith.constant 0 : index
    %c0_98 = arith.constant 0 : index
    %171 = vector.load %arg11[%c3_96, %c0_97, %c0_98] : memref<8x10x10xf32, #tpu.memory_space<vmem>>, vector<1x8x8xf32>
    %172 = vector.shape_cast %171 : vector<1x8x8xf32> to vector<8x8xf32>
    %173 = vector.broadcast %170 : f32 to vector<8x8xf32>
    %174 = arith.mulf %173, %172 : vector<8x8xf32>
    %175 = arith.addf %169, %174 : vector<8x8xf32>
    %c28 = arith.constant 28 : index
    %176 = memref.load %arg2[%c28] : memref<288xf32, #tpu.memory_space<smem>>
    %c3_99 = arith.constant 3 : index
    %c0_100 = arith.constant 0 : index
    %c1_101 = arith.constant 1 : index
    %177 = vector.load %arg11[%c3_99, %c0_100, %c1_101] : memref<8x10x10xf32, #tpu.memory_space<vmem>>, vector<1x8x8xf32>
    %178 = vector.shape_cast %177 : vector<1x8x8xf32> to vector<8x8xf32>
    %179 = vector.broadcast %176 : f32 to vector<8x8xf32>
    %180 = arith.mulf %179, %178 : vector<8x8xf32>
    %181 = arith.addf %175, %180 : vector<8x8xf32>
    %c29 = arith.constant 29 : index
    %182 = memref.load %arg2[%c29] : memref<288xf32, #tpu.memory_space<smem>>
    %c3_102 = arith.constant 3 : index
    %c0_103 = arith.constant 0 : index
    %c2_104 = arith.constant 2 : index
    %183 = vector.load %arg11[%c3_102, %c0_103, %c2_104] : memref<8x10x10xf32, #tpu.memory_space<vmem>>, vector<1x8x8xf32>
    %184 = vector.shape_cast %183 : vector<1x8x8xf32> to vector<8x8xf32>
    %185 = vector.broadcast %182 : f32 to vector<8x8xf32>
    %186 = arith.mulf %185, %184 : vector<8x8xf32>
    %187 = arith.addf %181, %186 : vector<8x8xf32>
    %c30 = arith.constant 30 : index
    %188 = memref.load %arg2[%c30] : memref<288xf32, #tpu.memory_space<smem>>
    %c3_105 = arith.constant 3 : index
    %c1_106 = arith.constant 1 : index
    %c0_107 = arith.constant 0 : index
    %189 = vector.load %arg11[%c3_105, %c1_106, %c0_107] : memref<8x10x10xf32, #tpu.memory_space<vmem>>, vector<1x8x8xf32>
    %190 = vector.shape_cast %189 : vector<1x8x8xf32> to vector<8x8xf32>
    %191 = vector.broadcast %188 : f32 to vector<8x8xf32>
    %192 = arith.mulf %191, %190 : vector<8x8xf32>
    %193 = arith.addf %187, %192 : vector<8x8xf32>
    %c31 = arith.constant 31 : index
    %194 = memref.load %arg2[%c31] : memref<288xf32, #tpu.memory_space<smem>>
    %c3_108 = arith.constant 3 : index
    %c1_109 = arith.constant 1 : index
    %c1_110 = arith.constant 1 : index
    %195 = vector.load %arg11[%c3_108, %c1_109, %c1_110] : memref<8x10x10xf32, #tpu.memory_space<vmem>>, vector<1x8x8xf32>
    %196 = vector.shape_cast %195 : vector<1x8x8xf32> to vector<8x8xf32>
    %197 = vector.broadcast %194 : f32 to vector<8x8xf32>
    %198 = arith.mulf %197, %196 : vector<8x8xf32>
    %199 = arith.addf %193, %198 : vector<8x8xf32>
    %c32 = arith.constant 32 : index
    %200 = memref.load %arg2[%c32] : memref<288xf32, #tpu.memory_space<smem>>
    %c3_111 = arith.constant 3 : index
    %c1_112 = arith.constant 1 : index
    %c2_113 = arith.constant 2 : index
    %201 = vector.load %arg11[%c3_111, %c1_112, %c2_113] : memref<8x10x10xf32, #tpu.memory_space<vmem>>, vector<1x8x8xf32>
    %202 = vector.shape_cast %201 : vector<1x8x8xf32> to vector<8x8xf32>
    %203 = vector.broadcast %200 : f32 to vector<8x8xf32>
    %204 = arith.mulf %203, %202 : vector<8x8xf32>
    %205 = arith.addf %199, %204 : vector<8x8xf32>
    %c33 = arith.constant 33 : index
    %206 = memref.load %arg2[%c33] : memref<288xf32, #tpu.memory_space<smem>>
    %c3_114 = arith.constant 3 : index
    %c2_115 = arith.constant 2 : index
    %c0_116 = arith.constant 0 : index
    %207 = vector.load %arg11[%c3_114, %c2_115, %c0_116] : memref<8x10x10xf32, #tpu.memory_space<vmem>>, vector<1x8x8xf32>
    %208 = vector.shape_cast %207 : vector<1x8x8xf32> to vector<8x8xf32>
    %209 = vector.broadcast %206 : f32 to vector<8x8xf32>
    %210 = arith.mulf %209, %208 : vector<8x8xf32>
    %211 = arith.addf %205, %210 : vector<8x8xf32>
    %c34 = arith.constant 34 : index
    %212 = memref.load %arg2[%c34] : memref<288xf32, #tpu.memory_space<smem>>
    %c3_117 = arith.constant 3 : index
    %c2_118 = arith.constant 2 : index
    %c1_119 = arith.constant 1 : index
    %213 = vector.load %arg11[%c3_117, %c2_118, %c1_119] : memref<8x10x10xf32, #tpu.memory_space<vmem>>, vector<1x8x8xf32>
    %214 = vector.shape_cast %213 : vector<1x8x8xf32> to vector<8x8xf32>
    %215 = vector.broadcast %212 : f32 to vector<8x8xf32>
    %216 = arith.mulf %215, %214 : vector<8x8xf32>
    %217 = arith.addf %211, %216 : vector<8x8xf32>
    %c35 = arith.constant 35 : index
    %218 = memref.load %arg2[%c35] : memref<288xf32, #tpu.memory_space<smem>>
    %c3_120 = arith.constant 3 : index
    %c2_121 = arith.constant 2 : index
    %c2_122 = arith.constant 2 : index
    %219 = vector.load %arg11[%c3_120, %c2_121, %c2_122] : memref<8x10x10xf32, #tpu.memory_space<vmem>>, vector<1x8x8xf32>
    %220 = vector.shape_cast %219 : vector<1x8x8xf32> to vector<8x8xf32>
    %221 = vector.broadcast %218 : f32 to vector<8x8xf32>
    %222 = arith.mulf %221, %220 : vector<8x8xf32>
    %223 = arith.addf %217, %222 : vector<8x8xf32>
    %c36 = arith.constant 36 : index
    %224 = memref.load %arg2[%c36] : memref<288xf32, #tpu.memory_space<smem>>
    %c4_123 = arith.constant 4 : index
    %c0_124 = arith.constant 0 : index
    %c0_125 = arith.constant 0 : index
    %225 = vector.load %arg11[%c4_123, %c0_124, %c0_125] : memref<8x10x10xf32, #tpu.memory_space<vmem>>, vector<1x8x8xf32>
    %226 = vector.shape_cast %225 : vector<1x8x8xf32> to vector<8x8xf32>
    %227 = vector.broadcast %224 : f32 to vector<8x8xf32>
    %228 = arith.mulf %227, %226 : vector<8x8xf32>
    %229 = arith.addf %223, %228 : vector<8x8xf32>
    %c37 = arith.constant 37 : index
    %230 = memref.load %arg2[%c37] : memref<288xf32, #tpu.memory_space<smem>>
    %c4_126 = arith.constant 4 : index
    %c0_127 = arith.constant 0 : index
    %c1_128 = arith.constant 1 : index
    %231 = vector.load %arg11[%c4_126, %c0_127, %c1_128] : memref<8x10x10xf32, #tpu.memory_space<vmem>>, vector<1x8x8xf32>
    %232 = vector.shape_cast %231 : vector<1x8x8xf32> to vector<8x8xf32>
    %233 = vector.broadcast %230 : f32 to vector<8x8xf32>
    %234 = arith.mulf %233, %232 : vector<8x8xf32>
    %235 = arith.addf %229, %234 : vector<8x8xf32>
    %c38 = arith.constant 38 : index
    %236 = memref.load %arg2[%c38] : memref<288xf32, #tpu.memory_space<smem>>
    %c4_129 = arith.constant 4 : index
    %c0_130 = arith.constant 0 : index
    %c2_131 = arith.constant 2 : index
    %237 = vector.load %arg11[%c4_129, %c0_130, %c2_131] : memref<8x10x10xf32, #tpu.memory_space<vmem>>, vector<1x8x8xf32>
    %238 = vector.shape_cast %237 : vector<1x8x8xf32> to vector<8x8xf32>
    %239 = vector.broadcast %236 : f32 to vector<8x8xf32>
    %240 = arith.mulf %239, %238 : vector<8x8xf32>
    %241 = arith.addf %235, %240 : vector<8x8xf32>
    %c39 = arith.constant 39 : index
    %242 = memref.load %arg2[%c39] : memref<288xf32, #tpu.memory_space<smem>>
    %c4_132 = arith.constant 4 : index
    %c1_133 = arith.constant 1 : index
    %c0_134 = arith.constant 0 : index
    %243 = vector.load %arg11[%c4_132, %c1_133, %c0_134] : memref<8x10x10xf32, #tpu.memory_space<vmem>>, vector<1x8x8xf32>
    %244 = vector.shape_cast %243 : vector<1x8x8xf32> to vector<8x8xf32>
    %245 = vector.broadcast %242 : f32 to vector<8x8xf32>
    %246 = arith.mulf %245, %244 : vector<8x8xf32>
    %247 = arith.addf %241, %246 : vector<8x8xf32>
    %c40 = arith.constant 40 : index
    %248 = memref.load %arg2[%c40] : memref<288xf32, #tpu.memory_space<smem>>
    %c4_135 = arith.constant 4 : index
    %c1_136 = arith.constant 1 : index
    %c1_137 = arith.constant 1 : index
    %249 = vector.load %arg11[%c4_135, %c1_136, %c1_137] : memref<8x10x10xf32, #tpu.memory_space<vmem>>, vector<1x8x8xf32>
    %250 = vector.shape_cast %249 : vector<1x8x8xf32> to vector<8x8xf32>
    %251 = vector.broadcast %248 : f32 to vector<8x8xf32>
    %252 = arith.mulf %251, %250 : vector<8x8xf32>
    %253 = arith.addf %247, %252 : vector<8x8xf32>
    %c41 = arith.constant 41 : index
    %254 = memref.load %arg2[%c41] : memref<288xf32, #tpu.memory_space<smem>>
    %c4_138 = arith.constant 4 : index
    %c1_139 = arith.constant 1 : index
    %c2_140 = arith.constant 2 : index
    %255 = vector.load %arg11[%c4_138, %c1_139, %c2_140] : memref<8x10x10xf32, #tpu.memory_space<vmem>>, vector<1x8x8xf32>
    %256 = vector.shape_cast %255 : vector<1x8x8xf32> to vector<8x8xf32>
    %257 = vector.broadcast %254 : f32 to vector<8x8xf32>
    %258 = arith.mulf %257, %256 : vector<8x8xf32>
    %259 = arith.addf %253, %258 : vector<8x8xf32>
    %c42 = arith.constant 42 : index
    %260 = memref.load %arg2[%c42] : memref<288xf32, #tpu.memory_space<smem>>
    %c4_141 = arith.constant 4 : index
    %c2_142 = arith.constant 2 : index
    %c0_143 = arith.constant 0 : index
    %261 = vector.load %arg11[%c4_141, %c2_142, %c0_143] : memref<8x10x10xf32, #tpu.memory_space<vmem>>, vector<1x8x8xf32>
    %262 = vector.shape_cast %261 : vector<1x8x8xf32> to vector<8x8xf32>
    %263 = vector.broadcast %260 : f32 to vector<8x8xf32>
    %264 = arith.mulf %263, %262 : vector<8x8xf32>
    %265 = arith.addf %259, %264 : vector<8x8xf32>
    %c43 = arith.constant 43 : index
    %266 = memref.load %arg2[%c43] : memref<288xf32, #tpu.memory_space<smem>>
    %c4_144 = arith.constant 4 : index
    %c2_145 = arith.constant 2 : index
    %c1_146 = arith.constant 1 : index
    %267 = vector.load %arg11[%c4_144, %c2_145, %c1_146] : memref<8x10x10xf32, #tpu.memory_space<vmem>>, vector<1x8x8xf32>
    %268 = vector.shape_cast %267 : vector<1x8x8xf32> to vector<8x8xf32>
    %269 = vector.broadcast %266 : f32 to vector<8x8xf32>
    %270 = arith.mulf %269, %268 : vector<8x8xf32>
    %271 = arith.addf %265, %270 : vector<8x8xf32>
    %c44 = arith.constant 44 : index
    %272 = memref.load %arg2[%c44] : memref<288xf32, #tpu.memory_space<smem>>
    %c4_147 = arith.constant 4 : index
    %c2_148 = arith.constant 2 : index
    %c2_149 = arith.constant 2 : index
    %273 = vector.load %arg11[%c4_147, %c2_148, %c2_149] : memref<8x10x10xf32, #tpu.memory_space<vmem>>, vector<1x8x8xf32>
    %274 = vector.shape_cast %273 : vector<1x8x8xf32> to vector<8x8xf32>
    %275 = vector.broadcast %272 : f32 to vector<8x8xf32>
    %276 = arith.mulf %275, %274 : vector<8x8xf32>
    %277 = arith.addf %271, %276 : vector<8x8xf32>
    %c45 = arith.constant 45 : index
    %278 = memref.load %arg2[%c45] : memref<288xf32, #tpu.memory_space<smem>>
    %c5_150 = arith.constant 5 : index
    %c0_151 = arith.constant 0 : index
    %c0_152 = arith.constant 0 : index
    %279 = vector.load %arg11[%c5_150, %c0_151, %c0_152] : memref<8x10x10xf32, #tpu.memory_space<vmem>>, vector<1x8x8xf32>
    %280 = vector.shape_cast %279 : vector<1x8x8xf32> to vector<8x8xf32>
    %281 = vector.broadcast %278 : f32 to vector<8x8xf32>
    %282 = arith.mulf %281, %280 : vector<8x8xf32>
    %283 = arith.addf %277, %282 : vector<8x8xf32>
    %c46 = arith.constant 46 : index
    %284 = memref.load %arg2[%c46] : memref<288xf32, #tpu.memory_space<smem>>
    %c5_153 = arith.constant 5 : index
    %c0_154 = arith.constant 0 : index
    %c1_155 = arith.constant 1 : index
    %285 = vector.load %arg11[%c5_153, %c0_154, %c1_155] : memref<8x10x10xf32, #tpu.memory_space<vmem>>, vector<1x8x8xf32>
    %286 = vector.shape_cast %285 : vector<1x8x8xf32> to vector<8x8xf32>
    %287 = vector.broadcast %284 : f32 to vector<8x8xf32>
    %288 = arith.mulf %287, %286 : vector<8x8xf32>
    %289 = arith.addf %283, %288 : vector<8x8xf32>
    %c47 = arith.constant 47 : index
    %290 = memref.load %arg2[%c47] : memref<288xf32, #tpu.memory_space<smem>>
    %c5_156 = arith.constant 5 : index
    %c0_157 = arith.constant 0 : index
    %c2_158 = arith.constant 2 : index
    %291 = vector.load %arg11[%c5_156, %c0_157, %c2_158] : memref<8x10x10xf32, #tpu.memory_space<vmem>>, vector<1x8x8xf32>
    %292 = vector.shape_cast %291 : vector<1x8x8xf32> to vector<8x8xf32>
    %293 = vector.broadcast %290 : f32 to vector<8x8xf32>
    %294 = arith.mulf %293, %292 : vector<8x8xf32>
    %295 = arith.addf %289, %294 : vector<8x8xf32>
    %c48 = arith.constant 48 : index
    %296 = memref.load %arg2[%c48] : memref<288xf32, #tpu.memory_space<smem>>
    %c5_159 = arith.constant 5 : index
    %c1_160 = arith.constant 1 : index
    %c0_161 = arith.constant 0 : index
    %297 = vector.load %arg11[%c5_159, %c1_160, %c0_161] : memref<8x10x10xf32, #tpu.memory_space<vmem>>, vector<1x8x8xf32>
    %298 = vector.shape_cast %297 : vector<1x8x8xf32> to vector<8x8xf32>
    %299 = vector.broadcast %296 : f32 to vector<8x8xf32>
    %300 = arith.mulf %299, %298 : vector<8x8xf32>
    %301 = arith.addf %295, %300 : vector<8x8xf32>
    %c49 = arith.constant 49 : index
    %302 = memref.load %arg2[%c49] : memref<288xf32, #tpu.memory_space<smem>>
    %c5_162 = arith.constant 5 : index
    %c1_163 = arith.constant 1 : index
    %c1_164 = arith.constant 1 : index
    %303 = vector.load %arg11[%c5_162, %c1_163, %c1_164] : memref<8x10x10xf32, #tpu.memory_space<vmem>>, vector<1x8x8xf32>
    %304 = vector.shape_cast %303 : vector<1x8x8xf32> to vector<8x8xf32>
    %305 = vector.broadcast %302 : f32 to vector<8x8xf32>
    %306 = arith.mulf %305, %304 : vector<8x8xf32>
    %307 = arith.addf %301, %306 : vector<8x8xf32>
    %c50 = arith.constant 50 : index
    %308 = memref.load %arg2[%c50] : memref<288xf32, #tpu.memory_space<smem>>
    %c5_165 = arith.constant 5 : index
    %c1_166 = arith.constant 1 : index
    %c2_167 = arith.constant 2 : index
    %309 = vector.load %arg11[%c5_165, %c1_166, %c2_167] : memref<8x10x10xf32, #tpu.memory_space<vmem>>, vector<1x8x8xf32>
    %310 = vector.shape_cast %309 : vector<1x8x8xf32> to vector<8x8xf32>
    %311 = vector.broadcast %308 : f32 to vector<8x8xf32>
    %312 = arith.mulf %311, %310 : vector<8x8xf32>
    %313 = arith.addf %307, %312 : vector<8x8xf32>
    %c51 = arith.constant 51 : index
    %314 = memref.load %arg2[%c51] : memref<288xf32, #tpu.memory_space<smem>>
    %c5_168 = arith.constant 5 : index
    %c2_169 = arith.constant 2 : index
    %c0_170 = arith.constant 0 : index
    %315 = vector.load %arg11[%c5_168, %c2_169, %c0_170] : memref<8x10x10xf32, #tpu.memory_space<vmem>>, vector<1x8x8xf32>
    %316 = vector.shape_cast %315 : vector<1x8x8xf32> to vector<8x8xf32>
    %317 = vector.broadcast %314 : f32 to vector<8x8xf32>
    %318 = arith.mulf %317, %316 : vector<8x8xf32>
    %319 = arith.addf %313, %318 : vector<8x8xf32>
    %c52 = arith.constant 52 : index
    %320 = memref.load %arg2[%c52] : memref<288xf32, #tpu.memory_space<smem>>
    %c5_171 = arith.constant 5 : index
    %c2_172 = arith.constant 2 : index
    %c1_173 = arith.constant 1 : index
    %321 = vector.load %arg11[%c5_171, %c2_172, %c1_173] : memref<8x10x10xf32, #tpu.memory_space<vmem>>, vector<1x8x8xf32>
    %322 = vector.shape_cast %321 : vector<1x8x8xf32> to vector<8x8xf32>
    %323 = vector.broadcast %320 : f32 to vector<8x8xf32>
    %324 = arith.mulf %323, %322 : vector<8x8xf32>
    %325 = arith.addf %319, %324 : vector<8x8xf32>
    %c53 = arith.constant 53 : index
    %326 = memref.load %arg2[%c53] : memref<288xf32, #tpu.memory_space<smem>>
    %c5_174 = arith.constant 5 : index
    %c2_175 = arith.constant 2 : index
    %c2_176 = arith.constant 2 : index
    %327 = vector.load %arg11[%c5_174, %c2_175, %c2_176] : memref<8x10x10xf32, #tpu.memory_space<vmem>>, vector<1x8x8xf32>
    %328 = vector.shape_cast %327 : vector<1x8x8xf32> to vector<8x8xf32>
    %329 = vector.broadcast %326 : f32 to vector<8x8xf32>
    %330 = arith.mulf %329, %328 : vector<8x8xf32>
    %331 = arith.addf %325, %330 : vector<8x8xf32>
    %c54 = arith.constant 54 : index
    %332 = memref.load %arg2[%c54] : memref<288xf32, #tpu.memory_space<smem>>
    %c6_177 = arith.constant 6 : index
    %c0_178 = arith.constant 0 : index
    %c0_179 = arith.constant 0 : index
    %333 = vector.load %arg11[%c6_177, %c0_178, %c0_179] : memref<8x10x10xf32, #tpu.memory_space<vmem>>, vector<1x8x8xf32>
    %334 = vector.shape_cast %333 : vector<1x8x8xf32> to vector<8x8xf32>
    %335 = vector.broadcast %332 : f32 to vector<8x8xf32>
    %336 = arith.mulf %335, %334 : vector<8x8xf32>
    %337 = arith.addf %331, %336 : vector<8x8xf32>
    %c55 = arith.constant 55 : index
    %338 = memref.load %arg2[%c55] : memref<288xf32, #tpu.memory_space<smem>>
    %c6_180 = arith.constant 6 : index
    %c0_181 = arith.constant 0 : index
    %c1_182 = arith.constant 1 : index
    %339 = vector.load %arg11[%c6_180, %c0_181, %c1_182] : memref<8x10x10xf32, #tpu.memory_space<vmem>>, vector<1x8x8xf32>
    %340 = vector.shape_cast %339 : vector<1x8x8xf32> to vector<8x8xf32>
    %341 = vector.broadcast %338 : f32 to vector<8x8xf32>
    %342 = arith.mulf %341, %340 : vector<8x8xf32>
    %343 = arith.addf %337, %342 : vector<8x8xf32>
    %c56 = arith.constant 56 : index
    %344 = memref.load %arg2[%c56] : memref<288xf32, #tpu.memory_space<smem>>
    %c6_183 = arith.constant 6 : index
    %c0_184 = arith.constant 0 : index
    %c2_185 = arith.constant 2 : index
    %345 = vector.load %arg11[%c6_183, %c0_184, %c2_185] : memref<8x10x10xf32, #tpu.memory_space<vmem>>, vector<1x8x8xf32>
    %346 = vector.shape_cast %345 : vector<1x8x8xf32> to vector<8x8xf32>
    %347 = vector.broadcast %344 : f32 to vector<8x8xf32>
    %348 = arith.mulf %347, %346 : vector<8x8xf32>
    %349 = arith.addf %343, %348 : vector<8x8xf32>
    %c57 = arith.constant 57 : index
    %350 = memref.load %arg2[%c57] : memref<288xf32, #tpu.memory_space<smem>>
    %c6_186 = arith.constant 6 : index
    %c1_187 = arith.constant 1 : index
    %c0_188 = arith.constant 0 : index
    %351 = vector.load %arg11[%c6_186, %c1_187, %c0_188] : memref<8x10x10xf32, #tpu.memory_space<vmem>>, vector<1x8x8xf32>
    %352 = vector.shape_cast %351 : vector<1x8x8xf32> to vector<8x8xf32>
    %353 = vector.broadcast %350 : f32 to vector<8x8xf32>
    %354 = arith.mulf %353, %352 : vector<8x8xf32>
    %355 = arith.addf %349, %354 : vector<8x8xf32>
    %c58 = arith.constant 58 : index
    %356 = memref.load %arg2[%c58] : memref<288xf32, #tpu.memory_space<smem>>
    %c6_189 = arith.constant 6 : index
    %c1_190 = arith.constant 1 : index
    %c1_191 = arith.constant 1 : index
    %357 = vector.load %arg11[%c6_189, %c1_190, %c1_191] : memref<8x10x10xf32, #tpu.memory_space<vmem>>, vector<1x8x8xf32>
    %358 = vector.shape_cast %357 : vector<1x8x8xf32> to vector<8x8xf32>
    %359 = vector.broadcast %356 : f32 to vector<8x8xf32>
    %360 = arith.mulf %359, %358 : vector<8x8xf32>
    %361 = arith.addf %355, %360 : vector<8x8xf32>
    %c59 = arith.constant 59 : index
    %362 = memref.load %arg2[%c59] : memref<288xf32, #tpu.memory_space<smem>>
    %c6_192 = arith.constant 6 : index
    %c1_193 = arith.constant 1 : index
    %c2_194 = arith.constant 2 : index
    %363 = vector.load %arg11[%c6_192, %c1_193, %c2_194] : memref<8x10x10xf32, #tpu.memory_space<vmem>>, vector<1x8x8xf32>
    %364 = vector.shape_cast %363 : vector<1x8x8xf32> to vector<8x8xf32>
    %365 = vector.broadcast %362 : f32 to vector<8x8xf32>
    %366 = arith.mulf %365, %364 : vector<8x8xf32>
    %367 = arith.addf %361, %366 : vector<8x8xf32>
    %c60 = arith.constant 60 : index
    %368 = memref.load %arg2[%c60] : memref<288xf32, #tpu.memory_space<smem>>
    %c6_195 = arith.constant 6 : index
    %c2_196 = arith.constant 2 : index
    %c0_197 = arith.constant 0 : index
    %369 = vector.load %arg11[%c6_195, %c2_196, %c0_197] : memref<8x10x10xf32, #tpu.memory_space<vmem>>, vector<1x8x8xf32>
    %370 = vector.shape_cast %369 : vector<1x8x8xf32> to vector<8x8xf32>
    %371 = vector.broadcast %368 : f32 to vector<8x8xf32>
    %372 = arith.mulf %371, %370 : vector<8x8xf32>
    %373 = arith.addf %367, %372 : vector<8x8xf32>
    %c61 = arith.constant 61 : index
    %374 = memref.load %arg2[%c61] : memref<288xf32, #tpu.memory_space<smem>>
    %c6_198 = arith.constant 6 : index
    %c2_199 = arith.constant 2 : index
    %c1_200 = arith.constant 1 : index
    %375 = vector.load %arg11[%c6_198, %c2_199, %c1_200] : memref<8x10x10xf32, #tpu.memory_space<vmem>>, vector<1x8x8xf32>
    %376 = vector.shape_cast %375 : vector<1x8x8xf32> to vector<8x8xf32>
    %377 = vector.broadcast %374 : f32 to vector<8x8xf32>
    %378 = arith.mulf %377, %376 : vector<8x8xf32>
    %379 = arith.addf %373, %378 : vector<8x8xf32>
    %c62 = arith.constant 62 : index
    %380 = memref.load %arg2[%c62] : memref<288xf32, #tpu.memory_space<smem>>
    %c6_201 = arith.constant 6 : index
    %c2_202 = arith.constant 2 : index
    %c2_203 = arith.constant 2 : index
    %381 = vector.load %arg11[%c6_201, %c2_202, %c2_203] : memref<8x10x10xf32, #tpu.memory_space<vmem>>, vector<1x8x8xf32>
    %382 = vector.shape_cast %381 : vector<1x8x8xf32> to vector<8x8xf32>
    %383 = vector.broadcast %380 : f32 to vector<8x8xf32>
    %384 = arith.mulf %383, %382 : vector<8x8xf32>
    %385 = arith.addf %379, %384 : vector<8x8xf32>
    %c63 = arith.constant 63 : index
    %386 = memref.load %arg2[%c63] : memref<288xf32, #tpu.memory_space<smem>>
    %c7_204 = arith.constant 7 : index
    %c0_205 = arith.constant 0 : index
    %c0_206 = arith.constant 0 : index
    %387 = vector.load %arg11[%c7_204, %c0_205, %c0_206] : memref<8x10x10xf32, #tpu.memory_space<vmem>>, vector<1x8x8xf32>
    %388 = vector.shape_cast %387 : vector<1x8x8xf32> to vector<8x8xf32>
    %389 = vector.broadcast %386 : f32 to vector<8x8xf32>
    %390 = arith.mulf %389, %388 : vector<8x8xf32>
    %391 = arith.addf %385, %390 : vector<8x8xf32>
    %c64 = arith.constant 64 : index
    %392 = memref.load %arg2[%c64] : memref<288xf32, #tpu.memory_space<smem>>
    %c7_207 = arith.constant 7 : index
    %c0_208 = arith.constant 0 : index
    %c1_209 = arith.constant 1 : index
    %393 = vector.load %arg11[%c7_207, %c0_208, %c1_209] : memref<8x10x10xf32, #tpu.memory_space<vmem>>, vector<1x8x8xf32>
    %394 = vector.shape_cast %393 : vector<1x8x8xf32> to vector<8x8xf32>
    %395 = vector.broadcast %392 : f32 to vector<8x8xf32>
    %396 = arith.mulf %395, %394 : vector<8x8xf32>
    %397 = arith.addf %391, %396 : vector<8x8xf32>
    %c65 = arith.constant 65 : index
    %398 = memref.load %arg2[%c65] : memref<288xf32, #tpu.memory_space<smem>>
    %c7_210 = arith.constant 7 : index
    %c0_211 = arith.constant 0 : index
    %c2_212 = arith.constant 2 : index
    %399 = vector.load %arg11[%c7_210, %c0_211, %c2_212] : memref<8x10x10xf32, #tpu.memory_space<vmem>>, vector<1x8x8xf32>
    %400 = vector.shape_cast %399 : vector<1x8x8xf32> to vector<8x8xf32>
    %401 = vector.broadcast %398 : f32 to vector<8x8xf32>
    %402 = arith.mulf %401, %400 : vector<8x8xf32>
    %403 = arith.addf %397, %402 : vector<8x8xf32>
    %c66 = arith.constant 66 : index
    %404 = memref.load %arg2[%c66] : memref<288xf32, #tpu.memory_space<smem>>
    %c7_213 = arith.constant 7 : index
    %c1_214 = arith.constant 1 : index
    %c0_215 = arith.constant 0 : index
    %405 = vector.load %arg11[%c7_213, %c1_214, %c0_215] : memref<8x10x10xf32, #tpu.memory_space<vmem>>, vector<1x8x8xf32>
    %406 = vector.shape_cast %405 : vector<1x8x8xf32> to vector<8x8xf32>
    %407 = vector.broadcast %404 : f32 to vector<8x8xf32>
    %408 = arith.mulf %407, %406 : vector<8x8xf32>
    %409 = arith.addf %403, %408 : vector<8x8xf32>
    %c67 = arith.constant 67 : index
    %410 = memref.load %arg2[%c67] : memref<288xf32, #tpu.memory_space<smem>>
    %c7_216 = arith.constant 7 : index
    %c1_217 = arith.constant 1 : index
    %c1_218 = arith.constant 1 : index
    %411 = vector.load %arg11[%c7_216, %c1_217, %c1_218] : memref<8x10x10xf32, #tpu.memory_space<vmem>>, vector<1x8x8xf32>
    %412 = vector.shape_cast %411 : vector<1x8x8xf32> to vector<8x8xf32>
    %413 = vector.broadcast %410 : f32 to vector<8x8xf32>
    %414 = arith.mulf %413, %412 : vector<8x8xf32>
    %415 = arith.addf %409, %414 : vector<8x8xf32>
    %c68 = arith.constant 68 : index
    %416 = memref.load %arg2[%c68] : memref<288xf32, #tpu.memory_space<smem>>
    %c7_219 = arith.constant 7 : index
    %c1_220 = arith.constant 1 : index
    %c2_221 = arith.constant 2 : index
    %417 = vector.load %arg11[%c7_219, %c1_220, %c2_221] : memref<8x10x10xf32, #tpu.memory_space<vmem>>, vector<1x8x8xf32>
    %418 = vector.shape_cast %417 : vector<1x8x8xf32> to vector<8x8xf32>
    %419 = vector.broadcast %416 : f32 to vector<8x8xf32>
    %420 = arith.mulf %419, %418 : vector<8x8xf32>
    %421 = arith.addf %415, %420 : vector<8x8xf32>
    %c69 = arith.constant 69 : index
    %422 = memref.load %arg2[%c69] : memref<288xf32, #tpu.memory_space<smem>>
    %c7_222 = arith.constant 7 : index
    %c2_223 = arith.constant 2 : index
    %c0_224 = arith.constant 0 : index
    %423 = vector.load %arg11[%c7_222, %c2_223, %c0_224] : memref<8x10x10xf32, #tpu.memory_space<vmem>>, vector<1x8x8xf32>
    %424 = vector.shape_cast %423 : vector<1x8x8xf32> to vector<8x8xf32>
    %425 = vector.broadcast %422 : f32 to vector<8x8xf32>
    %426 = arith.mulf %425, %424 : vector<8x8xf32>
    %427 = arith.addf %421, %426 : vector<8x8xf32>
    %c70 = arith.constant 70 : index
    %428 = memref.load %arg2[%c70] : memref<288xf32, #tpu.memory_space<smem>>
    %c7_225 = arith.constant 7 : index
    %c2_226 = arith.constant 2 : index
    %c1_227 = arith.constant 1 : index
    %429 = vector.load %arg11[%c7_225, %c2_226, %c1_227] : memref<8x10x10xf32, #tpu.memory_space<vmem>>, vector<1x8x8xf32>
    %430 = vector.shape_cast %429 : vector<1x8x8xf32> to vector<8x8xf32>
    %431 = vector.broadcast %428 : f32 to vector<8x8xf32>
    %432 = arith.mulf %431, %430 : vector<8x8xf32>
    %433 = arith.addf %427, %432 : vector<8x8xf32>
    %c71 = arith.constant 71 : index
    %434 = memref.load %arg2[%c71] : memref<288xf32, #tpu.memory_space<smem>>
    %c7_228 = arith.constant 7 : index
    %c2_229 = arith.constant 2 : index
    %c2_230 = arith.constant 2 : index
    %435 = vector.load %arg11[%c7_228, %c2_229, %c2_230] : memref<8x10x10xf32, #tpu.memory_space<vmem>>, vector<1x8x8xf32>
    %436 = vector.shape_cast %435 : vector<1x8x8xf32> to vector<8x8xf32>
    %437 = vector.broadcast %434 : f32 to vector<8x8xf32>
    %438 = arith.mulf %437, %436 : vector<8x8xf32>
    %439 = arith.addf %433, %438 : vector<8x8xf32>
    %c0_231 = arith.constant 0 : index
    %440 = memref.load %arg3[%c0_231] : memref<4xf32, #tpu.memory_space<smem>>
    %441 = vector.broadcast %440 : f32 to vector<8x8xf32>
    %442 = arith.mulf %439, %441 : vector<8x8xf32>
    %c0_232 = arith.constant 0 : index
    %443 = memref.load %arg4[%c0_232] : memref<4xf32, #tpu.memory_space<smem>>
    %444 = vector.broadcast %443 : f32 to vector<8x8xf32>
    %445 = arith.addf %442, %444 : vector<8x8xf32>
    %cst_233 = arith.constant 0.000000e+00 : f32
    %446 = vector.broadcast %cst_233 : f32 to vector<8x8xf32>
    %447 = arith.cmpf ogt, %445, %446 : vector<8x8xf32>
    %cst_234 = arith.constant 0.00999999977 : f32
    %448 = vector.broadcast %cst_234 : f32 to vector<8x8xf32>
    %449 = arith.mulf %448, %445 : vector<8x8xf32>
    %450 = arith.select %447, %445, %449 : vector<8x8xi1>, vector<8x8xf32>
    %c0_235 = arith.constant 0 : index
    %c1_236 = arith.constant 1 : index
    %c1_237 = arith.constant 1 : index
    %451 = vector.load %arg12[%c0_235, %c1_236, %c1_237] : memref<4x10x10xf32, #tpu.memory_space<vmem>>, vector<1x8x8xf32>
    %452 = vector.shape_cast %451 : vector<1x8x8xf32> to vector<8x8xf32>
    %453 = vector.shape_cast %450 : vector<8x8xf32> to vector<1x8x8xf32>
    tpu.vector_store %arg12[%c0_235, %c1_236, %c1_237], %453 {strides = array<i32>} : memref<4x10x10xf32, #tpu.memory_space<vmem>>, vector<1x8x8xf32>,
    %cst_238 = arith.constant 0.000000e+00 : f32
    %454 = vector.broadcast %cst_238 : f32 to vector<8x8xf32>
    %c72 = arith.constant 72 : index
    %455 = memref.load %arg2[%c72] : memref<288xf32, #tpu.memory_space<smem>>
    %c0_239 = arith.constant 0 : index
    %c0_240 = arith.constant 0 : index
    %c0_241 = arith.constant 0 : index
    %456 = vector.load %arg11[%c0_239, %c0_240, %c0_241] : memref<8x10x10xf32, #tpu.memory_space<vmem>>, vector<1x8x8xf32>
    %457 = vector.shape_cast %456 : vector<1x8x8xf32> to vector<8x8xf32>
    %458 = vector.broadcast %455 : f32 to vector<8x8xf32>
    %459 = arith.mulf %458, %457 : vector<8x8xf32>
    %460 = arith.addf %454, %459 : vector<8x8xf32>
    %c73 = arith.constant 73 : index
    %461 = memref.load %arg2[%c73] : memref<288xf32, #tpu.memory_space<smem>>
    %c0_242 = arith.constant 0 : index
    %c0_243 = arith.constant 0 : index
    %c1_244 = arith.constant 1 : index
    %462 = vector.load %arg11[%c0_242, %c0_243, %c1_244] : memref<8x10x10xf32, #tpu.memory_space<vmem>>, vector<1x8x8xf32>
    %463 = vector.shape_cast %462 : vector<1x8x8xf32> to vector<8x8xf32>
    %464 = vector.broadcast %461 : f32 to vector<8x8xf32>
    %465 = arith.mulf %464, %463 : vector<8x8xf32>
    %466 = arith.addf %460, %465 : vector<8x8xf32>
    %c74 = arith.constant 74 : index
    %467 = memref.load %arg2[%c74] : memref<288xf32, #tpu.memory_space<smem>>
    %c0_245 = arith.constant 0 : index
    %c0_246 = arith.constant 0 : index
    %c2_247 = arith.constant 2 : index
    %468 = vector.load %arg11[%c0_245, %c0_246, %c2_247] : memref<8x10x10xf32, #tpu.memory_space<vmem>>, vector<1x8x8xf32>
    %469 = vector.shape_cast %468 : vector<1x8x8xf32> to vector<8x8xf32>
    %470 = vector.broadcast %467 : f32 to vector<8x8xf32>
    %471 = arith.mulf %470, %469 : vector<8x8xf32>
    %472 = arith.addf %466, %471 : vector<8x8xf32>
    %c75 = arith.constant 75 : index
    %473 = memref.load %arg2[%c75] : memref<288xf32, #tpu.memory_space<smem>>
    %c0_248 = arith.constant 0 : index
    %c1_249 = arith.constant 1 : index
    %c0_250 = arith.constant 0 : index
    %474 = vector.load %arg11[%c0_248, %c1_249, %c0_250] : memref<8x10x10xf32, #tpu.memory_space<vmem>>, vector<1x8x8xf32>
    %475 = vector.shape_cast %474 : vector<1x8x8xf32> to vector<8x8xf32>
    %476 = vector.broadcast %473 : f32 to vector<8x8xf32>
    %477 = arith.mulf %476, %475 : vector<8x8xf32>
    %478 = arith.addf %472, %477 : vector<8x8xf32>
    %c76 = arith.constant 76 : index
    %479 = memref.load %arg2[%c76] : memref<288xf32, #tpu.memory_space<smem>>
    %c0_251 = arith.constant 0 : index
    %c1_252 = arith.constant 1 : index
    %c1_253 = arith.constant 1 : index
    %480 = vector.load %arg11[%c0_251, %c1_252, %c1_253] : memref<8x10x10xf32, #tpu.memory_space<vmem>>, vector<1x8x8xf32>
    %481 = vector.shape_cast %480 : vector<1x8x8xf32> to vector<8x8xf32>
    %482 = vector.broadcast %479 : f32 to vector<8x8xf32>
    %483 = arith.mulf %482, %481 : vector<8x8xf32>
    %484 = arith.addf %478, %483 : vector<8x8xf32>
    %c77 = arith.constant 77 : index
    %485 = memref.load %arg2[%c77] : memref<288xf32, #tpu.memory_space<smem>>
    %c0_254 = arith.constant 0 : index
    %c1_255 = arith.constant 1 : index
    %c2_256 = arith.constant 2 : index
    %486 = vector.load %arg11[%c0_254, %c1_255, %c2_256] : memref<8x10x10xf32, #tpu.memory_space<vmem>>, vector<1x8x8xf32>
    %487 = vector.shape_cast %486 : vector<1x8x8xf32> to vector<8x8xf32>
    %488 = vector.broadcast %485 : f32 to vector<8x8xf32>
    %489 = arith.mulf %488, %487 : vector<8x8xf32>
    %490 = arith.addf %484, %489 : vector<8x8xf32>
    %c78 = arith.constant 78 : index
    %491 = memref.load %arg2[%c78] : memref<288xf32, #tpu.memory_space<smem>>
    %c0_257 = arith.constant 0 : index
    %c2_258 = arith.constant 2 : index
    %c0_259 = arith.constant 0 : index
    %492 = vector.load %arg11[%c0_257, %c2_258, %c0_259] : memref<8x10x10xf32, #tpu.memory_space<vmem>>, vector<1x8x8xf32>
    %493 = vector.shape_cast %492 : vector<1x8x8xf32> to vector<8x8xf32>
    %494 = vector.broadcast %491 : f32 to vector<8x8xf32>
    %495 = arith.mulf %494, %493 : vector<8x8xf32>
    %496 = arith.addf %490, %495 : vector<8x8xf32>
    %c79 = arith.constant 79 : index
    %497 = memref.load %arg2[%c79] : memref<288xf32, #tpu.memory_space<smem>>
    %c0_260 = arith.constant 0 : index
    %c2_261 = arith.constant 2 : index
    %c1_262 = arith.constant 1 : index
    %498 = vector.load %arg11[%c0_260, %c2_261, %c1_262] : memref<8x10x10xf32, #tpu.memory_space<vmem>>, vector<1x8x8xf32>
    %499 = vector.shape_cast %498 : vector<1x8x8xf32> to vector<8x8xf32>
    %500 = vector.broadcast %497 : f32 to vector<8x8xf32>
    %501 = arith.mulf %500, %499 : vector<8x8xf32>
    %502 = arith.addf %496, %501 : vector<8x8xf32>
    %c80 = arith.constant 80 : index
    %503 = memref.load %arg2[%c80] : memref<288xf32, #tpu.memory_space<smem>>
    %c0_263 = arith.constant 0 : index
    %c2_264 = arith.constant 2 : index
    %c2_265 = arith.constant 2 : index
    %504 = vector.load %arg11[%c0_263, %c2_264, %c2_265] : memref<8x10x10xf32, #tpu.memory_space<vmem>>, vector<1x8x8xf32>
    %505 = vector.shape_cast %504 : vector<1x8x8xf32> to vector<8x8xf32>
    %506 = vector.broadcast %503 : f32 to vector<8x8xf32>
    %507 = arith.mulf %506, %505 : vector<8x8xf32>
    %508 = arith.addf %502, %507 : vector<8x8xf32>
    %c81 = arith.constant 81 : index
    %509 = memref.load %arg2[%c81] : memref<288xf32, #tpu.memory_space<smem>>
    %c1_266 = arith.constant 1 : index
    %c0_267 = arith.constant 0 : index
    %c0_268 = arith.constant 0 : index
    %510 = vector.load %arg11[%c1_266, %c0_267, %c0_268] : memref<8x10x10xf32, #tpu.memory_space<vmem>>, vector<1x8x8xf32>
    %511 = vector.shape_cast %510 : vector<1x8x8xf32> to vector<8x8xf32>
    %512 = vector.broadcast %509 : f32 to vector<8x8xf32>
    %513 = arith.mulf %512, %511 : vector<8x8xf32>
    %514 = arith.addf %508, %513 : vector<8x8xf32>
    %c82 = arith.constant 82 : index
    %515 = memref.load %arg2[%c82] : memref<288xf32, #tpu.memory_space<smem>>
    %c1_269 = arith.constant 1 : index
    %c0_270 = arith.constant 0 : index
    %c1_271 = arith.constant 1 : index
    %516 = vector.load %arg11[%c1_269, %c0_270, %c1_271] : memref<8x10x10xf32, #tpu.memory_space<vmem>>, vector<1x8x8xf32>
    %517 = vector.shape_cast %516 : vector<1x8x8xf32> to vector<8x8xf32>
    %518 = vector.broadcast %515 : f32 to vector<8x8xf32>
    %519 = arith.mulf %518, %517 : vector<8x8xf32>
    %520 = arith.addf %514, %519 : vector<8x8xf32>
    %c83 = arith.constant 83 : index
    %521 = memref.load %arg2[%c83] : memref<288xf32, #tpu.memory_space<smem>>
    %c1_272 = arith.constant 1 : index
    %c0_273 = arith.constant 0 : index
    %c2_274 = arith.constant 2 : index
    %522 = vector.load %arg11[%c1_272, %c0_273, %c2_274] : memref<8x10x10xf32, #tpu.memory_space<vmem>>, vector<1x8x8xf32>
    %523 = vector.shape_cast %522 : vector<1x8x8xf32> to vector<8x8xf32>
    %524 = vector.broadcast %521 : f32 to vector<8x8xf32>
    %525 = arith.mulf %524, %523 : vector<8x8xf32>
    %526 = arith.addf %520, %525 : vector<8x8xf32>
    %c84 = arith.constant 84 : index
    %527 = memref.load %arg2[%c84] : memref<288xf32, #tpu.memory_space<smem>>
    %c1_275 = arith.constant 1 : index
    %c1_276 = arith.constant 1 : index
    %c0_277 = arith.constant 0 : index
    %528 = vector.load %arg11[%c1_275, %c1_276, %c0_277] : memref<8x10x10xf32, #tpu.memory_space<vmem>>, vector<1x8x8xf32>
    %529 = vector.shape_cast %528 : vector<1x8x8xf32> to vector<8x8xf32>
    %530 = vector.broadcast %527 : f32 to vector<8x8xf32>
    %531 = arith.mulf %530, %529 : vector<8x8xf32>
    %532 = arith.addf %526, %531 : vector<8x8xf32>
    %c85 = arith.constant 85 : index
    %533 = memref.load %arg2[%c85] : memref<288xf32, #tpu.memory_space<smem>>
    %c1_278 = arith.constant 1 : index
    %c1_279 = arith.constant 1 : index
    %c1_280 = arith.constant 1 : index
    %534 = vector.load %arg11[%c1_278, %c1_279, %c1_280] : memref<8x10x10xf32, #tpu.memory_space<vmem>>, vector<1x8x8xf32>
    %535 = vector.shape_cast %534 : vector<1x8x8xf32> to vector<8x8xf32>
    %536 = vector.broadcast %533 : f32 to vector<8x8xf32>
    %537 = arith.mulf %536, %535 : vector<8x8xf32>
    %538 = arith.addf %532, %537 : vector<8x8xf32>
    %c86 = arith.constant 86 : index
    %539 = memref.load %arg2[%c86] : memref<288xf32, #tpu.memory_space<smem>>
    %c1_281 = arith.constant 1 : index
    %c1_282 = arith.constant 1 : index
    %c2_283 = arith.constant 2 : index
    %540 = vector.load %arg11[%c1_281, %c1_282, %c2_283] : memref<8x10x10xf32, #tpu.memory_space<vmem>>, vector<1x8x8xf32>
    %541 = vector.shape_cast %540 : vector<1x8x8xf32> to vector<8x8xf32>
    %542 = vector.broadcast %539 : f32 to vector<8x8xf32>
    %543 = arith.mulf %542, %541 : vector<8x8xf32>
    %544 = arith.addf %538, %543 : vector<8x8xf32>
    %c87 = arith.constant 87 : index
    %545 = memref.load %arg2[%c87] : memref<288xf32, #tpu.memory_space<smem>>
    %c1_284 = arith.constant 1 : index
    %c2_285 = arith.constant 2 : index
    %c0_286 = arith.constant 0 : index
    %546 = vector.load %arg11[%c1_284, %c2_285, %c0_286] : memref<8x10x10xf32, #tpu.memory_space<vmem>>, vector<1x8x8xf32>
    %547 = vector.shape_cast %546 : vector<1x8x8xf32> to vector<8x8xf32>
    %548 = vector.broadcast %545 : f32 to vector<8x8xf32>
    %549 = arith.mulf %548, %547 : vector<8x8xf32>
    %550 = arith.addf %544, %549 : vector<8x8xf32>
    %c88 = arith.constant 88 : index
    %551 = memref.load %arg2[%c88] : memref<288xf32, #tpu.memory_space<smem>>
    %c1_287 = arith.constant 1 : index
    %c2_288 = arith.constant 2 : index
    %c1_289 = arith.constant 1 : index
    %552 = vector.load %arg11[%c1_287, %c2_288, %c1_289] : memref<8x10x10xf32, #tpu.memory_space<vmem>>, vector<1x8x8xf32>
    %553 = vector.shape_cast %552 : vector<1x8x8xf32> to vector<8x8xf32>
    %554 = vector.broadcast %551 : f32 to vector<8x8xf32>
    %555 = arith.mulf %554, %553 : vector<8x8xf32>
    %556 = arith.addf %550, %555 : vector<8x8xf32>
    %c89 = arith.constant 89 : index
    %557 = memref.load %arg2[%c89] : memref<288xf32, #tpu.memory_space<smem>>
    %c1_290 = arith.constant 1 : index
    %c2_291 = arith.constant 2 : index
    %c2_292 = arith.constant 2 : index
    %558 = vector.load %arg11[%c1_290, %c2_291, %c2_292] : memref<8x10x10xf32, #tpu.memory_space<vmem>>, vector<1x8x8xf32>
    %559 = vector.shape_cast %558 : vector<1x8x8xf32> to vector<8x8xf32>
    %560 = vector.broadcast %557 : f32 to vector<8x8xf32>
    %561 = arith.mulf %560, %559 : vector<8x8xf32>
    %562 = arith.addf %556, %561 : vector<8x8xf32>
    %c90 = arith.constant 90 : index
    %563 = memref.load %arg2[%c90] : memref<288xf32, #tpu.memory_space<smem>>
    %c2_293 = arith.constant 2 : index
    %c0_294 = arith.constant 0 : index
    %c0_295 = arith.constant 0 : index
    %564 = vector.load %arg11[%c2_293, %c0_294, %c0_295] : memref<8x10x10xf32, #tpu.memory_space<vmem>>, vector<1x8x8xf32>
    %565 = vector.shape_cast %564 : vector<1x8x8xf32> to vector<8x8xf32>
    %566 = vector.broadcast %563 : f32 to vector<8x8xf32>
    %567 = arith.mulf %566, %565 : vector<8x8xf32>
    %568 = arith.addf %562, %567 : vector<8x8xf32>
    %c91 = arith.constant 91 : index
    %569 = memref.load %arg2[%c91] : memref<288xf32, #tpu.memory_space<smem>>
    %c2_296 = arith.constant 2 : index
    %c0_297 = arith.constant 0 : index
    %c1_298 = arith.constant 1 : index
    %570 = vector.load %arg11[%c2_296, %c0_297, %c1_298] : memref<8x10x10xf32, #tpu.memory_space<vmem>>, vector<1x8x8xf32>
    %571 = vector.shape_cast %570 : vector<1x8x8xf32> to vector<8x8xf32>
    %572 = vector.broadcast %569 : f32 to vector<8x8xf32>
    %573 = arith.mulf %572, %571 : vector<8x8xf32>
    %574 = arith.addf %568, %573 : vector<8x8xf32>
    %c92 = arith.constant 92 : index
    %575 = memref.load %arg2[%c92] : memref<288xf32, #tpu.memory_space<smem>>
    %c2_299 = arith.constant 2 : index
    %c0_300 = arith.constant 0 : index
    %c2_301 = arith.constant 2 : index
    %576 = vector.load %arg11[%c2_299, %c0_300, %c2_301] : memref<8x10x10xf32, #tpu.memory_space<vmem>>, vector<1x8x8xf32>
    %577 = vector.shape_cast %576 : vector<1x8x8xf32> to vector<8x8xf32>
    %578 = vector.broadcast %575 : f32 to vector<8x8xf32>
    %579 = arith.mulf %578, %577 : vector<8x8xf32>
    %580 = arith.addf %574, %579 : vector<8x8xf32>
    %c93 = arith.constant 93 : index
    %581 = memref.load %arg2[%c93] : memref<288xf32, #tpu.memory_space<smem>>
    %c2_302 = arith.constant 2 : index
    %c1_303 = arith.constant 1 : index
    %c0_304 = arith.constant 0 : index
    %582 = vector.load %arg11[%c2_302, %c1_303, %c0_304] : memref<8x10x10xf32, #tpu.memory_space<vmem>>, vector<1x8x8xf32>
    %583 = vector.shape_cast %582 : vector<1x8x8xf32> to vector<8x8xf32>
    %584 = vector.broadcast %581 : f32 to vector<8x8xf32>
    %585 = arith.mulf %584, %583 : vector<8x8xf32>
    %586 = arith.addf %580, %585 : vector<8x8xf32>
    %c94 = arith.constant 94 : index
    %587 = memref.load %arg2[%c94] : memref<288xf32, #tpu.memory_space<smem>>
    %c2_305 = arith.constant 2 : index
    %c1_306 = arith.constant 1 : index
    %c1_307 = arith.constant 1 : index
    %588 = vector.load %arg11[%c2_305, %c1_306, %c1_307] : memref<8x10x10xf32, #tpu.memory_space<vmem>>, vector<1x8x8xf32>
    %589 = vector.shape_cast %588 : vector<1x8x8xf32> to vector<8x8xf32>
    %590 = vector.broadcast %587 : f32 to vector<8x8xf32>
    %591 = arith.mulf %590, %589 : vector<8x8xf32>
    %592 = arith.addf %586, %591 : vector<8x8xf32>
    %c95 = arith.constant 95 : index
    %593 = memref.load %arg2[%c95] : memref<288xf32, #tpu.memory_space<smem>>
    %c2_308 = arith.constant 2 : index
    %c1_309 = arith.constant 1 : index
    %c2_310 = arith.constant 2 : index
    %594 = vector.load %arg11[%c2_308, %c1_309, %c2_310] : memref<8x10x10xf32, #tpu.memory_space<vmem>>, vector<1x8x8xf32>
    %595 = vector.shape_cast %594 : vector<1x8x8xf32> to vector<8x8xf32>
    %596 = vector.broadcast %593 : f32 to vector<8x8xf32>
    %597 = arith.mulf %596, %595 : vector<8x8xf32>
    %598 = arith.addf %592, %597 : vector<8x8xf32>
    %c96 = arith.constant 96 : index
    %599 = memref.load %arg2[%c96] : memref<288xf32, #tpu.memory_space<smem>>
    %c2_311 = arith.constant 2 : index
    %c2_312 = arith.constant 2 : index
    %c0_313 = arith.constant 0 : index
    %600 = vector.load %arg11[%c2_311, %c2_312, %c0_313] : memref<8x10x10xf32, #tpu.memory_space<vmem>>, vector<1x8x8xf32>
    %601 = vector.shape_cast %600 : vector<1x8x8xf32> to vector<8x8xf32>
    %602 = vector.broadcast %599 : f32 to vector<8x8xf32>
    %603 = arith.mulf %602, %601 : vector<8x8xf32>
    %604 = arith.addf %598, %603 : vector<8x8xf32>
    %c97 = arith.constant 97 : index
    %605 = memref.load %arg2[%c97] : memref<288xf32, #tpu.memory_space<smem>>
    %c2_314 = arith.constant 2 : index
    %c2_315 = arith.constant 2 : index
    %c1_316 = arith.constant 1 : index
    %606 = vector.load %arg11[%c2_314, %c2_315, %c1_316] : memref<8x10x10xf32, #tpu.memory_space<vmem>>, vector<1x8x8xf32>
    %607 = vector.shape_cast %606 : vector<1x8x8xf32> to vector<8x8xf32>
    %608 = vector.broadcast %605 : f32 to vector<8x8xf32>
    %609 = arith.mulf %608, %607 : vector<8x8xf32>
    %610 = arith.addf %604, %609 : vector<8x8xf32>
    %c98 = arith.constant 98 : index
    %611 = memref.load %arg2[%c98] : memref<288xf32, #tpu.memory_space<smem>>
    %c2_317 = arith.constant 2 : index
    %c2_318 = arith.constant 2 : index
    %c2_319 = arith.constant 2 : index
    %612 = vector.load %arg11[%c2_317, %c2_318, %c2_319] : memref<8x10x10xf32, #tpu.memory_space<vmem>>, vector<1x8x8xf32>
    %613 = vector.shape_cast %612 : vector<1x8x8xf32> to vector<8x8xf32>
    %614 = vector.broadcast %611 : f32 to vector<8x8xf32>
    %615 = arith.mulf %614, %613 : vector<8x8xf32>
    %616 = arith.addf %610, %615 : vector<8x8xf32>
    %c99 = arith.constant 99 : index
    %617 = memref.load %arg2[%c99] : memref<288xf32, #tpu.memory_space<smem>>
    %c3_320 = arith.constant 3 : index
    %c0_321 = arith.constant 0 : index
    %c0_322 = arith.constant 0 : index
    %618 = vector.load %arg11[%c3_320, %c0_321, %c0_322] : memref<8x10x10xf32, #tpu.memory_space<vmem>>, vector<1x8x8xf32>
    %619 = vector.shape_cast %618 : vector<1x8x8xf32> to vector<8x8xf32>
    %620 = vector.broadcast %617 : f32 to vector<8x8xf32>
    %621 = arith.mulf %620, %619 : vector<8x8xf32>
    %622 = arith.addf %616, %621 : vector<8x8xf32>
    %c100 = arith.constant 100 : index
    %623 = memref.load %arg2[%c100] : memref<288xf32, #tpu.memory_space<smem>>
    %c3_323 = arith.constant 3 : index
    %c0_324 = arith.constant 0 : index
    %c1_325 = arith.constant 1 : index
    %624 = vector.load %arg11[%c3_323, %c0_324, %c1_325] : memref<8x10x10xf32, #tpu.memory_space<vmem>>, vector<1x8x8xf32>
    %625 = vector.shape_cast %624 : vector<1x8x8xf32> to vector<8x8xf32>
    %626 = vector.broadcast %623 : f32 to vector<8x8xf32>
    %627 = arith.mulf %626, %625 : vector<8x8xf32>
    %628 = arith.addf %622, %627 : vector<8x8xf32>
    %c101 = arith.constant 101 : index
    %629 = memref.load %arg2[%c101] : memref<288xf32, #tpu.memory_space<smem>>
    %c3_326 = arith.constant 3 : index
    %c0_327 = arith.constant 0 : index
    %c2_328 = arith.constant 2 : index
    %630 = vector.load %arg11[%c3_326, %c0_327, %c2_328] : memref<8x10x10xf32, #tpu.memory_space<vmem>>, vector<1x8x8xf32>
    %631 = vector.shape_cast %630 : vector<1x8x8xf32> to vector<8x8xf32>
    %632 = vector.broadcast %629 : f32 to vector<8x8xf32>
    %633 = arith.mulf %632, %631 : vector<8x8xf32>
    %634 = arith.addf %628, %633 : vector<8x8xf32>
    %c102 = arith.constant 102 : index
    %635 = memref.load %arg2[%c102] : memref<288xf32, #tpu.memory_space<smem>>
    %c3_329 = arith.constant 3 : index
    %c1_330 = arith.constant 1 : index
    %c0_331 = arith.constant 0 : index
    %636 = vector.load %arg11[%c3_329, %c1_330, %c0_331] : memref<8x10x10xf32, #tpu.memory_space<vmem>>, vector<1x8x8xf32>
    %637 = vector.shape_cast %636 : vector<1x8x8xf32> to vector<8x8xf32>
    %638 = vector.broadcast %635 : f32 to vector<8x8xf32>
    %639 = arith.mulf %638, %637 : vector<8x8xf32>
    %640 = arith.addf %634, %639 : vector<8x8xf32>
    %c103 = arith.constant 103 : index
    %641 = memref.load %arg2[%c103] : memref<288xf32, #tpu.memory_space<smem>>
    %c3_332 = arith.constant 3 : index
    %c1_333 = arith.constant 1 : index
    %c1_334 = arith.constant 1 : index
    %642 = vector.load %arg11[%c3_332, %c1_333, %c1_334] : memref<8x10x10xf32, #tpu.memory_space<vmem>>, vector<1x8x8xf32>
    %643 = vector.shape_cast %642 : vector<1x8x8xf32> to vector<8x8xf32>
    %644 = vector.broadcast %641 : f32 to vector<8x8xf32>
    %645 = arith.mulf %644, %643 : vector<8x8xf32>
    %646 = arith.addf %640, %645 : vector<8x8xf32>
    %c104 = arith.constant 104 : index
    %647 = memref.load %arg2[%c104] : memref<288xf32, #tpu.memory_space<smem>>
    %c3_335 = arith.constant 3 : index
    %c1_336 = arith.constant 1 : index
    %c2_337 = arith.constant 2 : index
    %648 = vector.load %arg11[%c3_335, %c1_336, %c2_337] : memref<8x10x10xf32, #tpu.memory_space<vmem>>, vector<1x8x8xf32>
    %649 = vector.shape_cast %648 : vector<1x8x8xf32> to vector<8x8xf32>
    %650 = vector.broadcast %647 : f32 to vector<8x8xf32>
    %651 = arith.mulf %650, %649 : vector<8x8xf32>
    %652 = arith.addf %646, %651 : vector<8x8xf32>
    %c105 = arith.constant 105 : index
    %653 = memref.load %arg2[%c105] : memref<288xf32, #tpu.memory_space<smem>>
    %c3_338 = arith.constant 3 : index
    %c2_339 = arith.constant 2 : index
    %c0_340 = arith.constant 0 : index
    %654 = vector.load %arg11[%c3_338, %c2_339, %c0_340] : memref<8x10x10xf32, #tpu.memory_space<vmem>>, vector<1x8x8xf32>
    %655 = vector.shape_cast %654 : vector<1x8x8xf32> to vector<8x8xf32>
    %656 = vector.broadcast %653 : f32 to vector<8x8xf32>
    %657 = arith.mulf %656, %655 : vector<8x8xf32>
    %658 = arith.addf %652, %657 : vector<8x8xf32>
    %c106 = arith.constant 106 : index
    %659 = memref.load %arg2[%c106] : memref<288xf32, #tpu.memory_space<smem>>
    %c3_341 = arith.constant 3 : index
    %c2_342 = arith.constant 2 : index
    %c1_343 = arith.constant 1 : index
    %660 = vector.load %arg11[%c3_341, %c2_342, %c1_343] : memref<8x10x10xf32, #tpu.memory_space<vmem>>, vector<1x8x8xf32>
    %661 = vector.shape_cast %660 : vector<1x8x8xf32> to vector<8x8xf32>
    %662 = vector.broadcast %659 : f32 to vector<8x8xf32>
    %663 = arith.mulf %662, %661 : vector<8x8xf32>
    %664 = arith.addf %658, %663 : vector<8x8xf32>
    %c107 = arith.constant 107 : index
    %665 = memref.load %arg2[%c107] : memref<288xf32, #tpu.memory_space<smem>>
    %c3_344 = arith.constant 3 : index
    %c2_345 = arith.constant 2 : index
    %c2_346 = arith.constant 2 : index
    %666 = vector.load %arg11[%c3_344, %c2_345, %c2_346] : memref<8x10x10xf32, #tpu.memory_space<vmem>>, vector<1x8x8xf32>
    %667 = vector.shape_cast %666 : vector<1x8x8xf32> to vector<8x8xf32>
    %668 = vector.broadcast %665 : f32 to vector<8x8xf32>
    %669 = arith.mulf %668, %667 : vector<8x8xf32>
    %670 = arith.addf %664, %669 : vector<8x8xf32>
    %c108 = arith.constant 108 : index
    %671 = memref.load %arg2[%c108] : memref<288xf32, #tpu.memory_space<smem>>
    %c4_347 = arith.constant 4 : index
    %c0_348 = arith.constant 0 : index
    %c0_349 = arith.constant 0 : index
    %672 = vector.load %arg11[%c4_347, %c0_348, %c0_349] : memref<8x10x10xf32, #tpu.memory_space<vmem>>, vector<1x8x8xf32>
    %673 = vector.shape_cast %672 : vector<1x8x8xf32> to vector<8x8xf32>
    %674 = vector.broadcast %671 : f32 to vector<8x8xf32>
    %675 = arith.mulf %674, %673 : vector<8x8xf32>
    %676 = arith.addf %670, %675 : vector<8x8xf32>
    %c109 = arith.constant 109 : index
    %677 = memref.load %arg2[%c109] : memref<288xf32, #tpu.memory_space<smem>>
    %c4_350 = arith.constant 4 : index
    %c0_351 = arith.constant 0 : index
    %c1_352 = arith.constant 1 : index
    %678 = vector.load %arg11[%c4_350, %c0_351, %c1_352] : memref<8x10x10xf32, #tpu.memory_space<vmem>>, vector<1x8x8xf32>
    %679 = vector.shape_cast %678 : vector<1x8x8xf32> to vector<8x8xf32>
    %680 = vector.broadcast %677 : f32 to vector<8x8xf32>
    %681 = arith.mulf %680, %679 : vector<8x8xf32>
    %682 = arith.addf %676, %681 : vector<8x8xf32>
    %c110 = arith.constant 110 : index
    %683 = memref.load %arg2[%c110] : memref<288xf32, #tpu.memory_space<smem>>
    %c4_353 = arith.constant 4 : index
    %c0_354 = arith.constant 0 : index
    %c2_355 = arith.constant 2 : index
    %684 = vector.load %arg11[%c4_353, %c0_354, %c2_355] : memref<8x10x10xf32, #tpu.memory_space<vmem>>, vector<1x8x8xf32>
    %685 = vector.shape_cast %684 : vector<1x8x8xf32> to vector<8x8xf32>
    %686 = vector.broadcast %683 : f32 to vector<8x8xf32>
    %687 = arith.mulf %686, %685 : vector<8x8xf32>
    %688 = arith.addf %682, %687 : vector<8x8xf32>
    %c111 = arith.constant 111 : index
    %689 = memref.load %arg2[%c111] : memref<288xf32, #tpu.memory_space<smem>>
    %c4_356 = arith.constant 4 : index
    %c1_357 = arith.constant 1 : index
    %c0_358 = arith.constant 0 : index
    %690 = vector.load %arg11[%c4_356, %c1_357, %c0_358] : memref<8x10x10xf32, #tpu.memory_space<vmem>>, vector<1x8x8xf32>
    %691 = vector.shape_cast %690 : vector<1x8x8xf32> to vector<8x8xf32>
    %692 = vector.broadcast %689 : f32 to vector<8x8xf32>
    %693 = arith.mulf %692, %691 : vector<8x8xf32>
    %694 = arith.addf %688, %693 : vector<8x8xf32>
    %c112 = arith.constant 112 : index
    %695 = memref.load %arg2[%c112] : memref<288xf32, #tpu.memory_space<smem>>
    %c4_359 = arith.constant 4 : index
    %c1_360 = arith.constant 1 : index
    %c1_361 = arith.constant 1 : index
    %696 = vector.load %arg11[%c4_359, %c1_360, %c1_361] : memref<8x10x10xf32, #tpu.memory_space<vmem>>, vector<1x8x8xf32>
    %697 = vector.shape_cast %696 : vector<1x8x8xf32> to vector<8x8xf32>
    %698 = vector.broadcast %695 : f32 to vector<8x8xf32>
    %699 = arith.mulf %698, %697 : vector<8x8xf32>
    %700 = arith.addf %694, %699 : vector<8x8xf32>
    %c113 = arith.constant 113 : index
    %701 = memref.load %arg2[%c113] : memref<288xf32, #tpu.memory_space<smem>>
    %c4_362 = arith.constant 4 : index
    %c1_363 = arith.constant 1 : index
    %c2_364 = arith.constant 2 : index
    %702 = vector.load %arg11[%c4_362, %c1_363, %c2_364] : memref<8x10x10xf32, #tpu.memory_space<vmem>>, vector<1x8x8xf32>
    %703 = vector.shape_cast %702 : vector<1x8x8xf32> to vector<8x8xf32>
    %704 = vector.broadcast %701 : f32 to vector<8x8xf32>
    %705 = arith.mulf %704, %703 : vector<8x8xf32>
    %706 = arith.addf %700, %705 : vector<8x8xf32>
    %c114 = arith.constant 114 : index
    %707 = memref.load %arg2[%c114] : memref<288xf32, #tpu.memory_space<smem>>
    %c4_365 = arith.constant 4 : index
    %c2_366 = arith.constant 2 : index
    %c0_367 = arith.constant 0 : index
    %708 = vector.load %arg11[%c4_365, %c2_366, %c0_367] : memref<8x10x10xf32, #tpu.memory_space<vmem>>, vector<1x8x8xf32>
    %709 = vector.shape_cast %708 : vector<1x8x8xf32> to vector<8x8xf32>
    %710 = vector.broadcast %707 : f32 to vector<8x8xf32>
    %711 = arith.mulf %710, %709 : vector<8x8xf32>
    %712 = arith.addf %706, %711 : vector<8x8xf32>
    %c115 = arith.constant 115 : index
    %713 = memref.load %arg2[%c115] : memref<288xf32, #tpu.memory_space<smem>>
    %c4_368 = arith.constant 4 : index
    %c2_369 = arith.constant 2 : index
    %c1_370 = arith.constant 1 : index
    %714 = vector.load %arg11[%c4_368, %c2_369, %c1_370] : memref<8x10x10xf32, #tpu.memory_space<vmem>>, vector<1x8x8xf32>
    %715 = vector.shape_cast %714 : vector<1x8x8xf32> to vector<8x8xf32>
    %716 = vector.broadcast %713 : f32 to vector<8x8xf32>
    %717 = arith.mulf %716, %715 : vector<8x8xf32>
    %718 = arith.addf %712, %717 : vector<8x8xf32>
    %c116 = arith.constant 116 : index
    %719 = memref.load %arg2[%c116] : memref<288xf32, #tpu.memory_space<smem>>
    %c4_371 = arith.constant 4 : index
    %c2_372 = arith.constant 2 : index
    %c2_373 = arith.constant 2 : index
    %720 = vector.load %arg11[%c4_371, %c2_372, %c2_373] : memref<8x10x10xf32, #tpu.memory_space<vmem>>, vector<1x8x8xf32>
    %721 = vector.shape_cast %720 : vector<1x8x8xf32> to vector<8x8xf32>
    %722 = vector.broadcast %719 : f32 to vector<8x8xf32>
    %723 = arith.mulf %722, %721 : vector<8x8xf32>
    %724 = arith.addf %718, %723 : vector<8x8xf32>
    %c117 = arith.constant 117 : index
    %725 = memref.load %arg2[%c117] : memref<288xf32, #tpu.memory_space<smem>>
    %c5_374 = arith.constant 5 : index
    %c0_375 = arith.constant 0 : index
    %c0_376 = arith.constant 0 : index
    %726 = vector.load %arg11[%c5_374, %c0_375, %c0_376] : memref<8x10x10xf32, #tpu.memory_space<vmem>>, vector<1x8x8xf32>
    %727 = vector.shape_cast %726 : vector<1x8x8xf32> to vector<8x8xf32>
    %728 = vector.broadcast %725 : f32 to vector<8x8xf32>
    %729 = arith.mulf %728, %727 : vector<8x8xf32>
    %730 = arith.addf %724, %729 : vector<8x8xf32>
    %c118 = arith.constant 118 : index
    %731 = memref.load %arg2[%c118] : memref<288xf32, #tpu.memory_space<smem>>
    %c5_377 = arith.constant 5 : index
    %c0_378 = arith.constant 0 : index
    %c1_379 = arith.constant 1 : index
    %732 = vector.load %arg11[%c5_377, %c0_378, %c1_379] : memref<8x10x10xf32, #tpu.memory_space<vmem>>, vector<1x8x8xf32>
    %733 = vector.shape_cast %732 : vector<1x8x8xf32> to vector<8x8xf32>
    %734 = vector.broadcast %731 : f32 to vector<8x8xf32>
    %735 = arith.mulf %734, %733 : vector<8x8xf32>
    %736 = arith.addf %730, %735 : vector<8x8xf32>
    %c119 = arith.constant 119 : index
    %737 = memref.load %arg2[%c119] : memref<288xf32, #tpu.memory_space<smem>>
    %c5_380 = arith.constant 5 : index
    %c0_381 = arith.constant 0 : index
    %c2_382 = arith.constant 2 : index
    %738 = vector.load %arg11[%c5_380, %c0_381, %c2_382] : memref<8x10x10xf32, #tpu.memory_space<vmem>>, vector<1x8x8xf32>
    %739 = vector.shape_cast %738 : vector<1x8x8xf32> to vector<8x8xf32>
    %740 = vector.broadcast %737 : f32 to vector<8x8xf32>
    %741 = arith.mulf %740, %739 : vector<8x8xf32>
    %742 = arith.addf %736, %741 : vector<8x8xf32>
    %c120 = arith.constant 120 : index
    %743 = memref.load %arg2[%c120] : memref<288xf32, #tpu.memory_space<smem>>
    %c5_383 = arith.constant 5 : index
    %c1_384 = arith.constant 1 : index
    %c0_385 = arith.constant 0 : index
    %744 = vector.load %arg11[%c5_383, %c1_384, %c0_385] : memref<8x10x10xf32, #tpu.memory_space<vmem>>, vector<1x8x8xf32>
    %745 = vector.shape_cast %744 : vector<1x8x8xf32> to vector<8x8xf32>
    %746 = vector.broadcast %743 : f32 to vector<8x8xf32>
    %747 = arith.mulf %746, %745 : vector<8x8xf32>
    %748 = arith.addf %742, %747 : vector<8x8xf32>
    %c121 = arith.constant 121 : index
    %749 = memref.load %arg2[%c121] : memref<288xf32, #tpu.memory_space<smem>>
    %c5_386 = arith.constant 5 : index
    %c1_387 = arith.constant 1 : index
    %c1_388 = arith.constant 1 : index
    %750 = vector.load %arg11[%c5_386, %c1_387, %c1_388] : memref<8x10x10xf32, #tpu.memory_space<vmem>>, vector<1x8x8xf32>
    %751 = vector.shape_cast %750 : vector<1x8x8xf32> to vector<8x8xf32>
    %752 = vector.broadcast %749 : f32 to vector<8x8xf32>
    %753 = arith.mulf %752, %751 : vector<8x8xf32>
    %754 = arith.addf %748, %753 : vector<8x8xf32>
    %c122 = arith.constant 122 : index
    %755 = memref.load %arg2[%c122] : memref<288xf32, #tpu.memory_space<smem>>
    %c5_389 = arith.constant 5 : index
    %c1_390 = arith.constant 1 : index
    %c2_391 = arith.constant 2 : index
    %756 = vector.load %arg11[%c5_389, %c1_390, %c2_391] : memref<8x10x10xf32, #tpu.memory_space<vmem>>, vector<1x8x8xf32>
    %757 = vector.shape_cast %756 : vector<1x8x8xf32> to vector<8x8xf32>
    %758 = vector.broadcast %755 : f32 to vector<8x8xf32>
    %759 = arith.mulf %758, %757 : vector<8x8xf32>
    %760 = arith.addf %754, %759 : vector<8x8xf32>
    %c123 = arith.constant 123 : index
    %761 = memref.load %arg2[%c123] : memref<288xf32, #tpu.memory_space<smem>>
    %c5_392 = arith.constant 5 : index
    %c2_393 = arith.constant 2 : index
    %c0_394 = arith.constant 0 : index
    %762 = vector.load %arg11[%c5_392, %c2_393, %c0_394] : memref<8x10x10xf32, #tpu.memory_space<vmem>>, vector<1x8x8xf32>
    %763 = vector.shape_cast %762 : vector<1x8x8xf32> to vector<8x8xf32>
    %764 = vector.broadcast %761 : f32 to vector<8x8xf32>
    %765 = arith.mulf %764, %763 : vector<8x8xf32>
    %766 = arith.addf %760, %765 : vector<8x8xf32>
    %c124 = arith.constant 124 : index
    %767 = memref.load %arg2[%c124] : memref<288xf32, #tpu.memory_space<smem>>
    %c5_395 = arith.constant 5 : index
    %c2_396 = arith.constant 2 : index
    %c1_397 = arith.constant 1 : index
    %768 = vector.load %arg11[%c5_395, %c2_396, %c1_397] : memref<8x10x10xf32, #tpu.memory_space<vmem>>, vector<1x8x8xf32>
    %769 = vector.shape_cast %768 : vector<1x8x8xf32> to vector<8x8xf32>
    %770 = vector.broadcast %767 : f32 to vector<8x8xf32>
    %771 = arith.mulf %770, %769 : vector<8x8xf32>
    %772 = arith.addf %766, %771 : vector<8x8xf32>
    %c125 = arith.constant 125 : index
    %773 = memref.load %arg2[%c125] : memref<288xf32, #tpu.memory_space<smem>>
    %c5_398 = arith.constant 5 : index
    %c2_399 = arith.constant 2 : index
    %c2_400 = arith.constant 2 : index
    %774 = vector.load %arg11[%c5_398, %c2_399, %c2_400] : memref<8x10x10xf32, #tpu.memory_space<vmem>>, vector<1x8x8xf32>
    %775 = vector.shape_cast %774 : vector<1x8x8xf32> to vector<8x8xf32>
    %776 = vector.broadcast %773 : f32 to vector<8x8xf32>
    %777 = arith.mulf %776, %775 : vector<8x8xf32>
    %778 = arith.addf %772, %777 : vector<8x8xf32>
    %c126 = arith.constant 126 : index
    %779 = memref.load %arg2[%c126] : memref<288xf32, #tpu.memory_space<smem>>
    %c6_401 = arith.constant 6 : index
    %c0_402 = arith.constant 0 : index
    %c0_403 = arith.constant 0 : index
    %780 = vector.load %arg11[%c6_401, %c0_402, %c0_403] : memref<8x10x10xf32, #tpu.memory_space<vmem>>, vector<1x8x8xf32>
    %781 = vector.shape_cast %780 : vector<1x8x8xf32> to vector<8x8xf32>
    %782 = vector.broadcast %779 : f32 to vector<8x8xf32>
    %783 = arith.mulf %782, %781 : vector<8x8xf32>
    %784 = arith.addf %778, %783 : vector<8x8xf32>
    %c127 = arith.constant 127 : index
    %785 = memref.load %arg2[%c127] : memref<288xf32, #tpu.memory_space<smem>>
    %c6_404 = arith.constant 6 : index
    %c0_405 = arith.constant 0 : index
    %c1_406 = arith.constant 1 : index
    %786 = vector.load %arg11[%c6_404, %c0_405, %c1_406] : memref<8x10x10xf32, #tpu.memory_space<vmem>>, vector<1x8x8xf32>
    %787 = vector.shape_cast %786 : vector<1x8x8xf32> to vector<8x8xf32>
    %788 = vector.broadcast %785 : f32 to vector<8x8xf32>
    %789 = arith.mulf %788, %787 : vector<8x8xf32>
    %790 = arith.addf %784, %789 : vector<8x8xf32>
    %c128 = arith.constant 128 : index
    %791 = memref.load %arg2[%c128] : memref<288xf32, #tpu.memory_space<smem>>
    %c6_407 = arith.constant 6 : index
    %c0_408 = arith.constant 0 : index
    %c2_409 = arith.constant 2 : index
    %792 = vector.load %arg11[%c6_407, %c0_408, %c2_409] : memref<8x10x10xf32, #tpu.memory_space<vmem>>, vector<1x8x8xf32>
    %793 = vector.shape_cast %792 : vector<1x8x8xf32> to vector<8x8xf32>
    %794 = vector.broadcast %791 : f32 to vector<8x8xf32>
    %795 = arith.mulf %794, %793 : vector<8x8xf32>
    %796 = arith.addf %790, %795 : vector<8x8xf32>
    %c129 = arith.constant 129 : index
    %797 = memref.load %arg2[%c129] : memref<288xf32, #tpu.memory_space<smem>>
    %c6_410 = arith.constant 6 : index
    %c1_411 = arith.constant 1 : index
    %c0_412 = arith.constant 0 : index
    %798 = vector.load %arg11[%c6_410, %c1_411, %c0_412] : memref<8x10x10xf32, #tpu.memory_space<vmem>>, vector<1x8x8xf32>
    %799 = vector.shape_cast %798 : vector<1x8x8xf32> to vector<8x8xf32>
    %800 = vector.broadcast %797 : f32 to vector<8x8xf32>
    %801 = arith.mulf %800, %799 : vector<8x8xf32>
    %802 = arith.addf %796, %801 : vector<8x8xf32>
    %c130 = arith.constant 130 : index
    %803 = memref.load %arg2[%c130] : memref<288xf32, #tpu.memory_space<smem>>
    %c6_413 = arith.constant 6 : index
    %c1_414 = arith.constant 1 : index
    %c1_415 = arith.constant 1 : index
    %804 = vector.load %arg11[%c6_413, %c1_414, %c1_415] : memref<8x10x10xf32, #tpu.memory_space<vmem>>, vector<1x8x8xf32>
    %805 = vector.shape_cast %804 : vector<1x8x8xf32> to vector<8x8xf32>
    %806 = vector.broadcast %803 : f32 to vector<8x8xf32>
    %807 = arith.mulf %806, %805 : vector<8x8xf32>
    %808 = arith.addf %802, %807 : vector<8x8xf32>
    %c131 = arith.constant 131 : index
    %809 = memref.load %arg2[%c131] : memref<288xf32, #tpu.memory_space<smem>>
    %c6_416 = arith.constant 6 : index
    %c1_417 = arith.constant 1 : index
    %c2_418 = arith.constant 2 : index
    %810 = vector.load %arg11[%c6_416, %c1_417, %c2_418] : memref<8x10x10xf32, #tpu.memory_space<vmem>>, vector<1x8x8xf32>
    %811 = vector.shape_cast %810 : vector<1x8x8xf32> to vector<8x8xf32>
    %812 = vector.broadcast %809 : f32 to vector<8x8xf32>
    %813 = arith.mulf %812, %811 : vector<8x8xf32>
    %814 = arith.addf %808, %813 : vector<8x8xf32>
    %c132 = arith.constant 132 : index
    %815 = memref.load %arg2[%c132] : memref<288xf32, #tpu.memory_space<smem>>
    %c6_419 = arith.constant 6 : index
    %c2_420 = arith.constant 2 : index
    %c0_421 = arith.constant 0 : index
    %816 = vector.load %arg11[%c6_419, %c2_420, %c0_421] : memref<8x10x10xf32, #tpu.memory_space<vmem>>, vector<1x8x8xf32>
    %817 = vector.shape_cast %816 : vector<1x8x8xf32> to vector<8x8xf32>
    %818 = vector.broadcast %815 : f32 to vector<8x8xf32>
    %819 = arith.mulf %818, %817 : vector<8x8xf32>
    %820 = arith.addf %814, %819 : vector<8x8xf32>
    %c133 = arith.constant 133 : index
    %821 = memref.load %arg2[%c133] : memref<288xf32, #tpu.memory_space<smem>>
    %c6_422 = arith.constant 6 : index
    %c2_423 = arith.constant 2 : index
    %c1_424 = arith.constant 1 : index
    %822 = vector.load %arg11[%c6_422, %c2_423, %c1_424] : memref<8x10x10xf32, #tpu.memory_space<vmem>>, vector<1x8x8xf32>
    %823 = vector.shape_cast %822 : vector<1x8x8xf32> to vector<8x8xf32>
    %824 = vector.broadcast %821 : f32 to vector<8x8xf32>
    %825 = arith.mulf %824, %823 : vector<8x8xf32>
    %826 = arith.addf %820, %825 : vector<8x8xf32>
    %c134 = arith.constant 134 : index
    %827 = memref.load %arg2[%c134] : memref<288xf32, #tpu.memory_space<smem>>
    %c6_425 = arith.constant 6 : index
    %c2_426 = arith.constant 2 : index
    %c2_427 = arith.constant 2 : index
    %828 = vector.load %arg11[%c6_425, %c2_426, %c2_427] : memref<8x10x10xf32, #tpu.memory_space<vmem>>, vector<1x8x8xf32>
    %829 = vector.shape_cast %828 : vector<1x8x8xf32> to vector<8x8xf32>
    %830 = vector.broadcast %827 : f32 to vector<8x8xf32>
    %831 = arith.mulf %830, %829 : vector<8x8xf32>
    %832 = arith.addf %826, %831 : vector<8x8xf32>
    %c135 = arith.constant 135 : index
    %833 = memref.load %arg2[%c135] : memref<288xf32, #tpu.memory_space<smem>>
    %c7_428 = arith.constant 7 : index
    %c0_429 = arith.constant 0 : index
    %c0_430 = arith.constant 0 : index
    %834 = vector.load %arg11[%c7_428, %c0_429, %c0_430] : memref<8x10x10xf32, #tpu.memory_space<vmem>>, vector<1x8x8xf32>
    %835 = vector.shape_cast %834 : vector<1x8x8xf32> to vector<8x8xf32>
    %836 = vector.broadcast %833 : f32 to vector<8x8xf32>
    %837 = arith.mulf %836, %835 : vector<8x8xf32>
    %838 = arith.addf %832, %837 : vector<8x8xf32>
    %c136 = arith.constant 136 : index
    %839 = memref.load %arg2[%c136] : memref<288xf32, #tpu.memory_space<smem>>
    %c7_431 = arith.constant 7 : index
    %c0_432 = arith.constant 0 : index
    %c1_433 = arith.constant 1 : index
    %840 = vector.load %arg11[%c7_431, %c0_432, %c1_433] : memref<8x10x10xf32, #tpu.memory_space<vmem>>, vector<1x8x8xf32>
    %841 = vector.shape_cast %840 : vector<1x8x8xf32> to vector<8x8xf32>
    %842 = vector.broadcast %839 : f32 to vector<8x8xf32>
    %843 = arith.mulf %842, %841 : vector<8x8xf32>
    %844 = arith.addf %838, %843 : vector<8x8xf32>
    %c137 = arith.constant 137 : index
    %845 = memref.load %arg2[%c137] : memref<288xf32, #tpu.memory_space<smem>>
    %c7_434 = arith.constant 7 : index
    %c0_435 = arith.constant 0 : index
    %c2_436 = arith.constant 2 : index
    %846 = vector.load %arg11[%c7_434, %c0_435, %c2_436] : memref<8x10x10xf32, #tpu.memory_space<vmem>>, vector<1x8x8xf32>
    %847 = vector.shape_cast %846 : vector<1x8x8xf32> to vector<8x8xf32>
    %848 = vector.broadcast %845 : f32 to vector<8x8xf32>
    %849 = arith.mulf %848, %847 : vector<8x8xf32>
    %850 = arith.addf %844, %849 : vector<8x8xf32>
    %c138 = arith.constant 138 : index
    %851 = memref.load %arg2[%c138] : memref<288xf32, #tpu.memory_space<smem>>
    %c7_437 = arith.constant 7 : index
    %c1_438 = arith.constant 1 : index
    %c0_439 = arith.constant 0 : index
    %852 = vector.load %arg11[%c7_437, %c1_438, %c0_439] : memref<8x10x10xf32, #tpu.memory_space<vmem>>, vector<1x8x8xf32>
    %853 = vector.shape_cast %852 : vector<1x8x8xf32> to vector<8x8xf32>
    %854 = vector.broadcast %851 : f32 to vector<8x8xf32>
    %855 = arith.mulf %854, %853 : vector<8x8xf32>
    %856 = arith.addf %850, %855 : vector<8x8xf32>
    %c139 = arith.constant 139 : index
    %857 = memref.load %arg2[%c139] : memref<288xf32, #tpu.memory_space<smem>>
    %c7_440 = arith.constant 7 : index
    %c1_441 = arith.constant 1 : index
    %c1_442 = arith.constant 1 : index
    %858 = vector.load %arg11[%c7_440, %c1_441, %c1_442] : memref<8x10x10xf32, #tpu.memory_space<vmem>>, vector<1x8x8xf32>
    %859 = vector.shape_cast %858 : vector<1x8x8xf32> to vector<8x8xf32>
    %860 = vector.broadcast %857 : f32 to vector<8x8xf32>
    %861 = arith.mulf %860, %859 : vector<8x8xf32>
    %862 = arith.addf %856, %861 : vector<8x8xf32>
    %c140 = arith.constant 140 : index
    %863 = memref.load %arg2[%c140] : memref<288xf32, #tpu.memory_space<smem>>
    %c7_443 = arith.constant 7 : index
    %c1_444 = arith.constant 1 : index
    %c2_445 = arith.constant 2 : index
    %864 = vector.load %arg11[%c7_443, %c1_444, %c2_445] : memref<8x10x10xf32, #tpu.memory_space<vmem>>, vector<1x8x8xf32>
    %865 = vector.shape_cast %864 : vector<1x8x8xf32> to vector<8x8xf32>
    %866 = vector.broadcast %863 : f32 to vector<8x8xf32>
    %867 = arith.mulf %866, %865 : vector<8x8xf32>
    %868 = arith.addf %862, %867 : vector<8x8xf32>
    %c141 = arith.constant 141 : index
    %869 = memref.load %arg2[%c141] : memref<288xf32, #tpu.memory_space<smem>>
    %c7_446 = arith.constant 7 : index
    %c2_447 = arith.constant 2 : index
    %c0_448 = arith.constant 0 : index
    %870 = vector.load %arg11[%c7_446, %c2_447, %c0_448] : memref<8x10x10xf32, #tpu.memory_space<vmem>>, vector<1x8x8xf32>
    %871 = vector.shape_cast %870 : vector<1x8x8xf32> to vector<8x8xf32>
    %872 = vector.broadcast %869 : f32 to vector<8x8xf32>
    %873 = arith.mulf %872, %871 : vector<8x8xf32>
    %874 = arith.addf %868, %873 : vector<8x8xf32>
    %c142 = arith.constant 142 : index
    %875 = memref.load %arg2[%c142] : memref<288xf32, #tpu.memory_space<smem>>
    %c7_449 = arith.constant 7 : index
    %c2_450 = arith.constant 2 : index
    %c1_451 = arith.constant 1 : index
    %876 = vector.load %arg11[%c7_449, %c2_450, %c1_451] : memref<8x10x10xf32, #tpu.memory_space<vmem>>, vector<1x8x8xf32>
    %877 = vector.shape_cast %876 : vector<1x8x8xf32> to vector<8x8xf32>
    %878 = vector.broadcast %875 : f32 to vector<8x8xf32>
    %879 = arith.mulf %878, %877 : vector<8x8xf32>
    %880 = arith.addf %874, %879 : vector<8x8xf32>
    %c143 = arith.constant 143 : index
    %881 = memref.load %arg2[%c143] : memref<288xf32, #tpu.memory_space<smem>>
    %c7_452 = arith.constant 7 : index
    %c2_453 = arith.constant 2 : index
    %c2_454 = arith.constant 2 : index
    %882 = vector.load %arg11[%c7_452, %c2_453, %c2_454] : memref<8x10x10xf32, #tpu.memory_space<vmem>>, vector<1x8x8xf32>
    %883 = vector.shape_cast %882 : vector<1x8x8xf32> to vector<8x8xf32>
    %884 = vector.broadcast %881 : f32 to vector<8x8xf32>
    %885 = arith.mulf %884, %883 : vector<8x8xf32>
    %886 = arith.addf %880, %885 : vector<8x8xf32>
    %c1_455 = arith.constant 1 : index
    %887 = memref.load %arg3[%c1_455] : memref<4xf32, #tpu.memory_space<smem>>
    %888 = vector.broadcast %887 : f32 to vector<8x8xf32>
    %889 = arith.mulf %886, %888 : vector<8x8xf32>
    %c1_456 = arith.constant 1 : index
    %890 = memref.load %arg4[%c1_456] : memref<4xf32, #tpu.memory_space<smem>>
    %891 = vector.broadcast %890 : f32 to vector<8x8xf32>
    %892 = arith.addf %889, %891 : vector<8x8xf32>
    %cst_457 = arith.constant 0.000000e+00 : f32
    %893 = vector.broadcast %cst_457 : f32 to vector<8x8xf32>
    %894 = arith.cmpf ogt, %892, %893 : vector<8x8xf32>
    %cst_458 = arith.constant 0.00999999977 : f32
    %895 = vector.broadcast %cst_458 : f32 to vector<8x8xf32>
    %896 = arith.mulf %895, %892 : vector<8x8xf32>
    %897 = arith.select %894, %892, %896 : vector<8x8xi1>, vector<8x8xf32>
    %c1_459 = arith.constant 1 : index
    %c1_460 = arith.constant 1 : index
    %c1_461 = arith.constant 1 : index
    %898 = vector.load %arg12[%c1_459, %c1_460, %c1_461] : memref<4x10x10xf32, #tpu.memory_space<vmem>>, vector<1x8x8xf32>
    %899 = vector.shape_cast %898 : vector<1x8x8xf32> to vector<8x8xf32>
    %900 = vector.shape_cast %897 : vector<8x8xf32> to vector<1x8x8xf32>
    tpu.vector_store %arg12[%c1_459, %c1_460, %c1_461], %900 {strides = array<i32>} : memref<4x10x10xf32, #tpu.memory_space<vmem>>, vector<1x8x8xf32>,
    %cst_462 = arith.constant 0.000000e+00 : f32
    %901 = vector.broadcast %cst_462 : f32 to vector<8x8xf32>
    %c144 = arith.constant 144 : index
    %902 = memref.load %arg2[%c144] : memref<288xf32, #tpu.memory_space<smem>>
    %c0_463 = arith.constant 0 : index
    %c0_464 = arith.constant 0 : index
    %c0_465 = arith.constant 0 : index
    %903 = vector.load %arg11[%c0_463, %c0_464, %c0_465] : memref<8x10x10xf32, #tpu.memory_space<vmem>>, vector<1x8x8xf32>
    %904 = vector.shape_cast %903 : vector<1x8x8xf32> to vector<8x8xf32>
    %905 = vector.broadcast %902 : f32 to vector<8x8xf32>
    %906 = arith.mulf %905, %904 : vector<8x8xf32>
    %907 = arith.addf %901, %906 : vector<8x8xf32>
    %c145 = arith.constant 145 : index
    %908 = memref.load %arg2[%c145] : memref<288xf32, #tpu.memory_space<smem>>
    %c0_466 = arith.constant 0 : index
    %c0_467 = arith.constant 0 : index
    %c1_468 = arith.constant 1 : index
    %909 = vector.load %arg11[%c0_466, %c0_467, %c1_468] : memref<8x10x10xf32, #tpu.memory_space<vmem>>, vector<1x8x8xf32>
    %910 = vector.shape_cast %909 : vector<1x8x8xf32> to vector<8x8xf32>
    %911 = vector.broadcast %908 : f32 to vector<8x8xf32>
    %912 = arith.mulf %911, %910 : vector<8x8xf32>
    %913 = arith.addf %907, %912 : vector<8x8xf32>
    %c146 = arith.constant 146 : index
    %914 = memref.load %arg2[%c146] : memref<288xf32, #tpu.memory_space<smem>>
    %c0_469 = arith.constant 0 : index
    %c0_470 = arith.constant 0 : index
    %c2_471 = arith.constant 2 : index
    %915 = vector.load %arg11[%c0_469, %c0_470, %c2_471] : memref<8x10x10xf32, #tpu.memory_space<vmem>>, vector<1x8x8xf32>
    %916 = vector.shape_cast %915 : vector<1x8x8xf32> to vector<8x8xf32>
    %917 = vector.broadcast %914 : f32 to vector<8x8xf32>
    %918 = arith.mulf %917, %916 : vector<8x8xf32>
    %919 = arith.addf %913, %918 : vector<8x8xf32>
    %c147 = arith.constant 147 : index
    %920 = memref.load %arg2[%c147] : memref<288xf32, #tpu.memory_space<smem>>
    %c0_472 = arith.constant 0 : index
    %c1_473 = arith.constant 1 : index
    %c0_474 = arith.constant 0 : index
    %921 = vector.load %arg11[%c0_472, %c1_473, %c0_474] : memref<8x10x10xf32, #tpu.memory_space<vmem>>, vector<1x8x8xf32>
    %922 = vector.shape_cast %921 : vector<1x8x8xf32> to vector<8x8xf32>
    %923 = vector.broadcast %920 : f32 to vector<8x8xf32>
    %924 = arith.mulf %923, %922 : vector<8x8xf32>
    %925 = arith.addf %919, %924 : vector<8x8xf32>
    %c148 = arith.constant 148 : index
    %926 = memref.load %arg2[%c148] : memref<288xf32, #tpu.memory_space<smem>>
    %c0_475 = arith.constant 0 : index
    %c1_476 = arith.constant 1 : index
    %c1_477 = arith.constant 1 : index
    %927 = vector.load %arg11[%c0_475, %c1_476, %c1_477] : memref<8x10x10xf32, #tpu.memory_space<vmem>>, vector<1x8x8xf32>
    %928 = vector.shape_cast %927 : vector<1x8x8xf32> to vector<8x8xf32>
    %929 = vector.broadcast %926 : f32 to vector<8x8xf32>
    %930 = arith.mulf %929, %928 : vector<8x8xf32>
    %931 = arith.addf %925, %930 : vector<8x8xf32>
    %c149 = arith.constant 149 : index
    %932 = memref.load %arg2[%c149] : memref<288xf32, #tpu.memory_space<smem>>
    %c0_478 = arith.constant 0 : index
    %c1_479 = arith.constant 1 : index
    %c2_480 = arith.constant 2 : index
    %933 = vector.load %arg11[%c0_478, %c1_479, %c2_480] : memref<8x10x10xf32, #tpu.memory_space<vmem>>, vector<1x8x8xf32>
    %934 = vector.shape_cast %933 : vector<1x8x8xf32> to vector<8x8xf32>
    %935 = vector.broadcast %932 : f32 to vector<8x8xf32>
    %936 = arith.mulf %935, %934 : vector<8x8xf32>
    %937 = arith.addf %931, %936 : vector<8x8xf32>
    %c150 = arith.constant 150 : index
    %938 = memref.load %arg2[%c150] : memref<288xf32, #tpu.memory_space<smem>>
    %c0_481 = arith.constant 0 : index
    %c2_482 = arith.constant 2 : index
    %c0_483 = arith.constant 0 : index
    %939 = vector.load %arg11[%c0_481, %c2_482, %c0_483] : memref<8x10x10xf32, #tpu.memory_space<vmem>>, vector<1x8x8xf32>
    %940 = vector.shape_cast %939 : vector<1x8x8xf32> to vector<8x8xf32>
    %941 = vector.broadcast %938 : f32 to vector<8x8xf32>
    %942 = arith.mulf %941, %940 : vector<8x8xf32>
    %943 = arith.addf %937, %942 : vector<8x8xf32>
    %c151 = arith.constant 151 : index
    %944 = memref.load %arg2[%c151] : memref<288xf32, #tpu.memory_space<smem>>
    %c0_484 = arith.constant 0 : index
    %c2_485 = arith.constant 2 : index
    %c1_486 = arith.constant 1 : index
    %945 = vector.load %arg11[%c0_484, %c2_485, %c1_486] : memref<8x10x10xf32, #tpu.memory_space<vmem>>, vector<1x8x8xf32>
    %946 = vector.shape_cast %945 : vector<1x8x8xf32> to vector<8x8xf32>
    %947 = vector.broadcast %944 : f32 to vector<8x8xf32>
    %948 = arith.mulf %947, %946 : vector<8x8xf32>
    %949 = arith.addf %943, %948 : vector<8x8xf32>
    %c152 = arith.constant 152 : index
    %950 = memref.load %arg2[%c152] : memref<288xf32, #tpu.memory_space<smem>>
    %c0_487 = arith.constant 0 : index
    %c2_488 = arith.constant 2 : index
    %c2_489 = arith.constant 2 : index
    %951 = vector.load %arg11[%c0_487, %c2_488, %c2_489] : memref<8x10x10xf32, #tpu.memory_space<vmem>>, vector<1x8x8xf32>
    %952 = vector.shape_cast %951 : vector<1x8x8xf32> to vector<8x8xf32>
    %953 = vector.broadcast %950 : f32 to vector<8x8xf32>
    %954 = arith.mulf %953, %952 : vector<8x8xf32>
    %955 = arith.addf %949, %954 : vector<8x8xf32>
    %c153 = arith.constant 153 : index
    %956 = memref.load %arg2[%c153] : memref<288xf32, #tpu.memory_space<smem>>
    %c1_490 = arith.constant 1 : index
    %c0_491 = arith.constant 0 : index
    %c0_492 = arith.constant 0 : index
    %957 = vector.load %arg11[%c1_490, %c0_491, %c0_492] : memref<8x10x10xf32, #tpu.memory_space<vmem>>, vector<1x8x8xf32>
    %958 = vector.shape_cast %957 : vector<1x8x8xf32> to vector<8x8xf32>
    %959 = vector.broadcast %956 : f32 to vector<8x8xf32>
    %960 = arith.mulf %959, %958 : vector<8x8xf32>
    %961 = arith.addf %955, %960 : vector<8x8xf32>
    %c154 = arith.constant 154 : index
    %962 = memref.load %arg2[%c154] : memref<288xf32, #tpu.memory_space<smem>>
    %c1_493 = arith.constant 1 : index
    %c0_494 = arith.constant 0 : index
    %c1_495 = arith.constant 1 : index
    %963 = vector.load %arg11[%c1_493, %c0_494, %c1_495] : memref<8x10x10xf32, #tpu.memory_space<vmem>>, vector<1x8x8xf32>
    %964 = vector.shape_cast %963 : vector<1x8x8xf32> to vector<8x8xf32>
    %965 = vector.broadcast %962 : f32 to vector<8x8xf32>
    %966 = arith.mulf %965, %964 : vector<8x8xf32>
    %967 = arith.addf %961, %966 : vector<8x8xf32>
    %c155 = arith.constant 155 : index
    %968 = memref.load %arg2[%c155] : memref<288xf32, #tpu.memory_space<smem>>
    %c1_496 = arith.constant 1 : index
    %c0_497 = arith.constant 0 : index
    %c2_498 = arith.constant 2 : index
    %969 = vector.load %arg11[%c1_496, %c0_497, %c2_498] : memref<8x10x10xf32, #tpu.memory_space<vmem>>, vector<1x8x8xf32>
    %970 = vector.shape_cast %969 : vector<1x8x8xf32> to vector<8x8xf32>
    %971 = vector.broadcast %968 : f32 to vector<8x8xf32>
    %972 = arith.mulf %971, %970 : vector<8x8xf32>
    %973 = arith.addf %967, %972 : vector<8x8xf32>
    %c156 = arith.constant 156 : index
    %974 = memref.load %arg2[%c156] : memref<288xf32, #tpu.memory_space<smem>>
    %c1_499 = arith.constant 1 : index
    %c1_500 = arith.constant 1 : index
    %c0_501 = arith.constant 0 : index
    %975 = vector.load %arg11[%c1_499, %c1_500, %c0_501] : memref<8x10x10xf32, #tpu.memory_space<vmem>>, vector<1x8x8xf32>
    %976 = vector.shape_cast %975 : vector<1x8x8xf32> to vector<8x8xf32>
    %977 = vector.broadcast %974 : f32 to vector<8x8xf32>
    %978 = arith.mulf %977, %976 : vector<8x8xf32>
    %979 = arith.addf %973, %978 : vector<8x8xf32>
    %c157 = arith.constant 157 : index
    %980 = memref.load %arg2[%c157] : memref<288xf32, #tpu.memory_space<smem>>
    %c1_502 = arith.constant 1 : index
    %c1_503 = arith.constant 1 : index
    %c1_504 = arith.constant 1 : index
    %981 = vector.load %arg11[%c1_502, %c1_503, %c1_504] : memref<8x10x10xf32, #tpu.memory_space<vmem>>, vector<1x8x8xf32>
    %982 = vector.shape_cast %981 : vector<1x8x8xf32> to vector<8x8xf32>
    %983 = vector.broadcast %980 : f32 to vector<8x8xf32>
    %984 = arith.mulf %983, %982 : vector<8x8xf32>
    %985 = arith.addf %979, %984 : vector<8x8xf32>
    %c158 = arith.constant 158 : index
    %986 = memref.load %arg2[%c158] : memref<288xf32, #tpu.memory_space<smem>>
    %c1_505 = arith.constant 1 : index
    %c1_506 = arith.constant 1 : index
    %c2_507 = arith.constant 2 : index
    %987 = vector.load %arg11[%c1_505, %c1_506, %c2_507] : memref<8x10x10xf32, #tpu.memory_space<vmem>>, vector<1x8x8xf32>
    %988 = vector.shape_cast %987 : vector<1x8x8xf32> to vector<8x8xf32>
    %989 = vector.broadcast %986 : f32 to vector<8x8xf32>
    %990 = arith.mulf %989, %988 : vector<8x8xf32>
    %991 = arith.addf %985, %990 : vector<8x8xf32>
    %c159 = arith.constant 159 : index
    %992 = memref.load %arg2[%c159] : memref<288xf32, #tpu.memory_space<smem>>
    %c1_508 = arith.constant 1 : index
    %c2_509 = arith.constant 2 : index
    %c0_510 = arith.constant 0 : index
    %993 = vector.load %arg11[%c1_508, %c2_509, %c0_510] : memref<8x10x10xf32, #tpu.memory_space<vmem>>, vector<1x8x8xf32>
    %994 = vector.shape_cast %993 : vector<1x8x8xf32> to vector<8x8xf32>
    %995 = vector.broadcast %992 : f32 to vector<8x8xf32>
    %996 = arith.mulf %995, %994 : vector<8x8xf32>
    %997 = arith.addf %991, %996 : vector<8x8xf32>
    %c160 = arith.constant 160 : index
    %998 = memref.load %arg2[%c160] : memref<288xf32, #tpu.memory_space<smem>>
    %c1_511 = arith.constant 1 : index
    %c2_512 = arith.constant 2 : index
    %c1_513 = arith.constant 1 : index
    %999 = vector.load %arg11[%c1_511, %c2_512, %c1_513] : memref<8x10x10xf32, #tpu.memory_space<vmem>>, vector<1x8x8xf32>
    %1000 = vector.shape_cast %999 : vector<1x8x8xf32> to vector<8x8xf32>
    %1001 = vector.broadcast %998 : f32 to vector<8x8xf32>
    %1002 = arith.mulf %1001, %1000 : vector<8x8xf32>
    %1003 = arith.addf %997, %1002 : vector<8x8xf32>
    %c161 = arith.constant 161 : index
    %1004 = memref.load %arg2[%c161] : memref<288xf32, #tpu.memory_space<smem>>
    %c1_514 = arith.constant 1 : index
    %c2_515 = arith.constant 2 : index
    %c2_516 = arith.constant 2 : index
    %1005 = vector.load %arg11[%c1_514, %c2_515, %c2_516] : memref<8x10x10xf32, #tpu.memory_space<vmem>>, vector<1x8x8xf32>
    %1006 = vector.shape_cast %1005 : vector<1x8x8xf32> to vector<8x8xf32>
    %1007 = vector.broadcast %1004 : f32 to vector<8x8xf32>
    %1008 = arith.mulf %1007, %1006 : vector<8x8xf32>
    %1009 = arith.addf %1003, %1008 : vector<8x8xf32>
    %c162 = arith.constant 162 : index
    %1010 = memref.load %arg2[%c162] : memref<288xf32, #tpu.memory_space<smem>>
    %c2_517 = arith.constant 2 : index
    %c0_518 = arith.constant 0 : index
    %c0_519 = arith.constant 0 : index
    %1011 = vector.load %arg11[%c2_517, %c0_518, %c0_519] : memref<8x10x10xf32, #tpu.memory_space<vmem>>, vector<1x8x8xf32>
    %1012 = vector.shape_cast %1011 : vector<1x8x8xf32> to vector<8x8xf32>
    %1013 = vector.broadcast %1010 : f32 to vector<8x8xf32>
    %1014 = arith.mulf %1013, %1012 : vector<8x8xf32>
    %1015 = arith.addf %1009, %1014 : vector<8x8xf32>
    %c163 = arith.constant 163 : index
    %1016 = memref.load %arg2[%c163] : memref<288xf32, #tpu.memory_space<smem>>
    %c2_520 = arith.constant 2 : index
    %c0_521 = arith.constant 0 : index
    %c1_522 = arith.constant 1 : index
    %1017 = vector.load %arg11[%c2_520, %c0_521, %c1_522] : memref<8x10x10xf32, #tpu.memory_space<vmem>>, vector<1x8x8xf32>
    %1018 = vector.shape_cast %1017 : vector<1x8x8xf32> to vector<8x8xf32>
    %1019 = vector.broadcast %1016 : f32 to vector<8x8xf32>
    %1020 = arith.mulf %1019, %1018 : vector<8x8xf32>
    %1021 = arith.addf %1015, %1020 : vector<8x8xf32>
    %c164 = arith.constant 164 : index
    %1022 = memref.load %arg2[%c164] : memref<288xf32, #tpu.memory_space<smem>>
    %c2_523 = arith.constant 2 : index
    %c0_524 = arith.constant 0 : index
    %c2_525 = arith.constant 2 : index
    %1023 = vector.load %arg11[%c2_523, %c0_524, %c2_525] : memref<8x10x10xf32, #tpu.memory_space<vmem>>, vector<1x8x8xf32>
    %1024 = vector.shape_cast %1023 : vector<1x8x8xf32> to vector<8x8xf32>
    %1025 = vector.broadcast %1022 : f32 to vector<8x8xf32>
    %1026 = arith.mulf %1025, %1024 : vector<8x8xf32>
    %1027 = arith.addf %1021, %1026 : vector<8x8xf32>
    %c165 = arith.constant 165 : index
    %1028 = memref.load %arg2[%c165] : memref<288xf32, #tpu.memory_space<smem>>
    %c2_526 = arith.constant 2 : index
    %c1_527 = arith.constant 1 : index
    %c0_528 = arith.constant 0 : index
    %1029 = vector.load %arg11[%c2_526, %c1_527, %c0_528] : memref<8x10x10xf32, #tpu.memory_space<vmem>>, vector<1x8x8xf32>
    %1030 = vector.shape_cast %1029 : vector<1x8x8xf32> to vector<8x8xf32>
    %1031 = vector.broadcast %1028 : f32 to vector<8x8xf32>
    %1032 = arith.mulf %1031, %1030 : vector<8x8xf32>
    %1033 = arith.addf %1027, %1032 : vector<8x8xf32>
    %c166 = arith.constant 166 : index
    %1034 = memref.load %arg2[%c166] : memref<288xf32, #tpu.memory_space<smem>>
    %c2_529 = arith.constant 2 : index
    %c1_530 = arith.constant 1 : index
    %c1_531 = arith.constant 1 : index
    %1035 = vector.load %arg11[%c2_529, %c1_530, %c1_531] : memref<8x10x10xf32, #tpu.memory_space<vmem>>, vector<1x8x8xf32>
    %1036 = vector.shape_cast %1035 : vector<1x8x8xf32> to vector<8x8xf32>
    %1037 = vector.broadcast %1034 : f32 to vector<8x8xf32>
    %1038 = arith.mulf %1037, %1036 : vector<8x8xf32>
    %1039 = arith.addf %1033, %1038 : vector<8x8xf32>
    %c167 = arith.constant 167 : index
    %1040 = memref.load %arg2[%c167] : memref<288xf32, #tpu.memory_space<smem>>
    %c2_532 = arith.constant 2 : index
    %c1_533 = arith.constant 1 : index
    %c2_534 = arith.constant 2 : index
    %1041 = vector.load %arg11[%c2_532, %c1_533, %c2_534] : memref<8x10x10xf32, #tpu.memory_space<vmem>>, vector<1x8x8xf32>
    %1042 = vector.shape_cast %1041 : vector<1x8x8xf32> to vector<8x8xf32>
    %1043 = vector.broadcast %1040 : f32 to vector<8x8xf32>
    %1044 = arith.mulf %1043, %1042 : vector<8x8xf32>
    %1045 = arith.addf %1039, %1044 : vector<8x8xf32>
    %c168 = arith.constant 168 : index
    %1046 = memref.load %arg2[%c168] : memref<288xf32, #tpu.memory_space<smem>>
    %c2_535 = arith.constant 2 : index
    %c2_536 = arith.constant 2 : index
    %c0_537 = arith.constant 0 : index
    %1047 = vector.load %arg11[%c2_535, %c2_536, %c0_537] : memref<8x10x10xf32, #tpu.memory_space<vmem>>, vector<1x8x8xf32>
    %1048 = vector.shape_cast %1047 : vector<1x8x8xf32> to vector<8x8xf32>
    %1049 = vector.broadcast %1046 : f32 to vector<8x8xf32>
    %1050 = arith.mulf %1049, %1048 : vector<8x8xf32>
    %1051 = arith.addf %1045, %1050 : vector<8x8xf32>
    %c169 = arith.constant 169 : index
    %1052 = memref.load %arg2[%c169] : memref<288xf32, #tpu.memory_space<smem>>
    %c2_538 = arith.constant 2 : index
    %c2_539 = arith.constant 2 : index
    %c1_540 = arith.constant 1 : index
    %1053 = vector.load %arg11[%c2_538, %c2_539, %c1_540] : memref<8x10x10xf32, #tpu.memory_space<vmem>>, vector<1x8x8xf32>
    %1054 = vector.shape_cast %1053 : vector<1x8x8xf32> to vector<8x8xf32>
    %1055 = vector.broadcast %1052 : f32 to vector<8x8xf32>
    %1056 = arith.mulf %1055, %1054 : vector<8x8xf32>
    %1057 = arith.addf %1051, %1056 : vector<8x8xf32>
    %c170 = arith.constant 170 : index
    %1058 = memref.load %arg2[%c170] : memref<288xf32, #tpu.memory_space<smem>>
    %c2_541 = arith.constant 2 : index
    %c2_542 = arith.constant 2 : index
    %c2_543 = arith.constant 2 : index
    %1059 = vector.load %arg11[%c2_541, %c2_542, %c2_543] : memref<8x10x10xf32, #tpu.memory_space<vmem>>, vector<1x8x8xf32>
    %1060 = vector.shape_cast %1059 : vector<1x8x8xf32> to vector<8x8xf32>
    %1061 = vector.broadcast %1058 : f32 to vector<8x8xf32>
    %1062 = arith.mulf %1061, %1060 : vector<8x8xf32>
    %1063 = arith.addf %1057, %1062 : vector<8x8xf32>
    %c171 = arith.constant 171 : index
    %1064 = memref.load %arg2[%c171] : memref<288xf32, #tpu.memory_space<smem>>
    %c3_544 = arith.constant 3 : index
    %c0_545 = arith.constant 0 : index
    %c0_546 = arith.constant 0 : index
    %1065 = vector.load %arg11[%c3_544, %c0_545, %c0_546] : memref<8x10x10xf32, #tpu.memory_space<vmem>>, vector<1x8x8xf32>
    %1066 = vector.shape_cast %1065 : vector<1x8x8xf32> to vector<8x8xf32>
    %1067 = vector.broadcast %1064 : f32 to vector<8x8xf32>
    %1068 = arith.mulf %1067, %1066 : vector<8x8xf32>
    %1069 = arith.addf %1063, %1068 : vector<8x8xf32>
    %c172 = arith.constant 172 : index
    %1070 = memref.load %arg2[%c172] : memref<288xf32, #tpu.memory_space<smem>>
    %c3_547 = arith.constant 3 : index
    %c0_548 = arith.constant 0 : index
    %c1_549 = arith.constant 1 : index
    %1071 = vector.load %arg11[%c3_547, %c0_548, %c1_549] : memref<8x10x10xf32, #tpu.memory_space<vmem>>, vector<1x8x8xf32>
    %1072 = vector.shape_cast %1071 : vector<1x8x8xf32> to vector<8x8xf32>
    %1073 = vector.broadcast %1070 : f32 to vector<8x8xf32>
    %1074 = arith.mulf %1073, %1072 : vector<8x8xf32>
    %1075 = arith.addf %1069, %1074 : vector<8x8xf32>
    %c173 = arith.constant 173 : index
    %1076 = memref.load %arg2[%c173] : memref<288xf32, #tpu.memory_space<smem>>
    %c3_550 = arith.constant 3 : index
    %c0_551 = arith.constant 0 : index
    %c2_552 = arith.constant 2 : index
    %1077 = vector.load %arg11[%c3_550, %c0_551, %c2_552] : memref<8x10x10xf32, #tpu.memory_space<vmem>>, vector<1x8x8xf32>
    %1078 = vector.shape_cast %1077 : vector<1x8x8xf32> to vector<8x8xf32>
    %1079 = vector.broadcast %1076 : f32 to vector<8x8xf32>
    %1080 = arith.mulf %1079, %1078 : vector<8x8xf32>
    %1081 = arith.addf %1075, %1080 : vector<8x8xf32>
    %c174 = arith.constant 174 : index
    %1082 = memref.load %arg2[%c174] : memref<288xf32, #tpu.memory_space<smem>>
    %c3_553 = arith.constant 3 : index
    %c1_554 = arith.constant 1 : index
    %c0_555 = arith.constant 0 : index
    %1083 = vector.load %arg11[%c3_553, %c1_554, %c0_555] : memref<8x10x10xf32, #tpu.memory_space<vmem>>, vector<1x8x8xf32>
    %1084 = vector.shape_cast %1083 : vector<1x8x8xf32> to vector<8x8xf32>
    %1085 = vector.broadcast %1082 : f32 to vector<8x8xf32>
    %1086 = arith.mulf %1085, %1084 : vector<8x8xf32>
    %1087 = arith.addf %1081, %1086 : vector<8x8xf32>
    %c175 = arith.constant 175 : index
    %1088 = memref.load %arg2[%c175] : memref<288xf32, #tpu.memory_space<smem>>
    %c3_556 = arith.constant 3 : index
    %c1_557 = arith.constant 1 : index
    %c1_558 = arith.constant 1 : index
    %1089 = vector.load %arg11[%c3_556, %c1_557, %c1_558] : memref<8x10x10xf32, #tpu.memory_space<vmem>>, vector<1x8x8xf32>
    %1090 = vector.shape_cast %1089 : vector<1x8x8xf32> to vector<8x8xf32>
    %1091 = vector.broadcast %1088 : f32 to vector<8x8xf32>
    %1092 = arith.mulf %1091, %1090 : vector<8x8xf32>
    %1093 = arith.addf %1087, %1092 : vector<8x8xf32>
    %c176 = arith.constant 176 : index
    %1094 = memref.load %arg2[%c176] : memref<288xf32, #tpu.memory_space<smem>>
    %c3_559 = arith.constant 3 : index
    %c1_560 = arith.constant 1 : index
    %c2_561 = arith.constant 2 : index
    %1095 = vector.load %arg11[%c3_559, %c1_560, %c2_561] : memref<8x10x10xf32, #tpu.memory_space<vmem>>, vector<1x8x8xf32>
    %1096 = vector.shape_cast %1095 : vector<1x8x8xf32> to vector<8x8xf32>
    %1097 = vector.broadcast %1094 : f32 to vector<8x8xf32>
    %1098 = arith.mulf %1097, %1096 : vector<8x8xf32>
    %1099 = arith.addf %1093, %1098 : vector<8x8xf32>
    %c177 = arith.constant 177 : index
    %1100 = memref.load %arg2[%c177] : memref<288xf32, #tpu.memory_space<smem>>
    %c3_562 = arith.constant 3 : index
    %c2_563 = arith.constant 2 : index
    %c0_564 = arith.constant 0 : index
    %1101 = vector.load %arg11[%c3_562, %c2_563, %c0_564] : memref<8x10x10xf32, #tpu.memory_space<vmem>>, vector<1x8x8xf32>
    %1102 = vector.shape_cast %1101 : vector<1x8x8xf32> to vector<8x8xf32>
    %1103 = vector.broadcast %1100 : f32 to vector<8x8xf32>
    %1104 = arith.mulf %1103, %1102 : vector<8x8xf32>
    %1105 = arith.addf %1099, %1104 : vector<8x8xf32>
    %c178 = arith.constant 178 : index
    %1106 = memref.load %arg2[%c178] : memref<288xf32, #tpu.memory_space<smem>>
    %c3_565 = arith.constant 3 : index
    %c2_566 = arith.constant 2 : index
    %c1_567 = arith.constant 1 : index
    %1107 = vector.load %arg11[%c3_565, %c2_566, %c1_567] : memref<8x10x10xf32, #tpu.memory_space<vmem>>, vector<1x8x8xf32>
    %1108 = vector.shape_cast %1107 : vector<1x8x8xf32> to vector<8x8xf32>
    %1109 = vector.broadcast %1106 : f32 to vector<8x8xf32>
    %1110 = arith.mulf %1109, %1108 : vector<8x8xf32>
    %1111 = arith.addf %1105, %1110 : vector<8x8xf32>
    %c179 = arith.constant 179 : index
    %1112 = memref.load %arg2[%c179] : memref<288xf32, #tpu.memory_space<smem>>
    %c3_568 = arith.constant 3 : index
    %c2_569 = arith.constant 2 : index
    %c2_570 = arith.constant 2 : index
    %1113 = vector.load %arg11[%c3_568, %c2_569, %c2_570] : memref<8x10x10xf32, #tpu.memory_space<vmem>>, vector<1x8x8xf32>
    %1114 = vector.shape_cast %1113 : vector<1x8x8xf32> to vector<8x8xf32>
    %1115 = vector.broadcast %1112 : f32 to vector<8x8xf32>
    %1116 = arith.mulf %1115, %1114 : vector<8x8xf32>
    %1117 = arith.addf %1111, %1116 : vector<8x8xf32>
    %c180 = arith.constant 180 : index
    %1118 = memref.load %arg2[%c180] : memref<288xf32, #tpu.memory_space<smem>>
    %c4_571 = arith.constant 4 : index
    %c0_572 = arith.constant 0 : index
    %c0_573 = arith.constant 0 : index
    %1119 = vector.load %arg11[%c4_571, %c0_572, %c0_573] : memref<8x10x10xf32, #tpu.memory_space<vmem>>, vector<1x8x8xf32>
    %1120 = vector.shape_cast %1119 : vector<1x8x8xf32> to vector<8x8xf32>
    %1121 = vector.broadcast %1118 : f32 to vector<8x8xf32>
    %1122 = arith.mulf %1121, %1120 : vector<8x8xf32>
    %1123 = arith.addf %1117, %1122 : vector<8x8xf32>
    %c181 = arith.constant 181 : index
    %1124 = memref.load %arg2[%c181] : memref<288xf32, #tpu.memory_space<smem>>
    %c4_574 = arith.constant 4 : index
    %c0_575 = arith.constant 0 : index
    %c1_576 = arith.constant 1 : index
    %1125 = vector.load %arg11[%c4_574, %c0_575, %c1_576] : memref<8x10x10xf32, #tpu.memory_space<vmem>>, vector<1x8x8xf32>
    %1126 = vector.shape_cast %1125 : vector<1x8x8xf32> to vector<8x8xf32>
    %1127 = vector.broadcast %1124 : f32 to vector<8x8xf32>
    %1128 = arith.mulf %1127, %1126 : vector<8x8xf32>
    %1129 = arith.addf %1123, %1128 : vector<8x8xf32>
    %c182 = arith.constant 182 : index
    %1130 = memref.load %arg2[%c182] : memref<288xf32, #tpu.memory_space<smem>>
    %c4_577 = arith.constant 4 : index
    %c0_578 = arith.constant 0 : index
    %c2_579 = arith.constant 2 : index
    %1131 = vector.load %arg11[%c4_577, %c0_578, %c2_579] : memref<8x10x10xf32, #tpu.memory_space<vmem>>, vector<1x8x8xf32>
    %1132 = vector.shape_cast %1131 : vector<1x8x8xf32> to vector<8x8xf32>
    %1133 = vector.broadcast %1130 : f32 to vector<8x8xf32>
    %1134 = arith.mulf %1133, %1132 : vector<8x8xf32>
    %1135 = arith.addf %1129, %1134 : vector<8x8xf32>
    %c183 = arith.constant 183 : index
    %1136 = memref.load %arg2[%c183] : memref<288xf32, #tpu.memory_space<smem>>
    %c4_580 = arith.constant 4 : index
    %c1_581 = arith.constant 1 : index
    %c0_582 = arith.constant 0 : index
    %1137 = vector.load %arg11[%c4_580, %c1_581, %c0_582] : memref<8x10x10xf32, #tpu.memory_space<vmem>>, vector<1x8x8xf32>
    %1138 = vector.shape_cast %1137 : vector<1x8x8xf32> to vector<8x8xf32>
    %1139 = vector.broadcast %1136 : f32 to vector<8x8xf32>
    %1140 = arith.mulf %1139, %1138 : vector<8x8xf32>
    %1141 = arith.addf %1135, %1140 : vector<8x8xf32>
    %c184 = arith.constant 184 : index
    %1142 = memref.load %arg2[%c184] : memref<288xf32, #tpu.memory_space<smem>>
    %c4_583 = arith.constant 4 : index
    %c1_584 = arith.constant 1 : index
    %c1_585 = arith.constant 1 : index
    %1143 = vector.load %arg11[%c4_583, %c1_584, %c1_585] : memref<8x10x10xf32, #tpu.memory_space<vmem>>, vector<1x8x8xf32>
    %1144 = vector.shape_cast %1143 : vector<1x8x8xf32> to vector<8x8xf32>
    %1145 = vector.broadcast %1142 : f32 to vector<8x8xf32>
    %1146 = arith.mulf %1145, %1144 : vector<8x8xf32>
    %1147 = arith.addf %1141, %1146 : vector<8x8xf32>
    %c185 = arith.constant 185 : index
    %1148 = memref.load %arg2[%c185] : memref<288xf32, #tpu.memory_space<smem>>
    %c4_586 = arith.constant 4 : index
    %c1_587 = arith.constant 1 : index
    %c2_588 = arith.constant 2 : index
    %1149 = vector.load %arg11[%c4_586, %c1_587, %c2_588] : memref<8x10x10xf32, #tpu.memory_space<vmem>>, vector<1x8x8xf32>
    %1150 = vector.shape_cast %1149 : vector<1x8x8xf32> to vector<8x8xf32>
    %1151 = vector.broadcast %1148 : f32 to vector<8x8xf32>
    %1152 = arith.mulf %1151, %1150 : vector<8x8xf32>
    %1153 = arith.addf %1147, %1152 : vector<8x8xf32>
    %c186 = arith.constant 186 : index
    %1154 = memref.load %arg2[%c186] : memref<288xf32, #tpu.memory_space<smem>>
    %c4_589 = arith.constant 4 : index
    %c2_590 = arith.constant 2 : index
    %c0_591 = arith.constant 0 : index
    %1155 = vector.load %arg11[%c4_589, %c2_590, %c0_591] : memref<8x10x10xf32, #tpu.memory_space<vmem>>, vector<1x8x8xf32>
    %1156 = vector.shape_cast %1155 : vector<1x8x8xf32> to vector<8x8xf32>
    %1157 = vector.broadcast %1154 : f32 to vector<8x8xf32>
    %1158 = arith.mulf %1157, %1156 : vector<8x8xf32>
    %1159 = arith.addf %1153, %1158 : vector<8x8xf32>
    %c187 = arith.constant 187 : index
    %1160 = memref.load %arg2[%c187] : memref<288xf32, #tpu.memory_space<smem>>
    %c4_592 = arith.constant 4 : index
    %c2_593 = arith.constant 2 : index
    %c1_594 = arith.constant 1 : index
    %1161 = vector.load %arg11[%c4_592, %c2_593, %c1_594] : memref<8x10x10xf32, #tpu.memory_space<vmem>>, vector<1x8x8xf32>
    %1162 = vector.shape_cast %1161 : vector<1x8x8xf32> to vector<8x8xf32>
    %1163 = vector.broadcast %1160 : f32 to vector<8x8xf32>
    %1164 = arith.mulf %1163, %1162 : vector<8x8xf32>
    %1165 = arith.addf %1159, %1164 : vector<8x8xf32>
    %c188 = arith.constant 188 : index
    %1166 = memref.load %arg2[%c188] : memref<288xf32, #tpu.memory_space<smem>>
    %c4_595 = arith.constant 4 : index
    %c2_596 = arith.constant 2 : index
    %c2_597 = arith.constant 2 : index
    %1167 = vector.load %arg11[%c4_595, %c2_596, %c2_597] : memref<8x10x10xf32, #tpu.memory_space<vmem>>, vector<1x8x8xf32>
    %1168 = vector.shape_cast %1167 : vector<1x8x8xf32> to vector<8x8xf32>
    %1169 = vector.broadcast %1166 : f32 to vector<8x8xf32>
    %1170 = arith.mulf %1169, %1168 : vector<8x8xf32>
    %1171 = arith.addf %1165, %1170 : vector<8x8xf32>
    %c189 = arith.constant 189 : index
    %1172 = memref.load %arg2[%c189] : memref<288xf32, #tpu.memory_space<smem>>
    %c5_598 = arith.constant 5 : index
    %c0_599 = arith.constant 0 : index
    %c0_600 = arith.constant 0 : index
    %1173 = vector.load %arg11[%c5_598, %c0_599, %c0_600] : memref<8x10x10xf32, #tpu.memory_space<vmem>>, vector<1x8x8xf32>
    %1174 = vector.shape_cast %1173 : vector<1x8x8xf32> to vector<8x8xf32>
    %1175 = vector.broadcast %1172 : f32 to vector<8x8xf32>
    %1176 = arith.mulf %1175, %1174 : vector<8x8xf32>
    %1177 = arith.addf %1171, %1176 : vector<8x8xf32>
    %c190 = arith.constant 190 : index
    %1178 = memref.load %arg2[%c190] : memref<288xf32, #tpu.memory_space<smem>>
    %c5_601 = arith.constant 5 : index
    %c0_602 = arith.constant 0 : index
    %c1_603 = arith.constant 1 : index
    %1179 = vector.load %arg11[%c5_601, %c0_602, %c1_603] : memref<8x10x10xf32, #tpu.memory_space<vmem>>, vector<1x8x8xf32>
    %1180 = vector.shape_cast %1179 : vector<1x8x8xf32> to vector<8x8xf32>
    %1181 = vector.broadcast %1178 : f32 to vector<8x8xf32>
    %1182 = arith.mulf %1181, %1180 : vector<8x8xf32>
    %1183 = arith.addf %1177, %1182 : vector<8x8xf32>
    %c191 = arith.constant 191 : index
    %1184 = memref.load %arg2[%c191] : memref<288xf32, #tpu.memory_space<smem>>
    %c5_604 = arith.constant 5 : index
    %c0_605 = arith.constant 0 : index
    %c2_606 = arith.constant 2 : index
    %1185 = vector.load %arg11[%c5_604, %c0_605, %c2_606] : memref<8x10x10xf32, #tpu.memory_space<vmem>>, vector<1x8x8xf32>
    %1186 = vector.shape_cast %1185 : vector<1x8x8xf32> to vector<8x8xf32>
    %1187 = vector.broadcast %1184 : f32 to vector<8x8xf32>
    %1188 = arith.mulf %1187, %1186 : vector<8x8xf32>
    %1189 = arith.addf %1183, %1188 : vector<8x8xf32>
    %c192 = arith.constant 192 : index
    %1190 = memref.load %arg2[%c192] : memref<288xf32, #tpu.memory_space<smem>>
    %c5_607 = arith.constant 5 : index
    %c1_608 = arith.constant 1 : index
    %c0_609 = arith.constant 0 : index
    %1191 = vector.load %arg11[%c5_607, %c1_608, %c0_609] : memref<8x10x10xf32, #tpu.memory_space<vmem>>, vector<1x8x8xf32>
    %1192 = vector.shape_cast %1191 : vector<1x8x8xf32> to vector<8x8xf32>
    %1193 = vector.broadcast %1190 : f32 to vector<8x8xf32>
    %1194 = arith.mulf %1193, %1192 : vector<8x8xf32>
    %1195 = arith.addf %1189, %1194 : vector<8x8xf32>
    %c193 = arith.constant 193 : index
    %1196 = memref.load %arg2[%c193] : memref<288xf32, #tpu.memory_space<smem>>
    %c5_610 = arith.constant 5 : index
    %c1_611 = arith.constant 1 : index
    %c1_612 = arith.constant 1 : index
    %1197 = vector.load %arg11[%c5_610, %c1_611, %c1_612] : memref<8x10x10xf32, #tpu.memory_space<vmem>>, vector<1x8x8xf32>
    %1198 = vector.shape_cast %1197 : vector<1x8x8xf32> to vector<8x8xf32>
    %1199 = vector.broadcast %1196 : f32 to vector<8x8xf32>
    %1200 = arith.mulf %1199, %1198 : vector<8x8xf32>
    %1201 = arith.addf %1195, %1200 : vector<8x8xf32>
    %c194 = arith.constant 194 : index
    %1202 = memref.load %arg2[%c194] : memref<288xf32, #tpu.memory_space<smem>>
    %c5_613 = arith.constant 5 : index
    %c1_614 = arith.constant 1 : index
    %c2_615 = arith.constant 2 : index
    %1203 = vector.load %arg11[%c5_613, %c1_614, %c2_615] : memref<8x10x10xf32, #tpu.memory_space<vmem>>, vector<1x8x8xf32>
    %1204 = vector.shape_cast %1203 : vector<1x8x8xf32> to vector<8x8xf32>
    %1205 = vector.broadcast %1202 : f32 to vector<8x8xf32>
    %1206 = arith.mulf %1205, %1204 : vector<8x8xf32>
    %1207 = arith.addf %1201, %1206 : vector<8x8xf32>
    %c195 = arith.constant 195 : index
    %1208 = memref.load %arg2[%c195] : memref<288xf32, #tpu.memory_space<smem>>
    %c5_616 = arith.constant 5 : index
    %c2_617 = arith.constant 2 : index
    %c0_618 = arith.constant 0 : index
    %1209 = vector.load %arg11[%c5_616, %c2_617, %c0_618] : memref<8x10x10xf32, #tpu.memory_space<vmem>>, vector<1x8x8xf32>
    %1210 = vector.shape_cast %1209 : vector<1x8x8xf32> to vector<8x8xf32>
    %1211 = vector.broadcast %1208 : f32 to vector<8x8xf32>
    %1212 = arith.mulf %1211, %1210 : vector<8x8xf32>
    %1213 = arith.addf %1207, %1212 : vector<8x8xf32>
    %c196 = arith.constant 196 : index
    %1214 = memref.load %arg2[%c196] : memref<288xf32, #tpu.memory_space<smem>>
    %c5_619 = arith.constant 5 : index
    %c2_620 = arith.constant 2 : index
    %c1_621 = arith.constant 1 : index
    %1215 = vector.load %arg11[%c5_619, %c2_620, %c1_621] : memref<8x10x10xf32, #tpu.memory_space<vmem>>, vector<1x8x8xf32>
    %1216 = vector.shape_cast %1215 : vector<1x8x8xf32> to vector<8x8xf32>
    %1217 = vector.broadcast %1214 : f32 to vector<8x8xf32>
    %1218 = arith.mulf %1217, %1216 : vector<8x8xf32>
    %1219 = arith.addf %1213, %1218 : vector<8x8xf32>
    %c197 = arith.constant 197 : index
    %1220 = memref.load %arg2[%c197] : memref<288xf32, #tpu.memory_space<smem>>
    %c5_622 = arith.constant 5 : index
    %c2_623 = arith.constant 2 : index
    %c2_624 = arith.constant 2 : index
    %1221 = vector.load %arg11[%c5_622, %c2_623, %c2_624] : memref<8x10x10xf32, #tpu.memory_space<vmem>>, vector<1x8x8xf32>
    %1222 = vector.shape_cast %1221 : vector<1x8x8xf32> to vector<8x8xf32>
    %1223 = vector.broadcast %1220 : f32 to vector<8x8xf32>
    %1224 = arith.mulf %1223, %1222 : vector<8x8xf32>
    %1225 = arith.addf %1219, %1224 : vector<8x8xf32>
    %c198 = arith.constant 198 : index
    %1226 = memref.load %arg2[%c198] : memref<288xf32, #tpu.memory_space<smem>>
    %c6_625 = arith.constant 6 : index
    %c0_626 = arith.constant 0 : index
    %c0_627 = arith.constant 0 : index
    %1227 = vector.load %arg11[%c6_625, %c0_626, %c0_627] : memref<8x10x10xf32, #tpu.memory_space<vmem>>, vector<1x8x8xf32>
    %1228 = vector.shape_cast %1227 : vector<1x8x8xf32> to vector<8x8xf32>
    %1229 = vector.broadcast %1226 : f32 to vector<8x8xf32>
    %1230 = arith.mulf %1229, %1228 : vector<8x8xf32>
    %1231 = arith.addf %1225, %1230 : vector<8x8xf32>
    %c199 = arith.constant 199 : index
    %1232 = memref.load %arg2[%c199] : memref<288xf32, #tpu.memory_space<smem>>
    %c6_628 = arith.constant 6 : index
    %c0_629 = arith.constant 0 : index
    %c1_630 = arith.constant 1 : index
    %1233 = vector.load %arg11[%c6_628, %c0_629, %c1_630] : memref<8x10x10xf32, #tpu.memory_space<vmem>>, vector<1x8x8xf32>
    %1234 = vector.shape_cast %1233 : vector<1x8x8xf32> to vector<8x8xf32>
    %1235 = vector.broadcast %1232 : f32 to vector<8x8xf32>
    %1236 = arith.mulf %1235, %1234 : vector<8x8xf32>
    %1237 = arith.addf %1231, %1236 : vector<8x8xf32>
    %c200 = arith.constant 200 : index
    %1238 = memref.load %arg2[%c200] : memref<288xf32, #tpu.memory_space<smem>>
    %c6_631 = arith.constant 6 : index
    %c0_632 = arith.constant 0 : index
    %c2_633 = arith.constant 2 : index
    %1239 = vector.load %arg11[%c6_631, %c0_632, %c2_633] : memref<8x10x10xf32, #tpu.memory_space<vmem>>, vector<1x8x8xf32>
    %1240 = vector.shape_cast %1239 : vector<1x8x8xf32> to vector<8x8xf32>
    %1241 = vector.broadcast %1238 : f32 to vector<8x8xf32>
    %1242 = arith.mulf %1241, %1240 : vector<8x8xf32>
    %1243 = arith.addf %1237, %1242 : vector<8x8xf32>
    %c201 = arith.constant 201 : index
    %1244 = memref.load %arg2[%c201] : memref<288xf32, #tpu.memory_space<smem>>
    %c6_634 = arith.constant 6 : index
    %c1_635 = arith.constant 1 : index
    %c0_636 = arith.constant 0 : index
    %1245 = vector.load %arg11[%c6_634, %c1_635, %c0_636] : memref<8x10x10xf32, #tpu.memory_space<vmem>>, vector<1x8x8xf32>
    %1246 = vector.shape_cast %1245 : vector<1x8x8xf32> to vector<8x8xf32>
    %1247 = vector.broadcast %1244 : f32 to vector<8x8xf32>
    %1248 = arith.mulf %1247, %1246 : vector<8x8xf32>
    %1249 = arith.addf %1243, %1248 : vector<8x8xf32>
    %c202 = arith.constant 202 : index
    %1250 = memref.load %arg2[%c202] : memref<288xf32, #tpu.memory_space<smem>>
    %c6_637 = arith.constant 6 : index
    %c1_638 = arith.constant 1 : index
    %c1_639 = arith.constant 1 : index
    %1251 = vector.load %arg11[%c6_637, %c1_638, %c1_639] : memref<8x10x10xf32, #tpu.memory_space<vmem>>, vector<1x8x8xf32>
    %1252 = vector.shape_cast %1251 : vector<1x8x8xf32> to vector<8x8xf32>
    %1253 = vector.broadcast %1250 : f32 to vector<8x8xf32>
    %1254 = arith.mulf %1253, %1252 : vector<8x8xf32>
    %1255 = arith.addf %1249, %1254 : vector<8x8xf32>
    %c203 = arith.constant 203 : index
    %1256 = memref.load %arg2[%c203] : memref<288xf32, #tpu.memory_space<smem>>
    %c6_640 = arith.constant 6 : index
    %c1_641 = arith.constant 1 : index
    %c2_642 = arith.constant 2 : index
    %1257 = vector.load %arg11[%c6_640, %c1_641, %c2_642] : memref<8x10x10xf32, #tpu.memory_space<vmem>>, vector<1x8x8xf32>
    %1258 = vector.shape_cast %1257 : vector<1x8x8xf32> to vector<8x8xf32>
    %1259 = vector.broadcast %1256 : f32 to vector<8x8xf32>
    %1260 = arith.mulf %1259, %1258 : vector<8x8xf32>
    %1261 = arith.addf %1255, %1260 : vector<8x8xf32>
    %c204 = arith.constant 204 : index
    %1262 = memref.load %arg2[%c204] : memref<288xf32, #tpu.memory_space<smem>>
    %c6_643 = arith.constant 6 : index
    %c2_644 = arith.constant 2 : index
    %c0_645 = arith.constant 0 : index
    %1263 = vector.load %arg11[%c6_643, %c2_644, %c0_645] : memref<8x10x10xf32, #tpu.memory_space<vmem>>, vector<1x8x8xf32>
    %1264 = vector.shape_cast %1263 : vector<1x8x8xf32> to vector<8x8xf32>
    %1265 = vector.broadcast %1262 : f32 to vector<8x8xf32>
    %1266 = arith.mulf %1265, %1264 : vector<8x8xf32>
    %1267 = arith.addf %1261, %1266 : vector<8x8xf32>
    %c205 = arith.constant 205 : index
    %1268 = memref.load %arg2[%c205] : memref<288xf32, #tpu.memory_space<smem>>
    %c6_646 = arith.constant 6 : index
    %c2_647 = arith.constant 2 : index
    %c1_648 = arith.constant 1 : index
    %1269 = vector.load %arg11[%c6_646, %c2_647, %c1_648] : memref<8x10x10xf32, #tpu.memory_space<vmem>>, vector<1x8x8xf32>
    %1270 = vector.shape_cast %1269 : vector<1x8x8xf32> to vector<8x8xf32>
    %1271 = vector.broadcast %1268 : f32 to vector<8x8xf32>
    %1272 = arith.mulf %1271, %1270 : vector<8x8xf32>
    %1273 = arith.addf %1267, %1272 : vector<8x8xf32>
    %c206 = arith.constant 206 : index
    %1274 = memref.load %arg2[%c206] : memref<288xf32, #tpu.memory_space<smem>>
    %c6_649 = arith.constant 6 : index
    %c2_650 = arith.constant 2 : index
    %c2_651 = arith.constant 2 : index
    %1275 = vector.load %arg11[%c6_649, %c2_650, %c2_651] : memref<8x10x10xf32, #tpu.memory_space<vmem>>, vector<1x8x8xf32>
    %1276 = vector.shape_cast %1275 : vector<1x8x8xf32> to vector<8x8xf32>
    %1277 = vector.broadcast %1274 : f32 to vector<8x8xf32>
    %1278 = arith.mulf %1277, %1276 : vector<8x8xf32>
    %1279 = arith.addf %1273, %1278 : vector<8x8xf32>
    %c207 = arith.constant 207 : index
    %1280 = memref.load %arg2[%c207] : memref<288xf32, #tpu.memory_space<smem>>
    %c7_652 = arith.constant 7 : index
    %c0_653 = arith.constant 0 : index
    %c0_654 = arith.constant 0 : index
    %1281 = vector.load %arg11[%c7_652, %c0_653, %c0_654] : memref<8x10x10xf32, #tpu.memory_space<vmem>>, vector<1x8x8xf32>
    %1282 = vector.shape_cast %1281 : vector<1x8x8xf32> to vector<8x8xf32>
    %1283 = vector.broadcast %1280 : f32 to vector<8x8xf32>
    %1284 = arith.mulf %1283, %1282 : vector<8x8xf32>
    %1285 = arith.addf %1279, %1284 : vector<8x8xf32>
    %c208 = arith.constant 208 : index
    %1286 = memref.load %arg2[%c208] : memref<288xf32, #tpu.memory_space<smem>>
    %c7_655 = arith.constant 7 : index
    %c0_656 = arith.constant 0 : index
    %c1_657 = arith.constant 1 : index
    %1287 = vector.load %arg11[%c7_655, %c0_656, %c1_657] : memref<8x10x10xf32, #tpu.memory_space<vmem>>, vector<1x8x8xf32>
    %1288 = vector.shape_cast %1287 : vector<1x8x8xf32> to vector<8x8xf32>
    %1289 = vector.broadcast %1286 : f32 to vector<8x8xf32>
    %1290 = arith.mulf %1289, %1288 : vector<8x8xf32>
    %1291 = arith.addf %1285, %1290 : vector<8x8xf32>
    %c209 = arith.constant 209 : index
    %1292 = memref.load %arg2[%c209] : memref<288xf32, #tpu.memory_space<smem>>
    %c7_658 = arith.constant 7 : index
    %c0_659 = arith.constant 0 : index
    %c2_660 = arith.constant 2 : index
    %1293 = vector.load %arg11[%c7_658, %c0_659, %c2_660] : memref<8x10x10xf32, #tpu.memory_space<vmem>>, vector<1x8x8xf32>
    %1294 = vector.shape_cast %1293 : vector<1x8x8xf32> to vector<8x8xf32>
    %1295 = vector.broadcast %1292 : f32 to vector<8x8xf32>
    %1296 = arith.mulf %1295, %1294 : vector<8x8xf32>
    %1297 = arith.addf %1291, %1296 : vector<8x8xf32>
    %c210 = arith.constant 210 : index
    %1298 = memref.load %arg2[%c210] : memref<288xf32, #tpu.memory_space<smem>>
    %c7_661 = arith.constant 7 : index
    %c1_662 = arith.constant 1 : index
    %c0_663 = arith.constant 0 : index
    %1299 = vector.load %arg11[%c7_661, %c1_662, %c0_663] : memref<8x10x10xf32, #tpu.memory_space<vmem>>, vector<1x8x8xf32>
    %1300 = vector.shape_cast %1299 : vector<1x8x8xf32> to vector<8x8xf32>
    %1301 = vector.broadcast %1298 : f32 to vector<8x8xf32>
    %1302 = arith.mulf %1301, %1300 : vector<8x8xf32>
    %1303 = arith.addf %1297, %1302 : vector<8x8xf32>
    %c211 = arith.constant 211 : index
    %1304 = memref.load %arg2[%c211] : memref<288xf32, #tpu.memory_space<smem>>
    %c7_664 = arith.constant 7 : index
    %c1_665 = arith.constant 1 : index
    %c1_666 = arith.constant 1 : index
    %1305 = vector.load %arg11[%c7_664, %c1_665, %c1_666] : memref<8x10x10xf32, #tpu.memory_space<vmem>>, vector<1x8x8xf32>
    %1306 = vector.shape_cast %1305 : vector<1x8x8xf32> to vector<8x8xf32>
    %1307 = vector.broadcast %1304 : f32 to vector<8x8xf32>
    %1308 = arith.mulf %1307, %1306 : vector<8x8xf32>
    %1309 = arith.addf %1303, %1308 : vector<8x8xf32>
    %c212 = arith.constant 212 : index
    %1310 = memref.load %arg2[%c212] : memref<288xf32, #tpu.memory_space<smem>>
    %c7_667 = arith.constant 7 : index
    %c1_668 = arith.constant 1 : index
    %c2_669 = arith.constant 2 : index
    %1311 = vector.load %arg11[%c7_667, %c1_668, %c2_669] : memref<8x10x10xf32, #tpu.memory_space<vmem>>, vector<1x8x8xf32>
    %1312 = vector.shape_cast %1311 : vector<1x8x8xf32> to vector<8x8xf32>
    %1313 = vector.broadcast %1310 : f32 to vector<8x8xf32>
    %1314 = arith.mulf %1313, %1312 : vector<8x8xf32>
    %1315 = arith.addf %1309, %1314 : vector<8x8xf32>
    %c213 = arith.constant 213 : index
    %1316 = memref.load %arg2[%c213] : memref<288xf32, #tpu.memory_space<smem>>
    %c7_670 = arith.constant 7 : index
    %c2_671 = arith.constant 2 : index
    %c0_672 = arith.constant 0 : index
    %1317 = vector.load %arg11[%c7_670, %c2_671, %c0_672] : memref<8x10x10xf32, #tpu.memory_space<vmem>>, vector<1x8x8xf32>
    %1318 = vector.shape_cast %1317 : vector<1x8x8xf32> to vector<8x8xf32>
    %1319 = vector.broadcast %1316 : f32 to vector<8x8xf32>
    %1320 = arith.mulf %1319, %1318 : vector<8x8xf32>
    %1321 = arith.addf %1315, %1320 : vector<8x8xf32>
    %c214 = arith.constant 214 : index
    %1322 = memref.load %arg2[%c214] : memref<288xf32, #tpu.memory_space<smem>>
    %c7_673 = arith.constant 7 : index
    %c2_674 = arith.constant 2 : index
    %c1_675 = arith.constant 1 : index
    %1323 = vector.load %arg11[%c7_673, %c2_674, %c1_675] : memref<8x10x10xf32, #tpu.memory_space<vmem>>, vector<1x8x8xf32>
    %1324 = vector.shape_cast %1323 : vector<1x8x8xf32> to vector<8x8xf32>
    %1325 = vector.broadcast %1322 : f32 to vector<8x8xf32>
    %1326 = arith.mulf %1325, %1324 : vector<8x8xf32>
    %1327 = arith.addf %1321, %1326 : vector<8x8xf32>
    %c215 = arith.constant 215 : index
    %1328 = memref.load %arg2[%c215] : memref<288xf32, #tpu.memory_space<smem>>
    %c7_676 = arith.constant 7 : index
    %c2_677 = arith.constant 2 : index
    %c2_678 = arith.constant 2 : index
    %1329 = vector.load %arg11[%c7_676, %c2_677, %c2_678] : memref<8x10x10xf32, #tpu.memory_space<vmem>>, vector<1x8x8xf32>
    %1330 = vector.shape_cast %1329 : vector<1x8x8xf32> to vector<8x8xf32>
    %1331 = vector.broadcast %1328 : f32 to vector<8x8xf32>
    %1332 = arith.mulf %1331, %1330 : vector<8x8xf32>
    %1333 = arith.addf %1327, %1332 : vector<8x8xf32>
    %c2_679 = arith.constant 2 : index
    %1334 = memref.load %arg3[%c2_679] : memref<4xf32, #tpu.memory_space<smem>>
    %1335 = vector.broadcast %1334 : f32 to vector<8x8xf32>
    %1336 = arith.mulf %1333, %1335 : vector<8x8xf32>
    %c2_680 = arith.constant 2 : index
    %1337 = memref.load %arg4[%c2_680] : memref<4xf32, #tpu.memory_space<smem>>
    %1338 = vector.broadcast %1337 : f32 to vector<8x8xf32>
    %1339 = arith.addf %1336, %1338 : vector<8x8xf32>
    %cst_681 = arith.constant 0.000000e+00 : f32
    %1340 = vector.broadcast %cst_681 : f32 to vector<8x8xf32>
    %1341 = arith.cmpf ogt, %1339, %1340 : vector<8x8xf32>
    %cst_682 = arith.constant 0.00999999977 : f32
    %1342 = vector.broadcast %cst_682 : f32 to vector<8x8xf32>
    %1343 = arith.mulf %1342, %1339 : vector<8x8xf32>
    %1344 = arith.select %1341, %1339, %1343 : vector<8x8xi1>, vector<8x8xf32>
    %c2_683 = arith.constant 2 : index
    %c1_684 = arith.constant 1 : index
    %c1_685 = arith.constant 1 : index
    %1345 = vector.load %arg12[%c2_683, %c1_684, %c1_685] : memref<4x10x10xf32, #tpu.memory_space<vmem>>, vector<1x8x8xf32>
    %1346 = vector.shape_cast %1345 : vector<1x8x8xf32> to vector<8x8xf32>
    %1347 = vector.shape_cast %1344 : vector<8x8xf32> to vector<1x8x8xf32>
    tpu.vector_store %arg12[%c2_683, %c1_684, %c1_685], %1347 {strides = array<i32>} : memref<4x10x10xf32, #tpu.memory_space<vmem>>, vector<1x8x8xf32>,
    %cst_686 = arith.constant 0.000000e+00 : f32
    %1348 = vector.broadcast %cst_686 : f32 to vector<8x8xf32>
    %c216 = arith.constant 216 : index
    %1349 = memref.load %arg2[%c216] : memref<288xf32, #tpu.memory_space<smem>>
    %c0_687 = arith.constant 0 : index
    %c0_688 = arith.constant 0 : index
    %c0_689 = arith.constant 0 : index
    %1350 = vector.load %arg11[%c0_687, %c0_688, %c0_689] : memref<8x10x10xf32, #tpu.memory_space<vmem>>, vector<1x8x8xf32>
    %1351 = vector.shape_cast %1350 : vector<1x8x8xf32> to vector<8x8xf32>
    %1352 = vector.broadcast %1349 : f32 to vector<8x8xf32>
    %1353 = arith.mulf %1352, %1351 : vector<8x8xf32>
    %1354 = arith.addf %1348, %1353 : vector<8x8xf32>
    %c217 = arith.constant 217 : index
    %1355 = memref.load %arg2[%c217] : memref<288xf32, #tpu.memory_space<smem>>
    %c0_690 = arith.constant 0 : index
    %c0_691 = arith.constant 0 : index
    %c1_692 = arith.constant 1 : index
    %1356 = vector.load %arg11[%c0_690, %c0_691, %c1_692] : memref<8x10x10xf32, #tpu.memory_space<vmem>>, vector<1x8x8xf32>
    %1357 = vector.shape_cast %1356 : vector<1x8x8xf32> to vector<8x8xf32>
    %1358 = vector.broadcast %1355 : f32 to vector<8x8xf32>
    %1359 = arith.mulf %1358, %1357 : vector<8x8xf32>
    %1360 = arith.addf %1354, %1359 : vector<8x8xf32>
    %c218 = arith.constant 218 : index
    %1361 = memref.load %arg2[%c218] : memref<288xf32, #tpu.memory_space<smem>>
    %c0_693 = arith.constant 0 : index
    %c0_694 = arith.constant 0 : index
    %c2_695 = arith.constant 2 : index
    %1362 = vector.load %arg11[%c0_693, %c0_694, %c2_695] : memref<8x10x10xf32, #tpu.memory_space<vmem>>, vector<1x8x8xf32>
    %1363 = vector.shape_cast %1362 : vector<1x8x8xf32> to vector<8x8xf32>
    %1364 = vector.broadcast %1361 : f32 to vector<8x8xf32>
    %1365 = arith.mulf %1364, %1363 : vector<8x8xf32>
    %1366 = arith.addf %1360, %1365 : vector<8x8xf32>
    %c219 = arith.constant 219 : index
    %1367 = memref.load %arg2[%c219] : memref<288xf32, #tpu.memory_space<smem>>
    %c0_696 = arith.constant 0 : index
    %c1_697 = arith.constant 1 : index
    %c0_698 = arith.constant 0 : index
    %1368 = vector.load %arg11[%c0_696, %c1_697, %c0_698] : memref<8x10x10xf32, #tpu.memory_space<vmem>>, vector<1x8x8xf32>
    %1369 = vector.shape_cast %1368 : vector<1x8x8xf32> to vector<8x8xf32>
    %1370 = vector.broadcast %1367 : f32 to vector<8x8xf32>
    %1371 = arith.mulf %1370, %1369 : vector<8x8xf32>
    %1372 = arith.addf %1366, %1371 : vector<8x8xf32>
    %c220 = arith.constant 220 : index
    %1373 = memref.load %arg2[%c220] : memref<288xf32, #tpu.memory_space<smem>>
    %c0_699 = arith.constant 0 : index
    %c1_700 = arith.constant 1 : index
    %c1_701 = arith.constant 1 : index
    %1374 = vector.load %arg11[%c0_699, %c1_700, %c1_701] : memref<8x10x10xf32, #tpu.memory_space<vmem>>, vector<1x8x8xf32>
    %1375 = vector.shape_cast %1374 : vector<1x8x8xf32> to vector<8x8xf32>
    %1376 = vector.broadcast %1373 : f32 to vector<8x8xf32>
    %1377 = arith.mulf %1376, %1375 : vector<8x8xf32>
    %1378 = arith.addf %1372, %1377 : vector<8x8xf32>
    %c221 = arith.constant 221 : index
    %1379 = memref.load %arg2[%c221] : memref<288xf32, #tpu.memory_space<smem>>
    %c0_702 = arith.constant 0 : index
    %c1_703 = arith.constant 1 : index
    %c2_704 = arith.constant 2 : index
    %1380 = vector.load %arg11[%c0_702, %c1_703, %c2_704] : memref<8x10x10xf32, #tpu.memory_space<vmem>>, vector<1x8x8xf32>
    %1381 = vector.shape_cast %1380 : vector<1x8x8xf32> to vector<8x8xf32>
    %1382 = vector.broadcast %1379 : f32 to vector<8x8xf32>
    %1383 = arith.mulf %1382, %1381 : vector<8x8xf32>
    %1384 = arith.addf %1378, %1383 : vector<8x8xf32>
    %c222 = arith.constant 222 : index
    %1385 = memref.load %arg2[%c222] : memref<288xf32, #tpu.memory_space<smem>>
    %c0_705 = arith.constant 0 : index
    %c2_706 = arith.constant 2 : index
    %c0_707 = arith.constant 0 : index
    %1386 = vector.load %arg11[%c0_705, %c2_706, %c0_707] : memref<8x10x10xf32, #tpu.memory_space<vmem>>, vector<1x8x8xf32>
    %1387 = vector.shape_cast %1386 : vector<1x8x8xf32> to vector<8x8xf32>
    %1388 = vector.broadcast %1385 : f32 to vector<8x8xf32>
    %1389 = arith.mulf %1388, %1387 : vector<8x8xf32>
    %1390 = arith.addf %1384, %1389 : vector<8x8xf32>
    %c223 = arith.constant 223 : index
    %1391 = memref.load %arg2[%c223] : memref<288xf32, #tpu.memory_space<smem>>
    %c0_708 = arith.constant 0 : index
    %c2_709 = arith.constant 2 : index
    %c1_710 = arith.constant 1 : index
    %1392 = vector.load %arg11[%c0_708, %c2_709, %c1_710] : memref<8x10x10xf32, #tpu.memory_space<vmem>>, vector<1x8x8xf32>
    %1393 = vector.shape_cast %1392 : vector<1x8x8xf32> to vector<8x8xf32>
    %1394 = vector.broadcast %1391 : f32 to vector<8x8xf32>
    %1395 = arith.mulf %1394, %1393 : vector<8x8xf32>
    %1396 = arith.addf %1390, %1395 : vector<8x8xf32>
    %c224 = arith.constant 224 : index
    %1397 = memref.load %arg2[%c224] : memref<288xf32, #tpu.memory_space<smem>>
    %c0_711 = arith.constant 0 : index
    %c2_712 = arith.constant 2 : index
    %c2_713 = arith.constant 2 : index
    %1398 = vector.load %arg11[%c0_711, %c2_712, %c2_713] : memref<8x10x10xf32, #tpu.memory_space<vmem>>, vector<1x8x8xf32>
    %1399 = vector.shape_cast %1398 : vector<1x8x8xf32> to vector<8x8xf32>
    %1400 = vector.broadcast %1397 : f32 to vector<8x8xf32>
    %1401 = arith.mulf %1400, %1399 : vector<8x8xf32>
    %1402 = arith.addf %1396, %1401 : vector<8x8xf32>
    %c225 = arith.constant 225 : index
    %1403 = memref.load %arg2[%c225] : memref<288xf32, #tpu.memory_space<smem>>
    %c1_714 = arith.constant 1 : index
    %c0_715 = arith.constant 0 : index
    %c0_716 = arith.constant 0 : index
    %1404 = vector.load %arg11[%c1_714, %c0_715, %c0_716] : memref<8x10x10xf32, #tpu.memory_space<vmem>>, vector<1x8x8xf32>
    %1405 = vector.shape_cast %1404 : vector<1x8x8xf32> to vector<8x8xf32>
    %1406 = vector.broadcast %1403 : f32 to vector<8x8xf32>
    %1407 = arith.mulf %1406, %1405 : vector<8x8xf32>
    %1408 = arith.addf %1402, %1407 : vector<8x8xf32>
    %c226 = arith.constant 226 : index
    %1409 = memref.load %arg2[%c226] : memref<288xf32, #tpu.memory_space<smem>>
    %c1_717 = arith.constant 1 : index
    %c0_718 = arith.constant 0 : index
    %c1_719 = arith.constant 1 : index
    %1410 = vector.load %arg11[%c1_717, %c0_718, %c1_719] : memref<8x10x10xf32, #tpu.memory_space<vmem>>, vector<1x8x8xf32>
    %1411 = vector.shape_cast %1410 : vector<1x8x8xf32> to vector<8x8xf32>
    %1412 = vector.broadcast %1409 : f32 to vector<8x8xf32>
    %1413 = arith.mulf %1412, %1411 : vector<8x8xf32>
    %1414 = arith.addf %1408, %1413 : vector<8x8xf32>
    %c227 = arith.constant 227 : index
    %1415 = memref.load %arg2[%c227] : memref<288xf32, #tpu.memory_space<smem>>
    %c1_720 = arith.constant 1 : index
    %c0_721 = arith.constant 0 : index
    %c2_722 = arith.constant 2 : index
    %1416 = vector.load %arg11[%c1_720, %c0_721, %c2_722] : memref<8x10x10xf32, #tpu.memory_space<vmem>>, vector<1x8x8xf32>
    %1417 = vector.shape_cast %1416 : vector<1x8x8xf32> to vector<8x8xf32>
    %1418 = vector.broadcast %1415 : f32 to vector<8x8xf32>
    %1419 = arith.mulf %1418, %1417 : vector<8x8xf32>
    %1420 = arith.addf %1414, %1419 : vector<8x8xf32>
    %c228 = arith.constant 228 : index
    %1421 = memref.load %arg2[%c228] : memref<288xf32, #tpu.memory_space<smem>>
    %c1_723 = arith.constant 1 : index
    %c1_724 = arith.constant 1 : index
    %c0_725 = arith.constant 0 : index
    %1422 = vector.load %arg11[%c1_723, %c1_724, %c0_725] : memref<8x10x10xf32, #tpu.memory_space<vmem>>, vector<1x8x8xf32>
    %1423 = vector.shape_cast %1422 : vector<1x8x8xf32> to vector<8x8xf32>
    %1424 = vector.broadcast %1421 : f32 to vector<8x8xf32>
    %1425 = arith.mulf %1424, %1423 : vector<8x8xf32>
    %1426 = arith.addf %1420, %1425 : vector<8x8xf32>
    %c229 = arith.constant 229 : index
    %1427 = memref.load %arg2[%c229] : memref<288xf32, #tpu.memory_space<smem>>
    %c1_726 = arith.constant 1 : index
    %c1_727 = arith.constant 1 : index
    %c1_728 = arith.constant 1 : index
    %1428 = vector.load %arg11[%c1_726, %c1_727, %c1_728] : memref<8x10x10xf32, #tpu.memory_space<vmem>>, vector<1x8x8xf32>
    %1429 = vector.shape_cast %1428 : vector<1x8x8xf32> to vector<8x8xf32>
    %1430 = vector.broadcast %1427 : f32 to vector<8x8xf32>
    %1431 = arith.mulf %1430, %1429 : vector<8x8xf32>
    %1432 = arith.addf %1426, %1431 : vector<8x8xf32>
    %c230 = arith.constant 230 : index
    %1433 = memref.load %arg2[%c230] : memref<288xf32, #tpu.memory_space<smem>>
    %c1_729 = arith.constant 1 : index
    %c1_730 = arith.constant 1 : index
    %c2_731 = arith.constant 2 : index
    %1434 = vector.load %arg11[%c1_729, %c1_730, %c2_731] : memref<8x10x10xf32, #tpu.memory_space<vmem>>, vector<1x8x8xf32>
    %1435 = vector.shape_cast %1434 : vector<1x8x8xf32> to vector<8x8xf32>
    %1436 = vector.broadcast %1433 : f32 to vector<8x8xf32>
    %1437 = arith.mulf %1436, %1435 : vector<8x8xf32>
    %1438 = arith.addf %1432, %1437 : vector<8x8xf32>
    %c231 = arith.constant 231 : index
    %1439 = memref.load %arg2[%c231] : memref<288xf32, #tpu.memory_space<smem>>
    %c1_732 = arith.constant 1 : index
    %c2_733 = arith.constant 2 : index
    %c0_734 = arith.constant 0 : index
    %1440 = vector.load %arg11[%c1_732, %c2_733, %c0_734] : memref<8x10x10xf32, #tpu.memory_space<vmem>>, vector<1x8x8xf32>
    %1441 = vector.shape_cast %1440 : vector<1x8x8xf32> to vector<8x8xf32>
    %1442 = vector.broadcast %1439 : f32 to vector<8x8xf32>
    %1443 = arith.mulf %1442, %1441 : vector<8x8xf32>
    %1444 = arith.addf %1438, %1443 : vector<8x8xf32>
    %c232 = arith.constant 232 : index
    %1445 = memref.load %arg2[%c232] : memref<288xf32, #tpu.memory_space<smem>>
    %c1_735 = arith.constant 1 : index
    %c2_736 = arith.constant 2 : index
    %c1_737 = arith.constant 1 : index
    %1446 = vector.load %arg11[%c1_735, %c2_736, %c1_737] : memref<8x10x10xf32, #tpu.memory_space<vmem>>, vector<1x8x8xf32>
    %1447 = vector.shape_cast %1446 : vector<1x8x8xf32> to vector<8x8xf32>
    %1448 = vector.broadcast %1445 : f32 to vector<8x8xf32>
    %1449 = arith.mulf %1448, %1447 : vector<8x8xf32>
    %1450 = arith.addf %1444, %1449 : vector<8x8xf32>
    %c233 = arith.constant 233 : index
    %1451 = memref.load %arg2[%c233] : memref<288xf32, #tpu.memory_space<smem>>
    %c1_738 = arith.constant 1 : index
    %c2_739 = arith.constant 2 : index
    %c2_740 = arith.constant 2 : index
    %1452 = vector.load %arg11[%c1_738, %c2_739, %c2_740] : memref<8x10x10xf32, #tpu.memory_space<vmem>>, vector<1x8x8xf32>
    %1453 = vector.shape_cast %1452 : vector<1x8x8xf32> to vector<8x8xf32>
    %1454 = vector.broadcast %1451 : f32 to vector<8x8xf32>
    %1455 = arith.mulf %1454, %1453 : vector<8x8xf32>
    %1456 = arith.addf %1450, %1455 : vector<8x8xf32>
    %c234 = arith.constant 234 : index
    %1457 = memref.load %arg2[%c234] : memref<288xf32, #tpu.memory_space<smem>>
    %c2_741 = arith.constant 2 : index
    %c0_742 = arith.constant 0 : index
    %c0_743 = arith.constant 0 : index
    %1458 = vector.load %arg11[%c2_741, %c0_742, %c0_743] : memref<8x10x10xf32, #tpu.memory_space<vmem>>, vector<1x8x8xf32>
    %1459 = vector.shape_cast %1458 : vector<1x8x8xf32> to vector<8x8xf32>
    %1460 = vector.broadcast %1457 : f32 to vector<8x8xf32>
    %1461 = arith.mulf %1460, %1459 : vector<8x8xf32>
    %1462 = arith.addf %1456, %1461 : vector<8x8xf32>
    %c235 = arith.constant 235 : index
    %1463 = memref.load %arg2[%c235] : memref<288xf32, #tpu.memory_space<smem>>
    %c2_744 = arith.constant 2 : index
    %c0_745 = arith.constant 0 : index
    %c1_746 = arith.constant 1 : index
    %1464 = vector.load %arg11[%c2_744, %c0_745, %c1_746] : memref<8x10x10xf32, #tpu.memory_space<vmem>>, vector<1x8x8xf32>
    %1465 = vector.shape_cast %1464 : vector<1x8x8xf32> to vector<8x8xf32>
    %1466 = vector.broadcast %1463 : f32 to vector<8x8xf32>
    %1467 = arith.mulf %1466, %1465 : vector<8x8xf32>
    %1468 = arith.addf %1462, %1467 : vector<8x8xf32>
    %c236 = arith.constant 236 : index
    %1469 = memref.load %arg2[%c236] : memref<288xf32, #tpu.memory_space<smem>>
    %c2_747 = arith.constant 2 : index
    %c0_748 = arith.constant 0 : index
    %c2_749 = arith.constant 2 : index
    %1470 = vector.load %arg11[%c2_747, %c0_748, %c2_749] : memref<8x10x10xf32, #tpu.memory_space<vmem>>, vector<1x8x8xf32>
    %1471 = vector.shape_cast %1470 : vector<1x8x8xf32> to vector<8x8xf32>
    %1472 = vector.broadcast %1469 : f32 to vector<8x8xf32>
    %1473 = arith.mulf %1472, %1471 : vector<8x8xf32>
    %1474 = arith.addf %1468, %1473 : vector<8x8xf32>
    %c237 = arith.constant 237 : index
    %1475 = memref.load %arg2[%c237] : memref<288xf32, #tpu.memory_space<smem>>
    %c2_750 = arith.constant 2 : index
    %c1_751 = arith.constant 1 : index
    %c0_752 = arith.constant 0 : index
    %1476 = vector.load %arg11[%c2_750, %c1_751, %c0_752] : memref<8x10x10xf32, #tpu.memory_space<vmem>>, vector<1x8x8xf32>
    %1477 = vector.shape_cast %1476 : vector<1x8x8xf32> to vector<8x8xf32>
    %1478 = vector.broadcast %1475 : f32 to vector<8x8xf32>
    %1479 = arith.mulf %1478, %1477 : vector<8x8xf32>
    %1480 = arith.addf %1474, %1479 : vector<8x8xf32>
    %c238 = arith.constant 238 : index
    %1481 = memref.load %arg2[%c238] : memref<288xf32, #tpu.memory_space<smem>>
    %c2_753 = arith.constant 2 : index
    %c1_754 = arith.constant 1 : index
    %c1_755 = arith.constant 1 : index
    %1482 = vector.load %arg11[%c2_753, %c1_754, %c1_755] : memref<8x10x10xf32, #tpu.memory_space<vmem>>, vector<1x8x8xf32>
    %1483 = vector.shape_cast %1482 : vector<1x8x8xf32> to vector<8x8xf32>
    %1484 = vector.broadcast %1481 : f32 to vector<8x8xf32>
    %1485 = arith.mulf %1484, %1483 : vector<8x8xf32>
    %1486 = arith.addf %1480, %1485 : vector<8x8xf32>
    %c239 = arith.constant 239 : index
    %1487 = memref.load %arg2[%c239] : memref<288xf32, #tpu.memory_space<smem>>
    %c2_756 = arith.constant 2 : index
    %c1_757 = arith.constant 1 : index
    %c2_758 = arith.constant 2 : index
    %1488 = vector.load %arg11[%c2_756, %c1_757, %c2_758] : memref<8x10x10xf32, #tpu.memory_space<vmem>>, vector<1x8x8xf32>
    %1489 = vector.shape_cast %1488 : vector<1x8x8xf32> to vector<8x8xf32>
    %1490 = vector.broadcast %1487 : f32 to vector<8x8xf32>
    %1491 = arith.mulf %1490, %1489 : vector<8x8xf32>
    %1492 = arith.addf %1486, %1491 : vector<8x8xf32>
    %c240 = arith.constant 240 : index
    %1493 = memref.load %arg2[%c240] : memref<288xf32, #tpu.memory_space<smem>>
    %c2_759 = arith.constant 2 : index
    %c2_760 = arith.constant 2 : index
    %c0_761 = arith.constant 0 : index
    %1494 = vector.load %arg11[%c2_759, %c2_760, %c0_761] : memref<8x10x10xf32, #tpu.memory_space<vmem>>, vector<1x8x8xf32>
    %1495 = vector.shape_cast %1494 : vector<1x8x8xf32> to vector<8x8xf32>
    %1496 = vector.broadcast %1493 : f32 to vector<8x8xf32>
    %1497 = arith.mulf %1496, %1495 : vector<8x8xf32>
    %1498 = arith.addf %1492, %1497 : vector<8x8xf32>
    %c241 = arith.constant 241 : index
    %1499 = memref.load %arg2[%c241] : memref<288xf32, #tpu.memory_space<smem>>
    %c2_762 = arith.constant 2 : index
    %c2_763 = arith.constant 2 : index
    %c1_764 = arith.constant 1 : index
    %1500 = vector.load %arg11[%c2_762, %c2_763, %c1_764] : memref<8x10x10xf32, #tpu.memory_space<vmem>>, vector<1x8x8xf32>
    %1501 = vector.shape_cast %1500 : vector<1x8x8xf32> to vector<8x8xf32>
    %1502 = vector.broadcast %1499 : f32 to vector<8x8xf32>
    %1503 = arith.mulf %1502, %1501 : vector<8x8xf32>
    %1504 = arith.addf %1498, %1503 : vector<8x8xf32>
    %c242 = arith.constant 242 : index
    %1505 = memref.load %arg2[%c242] : memref<288xf32, #tpu.memory_space<smem>>
    %c2_765 = arith.constant 2 : index
    %c2_766 = arith.constant 2 : index
    %c2_767 = arith.constant 2 : index
    %1506 = vector.load %arg11[%c2_765, %c2_766, %c2_767] : memref<8x10x10xf32, #tpu.memory_space<vmem>>, vector<1x8x8xf32>
    %1507 = vector.shape_cast %1506 : vector<1x8x8xf32> to vector<8x8xf32>
    %1508 = vector.broadcast %1505 : f32 to vector<8x8xf32>
    %1509 = arith.mulf %1508, %1507 : vector<8x8xf32>
    %1510 = arith.addf %1504, %1509 : vector<8x8xf32>
    %c243 = arith.constant 243 : index
    %1511 = memref.load %arg2[%c243] : memref<288xf32, #tpu.memory_space<smem>>
    %c3_768 = arith.constant 3 : index
    %c0_769 = arith.constant 0 : index
    %c0_770 = arith.constant 0 : index
    %1512 = vector.load %arg11[%c3_768, %c0_769, %c0_770] : memref<8x10x10xf32, #tpu.memory_space<vmem>>, vector<1x8x8xf32>
    %1513 = vector.shape_cast %1512 : vector<1x8x8xf32> to vector<8x8xf32>
    %1514 = vector.broadcast %1511 : f32 to vector<8x8xf32>
    %1515 = arith.mulf %1514, %1513 : vector<8x8xf32>
    %1516 = arith.addf %1510, %1515 : vector<8x8xf32>
    %c244 = arith.constant 244 : index
    %1517 = memref.load %arg2[%c244] : memref<288xf32, #tpu.memory_space<smem>>
    %c3_771 = arith.constant 3 : index
    %c0_772 = arith.constant 0 : index
    %c1_773 = arith.constant 1 : index
    %1518 = vector.load %arg11[%c3_771, %c0_772, %c1_773] : memref<8x10x10xf32, #tpu.memory_space<vmem>>, vector<1x8x8xf32>
    %1519 = vector.shape_cast %1518 : vector<1x8x8xf32> to vector<8x8xf32>
    %1520 = vector.broadcast %1517 : f32 to vector<8x8xf32>
    %1521 = arith.mulf %1520, %1519 : vector<8x8xf32>
    %1522 = arith.addf %1516, %1521 : vector<8x8xf32>
    %c245 = arith.constant 245 : index
    %1523 = memref.load %arg2[%c245] : memref<288xf32, #tpu.memory_space<smem>>
    %c3_774 = arith.constant 3 : index
    %c0_775 = arith.constant 0 : index
    %c2_776 = arith.constant 2 : index
    %1524 = vector.load %arg11[%c3_774, %c0_775, %c2_776] : memref<8x10x10xf32, #tpu.memory_space<vmem>>, vector<1x8x8xf32>
    %1525 = vector.shape_cast %1524 : vector<1x8x8xf32> to vector<8x8xf32>
    %1526 = vector.broadcast %1523 : f32 to vector<8x8xf32>
    %1527 = arith.mulf %1526, %1525 : vector<8x8xf32>
    %1528 = arith.addf %1522, %1527 : vector<8x8xf32>
    %c246 = arith.constant 246 : index
    %1529 = memref.load %arg2[%c246] : memref<288xf32, #tpu.memory_space<smem>>
    %c3_777 = arith.constant 3 : index
    %c1_778 = arith.constant 1 : index
    %c0_779 = arith.constant 0 : index
    %1530 = vector.load %arg11[%c3_777, %c1_778, %c0_779] : memref<8x10x10xf32, #tpu.memory_space<vmem>>, vector<1x8x8xf32>
    %1531 = vector.shape_cast %1530 : vector<1x8x8xf32> to vector<8x8xf32>
    %1532 = vector.broadcast %1529 : f32 to vector<8x8xf32>
    %1533 = arith.mulf %1532, %1531 : vector<8x8xf32>
    %1534 = arith.addf %1528, %1533 : vector<8x8xf32>
    %c247 = arith.constant 247 : index
    %1535 = memref.load %arg2[%c247] : memref<288xf32, #tpu.memory_space<smem>>
    %c3_780 = arith.constant 3 : index
    %c1_781 = arith.constant 1 : index
    %c1_782 = arith.constant 1 : index
    %1536 = vector.load %arg11[%c3_780, %c1_781, %c1_782] : memref<8x10x10xf32, #tpu.memory_space<vmem>>, vector<1x8x8xf32>
    %1537 = vector.shape_cast %1536 : vector<1x8x8xf32> to vector<8x8xf32>
    %1538 = vector.broadcast %1535 : f32 to vector<8x8xf32>
    %1539 = arith.mulf %1538, %1537 : vector<8x8xf32>
    %1540 = arith.addf %1534, %1539 : vector<8x8xf32>
    %c248 = arith.constant 248 : index
    %1541 = memref.load %arg2[%c248] : memref<288xf32, #tpu.memory_space<smem>>
    %c3_783 = arith.constant 3 : index
    %c1_784 = arith.constant 1 : index
    %c2_785 = arith.constant 2 : index
    %1542 = vector.load %arg11[%c3_783, %c1_784, %c2_785] : memref<8x10x10xf32, #tpu.memory_space<vmem>>, vector<1x8x8xf32>
    %1543 = vector.shape_cast %1542 : vector<1x8x8xf32> to vector<8x8xf32>
    %1544 = vector.broadcast %1541 : f32 to vector<8x8xf32>
    %1545 = arith.mulf %1544, %1543 : vector<8x8xf32>
    %1546 = arith.addf %1540, %1545 : vector<8x8xf32>
    %c249 = arith.constant 249 : index
    %1547 = memref.load %arg2[%c249] : memref<288xf32, #tpu.memory_space<smem>>
    %c3_786 = arith.constant 3 : index
    %c2_787 = arith.constant 2 : index
    %c0_788 = arith.constant 0 : index
    %1548 = vector.load %arg11[%c3_786, %c2_787, %c0_788] : memref<8x10x10xf32, #tpu.memory_space<vmem>>, vector<1x8x8xf32>
    %1549 = vector.shape_cast %1548 : vector<1x8x8xf32> to vector<8x8xf32>
    %1550 = vector.broadcast %1547 : f32 to vector<8x8xf32>
    %1551 = arith.mulf %1550, %1549 : vector<8x8xf32>
    %1552 = arith.addf %1546, %1551 : vector<8x8xf32>
    %c250 = arith.constant 250 : index
    %1553 = memref.load %arg2[%c250] : memref<288xf32, #tpu.memory_space<smem>>
    %c3_789 = arith.constant 3 : index
    %c2_790 = arith.constant 2 : index
    %c1_791 = arith.constant 1 : index
    %1554 = vector.load %arg11[%c3_789, %c2_790, %c1_791] : memref<8x10x10xf32, #tpu.memory_space<vmem>>, vector<1x8x8xf32>
    %1555 = vector.shape_cast %1554 : vector<1x8x8xf32> to vector<8x8xf32>
    %1556 = vector.broadcast %1553 : f32 to vector<8x8xf32>
    %1557 = arith.mulf %1556, %1555 : vector<8x8xf32>
    %1558 = arith.addf %1552, %1557 : vector<8x8xf32>
    %c251 = arith.constant 251 : index
    %1559 = memref.load %arg2[%c251] : memref<288xf32, #tpu.memory_space<smem>>
    %c3_792 = arith.constant 3 : index
    %c2_793 = arith.constant 2 : index
    %c2_794 = arith.constant 2 : index
    %1560 = vector.load %arg11[%c3_792, %c2_793, %c2_794] : memref<8x10x10xf32, #tpu.memory_space<vmem>>, vector<1x8x8xf32>
    %1561 = vector.shape_cast %1560 : vector<1x8x8xf32> to vector<8x8xf32>
    %1562 = vector.broadcast %1559 : f32 to vector<8x8xf32>
    %1563 = arith.mulf %1562, %1561 : vector<8x8xf32>
    %1564 = arith.addf %1558, %1563 : vector<8x8xf32>
    %c252 = arith.constant 252 : index
    %1565 = memref.load %arg2[%c252] : memref<288xf32, #tpu.memory_space<smem>>
    %c4_795 = arith.constant 4 : index
    %c0_796 = arith.constant 0 : index
    %c0_797 = arith.constant 0 : index
    %1566 = vector.load %arg11[%c4_795, %c0_796, %c0_797] : memref<8x10x10xf32, #tpu.memory_space<vmem>>, vector<1x8x8xf32>
    %1567 = vector.shape_cast %1566 : vector<1x8x8xf32> to vector<8x8xf32>
    %1568 = vector.broadcast %1565 : f32 to vector<8x8xf32>
    %1569 = arith.mulf %1568, %1567 : vector<8x8xf32>
    %1570 = arith.addf %1564, %1569 : vector<8x8xf32>
    %c253 = arith.constant 253 : index
    %1571 = memref.load %arg2[%c253] : memref<288xf32, #tpu.memory_space<smem>>
    %c4_798 = arith.constant 4 : index
    %c0_799 = arith.constant 0 : index
    %c1_800 = arith.constant 1 : index
    %1572 = vector.load %arg11[%c4_798, %c0_799, %c1_800] : memref<8x10x10xf32, #tpu.memory_space<vmem>>, vector<1x8x8xf32>
    %1573 = vector.shape_cast %1572 : vector<1x8x8xf32> to vector<8x8xf32>
    %1574 = vector.broadcast %1571 : f32 to vector<8x8xf32>
    %1575 = arith.mulf %1574, %1573 : vector<8x8xf32>
    %1576 = arith.addf %1570, %1575 : vector<8x8xf32>
    %c254 = arith.constant 254 : index
    %1577 = memref.load %arg2[%c254] : memref<288xf32, #tpu.memory_space<smem>>
    %c4_801 = arith.constant 4 : index
    %c0_802 = arith.constant 0 : index
    %c2_803 = arith.constant 2 : index
    %1578 = vector.load %arg11[%c4_801, %c0_802, %c2_803] : memref<8x10x10xf32, #tpu.memory_space<vmem>>, vector<1x8x8xf32>
    %1579 = vector.shape_cast %1578 : vector<1x8x8xf32> to vector<8x8xf32>
    %1580 = vector.broadcast %1577 : f32 to vector<8x8xf32>
    %1581 = arith.mulf %1580, %1579 : vector<8x8xf32>
    %1582 = arith.addf %1576, %1581 : vector<8x8xf32>
    %c255 = arith.constant 255 : index
    %1583 = memref.load %arg2[%c255] : memref<288xf32, #tpu.memory_space<smem>>
    %c4_804 = arith.constant 4 : index
    %c1_805 = arith.constant 1 : index
    %c0_806 = arith.constant 0 : index
    %1584 = vector.load %arg11[%c4_804, %c1_805, %c0_806] : memref<8x10x10xf32, #tpu.memory_space<vmem>>, vector<1x8x8xf32>
    %1585 = vector.shape_cast %1584 : vector<1x8x8xf32> to vector<8x8xf32>
    %1586 = vector.broadcast %1583 : f32 to vector<8x8xf32>
    %1587 = arith.mulf %1586, %1585 : vector<8x8xf32>
    %1588 = arith.addf %1582, %1587 : vector<8x8xf32>
    %c256 = arith.constant 256 : index
    %1589 = memref.load %arg2[%c256] : memref<288xf32, #tpu.memory_space<smem>>
    %c4_807 = arith.constant 4 : index
    %c1_808 = arith.constant 1 : index
    %c1_809 = arith.constant 1 : index
    %1590 = vector.load %arg11[%c4_807, %c1_808, %c1_809] : memref<8x10x10xf32, #tpu.memory_space<vmem>>, vector<1x8x8xf32>
    %1591 = vector.shape_cast %1590 : vector<1x8x8xf32> to vector<8x8xf32>
    %1592 = vector.broadcast %1589 : f32 to vector<8x8xf32>
    %1593 = arith.mulf %1592, %1591 : vector<8x8xf32>
    %1594 = arith.addf %1588, %1593 : vector<8x8xf32>
    %c257 = arith.constant 257 : index
    %1595 = memref.load %arg2[%c257] : memref<288xf32, #tpu.memory_space<smem>>
    %c4_810 = arith.constant 4 : index
    %c1_811 = arith.constant 1 : index
    %c2_812 = arith.constant 2 : index
    %1596 = vector.load %arg11[%c4_810, %c1_811, %c2_812] : memref<8x10x10xf32, #tpu.memory_space<vmem>>, vector<1x8x8xf32>
    %1597 = vector.shape_cast %1596 : vector<1x8x8xf32> to vector<8x8xf32>
    %1598 = vector.broadcast %1595 : f32 to vector<8x8xf32>
    %1599 = arith.mulf %1598, %1597 : vector<8x8xf32>
    %1600 = arith.addf %1594, %1599 : vector<8x8xf32>
    %c258 = arith.constant 258 : index
    %1601 = memref.load %arg2[%c258] : memref<288xf32, #tpu.memory_space<smem>>
    %c4_813 = arith.constant 4 : index
    %c2_814 = arith.constant 2 : index
    %c0_815 = arith.constant 0 : index
    %1602 = vector.load %arg11[%c4_813, %c2_814, %c0_815] : memref<8x10x10xf32, #tpu.memory_space<vmem>>, vector<1x8x8xf32>
    %1603 = vector.shape_cast %1602 : vector<1x8x8xf32> to vector<8x8xf32>
    %1604 = vector.broadcast %1601 : f32 to vector<8x8xf32>
    %1605 = arith.mulf %1604, %1603 : vector<8x8xf32>
    %1606 = arith.addf %1600, %1605 : vector<8x8xf32>
    %c259 = arith.constant 259 : index
    %1607 = memref.load %arg2[%c259] : memref<288xf32, #tpu.memory_space<smem>>
    %c4_816 = arith.constant 4 : index
    %c2_817 = arith.constant 2 : index
    %c1_818 = arith.constant 1 : index
    %1608 = vector.load %arg11[%c4_816, %c2_817, %c1_818] : memref<8x10x10xf32, #tpu.memory_space<vmem>>, vector<1x8x8xf32>
    %1609 = vector.shape_cast %1608 : vector<1x8x8xf32> to vector<8x8xf32>
    %1610 = vector.broadcast %1607 : f32 to vector<8x8xf32>
    %1611 = arith.mulf %1610, %1609 : vector<8x8xf32>
    %1612 = arith.addf %1606, %1611 : vector<8x8xf32>
    %c260 = arith.constant 260 : index
    %1613 = memref.load %arg2[%c260] : memref<288xf32, #tpu.memory_space<smem>>
    %c4_819 = arith.constant 4 : index
    %c2_820 = arith.constant 2 : index
    %c2_821 = arith.constant 2 : index
    %1614 = vector.load %arg11[%c4_819, %c2_820, %c2_821] : memref<8x10x10xf32, #tpu.memory_space<vmem>>, vector<1x8x8xf32>
    %1615 = vector.shape_cast %1614 : vector<1x8x8xf32> to vector<8x8xf32>
    %1616 = vector.broadcast %1613 : f32 to vector<8x8xf32>
    %1617 = arith.mulf %1616, %1615 : vector<8x8xf32>
    %1618 = arith.addf %1612, %1617 : vector<8x8xf32>
    %c261 = arith.constant 261 : index
    %1619 = memref.load %arg2[%c261] : memref<288xf32, #tpu.memory_space<smem>>
    %c5_822 = arith.constant 5 : index
    %c0_823 = arith.constant 0 : index
    %c0_824 = arith.constant 0 : index
    %1620 = vector.load %arg11[%c5_822, %c0_823, %c0_824] : memref<8x10x10xf32, #tpu.memory_space<vmem>>, vector<1x8x8xf32>
    %1621 = vector.shape_cast %1620 : vector<1x8x8xf32> to vector<8x8xf32>
    %1622 = vector.broadcast %1619 : f32 to vector<8x8xf32>
    %1623 = arith.mulf %1622, %1621 : vector<8x8xf32>
    %1624 = arith.addf %1618, %1623 : vector<8x8xf32>
    %c262 = arith.constant 262 : index
    %1625 = memref.load %arg2[%c262] : memref<288xf32, #tpu.memory_space<smem>>
    %c5_825 = arith.constant 5 : index
    %c0_826 = arith.constant 0 : index
    %c1_827 = arith.constant 1 : index
    %1626 = vector.load %arg11[%c5_825, %c0_826, %c1_827] : memref<8x10x10xf32, #tpu.memory_space<vmem>>, vector<1x8x8xf32>
    %1627 = vector.shape_cast %1626 : vector<1x8x8xf32> to vector<8x8xf32>
    %1628 = vector.broadcast %1625 : f32 to vector<8x8xf32>
    %1629 = arith.mulf %1628, %1627 : vector<8x8xf32>
    %1630 = arith.addf %1624, %1629 : vector<8x8xf32>
    %c263 = arith.constant 263 : index
    %1631 = memref.load %arg2[%c263] : memref<288xf32, #tpu.memory_space<smem>>
    %c5_828 = arith.constant 5 : index
    %c0_829 = arith.constant 0 : index
    %c2_830 = arith.constant 2 : index
    %1632 = vector.load %arg11[%c5_828, %c0_829, %c2_830] : memref<8x10x10xf32, #tpu.memory_space<vmem>>, vector<1x8x8xf32>
    %1633 = vector.shape_cast %1632 : vector<1x8x8xf32> to vector<8x8xf32>
    %1634 = vector.broadcast %1631 : f32 to vector<8x8xf32>
    %1635 = arith.mulf %1634, %1633 : vector<8x8xf32>
    %1636 = arith.addf %1630, %1635 : vector<8x8xf32>
    %c264 = arith.constant 264 : index
    %1637 = memref.load %arg2[%c264] : memref<288xf32, #tpu.memory_space<smem>>
    %c5_831 = arith.constant 5 : index
    %c1_832 = arith.constant 1 : index
    %c0_833 = arith.constant 0 : index
    %1638 = vector.load %arg11[%c5_831, %c1_832, %c0_833] : memref<8x10x10xf32, #tpu.memory_space<vmem>>, vector<1x8x8xf32>
    %1639 = vector.shape_cast %1638 : vector<1x8x8xf32> to vector<8x8xf32>
    %1640 = vector.broadcast %1637 : f32 to vector<8x8xf32>
    %1641 = arith.mulf %1640, %1639 : vector<8x8xf32>
    %1642 = arith.addf %1636, %1641 : vector<8x8xf32>
    %c265 = arith.constant 265 : index
    %1643 = memref.load %arg2[%c265] : memref<288xf32, #tpu.memory_space<smem>>
    %c5_834 = arith.constant 5 : index
    %c1_835 = arith.constant 1 : index
    %c1_836 = arith.constant 1 : index
    %1644 = vector.load %arg11[%c5_834, %c1_835, %c1_836] : memref<8x10x10xf32, #tpu.memory_space<vmem>>, vector<1x8x8xf32>
    %1645 = vector.shape_cast %1644 : vector<1x8x8xf32> to vector<8x8xf32>
    %1646 = vector.broadcast %1643 : f32 to vector<8x8xf32>
    %1647 = arith.mulf %1646, %1645 : vector<8x8xf32>
    %1648 = arith.addf %1642, %1647 : vector<8x8xf32>
    %c266 = arith.constant 266 : index
    %1649 = memref.load %arg2[%c266] : memref<288xf32, #tpu.memory_space<smem>>
    %c5_837 = arith.constant 5 : index
    %c1_838 = arith.constant 1 : index
    %c2_839 = arith.constant 2 : index
    %1650 = vector.load %arg11[%c5_837, %c1_838, %c2_839] : memref<8x10x10xf32, #tpu.memory_space<vmem>>, vector<1x8x8xf32>
    %1651 = vector.shape_cast %1650 : vector<1x8x8xf32> to vector<8x8xf32>
    %1652 = vector.broadcast %1649 : f32 to vector<8x8xf32>
    %1653 = arith.mulf %1652, %1651 : vector<8x8xf32>
    %1654 = arith.addf %1648, %1653 : vector<8x8xf32>
    %c267 = arith.constant 267 : index
    %1655 = memref.load %arg2[%c267] : memref<288xf32, #tpu.memory_space<smem>>
    %c5_840 = arith.constant 5 : index
    %c2_841 = arith.constant 2 : index
    %c0_842 = arith.constant 0 : index
    %1656 = vector.load %arg11[%c5_840, %c2_841, %c0_842] : memref<8x10x10xf32, #tpu.memory_space<vmem>>, vector<1x8x8xf32>
    %1657 = vector.shape_cast %1656 : vector<1x8x8xf32> to vector<8x8xf32>
    %1658 = vector.broadcast %1655 : f32 to vector<8x8xf32>
    %1659 = arith.mulf %1658, %1657 : vector<8x8xf32>
    %1660 = arith.addf %1654, %1659 : vector<8x8xf32>
    %c268 = arith.constant 268 : index
    %1661 = memref.load %arg2[%c268] : memref<288xf32, #tpu.memory_space<smem>>
    %c5_843 = arith.constant 5 : index
    %c2_844 = arith.constant 2 : index
    %c1_845 = arith.constant 1 : index
    %1662 = vector.load %arg11[%c5_843, %c2_844, %c1_845] : memref<8x10x10xf32, #tpu.memory_space<vmem>>, vector<1x8x8xf32>
    %1663 = vector.shape_cast %1662 : vector<1x8x8xf32> to vector<8x8xf32>
    %1664 = vector.broadcast %1661 : f32 to vector<8x8xf32>
    %1665 = arith.mulf %1664, %1663 : vector<8x8xf32>
    %1666 = arith.addf %1660, %1665 : vector<8x8xf32>
    %c269 = arith.constant 269 : index
    %1667 = memref.load %arg2[%c269] : memref<288xf32, #tpu.memory_space<smem>>
    %c5_846 = arith.constant 5 : index
    %c2_847 = arith.constant 2 : index
    %c2_848 = arith.constant 2 : index
    %1668 = vector.load %arg11[%c5_846, %c2_847, %c2_848] : memref<8x10x10xf32, #tpu.memory_space<vmem>>, vector<1x8x8xf32>
    %1669 = vector.shape_cast %1668 : vector<1x8x8xf32> to vector<8x8xf32>
    %1670 = vector.broadcast %1667 : f32 to vector<8x8xf32>
    %1671 = arith.mulf %1670, %1669 : vector<8x8xf32>
    %1672 = arith.addf %1666, %1671 : vector<8x8xf32>
    %c270 = arith.constant 270 : index
    %1673 = memref.load %arg2[%c270] : memref<288xf32, #tpu.memory_space<smem>>
    %c6_849 = arith.constant 6 : index
    %c0_850 = arith.constant 0 : index
    %c0_851 = arith.constant 0 : index
    %1674 = vector.load %arg11[%c6_849, %c0_850, %c0_851] : memref<8x10x10xf32, #tpu.memory_space<vmem>>, vector<1x8x8xf32>
    %1675 = vector.shape_cast %1674 : vector<1x8x8xf32> to vector<8x8xf32>
    %1676 = vector.broadcast %1673 : f32 to vector<8x8xf32>
    %1677 = arith.mulf %1676, %1675 : vector<8x8xf32>
    %1678 = arith.addf %1672, %1677 : vector<8x8xf32>
    %c271 = arith.constant 271 : index
    %1679 = memref.load %arg2[%c271] : memref<288xf32, #tpu.memory_space<smem>>
    %c6_852 = arith.constant 6 : index
    %c0_853 = arith.constant 0 : index
    %c1_854 = arith.constant 1 : index
    %1680 = vector.load %arg11[%c6_852, %c0_853, %c1_854] : memref<8x10x10xf32, #tpu.memory_space<vmem>>, vector<1x8x8xf32>
    %1681 = vector.shape_cast %1680 : vector<1x8x8xf32> to vector<8x8xf32>
    %1682 = vector.broadcast %1679 : f32 to vector<8x8xf32>
    %1683 = arith.mulf %1682, %1681 : vector<8x8xf32>
    %1684 = arith.addf %1678, %1683 : vector<8x8xf32>
    %c272 = arith.constant 272 : index
    %1685 = memref.load %arg2[%c272] : memref<288xf32, #tpu.memory_space<smem>>
    %c6_855 = arith.constant 6 : index
    %c0_856 = arith.constant 0 : index
    %c2_857 = arith.constant 2 : index
    %1686 = vector.load %arg11[%c6_855, %c0_856, %c2_857] : memref<8x10x10xf32, #tpu.memory_space<vmem>>, vector<1x8x8xf32>
    %1687 = vector.shape_cast %1686 : vector<1x8x8xf32> to vector<8x8xf32>
    %1688 = vector.broadcast %1685 : f32 to vector<8x8xf32>
    %1689 = arith.mulf %1688, %1687 : vector<8x8xf32>
    %1690 = arith.addf %1684, %1689 : vector<8x8xf32>
    %c273 = arith.constant 273 : index
    %1691 = memref.load %arg2[%c273] : memref<288xf32, #tpu.memory_space<smem>>
    %c6_858 = arith.constant 6 : index
    %c1_859 = arith.constant 1 : index
    %c0_860 = arith.constant 0 : index
    %1692 = vector.load %arg11[%c6_858, %c1_859, %c0_860] : memref<8x10x10xf32, #tpu.memory_space<vmem>>, vector<1x8x8xf32>
    %1693 = vector.shape_cast %1692 : vector<1x8x8xf32> to vector<8x8xf32>
    %1694 = vector.broadcast %1691 : f32 to vector<8x8xf32>
    %1695 = arith.mulf %1694, %1693 : vector<8x8xf32>
    %1696 = arith.addf %1690, %1695 : vector<8x8xf32>
    %c274 = arith.constant 274 : index
    %1697 = memref.load %arg2[%c274] : memref<288xf32, #tpu.memory_space<smem>>
    %c6_861 = arith.constant 6 : index
    %c1_862 = arith.constant 1 : index
    %c1_863 = arith.constant 1 : index
    %1698 = vector.load %arg11[%c6_861, %c1_862, %c1_863] : memref<8x10x10xf32, #tpu.memory_space<vmem>>, vector<1x8x8xf32>
    %1699 = vector.shape_cast %1698 : vector<1x8x8xf32> to vector<8x8xf32>
    %1700 = vector.broadcast %1697 : f32 to vector<8x8xf32>
    %1701 = arith.mulf %1700, %1699 : vector<8x8xf32>
    %1702 = arith.addf %1696, %1701 : vector<8x8xf32>
    %c275 = arith.constant 275 : index
    %1703 = memref.load %arg2[%c275] : memref<288xf32, #tpu.memory_space<smem>>
    %c6_864 = arith.constant 6 : index
    %c1_865 = arith.constant 1 : index
    %c2_866 = arith.constant 2 : index
    %1704 = vector.load %arg11[%c6_864, %c1_865, %c2_866] : memref<8x10x10xf32, #tpu.memory_space<vmem>>, vector<1x8x8xf32>
    %1705 = vector.shape_cast %1704 : vector<1x8x8xf32> to vector<8x8xf32>
    %1706 = vector.broadcast %1703 : f32 to vector<8x8xf32>
    %1707 = arith.mulf %1706, %1705 : vector<8x8xf32>
    %1708 = arith.addf %1702, %1707 : vector<8x8xf32>
    %c276 = arith.constant 276 : index
    %1709 = memref.load %arg2[%c276] : memref<288xf32, #tpu.memory_space<smem>>
    %c6_867 = arith.constant 6 : index
    %c2_868 = arith.constant 2 : index
    %c0_869 = arith.constant 0 : index
    %1710 = vector.load %arg11[%c6_867, %c2_868, %c0_869] : memref<8x10x10xf32, #tpu.memory_space<vmem>>, vector<1x8x8xf32>
    %1711 = vector.shape_cast %1710 : vector<1x8x8xf32> to vector<8x8xf32>
    %1712 = vector.broadcast %1709 : f32 to vector<8x8xf32>
    %1713 = arith.mulf %1712, %1711 : vector<8x8xf32>
    %1714 = arith.addf %1708, %1713 : vector<8x8xf32>
    %c277 = arith.constant 277 : index
    %1715 = memref.load %arg2[%c277] : memref<288xf32, #tpu.memory_space<smem>>
    %c6_870 = arith.constant 6 : index
    %c2_871 = arith.constant 2 : index
    %c1_872 = arith.constant 1 : index
    %1716 = vector.load %arg11[%c6_870, %c2_871, %c1_872] : memref<8x10x10xf32, #tpu.memory_space<vmem>>, vector<1x8x8xf32>
    %1717 = vector.shape_cast %1716 : vector<1x8x8xf32> to vector<8x8xf32>
    %1718 = vector.broadcast %1715 : f32 to vector<8x8xf32>
    %1719 = arith.mulf %1718, %1717 : vector<8x8xf32>
    %1720 = arith.addf %1714, %1719 : vector<8x8xf32>
    %c278 = arith.constant 278 : index
    %1721 = memref.load %arg2[%c278] : memref<288xf32, #tpu.memory_space<smem>>
    %c6_873 = arith.constant 6 : index
    %c2_874 = arith.constant 2 : index
    %c2_875 = arith.constant 2 : index
    %1722 = vector.load %arg11[%c6_873, %c2_874, %c2_875] : memref<8x10x10xf32, #tpu.memory_space<vmem>>, vector<1x8x8xf32>
    %1723 = vector.shape_cast %1722 : vector<1x8x8xf32> to vector<8x8xf32>
    %1724 = vector.broadcast %1721 : f32 to vector<8x8xf32>
    %1725 = arith.mulf %1724, %1723 : vector<8x8xf32>
    %1726 = arith.addf %1720, %1725 : vector<8x8xf32>
    %c279 = arith.constant 279 : index
    %1727 = memref.load %arg2[%c279] : memref<288xf32, #tpu.memory_space<smem>>
    %c7_876 = arith.constant 7 : index
    %c0_877 = arith.constant 0 : index
    %c0_878 = arith.constant 0 : index
    %1728 = vector.load %arg11[%c7_876, %c0_877, %c0_878] : memref<8x10x10xf32, #tpu.memory_space<vmem>>, vector<1x8x8xf32>
    %1729 = vector.shape_cast %1728 : vector<1x8x8xf32> to vector<8x8xf32>
    %1730 = vector.broadcast %1727 : f32 to vector<8x8xf32>
    %1731 = arith.mulf %1730, %1729 : vector<8x8xf32>
    %1732 = arith.addf %1726, %1731 : vector<8x8xf32>
    %c280 = arith.constant 280 : index
    %1733 = memref.load %arg2[%c280] : memref<288xf32, #tpu.memory_space<smem>>
    %c7_879 = arith.constant 7 : index
    %c0_880 = arith.constant 0 : index
    %c1_881 = arith.constant 1 : index
    %1734 = vector.load %arg11[%c7_879, %c0_880, %c1_881] : memref<8x10x10xf32, #tpu.memory_space<vmem>>, vector<1x8x8xf32>
    %1735 = vector.shape_cast %1734 : vector<1x8x8xf32> to vector<8x8xf32>
    %1736 = vector.broadcast %1733 : f32 to vector<8x8xf32>
    %1737 = arith.mulf %1736, %1735 : vector<8x8xf32>
    %1738 = arith.addf %1732, %1737 : vector<8x8xf32>
    %c281 = arith.constant 281 : index
    %1739 = memref.load %arg2[%c281] : memref<288xf32, #tpu.memory_space<smem>>
    %c7_882 = arith.constant 7 : index
    %c0_883 = arith.constant 0 : index
    %c2_884 = arith.constant 2 : index
    %1740 = vector.load %arg11[%c7_882, %c0_883, %c2_884] : memref<8x10x10xf32, #tpu.memory_space<vmem>>, vector<1x8x8xf32>
    %1741 = vector.shape_cast %1740 : vector<1x8x8xf32> to vector<8x8xf32>
    %1742 = vector.broadcast %1739 : f32 to vector<8x8xf32>
    %1743 = arith.mulf %1742, %1741 : vector<8x8xf32>
    %1744 = arith.addf %1738, %1743 : vector<8x8xf32>
    %c282 = arith.constant 282 : index
    %1745 = memref.load %arg2[%c282] : memref<288xf32, #tpu.memory_space<smem>>
    %c7_885 = arith.constant 7 : index
    %c1_886 = arith.constant 1 : index
    %c0_887 = arith.constant 0 : index
    %1746 = vector.load %arg11[%c7_885, %c1_886, %c0_887] : memref<8x10x10xf32, #tpu.memory_space<vmem>>, vector<1x8x8xf32>
    %1747 = vector.shape_cast %1746 : vector<1x8x8xf32> to vector<8x8xf32>
    %1748 = vector.broadcast %1745 : f32 to vector<8x8xf32>
    %1749 = arith.mulf %1748, %1747 : vector<8x8xf32>
    %1750 = arith.addf %1744, %1749 : vector<8x8xf32>
    %c283 = arith.constant 283 : index
    %1751 = memref.load %arg2[%c283] : memref<288xf32, #tpu.memory_space<smem>>
    %c7_888 = arith.constant 7 : index
    %c1_889 = arith.constant 1 : index
    %c1_890 = arith.constant 1 : index
    %1752 = vector.load %arg11[%c7_888, %c1_889, %c1_890] : memref<8x10x10xf32, #tpu.memory_space<vmem>>, vector<1x8x8xf32>
    %1753 = vector.shape_cast %1752 : vector<1x8x8xf32> to vector<8x8xf32>
    %1754 = vector.broadcast %1751 : f32 to vector<8x8xf32>
    %1755 = arith.mulf %1754, %1753 : vector<8x8xf32>
    %1756 = arith.addf %1750, %1755 : vector<8x8xf32>
    %c284 = arith.constant 284 : index
    %1757 = memref.load %arg2[%c284] : memref<288xf32, #tpu.memory_space<smem>>
    %c7_891 = arith.constant 7 : index
    %c1_892 = arith.constant 1 : index
    %c2_893 = arith.constant 2 : index
    %1758 = vector.load %arg11[%c7_891, %c1_892, %c2_893] : memref<8x10x10xf32, #tpu.memory_space<vmem>>, vector<1x8x8xf32>
    %1759 = vector.shape_cast %1758 : vector<1x8x8xf32> to vector<8x8xf32>
    %1760 = vector.broadcast %1757 : f32 to vector<8x8xf32>
    %1761 = arith.mulf %1760, %1759 : vector<8x8xf32>
    %1762 = arith.addf %1756, %1761 : vector<8x8xf32>
    %c285 = arith.constant 285 : index
    %1763 = memref.load %arg2[%c285] : memref<288xf32, #tpu.memory_space<smem>>
    %c7_894 = arith.constant 7 : index
    %c2_895 = arith.constant 2 : index
    %c0_896 = arith.constant 0 : index
    %1764 = vector.load %arg11[%c7_894, %c2_895, %c0_896] : memref<8x10x10xf32, #tpu.memory_space<vmem>>, vector<1x8x8xf32>
    %1765 = vector.shape_cast %1764 : vector<1x8x8xf32> to vector<8x8xf32>
    %1766 = vector.broadcast %1763 : f32 to vector<8x8xf32>
    %1767 = arith.mulf %1766, %1765 : vector<8x8xf32>
    %1768 = arith.addf %1762, %1767 : vector<8x8xf32>
    %c286 = arith.constant 286 : index
    %1769 = memref.load %arg2[%c286] : memref<288xf32, #tpu.memory_space<smem>>
    %c7_897 = arith.constant 7 : index
    %c2_898 = arith.constant 2 : index
    %c1_899 = arith.constant 1 : index
    %1770 = vector.load %arg11[%c7_897, %c2_898, %c1_899] : memref<8x10x10xf32, #tpu.memory_space<vmem>>, vector<1x8x8xf32>
    %1771 = vector.shape_cast %1770 : vector<1x8x8xf32> to vector<8x8xf32>
    %1772 = vector.broadcast %1769 : f32 to vector<8x8xf32>
    %1773 = arith.mulf %1772, %1771 : vector<8x8xf32>
    %1774 = arith.addf %1768, %1773 : vector<8x8xf32>
    %c287 = arith.constant 287 : index
    %1775 = memref.load %arg2[%c287] : memref<288xf32, #tpu.memory_space<smem>>
    %c7_900 = arith.constant 7 : index
    %c2_901 = arith.constant 2 : index
    %c2_902 = arith.constant 2 : index
    %1776 = vector.load %arg11[%c7_900, %c2_901, %c2_902] : memref<8x10x10xf32, #tpu.memory_space<vmem>>, vector<1x8x8xf32>
    %1777 = vector.shape_cast %1776 : vector<1x8x8xf32> to vector<8x8xf32>
    %1778 = vector.broadcast %1775 : f32 to vector<8x8xf32>
    %1779 = arith.mulf %1778, %1777 : vector<8x8xf32>
    %1780 = arith.addf %1774, %1779 : vector<8x8xf32>
    %c3_903 = arith.constant 3 : index
    %1781 = memref.load %arg3[%c3_903] : memref<4xf32, #tpu.memory_space<smem>>
    %1782 = vector.broadcast %1781 : f32 to vector<8x8xf32>
    %1783 = arith.mulf %1780, %1782 : vector<8x8xf32>
    %c3_904 = arith.constant 3 : index
    %1784 = memref.load %arg4[%c3_904] : memref<4xf32, #tpu.memory_space<smem>>
    %1785 = vector.broadcast %1784 : f32 to vector<8x8xf32>
    %1786 = arith.addf %1783, %1785 : vector<8x8xf32>
    %cst_905 = arith.constant 0.000000e+00 : f32
    %1787 = vector.broadcast %cst_905 : f32 to vector<8x8xf32>
    %1788 = arith.cmpf ogt, %1786, %1787 : vector<8x8xf32>
    %cst_906 = arith.constant 0.00999999977 : f32
    %1789 = vector.broadcast %cst_906 : f32 to vector<8x8xf32>
    %1790 = arith.mulf %1789, %1786 : vector<8x8xf32>
    %1791 = arith.select %1788, %1786, %1790 : vector<8x8xi1>, vector<8x8xf32>
    %c3_907 = arith.constant 3 : index
    %c1_908 = arith.constant 1 : index
    %c1_909 = arith.constant 1 : index
    %1792 = vector.load %arg12[%c3_907, %c1_908, %c1_909] : memref<4x10x10xf32, #tpu.memory_space<vmem>>, vector<1x8x8xf32>
    %1793 = vector.shape_cast %1792 : vector<1x8x8xf32> to vector<8x8xf32>
    %1794 = vector.shape_cast %1791 : vector<8x8xf32> to vector<1x8x8xf32>
    tpu.vector_store %arg12[%c3_907, %c1_908, %c1_909], %1794 {strides = array<i32>} : memref<4x10x10xf32, #tpu.memory_space<vmem>>, vector<1x8x8xf32>,
    %c0_910 = arith.constant 0 : index
    %c0_911 = arith.constant 0 : index
    %1795 = vector.load %arg8[%c0_910, %c0_911] : memref<16x8xf32, #tpu.memory_space<vmem>>, vector<16x8xf32>
    %c0_912 = arith.constant 0 : index
    %c0_913 = arith.constant 0 : index
    %1796 = vector.load %arg9[%c0_912, %c0_913] : memref<8x16xf32, #tpu.memory_space<vmem>>, vector<8x16xf32>
    %cst_914 = arith.constant 0.000000e+00 : f32
    %1797 = vector.broadcast %cst_914 : f32 to vector<8x8xf32>
    %c0_915 = arith.constant 0 : index
    %1798 = memref.load %arg5[%c0_915] : memref<144xf32, #tpu.memory_space<smem>>
    %c0_916 = arith.constant 0 : index
    %c0_917 = arith.constant 0 : index
    %c0_918 = arith.constant 0 : index
    %1799 = vector.load %arg12[%c0_916, %c0_917, %c0_918] : memref<4x10x10xf32, #tpu.memory_space<vmem>>, vector<1x8x8xf32>
    %1800 = vector.shape_cast %1799 : vector<1x8x8xf32> to vector<8x8xf32>
    %1801 = vector.broadcast %1798 : f32 to vector<8x8xf32>
    %1802 = arith.mulf %1801, %1800 : vector<8x8xf32>
    %1803 = arith.addf %1797, %1802 : vector<8x8xf32>
    %c1_919 = arith.constant 1 : index
    %1804 = memref.load %arg5[%c1_919] : memref<144xf32, #tpu.memory_space<smem>>
    %c0_920 = arith.constant 0 : index
    %c0_921 = arith.constant 0 : index
    %c1_922 = arith.constant 1 : index
    %1805 = vector.load %arg12[%c0_920, %c0_921, %c1_922] : memref<4x10x10xf32, #tpu.memory_space<vmem>>, vector<1x8x8xf32>
    %1806 = vector.shape_cast %1805 : vector<1x8x8xf32> to vector<8x8xf32>
    %1807 = vector.broadcast %1804 : f32 to vector<8x8xf32>
    %1808 = arith.mulf %1807, %1806 : vector<8x8xf32>
    %1809 = arith.addf %1803, %1808 : vector<8x8xf32>
    %c2_923 = arith.constant 2 : index
    %1810 = memref.load %arg5[%c2_923] : memref<144xf32, #tpu.memory_space<smem>>
    %c0_924 = arith.constant 0 : index
    %c0_925 = arith.constant 0 : index
    %c2_926 = arith.constant 2 : index
    %1811 = vector.load %arg12[%c0_924, %c0_925, %c2_926] : memref<4x10x10xf32, #tpu.memory_space<vmem>>, vector<1x8x8xf32>
    %1812 = vector.shape_cast %1811 : vector<1x8x8xf32> to vector<8x8xf32>
    %1813 = vector.broadcast %1810 : f32 to vector<8x8xf32>
    %1814 = arith.mulf %1813, %1812 : vector<8x8xf32>
    %1815 = arith.addf %1809, %1814 : vector<8x8xf32>
    %c3_927 = arith.constant 3 : index
    %1816 = memref.load %arg5[%c3_927] : memref<144xf32, #tpu.memory_space<smem>>
    %c0_928 = arith.constant 0 : index
    %c1_929 = arith.constant 1 : index
    %c0_930 = arith.constant 0 : index
    %1817 = vector.load %arg12[%c0_928, %c1_929, %c0_930] : memref<4x10x10xf32, #tpu.memory_space<vmem>>, vector<1x8x8xf32>
    %1818 = vector.shape_cast %1817 : vector<1x8x8xf32> to vector<8x8xf32>
    %1819 = vector.broadcast %1816 : f32 to vector<8x8xf32>
    %1820 = arith.mulf %1819, %1818 : vector<8x8xf32>
    %1821 = arith.addf %1815, %1820 : vector<8x8xf32>
    %c4_931 = arith.constant 4 : index
    %1822 = memref.load %arg5[%c4_931] : memref<144xf32, #tpu.memory_space<smem>>
    %c0_932 = arith.constant 0 : index
    %c1_933 = arith.constant 1 : index
    %c1_934 = arith.constant 1 : index
    %1823 = vector.load %arg12[%c0_932, %c1_933, %c1_934] : memref<4x10x10xf32, #tpu.memory_space<vmem>>, vector<1x8x8xf32>
    %1824 = vector.shape_cast %1823 : vector<1x8x8xf32> to vector<8x8xf32>
    %1825 = vector.broadcast %1822 : f32 to vector<8x8xf32>
    %1826 = arith.mulf %1825, %1824 : vector<8x8xf32>
    %1827 = arith.addf %1821, %1826 : vector<8x8xf32>
    %c5_935 = arith.constant 5 : index
    %1828 = memref.load %arg5[%c5_935] : memref<144xf32, #tpu.memory_space<smem>>
    %c0_936 = arith.constant 0 : index
    %c1_937 = arith.constant 1 : index
    %c2_938 = arith.constant 2 : index
    %1829 = vector.load %arg12[%c0_936, %c1_937, %c2_938] : memref<4x10x10xf32, #tpu.memory_space<vmem>>, vector<1x8x8xf32>
    %1830 = vector.shape_cast %1829 : vector<1x8x8xf32> to vector<8x8xf32>
    %1831 = vector.broadcast %1828 : f32 to vector<8x8xf32>
    %1832 = arith.mulf %1831, %1830 : vector<8x8xf32>
    %1833 = arith.addf %1827, %1832 : vector<8x8xf32>
    %c6_939 = arith.constant 6 : index
    %1834 = memref.load %arg5[%c6_939] : memref<144xf32, #tpu.memory_space<smem>>
    %c0_940 = arith.constant 0 : index
    %c2_941 = arith.constant 2 : index
    %c0_942 = arith.constant 0 : index
    %1835 = vector.load %arg12[%c0_940, %c2_941, %c0_942] : memref<4x10x10xf32, #tpu.memory_space<vmem>>, vector<1x8x8xf32>
    %1836 = vector.shape_cast %1835 : vector<1x8x8xf32> to vector<8x8xf32>
    %1837 = vector.broadcast %1834 : f32 to vector<8x8xf32>
    %1838 = arith.mulf %1837, %1836 : vector<8x8xf32>
    %1839 = arith.addf %1833, %1838 : vector<8x8xf32>
    %c7_943 = arith.constant 7 : index
    %1840 = memref.load %arg5[%c7_943] : memref<144xf32, #tpu.memory_space<smem>>
    %c0_944 = arith.constant 0 : index
    %c2_945 = arith.constant 2 : index
    %c1_946 = arith.constant 1 : index
    %1841 = vector.load %arg12[%c0_944, %c2_945, %c1_946] : memref<4x10x10xf32, #tpu.memory_space<vmem>>, vector<1x8x8xf32>
    %1842 = vector.shape_cast %1841 : vector<1x8x8xf32> to vector<8x8xf32>
    %1843 = vector.broadcast %1840 : f32 to vector<8x8xf32>
    %1844 = arith.mulf %1843, %1842 : vector<8x8xf32>
    %1845 = arith.addf %1839, %1844 : vector<8x8xf32>
    %c8_947 = arith.constant 8 : index
    %1846 = memref.load %arg5[%c8_947] : memref<144xf32, #tpu.memory_space<smem>>
    %c0_948 = arith.constant 0 : index
    %c2_949 = arith.constant 2 : index
    %c2_950 = arith.constant 2 : index
    %1847 = vector.load %arg12[%c0_948, %c2_949, %c2_950] : memref<4x10x10xf32, #tpu.memory_space<vmem>>, vector<1x8x8xf32>
    %1848 = vector.shape_cast %1847 : vector<1x8x8xf32> to vector<8x8xf32>
    %1849 = vector.broadcast %1846 : f32 to vector<8x8xf32>
    %1850 = arith.mulf %1849, %1848 : vector<8x8xf32>
    %1851 = arith.addf %1845, %1850 : vector<8x8xf32>
    %c9_951 = arith.constant 9 : index
    %1852 = memref.load %arg5[%c9_951] : memref<144xf32, #tpu.memory_space<smem>>
    %c1_952 = arith.constant 1 : index
    %c0_953 = arith.constant 0 : index
    %c0_954 = arith.constant 0 : index
    %1853 = vector.load %arg12[%c1_952, %c0_953, %c0_954] : memref<4x10x10xf32, #tpu.memory_space<vmem>>, vector<1x8x8xf32>
    %1854 = vector.shape_cast %1853 : vector<1x8x8xf32> to vector<8x8xf32>
    %1855 = vector.broadcast %1852 : f32 to vector<8x8xf32>
    %1856 = arith.mulf %1855, %1854 : vector<8x8xf32>
    %1857 = arith.addf %1851, %1856 : vector<8x8xf32>
    %c10_955 = arith.constant 10 : index
    %1858 = memref.load %arg5[%c10_955] : memref<144xf32, #tpu.memory_space<smem>>
    %c1_956 = arith.constant 1 : index
    %c0_957 = arith.constant 0 : index
    %c1_958 = arith.constant 1 : index
    %1859 = vector.load %arg12[%c1_956, %c0_957, %c1_958] : memref<4x10x10xf32, #tpu.memory_space<vmem>>, vector<1x8x8xf32>
    %1860 = vector.shape_cast %1859 : vector<1x8x8xf32> to vector<8x8xf32>
    %1861 = vector.broadcast %1858 : f32 to vector<8x8xf32>
    %1862 = arith.mulf %1861, %1860 : vector<8x8xf32>
    %1863 = arith.addf %1857, %1862 : vector<8x8xf32>
    %c11_959 = arith.constant 11 : index
    %1864 = memref.load %arg5[%c11_959] : memref<144xf32, #tpu.memory_space<smem>>
    %c1_960 = arith.constant 1 : index
    %c0_961 = arith.constant 0 : index
    %c2_962 = arith.constant 2 : index
    %1865 = vector.load %arg12[%c1_960, %c0_961, %c2_962] : memref<4x10x10xf32, #tpu.memory_space<vmem>>, vector<1x8x8xf32>
    %1866 = vector.shape_cast %1865 : vector<1x8x8xf32> to vector<8x8xf32>
    %1867 = vector.broadcast %1864 : f32 to vector<8x8xf32>
    %1868 = arith.mulf %1867, %1866 : vector<8x8xf32>
    %1869 = arith.addf %1863, %1868 : vector<8x8xf32>
    %c12_963 = arith.constant 12 : index
    %1870 = memref.load %arg5[%c12_963] : memref<144xf32, #tpu.memory_space<smem>>
    %c1_964 = arith.constant 1 : index
    %c1_965 = arith.constant 1 : index
    %c0_966 = arith.constant 0 : index
    %1871 = vector.load %arg12[%c1_964, %c1_965, %c0_966] : memref<4x10x10xf32, #tpu.memory_space<vmem>>, vector<1x8x8xf32>
    %1872 = vector.shape_cast %1871 : vector<1x8x8xf32> to vector<8x8xf32>
    %1873 = vector.broadcast %1870 : f32 to vector<8x8xf32>
    %1874 = arith.mulf %1873, %1872 : vector<8x8xf32>
    %1875 = arith.addf %1869, %1874 : vector<8x8xf32>
    %c13_967 = arith.constant 13 : index
    %1876 = memref.load %arg5[%c13_967] : memref<144xf32, #tpu.memory_space<smem>>
    %c1_968 = arith.constant 1 : index
    %c1_969 = arith.constant 1 : index
    %c1_970 = arith.constant 1 : index
    %1877 = vector.load %arg12[%c1_968, %c1_969, %c1_970] : memref<4x10x10xf32, #tpu.memory_space<vmem>>, vector<1x8x8xf32>
    %1878 = vector.shape_cast %1877 : vector<1x8x8xf32> to vector<8x8xf32>
    %1879 = vector.broadcast %1876 : f32 to vector<8x8xf32>
    %1880 = arith.mulf %1879, %1878 : vector<8x8xf32>
    %1881 = arith.addf %1875, %1880 : vector<8x8xf32>
    %c14_971 = arith.constant 14 : index
    %1882 = memref.load %arg5[%c14_971] : memref<144xf32, #tpu.memory_space<smem>>
    %c1_972 = arith.constant 1 : index
    %c1_973 = arith.constant 1 : index
    %c2_974 = arith.constant 2 : index
    %1883 = vector.load %arg12[%c1_972, %c1_973, %c2_974] : memref<4x10x10xf32, #tpu.memory_space<vmem>>, vector<1x8x8xf32>
    %1884 = vector.shape_cast %1883 : vector<1x8x8xf32> to vector<8x8xf32>
    %1885 = vector.broadcast %1882 : f32 to vector<8x8xf32>
    %1886 = arith.mulf %1885, %1884 : vector<8x8xf32>
    %1887 = arith.addf %1881, %1886 : vector<8x8xf32>
    %c15_975 = arith.constant 15 : index
    %1888 = memref.load %arg5[%c15_975] : memref<144xf32, #tpu.memory_space<smem>>
    %c1_976 = arith.constant 1 : index
    %c2_977 = arith.constant 2 : index
    %c0_978 = arith.constant 0 : index
    %1889 = vector.load %arg12[%c1_976, %c2_977, %c0_978] : memref<4x10x10xf32, #tpu.memory_space<vmem>>, vector<1x8x8xf32>
    %1890 = vector.shape_cast %1889 : vector<1x8x8xf32> to vector<8x8xf32>
    %1891 = vector.broadcast %1888 : f32 to vector<8x8xf32>
    %1892 = arith.mulf %1891, %1890 : vector<8x8xf32>
    %1893 = arith.addf %1887, %1892 : vector<8x8xf32>
    %c16_979 = arith.constant 16 : index
    %1894 = memref.load %arg5[%c16_979] : memref<144xf32, #tpu.memory_space<smem>>
    %c1_980 = arith.constant 1 : index
    %c2_981 = arith.constant 2 : index
    %c1_982 = arith.constant 1 : index
    %1895 = vector.load %arg12[%c1_980, %c2_981, %c1_982] : memref<4x10x10xf32, #tpu.memory_space<vmem>>, vector<1x8x8xf32>
    %1896 = vector.shape_cast %1895 : vector<1x8x8xf32> to vector<8x8xf32>
    %1897 = vector.broadcast %1894 : f32 to vector<8x8xf32>
    %1898 = arith.mulf %1897, %1896 : vector<8x8xf32>
    %1899 = arith.addf %1893, %1898 : vector<8x8xf32>
    %c17_983 = arith.constant 17 : index
    %1900 = memref.load %arg5[%c17_983] : memref<144xf32, #tpu.memory_space<smem>>
    %c1_984 = arith.constant 1 : index
    %c2_985 = arith.constant 2 : index
    %c2_986 = arith.constant 2 : index
    %1901 = vector.load %arg12[%c1_984, %c2_985, %c2_986] : memref<4x10x10xf32, #tpu.memory_space<vmem>>, vector<1x8x8xf32>
    %1902 = vector.shape_cast %1901 : vector<1x8x8xf32> to vector<8x8xf32>
    %1903 = vector.broadcast %1900 : f32 to vector<8x8xf32>
    %1904 = arith.mulf %1903, %1902 : vector<8x8xf32>
    %1905 = arith.addf %1899, %1904 : vector<8x8xf32>
    %c18_987 = arith.constant 18 : index
    %1906 = memref.load %arg5[%c18_987] : memref<144xf32, #tpu.memory_space<smem>>
    %c2_988 = arith.constant 2 : index
    %c0_989 = arith.constant 0 : index
    %c0_990 = arith.constant 0 : index
    %1907 = vector.load %arg12[%c2_988, %c0_989, %c0_990] : memref<4x10x10xf32, #tpu.memory_space<vmem>>, vector<1x8x8xf32>
    %1908 = vector.shape_cast %1907 : vector<1x8x8xf32> to vector<8x8xf32>
    %1909 = vector.broadcast %1906 : f32 to vector<8x8xf32>
    %1910 = arith.mulf %1909, %1908 : vector<8x8xf32>
    %1911 = arith.addf %1905, %1910 : vector<8x8xf32>
    %c19_991 = arith.constant 19 : index
    %1912 = memref.load %arg5[%c19_991] : memref<144xf32, #tpu.memory_space<smem>>
    %c2_992 = arith.constant 2 : index
    %c0_993 = arith.constant 0 : index
    %c1_994 = arith.constant 1 : index
    %1913 = vector.load %arg12[%c2_992, %c0_993, %c1_994] : memref<4x10x10xf32, #tpu.memory_space<vmem>>, vector<1x8x8xf32>
    %1914 = vector.shape_cast %1913 : vector<1x8x8xf32> to vector<8x8xf32>
    %1915 = vector.broadcast %1912 : f32 to vector<8x8xf32>
    %1916 = arith.mulf %1915, %1914 : vector<8x8xf32>
    %1917 = arith.addf %1911, %1916 : vector<8x8xf32>
    %c20_995 = arith.constant 20 : index
    %1918 = memref.load %arg5[%c20_995] : memref<144xf32, #tpu.memory_space<smem>>
    %c2_996 = arith.constant 2 : index
    %c0_997 = arith.constant 0 : index
    %c2_998 = arith.constant 2 : index
    %1919 = vector.load %arg12[%c2_996, %c0_997, %c2_998] : memref<4x10x10xf32, #tpu.memory_space<vmem>>, vector<1x8x8xf32>
    %1920 = vector.shape_cast %1919 : vector<1x8x8xf32> to vector<8x8xf32>
    %1921 = vector.broadcast %1918 : f32 to vector<8x8xf32>
    %1922 = arith.mulf %1921, %1920 : vector<8x8xf32>
    %1923 = arith.addf %1917, %1922 : vector<8x8xf32>
    %c21_999 = arith.constant 21 : index
    %1924 = memref.load %arg5[%c21_999] : memref<144xf32, #tpu.memory_space<smem>>
    %c2_1000 = arith.constant 2 : index
    %c1_1001 = arith.constant 1 : index
    %c0_1002 = arith.constant 0 : index
    %1925 = vector.load %arg12[%c2_1000, %c1_1001, %c0_1002] : memref<4x10x10xf32, #tpu.memory_space<vmem>>, vector<1x8x8xf32>
    %1926 = vector.shape_cast %1925 : vector<1x8x8xf32> to vector<8x8xf32>
    %1927 = vector.broadcast %1924 : f32 to vector<8x8xf32>
    %1928 = arith.mulf %1927, %1926 : vector<8x8xf32>
    %1929 = arith.addf %1923, %1928 : vector<8x8xf32>
    %c22_1003 = arith.constant 22 : index
    %1930 = memref.load %arg5[%c22_1003] : memref<144xf32, #tpu.memory_space<smem>>
    %c2_1004 = arith.constant 2 : index
    %c1_1005 = arith.constant 1 : index
    %c1_1006 = arith.constant 1 : index
    %1931 = vector.load %arg12[%c2_1004, %c1_1005, %c1_1006] : memref<4x10x10xf32, #tpu.memory_space<vmem>>, vector<1x8x8xf32>
    %1932 = vector.shape_cast %1931 : vector<1x8x8xf32> to vector<8x8xf32>
    %1933 = vector.broadcast %1930 : f32 to vector<8x8xf32>
    %1934 = arith.mulf %1933, %1932 : vector<8x8xf32>
    %1935 = arith.addf %1929, %1934 : vector<8x8xf32>
    %c23_1007 = arith.constant 23 : index
    %1936 = memref.load %arg5[%c23_1007] : memref<144xf32, #tpu.memory_space<smem>>
    %c2_1008 = arith.constant 2 : index
    %c1_1009 = arith.constant 1 : index
    %c2_1010 = arith.constant 2 : index
    %1937 = vector.load %arg12[%c2_1008, %c1_1009, %c2_1010] : memref<4x10x10xf32, #tpu.memory_space<vmem>>, vector<1x8x8xf32>
    %1938 = vector.shape_cast %1937 : vector<1x8x8xf32> to vector<8x8xf32>
    %1939 = vector.broadcast %1936 : f32 to vector<8x8xf32>
    %1940 = arith.mulf %1939, %1938 : vector<8x8xf32>
    %1941 = arith.addf %1935, %1940 : vector<8x8xf32>
    %c24_1011 = arith.constant 24 : index
    %1942 = memref.load %arg5[%c24_1011] : memref<144xf32, #tpu.memory_space<smem>>
    %c2_1012 = arith.constant 2 : index
    %c2_1013 = arith.constant 2 : index
    %c0_1014 = arith.constant 0 : index
    %1943 = vector.load %arg12[%c2_1012, %c2_1013, %c0_1014] : memref<4x10x10xf32, #tpu.memory_space<vmem>>, vector<1x8x8xf32>
    %1944 = vector.shape_cast %1943 : vector<1x8x8xf32> to vector<8x8xf32>
    %1945 = vector.broadcast %1942 : f32 to vector<8x8xf32>
    %1946 = arith.mulf %1945, %1944 : vector<8x8xf32>
    %1947 = arith.addf %1941, %1946 : vector<8x8xf32>
    %c25_1015 = arith.constant 25 : index
    %1948 = memref.load %arg5[%c25_1015] : memref<144xf32, #tpu.memory_space<smem>>
    %c2_1016 = arith.constant 2 : index
    %c2_1017 = arith.constant 2 : index
    %c1_1018 = arith.constant 1 : index
    %1949 = vector.load %arg12[%c2_1016, %c2_1017, %c1_1018] : memref<4x10x10xf32, #tpu.memory_space<vmem>>, vector<1x8x8xf32>
    %1950 = vector.shape_cast %1949 : vector<1x8x8xf32> to vector<8x8xf32>
    %1951 = vector.broadcast %1948 : f32 to vector<8x8xf32>
    %1952 = arith.mulf %1951, %1950 : vector<8x8xf32>
    %1953 = arith.addf %1947, %1952 : vector<8x8xf32>
    %c26_1019 = arith.constant 26 : index
    %1954 = memref.load %arg5[%c26_1019] : memref<144xf32, #tpu.memory_space<smem>>
    %c2_1020 = arith.constant 2 : index
    %c2_1021 = arith.constant 2 : index
    %c2_1022 = arith.constant 2 : index
    %1955 = vector.load %arg12[%c2_1020, %c2_1021, %c2_1022] : memref<4x10x10xf32, #tpu.memory_space<vmem>>, vector<1x8x8xf32>
    %1956 = vector.shape_cast %1955 : vector<1x8x8xf32> to vector<8x8xf32>
    %1957 = vector.broadcast %1954 : f32 to vector<8x8xf32>
    %1958 = arith.mulf %1957, %1956 : vector<8x8xf32>
    %1959 = arith.addf %1953, %1958 : vector<8x8xf32>
    %c27_1023 = arith.constant 27 : index
    %1960 = memref.load %arg5[%c27_1023] : memref<144xf32, #tpu.memory_space<smem>>
    %c3_1024 = arith.constant 3 : index
    %c0_1025 = arith.constant 0 : index
    %c0_1026 = arith.constant 0 : index
    %1961 = vector.load %arg12[%c3_1024, %c0_1025, %c0_1026] : memref<4x10x10xf32, #tpu.memory_space<vmem>>, vector<1x8x8xf32>
    %1962 = vector.shape_cast %1961 : vector<1x8x8xf32> to vector<8x8xf32>
    %1963 = vector.broadcast %1960 : f32 to vector<8x8xf32>
    %1964 = arith.mulf %1963, %1962 : vector<8x8xf32>
    %1965 = arith.addf %1959, %1964 : vector<8x8xf32>
    %c28_1027 = arith.constant 28 : index
    %1966 = memref.load %arg5[%c28_1027] : memref<144xf32, #tpu.memory_space<smem>>
    %c3_1028 = arith.constant 3 : index
    %c0_1029 = arith.constant 0 : index
    %c1_1030 = arith.constant 1 : index
    %1967 = vector.load %arg12[%c3_1028, %c0_1029, %c1_1030] : memref<4x10x10xf32, #tpu.memory_space<vmem>>, vector<1x8x8xf32>
    %1968 = vector.shape_cast %1967 : vector<1x8x8xf32> to vector<8x8xf32>
    %1969 = vector.broadcast %1966 : f32 to vector<8x8xf32>
    %1970 = arith.mulf %1969, %1968 : vector<8x8xf32>
    %1971 = arith.addf %1965, %1970 : vector<8x8xf32>
    %c29_1031 = arith.constant 29 : index
    %1972 = memref.load %arg5[%c29_1031] : memref<144xf32, #tpu.memory_space<smem>>
    %c3_1032 = arith.constant 3 : index
    %c0_1033 = arith.constant 0 : index
    %c2_1034 = arith.constant 2 : index
    %1973 = vector.load %arg12[%c3_1032, %c0_1033, %c2_1034] : memref<4x10x10xf32, #tpu.memory_space<vmem>>, vector<1x8x8xf32>
    %1974 = vector.shape_cast %1973 : vector<1x8x8xf32> to vector<8x8xf32>
    %1975 = vector.broadcast %1972 : f32 to vector<8x8xf32>
    %1976 = arith.mulf %1975, %1974 : vector<8x8xf32>
    %1977 = arith.addf %1971, %1976 : vector<8x8xf32>
    %c30_1035 = arith.constant 30 : index
    %1978 = memref.load %arg5[%c30_1035] : memref<144xf32, #tpu.memory_space<smem>>
    %c3_1036 = arith.constant 3 : index
    %c1_1037 = arith.constant 1 : index
    %c0_1038 = arith.constant 0 : index
    %1979 = vector.load %arg12[%c3_1036, %c1_1037, %c0_1038] : memref<4x10x10xf32, #tpu.memory_space<vmem>>, vector<1x8x8xf32>
    %1980 = vector.shape_cast %1979 : vector<1x8x8xf32> to vector<8x8xf32>
    %1981 = vector.broadcast %1978 : f32 to vector<8x8xf32>
    %1982 = arith.mulf %1981, %1980 : vector<8x8xf32>
    %1983 = arith.addf %1977, %1982 : vector<8x8xf32>
    %c31_1039 = arith.constant 31 : index
    %1984 = memref.load %arg5[%c31_1039] : memref<144xf32, #tpu.memory_space<smem>>
    %c3_1040 = arith.constant 3 : index
    %c1_1041 = arith.constant 1 : index
    %c1_1042 = arith.constant 1 : index
    %1985 = vector.load %arg12[%c3_1040, %c1_1041, %c1_1042] : memref<4x10x10xf32, #tpu.memory_space<vmem>>, vector<1x8x8xf32>
    %1986 = vector.shape_cast %1985 : vector<1x8x8xf32> to vector<8x8xf32>
    %1987 = vector.broadcast %1984 : f32 to vector<8x8xf32>
    %1988 = arith.mulf %1987, %1986 : vector<8x8xf32>
    %1989 = arith.addf %1983, %1988 : vector<8x8xf32>
    %c32_1043 = arith.constant 32 : index
    %1990 = memref.load %arg5[%c32_1043] : memref<144xf32, #tpu.memory_space<smem>>
    %c3_1044 = arith.constant 3 : index
    %c1_1045 = arith.constant 1 : index
    %c2_1046 = arith.constant 2 : index
    %1991 = vector.load %arg12[%c3_1044, %c1_1045, %c2_1046] : memref<4x10x10xf32, #tpu.memory_space<vmem>>, vector<1x8x8xf32>
    %1992 = vector.shape_cast %1991 : vector<1x8x8xf32> to vector<8x8xf32>
    %1993 = vector.broadcast %1990 : f32 to vector<8x8xf32>
    %1994 = arith.mulf %1993, %1992 : vector<8x8xf32>
    %1995 = arith.addf %1989, %1994 : vector<8x8xf32>
    %c33_1047 = arith.constant 33 : index
    %1996 = memref.load %arg5[%c33_1047] : memref<144xf32, #tpu.memory_space<smem>>
    %c3_1048 = arith.constant 3 : index
    %c2_1049 = arith.constant 2 : index
    %c0_1050 = arith.constant 0 : index
    %1997 = vector.load %arg12[%c3_1048, %c2_1049, %c0_1050] : memref<4x10x10xf32, #tpu.memory_space<vmem>>, vector<1x8x8xf32>
    %1998 = vector.shape_cast %1997 : vector<1x8x8xf32> to vector<8x8xf32>
    %1999 = vector.broadcast %1996 : f32 to vector<8x8xf32>
    %2000 = arith.mulf %1999, %1998 : vector<8x8xf32>
    %2001 = arith.addf %1995, %2000 : vector<8x8xf32>
    %c34_1051 = arith.constant 34 : index
    %2002 = memref.load %arg5[%c34_1051] : memref<144xf32, #tpu.memory_space<smem>>
    %c3_1052 = arith.constant 3 : index
    %c2_1053 = arith.constant 2 : index
    %c1_1054 = arith.constant 1 : index
    %2003 = vector.load %arg12[%c3_1052, %c2_1053, %c1_1054] : memref<4x10x10xf32, #tpu.memory_space<vmem>>, vector<1x8x8xf32>
    %2004 = vector.shape_cast %2003 : vector<1x8x8xf32> to vector<8x8xf32>
    %2005 = vector.broadcast %2002 : f32 to vector<8x8xf32>
    %2006 = arith.mulf %2005, %2004 : vector<8x8xf32>
    %2007 = arith.addf %2001, %2006 : vector<8x8xf32>
    %c35_1055 = arith.constant 35 : index
    %2008 = memref.load %arg5[%c35_1055] : memref<144xf32, #tpu.memory_space<smem>>
    %c3_1056 = arith.constant 3 : index
    %c2_1057 = arith.constant 2 : index
    %c2_1058 = arith.constant 2 : index
    %2009 = vector.load %arg12[%c3_1056, %c2_1057, %c2_1058] : memref<4x10x10xf32, #tpu.memory_space<vmem>>, vector<1x8x8xf32>
    %2010 = vector.shape_cast %2009 : vector<1x8x8xf32> to vector<8x8xf32>
    %2011 = vector.broadcast %2008 : f32 to vector<8x8xf32>
    %2012 = arith.mulf %2011, %2010 : vector<8x8xf32>
    %2013 = arith.addf %2007, %2012 : vector<8x8xf32>
    %c0_1059 = arith.constant 0 : index
    %2014 = memref.load %arg6[%c0_1059] : memref<4xf32, #tpu.memory_space<smem>>
    %2015 = vector.broadcast %2014 : f32 to vector<8x8xf32>
    %2016 = arith.mulf %2013, %2015 : vector<8x8xf32>
    %c0_1060 = arith.constant 0 : index
    %2017 = memref.load %arg7[%c0_1060] : memref<4xf32, #tpu.memory_space<smem>>
    %2018 = vector.broadcast %2017 : f32 to vector<8x8xf32>
    %2019 = arith.addf %2016, %2018 : vector<8x8xf32>
    %cst_1061 = arith.constant 0.000000e+00 : f32
    %2020 = vector.broadcast %cst_1061 : f32 to vector<8x8xf32>
    %2021 = arith.cmpf ogt, %2019, %2020 : vector<8x8xf32>
    %cst_1062 = arith.constant 0.00999999977 : f32
    %2022 = vector.broadcast %cst_1062 : f32 to vector<8x8xf32>
    %2023 = arith.mulf %2022, %2019 : vector<8x8xf32>
    %2024 = arith.select %2021, %2019, %2023 : vector<8x8xi1>, vector<8x8xf32>
    %cst_1063 = arith.constant dense<0.000000e+00> : vector<16x8xf32>
    %2025 = tpu.matmul %1795, %2024, %cst_1063 {dimension_numbers = #tpu.dot_dimension_numbers<[1], [0], [0], [1], [0, 0, 1, 1], [], []>} : vector<16x8xf32>, vector<8x8xf32>, vector<16x8xf32> -> vector<16x8xf32>
    %cst_1064 = arith.constant dense<0.000000e+00> : vector<16x16xf32>
    %2026 = tpu.matmul %2025, %1796, %cst_1064 {dimension_numbers = #tpu.dot_dimension_numbers<[1], [0], [0], [1], [0, 0, 1, 1], [], []>} : vector<16x8xf32>, vector<8x16xf32>, vector<16x16xf32> -> vector<16x16xf32>
    %c0_1065 = arith.constant 0 : index
    %c0_1066 = arith.constant 0 : index
    %c0_1067 = arith.constant 0 : index
    %c0_1068 = arith.constant 0 : index
    %2027 = vector.load %arg10[%c0_1065, %c0_1066, %c0_1067, %c0_1068] : memref<1x4x16x16xf32, #tpu.memory_space<vmem>>, vector<1x1x16x16xf32>
    %2028 = vector.shape_cast %2027 : vector<1x1x16x16xf32> to vector<16x16xf32>
    %2029 = vector.shape_cast %2026 : vector<16x16xf32> to vector<1x1x16x16xf32>
    tpu.vector_store %arg10[%c0_1065, %c0_1066, %c0_1067, %c0_1068], %2029 {strides = array<i32>} : memref<1x4x16x16xf32, #tpu.memory_space<vmem>>, vector<1x1x16x16xf32>,
    %cst_1069 = arith.constant 0.000000e+00 : f32
    %2030 = vector.broadcast %cst_1069 : f32 to vector<8x8xf32>
    %c36_1070 = arith.constant 36 : index
    %2031 = memref.load %arg5[%c36_1070] : memref<144xf32, #tpu.memory_space<smem>>
    %c0_1071 = arith.constant 0 : index
    %c0_1072 = arith.constant 0 : index
    %c0_1073 = arith.constant 0 : index
    %2032 = vector.load %arg12[%c0_1071, %c0_1072, %c0_1073] : memref<4x10x10xf32, #tpu.memory_space<vmem>>, vector<1x8x8xf32>
    %2033 = vector.shape_cast %2032 : vector<1x8x8xf32> to vector<8x8xf32>
    %2034 = vector.broadcast %2031 : f32 to vector<8x8xf32>
    %2035 = arith.mulf %2034, %2033 : vector<8x8xf32>
    %2036 = arith.addf %2030, %2035 : vector<8x8xf32>
    %c37_1074 = arith.constant 37 : index
    %2037 = memref.load %arg5[%c37_1074] : memref<144xf32, #tpu.memory_space<smem>>
    %c0_1075 = arith.constant 0 : index
    %c0_1076 = arith.constant 0 : index
    %c1_1077 = arith.constant 1 : index
    %2038 = vector.load %arg12[%c0_1075, %c0_1076, %c1_1077] : memref<4x10x10xf32, #tpu.memory_space<vmem>>, vector<1x8x8xf32>
    %2039 = vector.shape_cast %2038 : vector<1x8x8xf32> to vector<8x8xf32>
    %2040 = vector.broadcast %2037 : f32 to vector<8x8xf32>
    %2041 = arith.mulf %2040, %2039 : vector<8x8xf32>
    %2042 = arith.addf %2036, %2041 : vector<8x8xf32>
    %c38_1078 = arith.constant 38 : index
    %2043 = memref.load %arg5[%c38_1078] : memref<144xf32, #tpu.memory_space<smem>>
    %c0_1079 = arith.constant 0 : index
    %c0_1080 = arith.constant 0 : index
    %c2_1081 = arith.constant 2 : index
    %2044 = vector.load %arg12[%c0_1079, %c0_1080, %c2_1081] : memref<4x10x10xf32, #tpu.memory_space<vmem>>, vector<1x8x8xf32>
    %2045 = vector.shape_cast %2044 : vector<1x8x8xf32> to vector<8x8xf32>
    %2046 = vector.broadcast %2043 : f32 to vector<8x8xf32>
    %2047 = arith.mulf %2046, %2045 : vector<8x8xf32>
    %2048 = arith.addf %2042, %2047 : vector<8x8xf32>
    %c39_1082 = arith.constant 39 : index
    %2049 = memref.load %arg5[%c39_1082] : memref<144xf32, #tpu.memory_space<smem>>
    %c0_1083 = arith.constant 0 : index
    %c1_1084 = arith.constant 1 : index
    %c0_1085 = arith.constant 0 : index
    %2050 = vector.load %arg12[%c0_1083, %c1_1084, %c0_1085] : memref<4x10x10xf32, #tpu.memory_space<vmem>>, vector<1x8x8xf32>
    %2051 = vector.shape_cast %2050 : vector<1x8x8xf32> to vector<8x8xf32>
    %2052 = vector.broadcast %2049 : f32 to vector<8x8xf32>
    %2053 = arith.mulf %2052, %2051 : vector<8x8xf32>
    %2054 = arith.addf %2048, %2053 : vector<8x8xf32>
    %c40_1086 = arith.constant 40 : index
    %2055 = memref.load %arg5[%c40_1086] : memref<144xf32, #tpu.memory_space<smem>>
    %c0_1087 = arith.constant 0 : index
    %c1_1088 = arith.constant 1 : index
    %c1_1089 = arith.constant 1 : index
    %2056 = vector.load %arg12[%c0_1087, %c1_1088, %c1_1089] : memref<4x10x10xf32, #tpu.memory_space<vmem>>, vector<1x8x8xf32>
    %2057 = vector.shape_cast %2056 : vector<1x8x8xf32> to vector<8x8xf32>
    %2058 = vector.broadcast %2055 : f32 to vector<8x8xf32>
    %2059 = arith.mulf %2058, %2057 : vector<8x8xf32>
    %2060 = arith.addf %2054, %2059 : vector<8x8xf32>
    %c41_1090 = arith.constant 41 : index
    %2061 = memref.load %arg5[%c41_1090] : memref<144xf32, #tpu.memory_space<smem>>
    %c0_1091 = arith.constant 0 : index
    %c1_1092 = arith.constant 1 : index
    %c2_1093 = arith.constant 2 : index
    %2062 = vector.load %arg12[%c0_1091, %c1_1092, %c2_1093] : memref<4x10x10xf32, #tpu.memory_space<vmem>>, vector<1x8x8xf32>
    %2063 = vector.shape_cast %2062 : vector<1x8x8xf32> to vector<8x8xf32>
    %2064 = vector.broadcast %2061 : f32 to vector<8x8xf32>
    %2065 = arith.mulf %2064, %2063 : vector<8x8xf32>
    %2066 = arith.addf %2060, %2065 : vector<8x8xf32>
    %c42_1094 = arith.constant 42 : index
    %2067 = memref.load %arg5[%c42_1094] : memref<144xf32, #tpu.memory_space<smem>>
    %c0_1095 = arith.constant 0 : index
    %c2_1096 = arith.constant 2 : index
    %c0_1097 = arith.constant 0 : index
    %2068 = vector.load %arg12[%c0_1095, %c2_1096, %c0_1097] : memref<4x10x10xf32, #tpu.memory_space<vmem>>, vector<1x8x8xf32>
    %2069 = vector.shape_cast %2068 : vector<1x8x8xf32> to vector<8x8xf32>
    %2070 = vector.broadcast %2067 : f32 to vector<8x8xf32>
    %2071 = arith.mulf %2070, %2069 : vector<8x8xf32>
    %2072 = arith.addf %2066, %2071 : vector<8x8xf32>
    %c43_1098 = arith.constant 43 : index
    %2073 = memref.load %arg5[%c43_1098] : memref<144xf32, #tpu.memory_space<smem>>
    %c0_1099 = arith.constant 0 : index
    %c2_1100 = arith.constant 2 : index
    %c1_1101 = arith.constant 1 : index
    %2074 = vector.load %arg12[%c0_1099, %c2_1100, %c1_1101] : memref<4x10x10xf32, #tpu.memory_space<vmem>>, vector<1x8x8xf32>
    %2075 = vector.shape_cast %2074 : vector<1x8x8xf32> to vector<8x8xf32>
    %2076 = vector.broadcast %2073 : f32 to vector<8x8xf32>
    %2077 = arith.mulf %2076, %2075 : vector<8x8xf32>
    %2078 = arith.addf %2072, %2077 : vector<8x8xf32>
    %c44_1102 = arith.constant 44 : index
    %2079 = memref.load %arg5[%c44_1102] : memref<144xf32, #tpu.memory_space<smem>>
    %c0_1103 = arith.constant 0 : index
    %c2_1104 = arith.constant 2 : index
    %c2_1105 = arith.constant 2 : index
    %2080 = vector.load %arg12[%c0_1103, %c2_1104, %c2_1105] : memref<4x10x10xf32, #tpu.memory_space<vmem>>, vector<1x8x8xf32>
    %2081 = vector.shape_cast %2080 : vector<1x8x8xf32> to vector<8x8xf32>
    %2082 = vector.broadcast %2079 : f32 to vector<8x8xf32>
    %2083 = arith.mulf %2082, %2081 : vector<8x8xf32>
    %2084 = arith.addf %2078, %2083 : vector<8x8xf32>
    %c45_1106 = arith.constant 45 : index
    %2085 = memref.load %arg5[%c45_1106] : memref<144xf32, #tpu.memory_space<smem>>
    %c1_1107 = arith.constant 1 : index
    %c0_1108 = arith.constant 0 : index
    %c0_1109 = arith.constant 0 : index
    %2086 = vector.load %arg12[%c1_1107, %c0_1108, %c0_1109] : memref<4x10x10xf32, #tpu.memory_space<vmem>>, vector<1x8x8xf32>
    %2087 = vector.shape_cast %2086 : vector<1x8x8xf32> to vector<8x8xf32>
    %2088 = vector.broadcast %2085 : f32 to vector<8x8xf32>
    %2089 = arith.mulf %2088, %2087 : vector<8x8xf32>
    %2090 = arith.addf %2084, %2089 : vector<8x8xf32>
    %c46_1110 = arith.constant 46 : index
    %2091 = memref.load %arg5[%c46_1110] : memref<144xf32, #tpu.memory_space<smem>>
    %c1_1111 = arith.constant 1 : index
    %c0_1112 = arith.constant 0 : index
    %c1_1113 = arith.constant 1 : index
    %2092 = vector.load %arg12[%c1_1111, %c0_1112, %c1_1113] : memref<4x10x10xf32, #tpu.memory_space<vmem>>, vector<1x8x8xf32>
    %2093 = vector.shape_cast %2092 : vector<1x8x8xf32> to vector<8x8xf32>
    %2094 = vector.broadcast %2091 : f32 to vector<8x8xf32>
    %2095 = arith.mulf %2094, %2093 : vector<8x8xf32>
    %2096 = arith.addf %2090, %2095 : vector<8x8xf32>
    %c47_1114 = arith.constant 47 : index
    %2097 = memref.load %arg5[%c47_1114] : memref<144xf32, #tpu.memory_space<smem>>
    %c1_1115 = arith.constant 1 : index
    %c0_1116 = arith.constant 0 : index
    %c2_1117 = arith.constant 2 : index
    %2098 = vector.load %arg12[%c1_1115, %c0_1116, %c2_1117] : memref<4x10x10xf32, #tpu.memory_space<vmem>>, vector<1x8x8xf32>
    %2099 = vector.shape_cast %2098 : vector<1x8x8xf32> to vector<8x8xf32>
    %2100 = vector.broadcast %2097 : f32 to vector<8x8xf32>
    %2101 = arith.mulf %2100, %2099 : vector<8x8xf32>
    %2102 = arith.addf %2096, %2101 : vector<8x8xf32>
    %c48_1118 = arith.constant 48 : index
    %2103 = memref.load %arg5[%c48_1118] : memref<144xf32, #tpu.memory_space<smem>>
    %c1_1119 = arith.constant 1 : index
    %c1_1120 = arith.constant 1 : index
    %c0_1121 = arith.constant 0 : index
    %2104 = vector.load %arg12[%c1_1119, %c1_1120, %c0_1121] : memref<4x10x10xf32, #tpu.memory_space<vmem>>, vector<1x8x8xf32>
    %2105 = vector.shape_cast %2104 : vector<1x8x8xf32> to vector<8x8xf32>
    %2106 = vector.broadcast %2103 : f32 to vector<8x8xf32>
    %2107 = arith.mulf %2106, %2105 : vector<8x8xf32>
    %2108 = arith.addf %2102, %2107 : vector<8x8xf32>
    %c49_1122 = arith.constant 49 : index
    %2109 = memref.load %arg5[%c49_1122] : memref<144xf32, #tpu.memory_space<smem>>
    %c1_1123 = arith.constant 1 : index
    %c1_1124 = arith.constant 1 : index
    %c1_1125 = arith.constant 1 : index
    %2110 = vector.load %arg12[%c1_1123, %c1_1124, %c1_1125] : memref<4x10x10xf32, #tpu.memory_space<vmem>>, vector<1x8x8xf32>
    %2111 = vector.shape_cast %2110 : vector<1x8x8xf32> to vector<8x8xf32>
    %2112 = vector.broadcast %2109 : f32 to vector<8x8xf32>
    %2113 = arith.mulf %2112, %2111 : vector<8x8xf32>
    %2114 = arith.addf %2108, %2113 : vector<8x8xf32>
    %c50_1126 = arith.constant 50 : index
    %2115 = memref.load %arg5[%c50_1126] : memref<144xf32, #tpu.memory_space<smem>>
    %c1_1127 = arith.constant 1 : index
    %c1_1128 = arith.constant 1 : index
    %c2_1129 = arith.constant 2 : index
    %2116 = vector.load %arg12[%c1_1127, %c1_1128, %c2_1129] : memref<4x10x10xf32, #tpu.memory_space<vmem>>, vector<1x8x8xf32>
    %2117 = vector.shape_cast %2116 : vector<1x8x8xf32> to vector<8x8xf32>
    %2118 = vector.broadcast %2115 : f32 to vector<8x8xf32>
    %2119 = arith.mulf %2118, %2117 : vector<8x8xf32>
    %2120 = arith.addf %2114, %2119 : vector<8x8xf32>
    %c51_1130 = arith.constant 51 : index
    %2121 = memref.load %arg5[%c51_1130] : memref<144xf32, #tpu.memory_space<smem>>
    %c1_1131 = arith.constant 1 : index
    %c2_1132 = arith.constant 2 : index
    %c0_1133 = arith.constant 0 : index
    %2122 = vector.load %arg12[%c1_1131, %c2_1132, %c0_1133] : memref<4x10x10xf32, #tpu.memory_space<vmem>>, vector<1x8x8xf32>
    %2123 = vector.shape_cast %2122 : vector<1x8x8xf32> to vector<8x8xf32>
    %2124 = vector.broadcast %2121 : f32 to vector<8x8xf32>
    %2125 = arith.mulf %2124, %2123 : vector<8x8xf32>
    %2126 = arith.addf %2120, %2125 : vector<8x8xf32>
    %c52_1134 = arith.constant 52 : index
    %2127 = memref.load %arg5[%c52_1134] : memref<144xf32, #tpu.memory_space<smem>>
    %c1_1135 = arith.constant 1 : index
    %c2_1136 = arith.constant 2 : index
    %c1_1137 = arith.constant 1 : index
    %2128 = vector.load %arg12[%c1_1135, %c2_1136, %c1_1137] : memref<4x10x10xf32, #tpu.memory_space<vmem>>, vector<1x8x8xf32>
    %2129 = vector.shape_cast %2128 : vector<1x8x8xf32> to vector<8x8xf32>
    %2130 = vector.broadcast %2127 : f32 to vector<8x8xf32>
    %2131 = arith.mulf %2130, %2129 : vector<8x8xf32>
    %2132 = arith.addf %2126, %2131 : vector<8x8xf32>
    %c53_1138 = arith.constant 53 : index
    %2133 = memref.load %arg5[%c53_1138] : memref<144xf32, #tpu.memory_space<smem>>
    %c1_1139 = arith.constant 1 : index
    %c2_1140 = arith.constant 2 : index
    %c2_1141 = arith.constant 2 : index
    %2134 = vector.load %arg12[%c1_1139, %c2_1140, %c2_1141] : memref<4x10x10xf32, #tpu.memory_space<vmem>>, vector<1x8x8xf32>
    %2135 = vector.shape_cast %2134 : vector<1x8x8xf32> to vector<8x8xf32>
    %2136 = vector.broadcast %2133 : f32 to vector<8x8xf32>
    %2137 = arith.mulf %2136, %2135 : vector<8x8xf32>
    %2138 = arith.addf %2132, %2137 : vector<8x8xf32>
    %c54_1142 = arith.constant 54 : index
    %2139 = memref.load %arg5[%c54_1142] : memref<144xf32, #tpu.memory_space<smem>>
    %c2_1143 = arith.constant 2 : index
    %c0_1144 = arith.constant 0 : index
    %c0_1145 = arith.constant 0 : index
    %2140 = vector.load %arg12[%c2_1143, %c0_1144, %c0_1145] : memref<4x10x10xf32, #tpu.memory_space<vmem>>, vector<1x8x8xf32>
    %2141 = vector.shape_cast %2140 : vector<1x8x8xf32> to vector<8x8xf32>
    %2142 = vector.broadcast %2139 : f32 to vector<8x8xf32>
    %2143 = arith.mulf %2142, %2141 : vector<8x8xf32>
    %2144 = arith.addf %2138, %2143 : vector<8x8xf32>
    %c55_1146 = arith.constant 55 : index
    %2145 = memref.load %arg5[%c55_1146] : memref<144xf32, #tpu.memory_space<smem>>
    %c2_1147 = arith.constant 2 : index
    %c0_1148 = arith.constant 0 : index
    %c1_1149 = arith.constant 1 : index
    %2146 = vector.load %arg12[%c2_1147, %c0_1148, %c1_1149] : memref<4x10x10xf32, #tpu.memory_space<vmem>>, vector<1x8x8xf32>
    %2147 = vector.shape_cast %2146 : vector<1x8x8xf32> to vector<8x8xf32>
    %2148 = vector.broadcast %2145 : f32 to vector<8x8xf32>
    %2149 = arith.mulf %2148, %2147 : vector<8x8xf32>
    %2150 = arith.addf %2144, %2149 : vector<8x8xf32>
    %c56_1150 = arith.constant 56 : index
    %2151 = memref.load %arg5[%c56_1150] : memref<144xf32, #tpu.memory_space<smem>>
    %c2_1151 = arith.constant 2 : index
    %c0_1152 = arith.constant 0 : index
    %c2_1153 = arith.constant 2 : index
    %2152 = vector.load %arg12[%c2_1151, %c0_1152, %c2_1153] : memref<4x10x10xf32, #tpu.memory_space<vmem>>, vector<1x8x8xf32>
    %2153 = vector.shape_cast %2152 : vector<1x8x8xf32> to vector<8x8xf32>
    %2154 = vector.broadcast %2151 : f32 to vector<8x8xf32>
    %2155 = arith.mulf %2154, %2153 : vector<8x8xf32>
    %2156 = arith.addf %2150, %2155 : vector<8x8xf32>
    %c57_1154 = arith.constant 57 : index
    %2157 = memref.load %arg5[%c57_1154] : memref<144xf32, #tpu.memory_space<smem>>
    %c2_1155 = arith.constant 2 : index
    %c1_1156 = arith.constant 1 : index
    %c0_1157 = arith.constant 0 : index
    %2158 = vector.load %arg12[%c2_1155, %c1_1156, %c0_1157] : memref<4x10x10xf32, #tpu.memory_space<vmem>>, vector<1x8x8xf32>
    %2159 = vector.shape_cast %2158 : vector<1x8x8xf32> to vector<8x8xf32>
    %2160 = vector.broadcast %2157 : f32 to vector<8x8xf32>
    %2161 = arith.mulf %2160, %2159 : vector<8x8xf32>
    %2162 = arith.addf %2156, %2161 : vector<8x8xf32>
    %c58_1158 = arith.constant 58 : index
    %2163 = memref.load %arg5[%c58_1158] : memref<144xf32, #tpu.memory_space<smem>>
    %c2_1159 = arith.constant 2 : index
    %c1_1160 = arith.constant 1 : index
    %c1_1161 = arith.constant 1 : index
    %2164 = vector.load %arg12[%c2_1159, %c1_1160, %c1_1161] : memref<4x10x10xf32, #tpu.memory_space<vmem>>, vector<1x8x8xf32>
    %2165 = vector.shape_cast %2164 : vector<1x8x8xf32> to vector<8x8xf32>
    %2166 = vector.broadcast %2163 : f32 to vector<8x8xf32>
    %2167 = arith.mulf %2166, %2165 : vector<8x8xf32>
    %2168 = arith.addf %2162, %2167 : vector<8x8xf32>
    %c59_1162 = arith.constant 59 : index
    %2169 = memref.load %arg5[%c59_1162] : memref<144xf32, #tpu.memory_space<smem>>
    %c2_1163 = arith.constant 2 : index
    %c1_1164 = arith.constant 1 : index
    %c2_1165 = arith.constant 2 : index
    %2170 = vector.load %arg12[%c2_1163, %c1_1164, %c2_1165] : memref<4x10x10xf32, #tpu.memory_space<vmem>>, vector<1x8x8xf32>
    %2171 = vector.shape_cast %2170 : vector<1x8x8xf32> to vector<8x8xf32>
    %2172 = vector.broadcast %2169 : f32 to vector<8x8xf32>
    %2173 = arith.mulf %2172, %2171 : vector<8x8xf32>
    %2174 = arith.addf %2168, %2173 : vector<8x8xf32>
    %c60_1166 = arith.constant 60 : index
    %2175 = memref.load %arg5[%c60_1166] : memref<144xf32, #tpu.memory_space<smem>>
    %c2_1167 = arith.constant 2 : index
    %c2_1168 = arith.constant 2 : index
    %c0_1169 = arith.constant 0 : index
    %2176 = vector.load %arg12[%c2_1167, %c2_1168, %c0_1169] : memref<4x10x10xf32, #tpu.memory_space<vmem>>, vector<1x8x8xf32>
    %2177 = vector.shape_cast %2176 : vector<1x8x8xf32> to vector<8x8xf32>
    %2178 = vector.broadcast %2175 : f32 to vector<8x8xf32>
    %2179 = arith.mulf %2178, %2177 : vector<8x8xf32>
    %2180 = arith.addf %2174, %2179 : vector<8x8xf32>
    %c61_1170 = arith.constant 61 : index
    %2181 = memref.load %arg5[%c61_1170] : memref<144xf32, #tpu.memory_space<smem>>
    %c2_1171 = arith.constant 2 : index
    %c2_1172 = arith.constant 2 : index
    %c1_1173 = arith.constant 1 : index
    %2182 = vector.load %arg12[%c2_1171, %c2_1172, %c1_1173] : memref<4x10x10xf32, #tpu.memory_space<vmem>>, vector<1x8x8xf32>
    %2183 = vector.shape_cast %2182 : vector<1x8x8xf32> to vector<8x8xf32>
    %2184 = vector.broadcast %2181 : f32 to vector<8x8xf32>
    %2185 = arith.mulf %2184, %2183 : vector<8x8xf32>
    %2186 = arith.addf %2180, %2185 : vector<8x8xf32>
    %c62_1174 = arith.constant 62 : index
    %2187 = memref.load %arg5[%c62_1174] : memref<144xf32, #tpu.memory_space<smem>>
    %c2_1175 = arith.constant 2 : index
    %c2_1176 = arith.constant 2 : index
    %c2_1177 = arith.constant 2 : index
    %2188 = vector.load %arg12[%c2_1175, %c2_1176, %c2_1177] : memref<4x10x10xf32, #tpu.memory_space<vmem>>, vector<1x8x8xf32>
    %2189 = vector.shape_cast %2188 : vector<1x8x8xf32> to vector<8x8xf32>
    %2190 = vector.broadcast %2187 : f32 to vector<8x8xf32>
    %2191 = arith.mulf %2190, %2189 : vector<8x8xf32>
    %2192 = arith.addf %2186, %2191 : vector<8x8xf32>
    %c63_1178 = arith.constant 63 : index
    %2193 = memref.load %arg5[%c63_1178] : memref<144xf32, #tpu.memory_space<smem>>
    %c3_1179 = arith.constant 3 : index
    %c0_1180 = arith.constant 0 : index
    %c0_1181 = arith.constant 0 : index
    %2194 = vector.load %arg12[%c3_1179, %c0_1180, %c0_1181] : memref<4x10x10xf32, #tpu.memory_space<vmem>>, vector<1x8x8xf32>
    %2195 = vector.shape_cast %2194 : vector<1x8x8xf32> to vector<8x8xf32>
    %2196 = vector.broadcast %2193 : f32 to vector<8x8xf32>
    %2197 = arith.mulf %2196, %2195 : vector<8x8xf32>
    %2198 = arith.addf %2192, %2197 : vector<8x8xf32>
    %c64_1182 = arith.constant 64 : index
    %2199 = memref.load %arg5[%c64_1182] : memref<144xf32, #tpu.memory_space<smem>>
    %c3_1183 = arith.constant 3 : index
    %c0_1184 = arith.constant 0 : index
    %c1_1185 = arith.constant 1 : index
    %2200 = vector.load %arg12[%c3_1183, %c0_1184, %c1_1185] : memref<4x10x10xf32, #tpu.memory_space<vmem>>, vector<1x8x8xf32>
    %2201 = vector.shape_cast %2200 : vector<1x8x8xf32> to vector<8x8xf32>
    %2202 = vector.broadcast %2199 : f32 to vector<8x8xf32>
    %2203 = arith.mulf %2202, %2201 : vector<8x8xf32>
    %2204 = arith.addf %2198, %2203 : vector<8x8xf32>
    %c65_1186 = arith.constant 65 : index
    %2205 = memref.load %arg5[%c65_1186] : memref<144xf32, #tpu.memory_space<smem>>
    %c3_1187 = arith.constant 3 : index
    %c0_1188 = arith.constant 0 : index
    %c2_1189 = arith.constant 2 : index
    %2206 = vector.load %arg12[%c3_1187, %c0_1188, %c2_1189] : memref<4x10x10xf32, #tpu.memory_space<vmem>>, vector<1x8x8xf32>
    %2207 = vector.shape_cast %2206 : vector<1x8x8xf32> to vector<8x8xf32>
    %2208 = vector.broadcast %2205 : f32 to vector<8x8xf32>
    %2209 = arith.mulf %2208, %2207 : vector<8x8xf32>
    %2210 = arith.addf %2204, %2209 : vector<8x8xf32>
    %c66_1190 = arith.constant 66 : index
    %2211 = memref.load %arg5[%c66_1190] : memref<144xf32, #tpu.memory_space<smem>>
    %c3_1191 = arith.constant 3 : index
    %c1_1192 = arith.constant 1 : index
    %c0_1193 = arith.constant 0 : index
    %2212 = vector.load %arg12[%c3_1191, %c1_1192, %c0_1193] : memref<4x10x10xf32, #tpu.memory_space<vmem>>, vector<1x8x8xf32>
    %2213 = vector.shape_cast %2212 : vector<1x8x8xf32> to vector<8x8xf32>
    %2214 = vector.broadcast %2211 : f32 to vector<8x8xf32>
    %2215 = arith.mulf %2214, %2213 : vector<8x8xf32>
    %2216 = arith.addf %2210, %2215 : vector<8x8xf32>
    %c67_1194 = arith.constant 67 : index
    %2217 = memref.load %arg5[%c67_1194] : memref<144xf32, #tpu.memory_space<smem>>
    %c3_1195 = arith.constant 3 : index
    %c1_1196 = arith.constant 1 : index
    %c1_1197 = arith.constant 1 : index
    %2218 = vector.load %arg12[%c3_1195, %c1_1196, %c1_1197] : memref<4x10x10xf32, #tpu.memory_space<vmem>>, vector<1x8x8xf32>
    %2219 = vector.shape_cast %2218 : vector<1x8x8xf32> to vector<8x8xf32>
    %2220 = vector.broadcast %2217 : f32 to vector<8x8xf32>
    %2221 = arith.mulf %2220, %2219 : vector<8x8xf32>
    %2222 = arith.addf %2216, %2221 : vector<8x8xf32>
    %c68_1198 = arith.constant 68 : index
    %2223 = memref.load %arg5[%c68_1198] : memref<144xf32, #tpu.memory_space<smem>>
    %c3_1199 = arith.constant 3 : index
    %c1_1200 = arith.constant 1 : index
    %c2_1201 = arith.constant 2 : index
    %2224 = vector.load %arg12[%c3_1199, %c1_1200, %c2_1201] : memref<4x10x10xf32, #tpu.memory_space<vmem>>, vector<1x8x8xf32>
    %2225 = vector.shape_cast %2224 : vector<1x8x8xf32> to vector<8x8xf32>
    %2226 = vector.broadcast %2223 : f32 to vector<8x8xf32>
    %2227 = arith.mulf %2226, %2225 : vector<8x8xf32>
    %2228 = arith.addf %2222, %2227 : vector<8x8xf32>
    %c69_1202 = arith.constant 69 : index
    %2229 = memref.load %arg5[%c69_1202] : memref<144xf32, #tpu.memory_space<smem>>
    %c3_1203 = arith.constant 3 : index
    %c2_1204 = arith.constant 2 : index
    %c0_1205 = arith.constant 0 : index
    %2230 = vector.load %arg12[%c3_1203, %c2_1204, %c0_1205] : memref<4x10x10xf32, #tpu.memory_space<vmem>>, vector<1x8x8xf32>
    %2231 = vector.shape_cast %2230 : vector<1x8x8xf32> to vector<8x8xf32>
    %2232 = vector.broadcast %2229 : f32 to vector<8x8xf32>
    %2233 = arith.mulf %2232, %2231 : vector<8x8xf32>
    %2234 = arith.addf %2228, %2233 : vector<8x8xf32>
    %c70_1206 = arith.constant 70 : index
    %2235 = memref.load %arg5[%c70_1206] : memref<144xf32, #tpu.memory_space<smem>>
    %c3_1207 = arith.constant 3 : index
    %c2_1208 = arith.constant 2 : index
    %c1_1209 = arith.constant 1 : index
    %2236 = vector.load %arg12[%c3_1207, %c2_1208, %c1_1209] : memref<4x10x10xf32, #tpu.memory_space<vmem>>, vector<1x8x8xf32>
    %2237 = vector.shape_cast %2236 : vector<1x8x8xf32> to vector<8x8xf32>
    %2238 = vector.broadcast %2235 : f32 to vector<8x8xf32>
    %2239 = arith.mulf %2238, %2237 : vector<8x8xf32>
    %2240 = arith.addf %2234, %2239 : vector<8x8xf32>
    %c71_1210 = arith.constant 71 : index
    %2241 = memref.load %arg5[%c71_1210] : memref<144xf32, #tpu.memory_space<smem>>
    %c3_1211 = arith.constant 3 : index
    %c2_1212 = arith.constant 2 : index
    %c2_1213 = arith.constant 2 : index
    %2242 = vector.load %arg12[%c3_1211, %c2_1212, %c2_1213] : memref<4x10x10xf32, #tpu.memory_space<vmem>>, vector<1x8x8xf32>
    %2243 = vector.shape_cast %2242 : vector<1x8x8xf32> to vector<8x8xf32>
    %2244 = vector.broadcast %2241 : f32 to vector<8x8xf32>
    %2245 = arith.mulf %2244, %2243 : vector<8x8xf32>
    %2246 = arith.addf %2240, %2245 : vector<8x8xf32>
    %c1_1214 = arith.constant 1 : index
    %2247 = memref.load %arg6[%c1_1214] : memref<4xf32, #tpu.memory_space<smem>>
    %2248 = vector.broadcast %2247 : f32 to vector<8x8xf32>
    %2249 = arith.mulf %2246, %2248 : vector<8x8xf32>
    %c1_1215 = arith.constant 1 : index
    %2250 = memref.load %arg7[%c1_1215] : memref<4xf32, #tpu.memory_space<smem>>
    %2251 = vector.broadcast %2250 : f32 to vector<8x8xf32>
    %2252 = arith.addf %2249, %2251 : vector<8x8xf32>
    %cst_1216 = arith.constant 0.000000e+00 : f32
    %2253 = vector.broadcast %cst_1216 : f32 to vector<8x8xf32>
    %2254 = arith.cmpf ogt, %2252, %2253 : vector<8x8xf32>
    %cst_1217 = arith.constant 0.00999999977 : f32
    %2255 = vector.broadcast %cst_1217 : f32 to vector<8x8xf32>
    %2256 = arith.mulf %2255, %2252 : vector<8x8xf32>
    %2257 = arith.select %2254, %2252, %2256 : vector<8x8xi1>, vector<8x8xf32>
    %cst_1218 = arith.constant dense<0.000000e+00> : vector<16x8xf32>
    %2258 = tpu.matmul %1795, %2257, %cst_1218 {dimension_numbers = #tpu.dot_dimension_numbers<[1], [0], [0], [1], [0, 0, 1, 1], [], []>} : vector<16x8xf32>, vector<8x8xf32>, vector<16x8xf32> -> vector<16x8xf32>
    %cst_1219 = arith.constant dense<0.000000e+00> : vector<16x16xf32>
    %2259 = tpu.matmul %2258, %1796, %cst_1219 {dimension_numbers = #tpu.dot_dimension_numbers<[1], [0], [0], [1], [0, 0, 1, 1], [], []>} : vector<16x8xf32>, vector<8x16xf32>, vector<16x16xf32> -> vector<16x16xf32>
    %c0_1220 = arith.constant 0 : index
    %c1_1221 = arith.constant 1 : index
    %c0_1222 = arith.constant 0 : index
    %c0_1223 = arith.constant 0 : index
    %2260 = vector.load %arg10[%c0_1220, %c1_1221, %c0_1222, %c0_1223] : memref<1x4x16x16xf32, #tpu.memory_space<vmem>>, vector<1x1x16x16xf32>
    %2261 = vector.shape_cast %2260 : vector<1x1x16x16xf32> to vector<16x16xf32>
    %2262 = vector.shape_cast %2259 : vector<16x16xf32> to vector<1x1x16x16xf32>
    tpu.vector_store %arg10[%c0_1220, %c1_1221, %c0_1222, %c0_1223], %2262 {strides = array<i32>} : memref<1x4x16x16xf32, #tpu.memory_space<vmem>>, vector<1x1x16x16xf32>,
    %cst_1224 = arith.constant 0.000000e+00 : f32
    %2263 = vector.broadcast %cst_1224 : f32 to vector<8x8xf32>
    %c72_1225 = arith.constant 72 : index
    %2264 = memref.load %arg5[%c72_1225] : memref<144xf32, #tpu.memory_space<smem>>
    %c0_1226 = arith.constant 0 : index
    %c0_1227 = arith.constant 0 : index
    %c0_1228 = arith.constant 0 : index
    %2265 = vector.load %arg12[%c0_1226, %c0_1227, %c0_1228] : memref<4x10x10xf32, #tpu.memory_space<vmem>>, vector<1x8x8xf32>
    %2266 = vector.shape_cast %2265 : vector<1x8x8xf32> to vector<8x8xf32>
    %2267 = vector.broadcast %2264 : f32 to vector<8x8xf32>
    %2268 = arith.mulf %2267, %2266 : vector<8x8xf32>
    %2269 = arith.addf %2263, %2268 : vector<8x8xf32>
    %c73_1229 = arith.constant 73 : index
    %2270 = memref.load %arg5[%c73_1229] : memref<144xf32, #tpu.memory_space<smem>>
    %c0_1230 = arith.constant 0 : index
    %c0_1231 = arith.constant 0 : index
    %c1_1232 = arith.constant 1 : index
    %2271 = vector.load %arg12[%c0_1230, %c0_1231, %c1_1232] : memref<4x10x10xf32, #tpu.memory_space<vmem>>, vector<1x8x8xf32>
    %2272 = vector.shape_cast %2271 : vector<1x8x8xf32> to vector<8x8xf32>
    %2273 = vector.broadcast %2270 : f32 to vector<8x8xf32>
    %2274 = arith.mulf %2273, %2272 : vector<8x8xf32>
    %2275 = arith.addf %2269, %2274 : vector<8x8xf32>
    %c74_1233 = arith.constant 74 : index
    %2276 = memref.load %arg5[%c74_1233] : memref<144xf32, #tpu.memory_space<smem>>
    %c0_1234 = arith.constant 0 : index
    %c0_1235 = arith.constant 0 : index
    %c2_1236 = arith.constant 2 : index
    %2277 = vector.load %arg12[%c0_1234, %c0_1235, %c2_1236] : memref<4x10x10xf32, #tpu.memory_space<vmem>>, vector<1x8x8xf32>
    %2278 = vector.shape_cast %2277 : vector<1x8x8xf32> to vector<8x8xf32>
    %2279 = vector.broadcast %2276 : f32 to vector<8x8xf32>
    %2280 = arith.mulf %2279, %2278 : vector<8x8xf32>
    %2281 = arith.addf %2275, %2280 : vector<8x8xf32>
    %c75_1237 = arith.constant 75 : index
    %2282 = memref.load %arg5[%c75_1237] : memref<144xf32, #tpu.memory_space<smem>>
    %c0_1238 = arith.constant 0 : index
    %c1_1239 = arith.constant 1 : index
    %c0_1240 = arith.constant 0 : index
    %2283 = vector.load %arg12[%c0_1238, %c1_1239, %c0_1240] : memref<4x10x10xf32, #tpu.memory_space<vmem>>, vector<1x8x8xf32>
    %2284 = vector.shape_cast %2283 : vector<1x8x8xf32> to vector<8x8xf32>
    %2285 = vector.broadcast %2282 : f32 to vector<8x8xf32>
    %2286 = arith.mulf %2285, %2284 : vector<8x8xf32>
    %2287 = arith.addf %2281, %2286 : vector<8x8xf32>
    %c76_1241 = arith.constant 76 : index
    %2288 = memref.load %arg5[%c76_1241] : memref<144xf32, #tpu.memory_space<smem>>
    %c0_1242 = arith.constant 0 : index
    %c1_1243 = arith.constant 1 : index
    %c1_1244 = arith.constant 1 : index
    %2289 = vector.load %arg12[%c0_1242, %c1_1243, %c1_1244] : memref<4x10x10xf32, #tpu.memory_space<vmem>>, vector<1x8x8xf32>
    %2290 = vector.shape_cast %2289 : vector<1x8x8xf32> to vector<8x8xf32>
    %2291 = vector.broadcast %2288 : f32 to vector<8x8xf32>
    %2292 = arith.mulf %2291, %2290 : vector<8x8xf32>
    %2293 = arith.addf %2287, %2292 : vector<8x8xf32>
    %c77_1245 = arith.constant 77 : index
    %2294 = memref.load %arg5[%c77_1245] : memref<144xf32, #tpu.memory_space<smem>>
    %c0_1246 = arith.constant 0 : index
    %c1_1247 = arith.constant 1 : index
    %c2_1248 = arith.constant 2 : index
    %2295 = vector.load %arg12[%c0_1246, %c1_1247, %c2_1248] : memref<4x10x10xf32, #tpu.memory_space<vmem>>, vector<1x8x8xf32>
    %2296 = vector.shape_cast %2295 : vector<1x8x8xf32> to vector<8x8xf32>
    %2297 = vector.broadcast %2294 : f32 to vector<8x8xf32>
    %2298 = arith.mulf %2297, %2296 : vector<8x8xf32>
    %2299 = arith.addf %2293, %2298 : vector<8x8xf32>
    %c78_1249 = arith.constant 78 : index
    %2300 = memref.load %arg5[%c78_1249] : memref<144xf32, #tpu.memory_space<smem>>
    %c0_1250 = arith.constant 0 : index
    %c2_1251 = arith.constant 2 : index
    %c0_1252 = arith.constant 0 : index
    %2301 = vector.load %arg12[%c0_1250, %c2_1251, %c0_1252] : memref<4x10x10xf32, #tpu.memory_space<vmem>>, vector<1x8x8xf32>
    %2302 = vector.shape_cast %2301 : vector<1x8x8xf32> to vector<8x8xf32>
    %2303 = vector.broadcast %2300 : f32 to vector<8x8xf32>
    %2304 = arith.mulf %2303, %2302 : vector<8x8xf32>
    %2305 = arith.addf %2299, %2304 : vector<8x8xf32>
    %c79_1253 = arith.constant 79 : index
    %2306 = memref.load %arg5[%c79_1253] : memref<144xf32, #tpu.memory_space<smem>>
    %c0_1254 = arith.constant 0 : index
    %c2_1255 = arith.constant 2 : index
    %c1_1256 = arith.constant 1 : index
    %2307 = vector.load %arg12[%c0_1254, %c2_1255, %c1_1256] : memref<4x10x10xf32, #tpu.memory_space<vmem>>, vector<1x8x8xf32>
    %2308 = vector.shape_cast %2307 : vector<1x8x8xf32> to vector<8x8xf32>
    %2309 = vector.broadcast %2306 : f32 to vector<8x8xf32>
    %2310 = arith.mulf %2309, %2308 : vector<8x8xf32>
    %2311 = arith.addf %2305, %2310 : vector<8x8xf32>
    %c80_1257 = arith.constant 80 : index
    %2312 = memref.load %arg5[%c80_1257] : memref<144xf32, #tpu.memory_space<smem>>
    %c0_1258 = arith.constant 0 : index
    %c2_1259 = arith.constant 2 : index
    %c2_1260 = arith.constant 2 : index
    %2313 = vector.load %arg12[%c0_1258, %c2_1259, %c2_1260] : memref<4x10x10xf32, #tpu.memory_space<vmem>>, vector<1x8x8xf32>
    %2314 = vector.shape_cast %2313 : vector<1x8x8xf32> to vector<8x8xf32>
    %2315 = vector.broadcast %2312 : f32 to vector<8x8xf32>
    %2316 = arith.mulf %2315, %2314 : vector<8x8xf32>
    %2317 = arith.addf %2311, %2316 : vector<8x8xf32>
    %c81_1261 = arith.constant 81 : index
    %2318 = memref.load %arg5[%c81_1261] : memref<144xf32, #tpu.memory_space<smem>>
    %c1_1262 = arith.constant 1 : index
    %c0_1263 = arith.constant 0 : index
    %c0_1264 = arith.constant 0 : index
    %2319 = vector.load %arg12[%c1_1262, %c0_1263, %c0_1264] : memref<4x10x10xf32, #tpu.memory_space<vmem>>, vector<1x8x8xf32>
    %2320 = vector.shape_cast %2319 : vector<1x8x8xf32> to vector<8x8xf32>
    %2321 = vector.broadcast %2318 : f32 to vector<8x8xf32>
    %2322 = arith.mulf %2321, %2320 : vector<8x8xf32>
    %2323 = arith.addf %2317, %2322 : vector<8x8xf32>
    %c82_1265 = arith.constant 82 : index
    %2324 = memref.load %arg5[%c82_1265] : memref<144xf32, #tpu.memory_space<smem>>
    %c1_1266 = arith.constant 1 : index
    %c0_1267 = arith.constant 0 : index
    %c1_1268 = arith.constant 1 : index
    %2325 = vector.load %arg12[%c1_1266, %c0_1267, %c1_1268] : memref<4x10x10xf32, #tpu.memory_space<vmem>>, vector<1x8x8xf32>
    %2326 = vector.shape_cast %2325 : vector<1x8x8xf32> to vector<8x8xf32>
    %2327 = vector.broadcast %2324 : f32 to vector<8x8xf32>
    %2328 = arith.mulf %2327, %2326 : vector<8x8xf32>
    %2329 = arith.addf %2323, %2328 : vector<8x8xf32>
    %c83_1269 = arith.constant 83 : index
    %2330 = memref.load %arg5[%c83_1269] : memref<144xf32, #tpu.memory_space<smem>>
    %c1_1270 = arith.constant 1 : index
    %c0_1271 = arith.constant 0 : index
    %c2_1272 = arith.constant 2 : index
    %2331 = vector.load %arg12[%c1_1270, %c0_1271, %c2_1272] : memref<4x10x10xf32, #tpu.memory_space<vmem>>, vector<1x8x8xf32>
    %2332 = vector.shape_cast %2331 : vector<1x8x8xf32> to vector<8x8xf32>
    %2333 = vector.broadcast %2330 : f32 to vector<8x8xf32>
    %2334 = arith.mulf %2333, %2332 : vector<8x8xf32>
    %2335 = arith.addf %2329, %2334 : vector<8x8xf32>
    %c84_1273 = arith.constant 84 : index
    %2336 = memref.load %arg5[%c84_1273] : memref<144xf32, #tpu.memory_space<smem>>
    %c1_1274 = arith.constant 1 : index
    %c1_1275 = arith.constant 1 : index
    %c0_1276 = arith.constant 0 : index
    %2337 = vector.load %arg12[%c1_1274, %c1_1275, %c0_1276] : memref<4x10x10xf32, #tpu.memory_space<vmem>>, vector<1x8x8xf32>
    %2338 = vector.shape_cast %2337 : vector<1x8x8xf32> to vector<8x8xf32>
    %2339 = vector.broadcast %2336 : f32 to vector<8x8xf32>
    %2340 = arith.mulf %2339, %2338 : vector<8x8xf32>
    %2341 = arith.addf %2335, %2340 : vector<8x8xf32>
    %c85_1277 = arith.constant 85 : index
    %2342 = memref.load %arg5[%c85_1277] : memref<144xf32, #tpu.memory_space<smem>>
    %c1_1278 = arith.constant 1 : index
    %c1_1279 = arith.constant 1 : index
    %c1_1280 = arith.constant 1 : index
    %2343 = vector.load %arg12[%c1_1278, %c1_1279, %c1_1280] : memref<4x10x10xf32, #tpu.memory_space<vmem>>, vector<1x8x8xf32>
    %2344 = vector.shape_cast %2343 : vector<1x8x8xf32> to vector<8x8xf32>
    %2345 = vector.broadcast %2342 : f32 to vector<8x8xf32>
    %2346 = arith.mulf %2345, %2344 : vector<8x8xf32>
    %2347 = arith.addf %2341, %2346 : vector<8x8xf32>
    %c86_1281 = arith.constant 86 : index
    %2348 = memref.load %arg5[%c86_1281] : memref<144xf32, #tpu.memory_space<smem>>
    %c1_1282 = arith.constant 1 : index
    %c1_1283 = arith.constant 1 : index
    %c2_1284 = arith.constant 2 : index
    %2349 = vector.load %arg12[%c1_1282, %c1_1283, %c2_1284] : memref<4x10x10xf32, #tpu.memory_space<vmem>>, vector<1x8x8xf32>
    %2350 = vector.shape_cast %2349 : vector<1x8x8xf32> to vector<8x8xf32>
    %2351 = vector.broadcast %2348 : f32 to vector<8x8xf32>
    %2352 = arith.mulf %2351, %2350 : vector<8x8xf32>
    %2353 = arith.addf %2347, %2352 : vector<8x8xf32>
    %c87_1285 = arith.constant 87 : index
    %2354 = memref.load %arg5[%c87_1285] : memref<144xf32, #tpu.memory_space<smem>>
    %c1_1286 = arith.constant 1 : index
    %c2_1287 = arith.constant 2 : index
    %c0_1288 = arith.constant 0 : index
    %2355 = vector.load %arg12[%c1_1286, %c2_1287, %c0_1288] : memref<4x10x10xf32, #tpu.memory_space<vmem>>, vector<1x8x8xf32>
    %2356 = vector.shape_cast %2355 : vector<1x8x8xf32> to vector<8x8xf32>
    %2357 = vector.broadcast %2354 : f32 to vector<8x8xf32>
    %2358 = arith.mulf %2357, %2356 : vector<8x8xf32>
    %2359 = arith.addf %2353, %2358 : vector<8x8xf32>
    %c88_1289 = arith.constant 88 : index
    %2360 = memref.load %arg5[%c88_1289] : memref<144xf32, #tpu.memory_space<smem>>
    %c1_1290 = arith.constant 1 : index
    %c2_1291 = arith.constant 2 : index
    %c1_1292 = arith.constant 1 : index
    %2361 = vector.load %arg12[%c1_1290, %c2_1291, %c1_1292] : memref<4x10x10xf32, #tpu.memory_space<vmem>>, vector<1x8x8xf32>
    %2362 = vector.shape_cast %2361 : vector<1x8x8xf32> to vector<8x8xf32>
    %2363 = vector.broadcast %2360 : f32 to vector<8x8xf32>
    %2364 = arith.mulf %2363, %2362 : vector<8x8xf32>
    %2365 = arith.addf %2359, %2364 : vector<8x8xf32>
    %c89_1293 = arith.constant 89 : index
    %2366 = memref.load %arg5[%c89_1293] : memref<144xf32, #tpu.memory_space<smem>>
    %c1_1294 = arith.constant 1 : index
    %c2_1295 = arith.constant 2 : index
    %c2_1296 = arith.constant 2 : index
    %2367 = vector.load %arg12[%c1_1294, %c2_1295, %c2_1296] : memref<4x10x10xf32, #tpu.memory_space<vmem>>, vector<1x8x8xf32>
    %2368 = vector.shape_cast %2367 : vector<1x8x8xf32> to vector<8x8xf32>
    %2369 = vector.broadcast %2366 : f32 to vector<8x8xf32>
    %2370 = arith.mulf %2369, %2368 : vector<8x8xf32>
    %2371 = arith.addf %2365, %2370 : vector<8x8xf32>
    %c90_1297 = arith.constant 90 : index
    %2372 = memref.load %arg5[%c90_1297] : memref<144xf32, #tpu.memory_space<smem>>
    %c2_1298 = arith.constant 2 : index
    %c0_1299 = arith.constant 0 : index
    %c0_1300 = arith.constant 0 : index
    %2373 = vector.load %arg12[%c2_1298, %c0_1299, %c0_1300] : memref<4x10x10xf32, #tpu.memory_space<vmem>>, vector<1x8x8xf32>
    %2374 = vector.shape_cast %2373 : vector<1x8x8xf32> to vector<8x8xf32>
    %2375 = vector.broadcast %2372 : f32 to vector<8x8xf32>
    %2376 = arith.mulf %2375, %2374 : vector<8x8xf32>
    %2377 = arith.addf %2371, %2376 : vector<8x8xf32>
    %c91_1301 = arith.constant 91 : index
    %2378 = memref.load %arg5[%c91_1301] : memref<144xf32, #tpu.memory_space<smem>>
    %c2_1302 = arith.constant 2 : index
    %c0_1303 = arith.constant 0 : index
    %c1_1304 = arith.constant 1 : index
    %2379 = vector.load %arg12[%c2_1302, %c0_1303, %c1_1304] : memref<4x10x10xf32, #tpu.memory_space<vmem>>, vector<1x8x8xf32>
    %2380 = vector.shape_cast %2379 : vector<1x8x8xf32> to vector<8x8xf32>
    %2381 = vector.broadcast %2378 : f32 to vector<8x8xf32>
    %2382 = arith.mulf %2381, %2380 : vector<8x8xf32>
    %2383 = arith.addf %2377, %2382 : vector<8x8xf32>
    %c92_1305 = arith.constant 92 : index
    %2384 = memref.load %arg5[%c92_1305] : memref<144xf32, #tpu.memory_space<smem>>
    %c2_1306 = arith.constant 2 : index
    %c0_1307 = arith.constant 0 : index
    %c2_1308 = arith.constant 2 : index
    %2385 = vector.load %arg12[%c2_1306, %c0_1307, %c2_1308] : memref<4x10x10xf32, #tpu.memory_space<vmem>>, vector<1x8x8xf32>
    %2386 = vector.shape_cast %2385 : vector<1x8x8xf32> to vector<8x8xf32>
    %2387 = vector.broadcast %2384 : f32 to vector<8x8xf32>
    %2388 = arith.mulf %2387, %2386 : vector<8x8xf32>
    %2389 = arith.addf %2383, %2388 : vector<8x8xf32>
    %c93_1309 = arith.constant 93 : index
    %2390 = memref.load %arg5[%c93_1309] : memref<144xf32, #tpu.memory_space<smem>>
    %c2_1310 = arith.constant 2 : index
    %c1_1311 = arith.constant 1 : index
    %c0_1312 = arith.constant 0 : index
    %2391 = vector.load %arg12[%c2_1310, %c1_1311, %c0_1312] : memref<4x10x10xf32, #tpu.memory_space<vmem>>, vector<1x8x8xf32>
    %2392 = vector.shape_cast %2391 : vector<1x8x8xf32> to vector<8x8xf32>
    %2393 = vector.broadcast %2390 : f32 to vector<8x8xf32>
    %2394 = arith.mulf %2393, %2392 : vector<8x8xf32>
    %2395 = arith.addf %2389, %2394 : vector<8x8xf32>
    %c94_1313 = arith.constant 94 : index
    %2396 = memref.load %arg5[%c94_1313] : memref<144xf32, #tpu.memory_space<smem>>
    %c2_1314 = arith.constant 2 : index
    %c1_1315 = arith.constant 1 : index
    %c1_1316 = arith.constant 1 : index
    %2397 = vector.load %arg12[%c2_1314, %c1_1315, %c1_1316] : memref<4x10x10xf32, #tpu.memory_space<vmem>>, vector<1x8x8xf32>
    %2398 = vector.shape_cast %2397 : vector<1x8x8xf32> to vector<8x8xf32>
    %2399 = vector.broadcast %2396 : f32 to vector<8x8xf32>
    %2400 = arith.mulf %2399, %2398 : vector<8x8xf32>
    %2401 = arith.addf %2395, %2400 : vector<8x8xf32>
    %c95_1317 = arith.constant 95 : index
    %2402 = memref.load %arg5[%c95_1317] : memref<144xf32, #tpu.memory_space<smem>>
    %c2_1318 = arith.constant 2 : index
    %c1_1319 = arith.constant 1 : index
    %c2_1320 = arith.constant 2 : index
    %2403 = vector.load %arg12[%c2_1318, %c1_1319, %c2_1320] : memref<4x10x10xf32, #tpu.memory_space<vmem>>, vector<1x8x8xf32>
    %2404 = vector.shape_cast %2403 : vector<1x8x8xf32> to vector<8x8xf32>
    %2405 = vector.broadcast %2402 : f32 to vector<8x8xf32>
    %2406 = arith.mulf %2405, %2404 : vector<8x8xf32>
    %2407 = arith.addf %2401, %2406 : vector<8x8xf32>
    %c96_1321 = arith.constant 96 : index
    %2408 = memref.load %arg5[%c96_1321] : memref<144xf32, #tpu.memory_space<smem>>
    %c2_1322 = arith.constant 2 : index
    %c2_1323 = arith.constant 2 : index
    %c0_1324 = arith.constant 0 : index
    %2409 = vector.load %arg12[%c2_1322, %c2_1323, %c0_1324] : memref<4x10x10xf32, #tpu.memory_space<vmem>>, vector<1x8x8xf32>
    %2410 = vector.shape_cast %2409 : vector<1x8x8xf32> to vector<8x8xf32>
    %2411 = vector.broadcast %2408 : f32 to vector<8x8xf32>
    %2412 = arith.mulf %2411, %2410 : vector<8x8xf32>
    %2413 = arith.addf %2407, %2412 : vector<8x8xf32>
    %c97_1325 = arith.constant 97 : index
    %2414 = memref.load %arg5[%c97_1325] : memref<144xf32, #tpu.memory_space<smem>>
    %c2_1326 = arith.constant 2 : index
    %c2_1327 = arith.constant 2 : index
    %c1_1328 = arith.constant 1 : index
    %2415 = vector.load %arg12[%c2_1326, %c2_1327, %c1_1328] : memref<4x10x10xf32, #tpu.memory_space<vmem>>, vector<1x8x8xf32>
    %2416 = vector.shape_cast %2415 : vector<1x8x8xf32> to vector<8x8xf32>
    %2417 = vector.broadcast %2414 : f32 to vector<8x8xf32>
    %2418 = arith.mulf %2417, %2416 : vector<8x8xf32>
    %2419 = arith.addf %2413, %2418 : vector<8x8xf32>
    %c98_1329 = arith.constant 98 : index
    %2420 = memref.load %arg5[%c98_1329] : memref<144xf32, #tpu.memory_space<smem>>
    %c2_1330 = arith.constant 2 : index
    %c2_1331 = arith.constant 2 : index
    %c2_1332 = arith.constant 2 : index
    %2421 = vector.load %arg12[%c2_1330, %c2_1331, %c2_1332] : memref<4x10x10xf32, #tpu.memory_space<vmem>>, vector<1x8x8xf32>
    %2422 = vector.shape_cast %2421 : vector<1x8x8xf32> to vector<8x8xf32>
    %2423 = vector.broadcast %2420 : f32 to vector<8x8xf32>
    %2424 = arith.mulf %2423, %2422 : vector<8x8xf32>
    %2425 = arith.addf %2419, %2424 : vector<8x8xf32>
    %c99_1333 = arith.constant 99 : index
    %2426 = memref.load %arg5[%c99_1333] : memref<144xf32, #tpu.memory_space<smem>>
    %c3_1334 = arith.constant 3 : index
    %c0_1335 = arith.constant 0 : index
    %c0_1336 = arith.constant 0 : index
    %2427 = vector.load %arg12[%c3_1334, %c0_1335, %c0_1336] : memref<4x10x10xf32, #tpu.memory_space<vmem>>, vector<1x8x8xf32>
    %2428 = vector.shape_cast %2427 : vector<1x8x8xf32> to vector<8x8xf32>
    %2429 = vector.broadcast %2426 : f32 to vector<8x8xf32>
    %2430 = arith.mulf %2429, %2428 : vector<8x8xf32>
    %2431 = arith.addf %2425, %2430 : vector<8x8xf32>
    %c100_1337 = arith.constant 100 : index
    %2432 = memref.load %arg5[%c100_1337] : memref<144xf32, #tpu.memory_space<smem>>
    %c3_1338 = arith.constant 3 : index
    %c0_1339 = arith.constant 0 : index
    %c1_1340 = arith.constant 1 : index
    %2433 = vector.load %arg12[%c3_1338, %c0_1339, %c1_1340] : memref<4x10x10xf32, #tpu.memory_space<vmem>>, vector<1x8x8xf32>
    %2434 = vector.shape_cast %2433 : vector<1x8x8xf32> to vector<8x8xf32>
    %2435 = vector.broadcast %2432 : f32 to vector<8x8xf32>
    %2436 = arith.mulf %2435, %2434 : vector<8x8xf32>
    %2437 = arith.addf %2431, %2436 : vector<8x8xf32>
    %c101_1341 = arith.constant 101 : index
    %2438 = memref.load %arg5[%c101_1341] : memref<144xf32, #tpu.memory_space<smem>>
    %c3_1342 = arith.constant 3 : index
    %c0_1343 = arith.constant 0 : index
    %c2_1344 = arith.constant 2 : index
    %2439 = vector.load %arg12[%c3_1342, %c0_1343, %c2_1344] : memref<4x10x10xf32, #tpu.memory_space<vmem>>, vector<1x8x8xf32>
    %2440 = vector.shape_cast %2439 : vector<1x8x8xf32> to vector<8x8xf32>
    %2441 = vector.broadcast %2438 : f32 to vector<8x8xf32>
    %2442 = arith.mulf %2441, %2440 : vector<8x8xf32>
    %2443 = arith.addf %2437, %2442 : vector<8x8xf32>
    %c102_1345 = arith.constant 102 : index
    %2444 = memref.load %arg5[%c102_1345] : memref<144xf32, #tpu.memory_space<smem>>
    %c3_1346 = arith.constant 3 : index
    %c1_1347 = arith.constant 1 : index
    %c0_1348 = arith.constant 0 : index
    %2445 = vector.load %arg12[%c3_1346, %c1_1347, %c0_1348] : memref<4x10x10xf32, #tpu.memory_space<vmem>>, vector<1x8x8xf32>
    %2446 = vector.shape_cast %2445 : vector<1x8x8xf32> to vector<8x8xf32>
    %2447 = vector.broadcast %2444 : f32 to vector<8x8xf32>
    %2448 = arith.mulf %2447, %2446 : vector<8x8xf32>
    %2449 = arith.addf %2443, %2448 : vector<8x8xf32>
    %c103_1349 = arith.constant 103 : index
    %2450 = memref.load %arg5[%c103_1349] : memref<144xf32, #tpu.memory_space<smem>>
    %c3_1350 = arith.constant 3 : index
    %c1_1351 = arith.constant 1 : index
    %c1_1352 = arith.constant 1 : index
    %2451 = vector.load %arg12[%c3_1350, %c1_1351, %c1_1352] : memref<4x10x10xf32, #tpu.memory_space<vmem>>, vector<1x8x8xf32>
    %2452 = vector.shape_cast %2451 : vector<1x8x8xf32> to vector<8x8xf32>
    %2453 = vector.broadcast %2450 : f32 to vector<8x8xf32>
    %2454 = arith.mulf %2453, %2452 : vector<8x8xf32>
    %2455 = arith.addf %2449, %2454 : vector<8x8xf32>
    %c104_1353 = arith.constant 104 : index
    %2456 = memref.load %arg5[%c104_1353] : memref<144xf32, #tpu.memory_space<smem>>
    %c3_1354 = arith.constant 3 : index
    %c1_1355 = arith.constant 1 : index
    %c2_1356 = arith.constant 2 : index
    %2457 = vector.load %arg12[%c3_1354, %c1_1355, %c2_1356] : memref<4x10x10xf32, #tpu.memory_space<vmem>>, vector<1x8x8xf32>
    %2458 = vector.shape_cast %2457 : vector<1x8x8xf32> to vector<8x8xf32>
    %2459 = vector.broadcast %2456 : f32 to vector<8x8xf32>
    %2460 = arith.mulf %2459, %2458 : vector<8x8xf32>
    %2461 = arith.addf %2455, %2460 : vector<8x8xf32>
    %c105_1357 = arith.constant 105 : index
    %2462 = memref.load %arg5[%c105_1357] : memref<144xf32, #tpu.memory_space<smem>>
    %c3_1358 = arith.constant 3 : index
    %c2_1359 = arith.constant 2 : index
    %c0_1360 = arith.constant 0 : index
    %2463 = vector.load %arg12[%c3_1358, %c2_1359, %c0_1360] : memref<4x10x10xf32, #tpu.memory_space<vmem>>, vector<1x8x8xf32>
    %2464 = vector.shape_cast %2463 : vector<1x8x8xf32> to vector<8x8xf32>
    %2465 = vector.broadcast %2462 : f32 to vector<8x8xf32>
    %2466 = arith.mulf %2465, %2464 : vector<8x8xf32>
    %2467 = arith.addf %2461, %2466 : vector<8x8xf32>
    %c106_1361 = arith.constant 106 : index
    %2468 = memref.load %arg5[%c106_1361] : memref<144xf32, #tpu.memory_space<smem>>
    %c3_1362 = arith.constant 3 : index
    %c2_1363 = arith.constant 2 : index
    %c1_1364 = arith.constant 1 : index
    %2469 = vector.load %arg12[%c3_1362, %c2_1363, %c1_1364] : memref<4x10x10xf32, #tpu.memory_space<vmem>>, vector<1x8x8xf32>
    %2470 = vector.shape_cast %2469 : vector<1x8x8xf32> to vector<8x8xf32>
    %2471 = vector.broadcast %2468 : f32 to vector<8x8xf32>
    %2472 = arith.mulf %2471, %2470 : vector<8x8xf32>
    %2473 = arith.addf %2467, %2472 : vector<8x8xf32>
    %c107_1365 = arith.constant 107 : index
    %2474 = memref.load %arg5[%c107_1365] : memref<144xf32, #tpu.memory_space<smem>>
    %c3_1366 = arith.constant 3 : index
    %c2_1367 = arith.constant 2 : index
    %c2_1368 = arith.constant 2 : index
    %2475 = vector.load %arg12[%c3_1366, %c2_1367, %c2_1368] : memref<4x10x10xf32, #tpu.memory_space<vmem>>, vector<1x8x8xf32>
    %2476 = vector.shape_cast %2475 : vector<1x8x8xf32> to vector<8x8xf32>
    %2477 = vector.broadcast %2474 : f32 to vector<8x8xf32>
    %2478 = arith.mulf %2477, %2476 : vector<8x8xf32>
    %2479 = arith.addf %2473, %2478 : vector<8x8xf32>
    %c2_1369 = arith.constant 2 : index
    %2480 = memref.load %arg6[%c2_1369] : memref<4xf32, #tpu.memory_space<smem>>
    %2481 = vector.broadcast %2480 : f32 to vector<8x8xf32>
    %2482 = arith.mulf %2479, %2481 : vector<8x8xf32>
    %c2_1370 = arith.constant 2 : index
    %2483 = memref.load %arg7[%c2_1370] : memref<4xf32, #tpu.memory_space<smem>>
    %2484 = vector.broadcast %2483 : f32 to vector<8x8xf32>
    %2485 = arith.addf %2482, %2484 : vector<8x8xf32>
    %cst_1371 = arith.constant 0.000000e+00 : f32
    %2486 = vector.broadcast %cst_1371 : f32 to vector<8x8xf32>
    %2487 = arith.cmpf ogt, %2485, %2486 : vector<8x8xf32>
    %cst_1372 = arith.constant 0.00999999977 : f32
    %2488 = vector.broadcast %cst_1372 : f32 to vector<8x8xf32>
    %2489 = arith.mulf %2488, %2485 : vector<8x8xf32>
    %2490 = arith.select %2487, %2485, %2489 : vector<8x8xi1>, vector<8x8xf32>
    %cst_1373 = arith.constant dense<0.000000e+00> : vector<16x8xf32>
    %2491 = tpu.matmul %1795, %2490, %cst_1373 {dimension_numbers = #tpu.dot_dimension_numbers<[1], [0], [0], [1], [0, 0, 1, 1], [], []>} : vector<16x8xf32>, vector<8x8xf32>, vector<16x8xf32> -> vector<16x8xf32>
    %cst_1374 = arith.constant dense<0.000000e+00> : vector<16x16xf32>
    %2492 = tpu.matmul %2491, %1796, %cst_1374 {dimension_numbers = #tpu.dot_dimension_numbers<[1], [0], [0], [1], [0, 0, 1, 1], [], []>} : vector<16x8xf32>, vector<8x16xf32>, vector<16x16xf32> -> vector<16x16xf32>
    %c0_1375 = arith.constant 0 : index
    %c2_1376 = arith.constant 2 : index
    %c0_1377 = arith.constant 0 : index
    %c0_1378 = arith.constant 0 : index
    %2493 = vector.load %arg10[%c0_1375, %c2_1376, %c0_1377, %c0_1378] : memref<1x4x16x16xf32, #tpu.memory_space<vmem>>, vector<1x1x16x16xf32>
    %2494 = vector.shape_cast %2493 : vector<1x1x16x16xf32> to vector<16x16xf32>
    %2495 = vector.shape_cast %2492 : vector<16x16xf32> to vector<1x1x16x16xf32>
    tpu.vector_store %arg10[%c0_1375, %c2_1376, %c0_1377, %c0_1378], %2495 {strides = array<i32>} : memref<1x4x16x16xf32, #tpu.memory_space<vmem>>, vector<1x1x16x16xf32>,
    %cst_1379 = arith.constant 0.000000e+00 : f32
    %2496 = vector.broadcast %cst_1379 : f32 to vector<8x8xf32>
    %c108_1380 = arith.constant 108 : index
    %2497 = memref.load %arg5[%c108_1380] : memref<144xf32, #tpu.memory_space<smem>>
    %c0_1381 = arith.constant 0 : index
    %c0_1382 = arith.constant 0 : index
    %c0_1383 = arith.constant 0 : index
    %2498 = vector.load %arg12[%c0_1381, %c0_1382, %c0_1383] : memref<4x10x10xf32, #tpu.memory_space<vmem>>, vector<1x8x8xf32>
    %2499 = vector.shape_cast %2498 : vector<1x8x8xf32> to vector<8x8xf32>
    %2500 = vector.broadcast %2497 : f32 to vector<8x8xf32>
    %2501 = arith.mulf %2500, %2499 : vector<8x8xf32>
    %2502 = arith.addf %2496, %2501 : vector<8x8xf32>
    %c109_1384 = arith.constant 109 : index
    %2503 = memref.load %arg5[%c109_1384] : memref<144xf32, #tpu.memory_space<smem>>
    %c0_1385 = arith.constant 0 : index
    %c0_1386 = arith.constant 0 : index
    %c1_1387 = arith.constant 1 : index
    %2504 = vector.load %arg12[%c0_1385, %c0_1386, %c1_1387] : memref<4x10x10xf32, #tpu.memory_space<vmem>>, vector<1x8x8xf32>
    %2505 = vector.shape_cast %2504 : vector<1x8x8xf32> to vector<8x8xf32>
    %2506 = vector.broadcast %2503 : f32 to vector<8x8xf32>
    %2507 = arith.mulf %2506, %2505 : vector<8x8xf32>
    %2508 = arith.addf %2502, %2507 : vector<8x8xf32>
    %c110_1388 = arith.constant 110 : index
    %2509 = memref.load %arg5[%c110_1388] : memref<144xf32, #tpu.memory_space<smem>>
    %c0_1389 = arith.constant 0 : index
    %c0_1390 = arith.constant 0 : index
    %c2_1391 = arith.constant 2 : index
    %2510 = vector.load %arg12[%c0_1389, %c0_1390, %c2_1391] : memref<4x10x10xf32, #tpu.memory_space<vmem>>, vector<1x8x8xf32>
    %2511 = vector.shape_cast %2510 : vector<1x8x8xf32> to vector<8x8xf32>
    %2512 = vector.broadcast %2509 : f32 to vector<8x8xf32>
    %2513 = arith.mulf %2512, %2511 : vector<8x8xf32>
    %2514 = arith.addf %2508, %2513 : vector<8x8xf32>
    %c111_1392 = arith.constant 111 : index
    %2515 = memref.load %arg5[%c111_1392] : memref<144xf32, #tpu.memory_space<smem>>
    %c0_1393 = arith.constant 0 : index
    %c1_1394 = arith.constant 1 : index
    %c0_1395 = arith.constant 0 : index
    %2516 = vector.load %arg12[%c0_1393, %c1_1394, %c0_1395] : memref<4x10x10xf32, #tpu.memory_space<vmem>>, vector<1x8x8xf32>
    %2517 = vector.shape_cast %2516 : vector<1x8x8xf32> to vector<8x8xf32>
    %2518 = vector.broadcast %2515 : f32 to vector<8x8xf32>
    %2519 = arith.mulf %2518, %2517 : vector<8x8xf32>
    %2520 = arith.addf %2514, %2519 : vector<8x8xf32>
    %c112_1396 = arith.constant 112 : index
    %2521 = memref.load %arg5[%c112_1396] : memref<144xf32, #tpu.memory_space<smem>>
    %c0_1397 = arith.constant 0 : index
    %c1_1398 = arith.constant 1 : index
    %c1_1399 = arith.constant 1 : index
    %2522 = vector.load %arg12[%c0_1397, %c1_1398, %c1_1399] : memref<4x10x10xf32, #tpu.memory_space<vmem>>, vector<1x8x8xf32>
    %2523 = vector.shape_cast %2522 : vector<1x8x8xf32> to vector<8x8xf32>
    %2524 = vector.broadcast %2521 : f32 to vector<8x8xf32>
    %2525 = arith.mulf %2524, %2523 : vector<8x8xf32>
    %2526 = arith.addf %2520, %2525 : vector<8x8xf32>
    %c113_1400 = arith.constant 113 : index
    %2527 = memref.load %arg5[%c113_1400] : memref<144xf32, #tpu.memory_space<smem>>
    %c0_1401 = arith.constant 0 : index
    %c1_1402 = arith.constant 1 : index
    %c2_1403 = arith.constant 2 : index
    %2528 = vector.load %arg12[%c0_1401, %c1_1402, %c2_1403] : memref<4x10x10xf32, #tpu.memory_space<vmem>>, vector<1x8x8xf32>
    %2529 = vector.shape_cast %2528 : vector<1x8x8xf32> to vector<8x8xf32>
    %2530 = vector.broadcast %2527 : f32 to vector<8x8xf32>
    %2531 = arith.mulf %2530, %2529 : vector<8x8xf32>
    %2532 = arith.addf %2526, %2531 : vector<8x8xf32>
    %c114_1404 = arith.constant 114 : index
    %2533 = memref.load %arg5[%c114_1404] : memref<144xf32, #tpu.memory_space<smem>>
    %c0_1405 = arith.constant 0 : index
    %c2_1406 = arith.constant 2 : index
    %c0_1407 = arith.constant 0 : index
    %2534 = vector.load %arg12[%c0_1405, %c2_1406, %c0_1407] : memref<4x10x10xf32, #tpu.memory_space<vmem>>, vector<1x8x8xf32>
    %2535 = vector.shape_cast %2534 : vector<1x8x8xf32> to vector<8x8xf32>
    %2536 = vector.broadcast %2533 : f32 to vector<8x8xf32>
    %2537 = arith.mulf %2536, %2535 : vector<8x8xf32>
    %2538 = arith.addf %2532, %2537 : vector<8x8xf32>
    %c115_1408 = arith.constant 115 : index
    %2539 = memref.load %arg5[%c115_1408] : memref<144xf32, #tpu.memory_space<smem>>
    %c0_1409 = arith.constant 0 : index
    %c2_1410 = arith.constant 2 : index
    %c1_1411 = arith.constant 1 : index
    %2540 = vector.load %arg12[%c0_1409, %c2_1410, %c1_1411] : memref<4x10x10xf32, #tpu.memory_space<vmem>>, vector<1x8x8xf32>
    %2541 = vector.shape_cast %2540 : vector<1x8x8xf32> to vector<8x8xf32>
    %2542 = vector.broadcast %2539 : f32 to vector<8x8xf32>
    %2543 = arith.mulf %2542, %2541 : vector<8x8xf32>
    %2544 = arith.addf %2538, %2543 : vector<8x8xf32>
    %c116_1412 = arith.constant 116 : index
    %2545 = memref.load %arg5[%c116_1412] : memref<144xf32, #tpu.memory_space<smem>>
    %c0_1413 = arith.constant 0 : index
    %c2_1414 = arith.constant 2 : index
    %c2_1415 = arith.constant 2 : index
    %2546 = vector.load %arg12[%c0_1413, %c2_1414, %c2_1415] : memref<4x10x10xf32, #tpu.memory_space<vmem>>, vector<1x8x8xf32>
    %2547 = vector.shape_cast %2546 : vector<1x8x8xf32> to vector<8x8xf32>
    %2548 = vector.broadcast %2545 : f32 to vector<8x8xf32>
    %2549 = arith.mulf %2548, %2547 : vector<8x8xf32>
    %2550 = arith.addf %2544, %2549 : vector<8x8xf32>
    %c117_1416 = arith.constant 117 : index
    %2551 = memref.load %arg5[%c117_1416] : memref<144xf32, #tpu.memory_space<smem>>
    %c1_1417 = arith.constant 1 : index
    %c0_1418 = arith.constant 0 : index
    %c0_1419 = arith.constant 0 : index
    %2552 = vector.load %arg12[%c1_1417, %c0_1418, %c0_1419] : memref<4x10x10xf32, #tpu.memory_space<vmem>>, vector<1x8x8xf32>
    %2553 = vector.shape_cast %2552 : vector<1x8x8xf32> to vector<8x8xf32>
    %2554 = vector.broadcast %2551 : f32 to vector<8x8xf32>
    %2555 = arith.mulf %2554, %2553 : vector<8x8xf32>
    %2556 = arith.addf %2550, %2555 : vector<8x8xf32>
    %c118_1420 = arith.constant 118 : index
    %2557 = memref.load %arg5[%c118_1420] : memref<144xf32, #tpu.memory_space<smem>>
    %c1_1421 = arith.constant 1 : index
    %c0_1422 = arith.constant 0 : index
    %c1_1423 = arith.constant 1 : index
    %2558 = vector.load %arg12[%c1_1421, %c0_1422, %c1_1423] : memref<4x10x10xf32, #tpu.memory_space<vmem>>, vector<1x8x8xf32>
    %2559 = vector.shape_cast %2558 : vector<1x8x8xf32> to vector<8x8xf32>
    %2560 = vector.broadcast %2557 : f32 to vector<8x8xf32>
    %2561 = arith.mulf %2560, %2559 : vector<8x8xf32>
    %2562 = arith.addf %2556, %2561 : vector<8x8xf32>
    %c119_1424 = arith.constant 119 : index
    %2563 = memref.load %arg5[%c119_1424] : memref<144xf32, #tpu.memory_space<smem>>
    %c1_1425 = arith.constant 1 : index
    %c0_1426 = arith.constant 0 : index
    %c2_1427 = arith.constant 2 : index
    %2564 = vector.load %arg12[%c1_1425, %c0_1426, %c2_1427] : memref<4x10x10xf32, #tpu.memory_space<vmem>>, vector<1x8x8xf32>
    %2565 = vector.shape_cast %2564 : vector<1x8x8xf32> to vector<8x8xf32>
    %2566 = vector.broadcast %2563 : f32 to vector<8x8xf32>
    %2567 = arith.mulf %2566, %2565 : vector<8x8xf32>
    %2568 = arith.addf %2562, %2567 : vector<8x8xf32>
    %c120_1428 = arith.constant 120 : index
    %2569 = memref.load %arg5[%c120_1428] : memref<144xf32, #tpu.memory_space<smem>>
    %c1_1429 = arith.constant 1 : index
    %c1_1430 = arith.constant 1 : index
    %c0_1431 = arith.constant 0 : index
    %2570 = vector.load %arg12[%c1_1429, %c1_1430, %c0_1431] : memref<4x10x10xf32, #tpu.memory_space<vmem>>, vector<1x8x8xf32>
    %2571 = vector.shape_cast %2570 : vector<1x8x8xf32> to vector<8x8xf32>
    %2572 = vector.broadcast %2569 : f32 to vector<8x8xf32>
    %2573 = arith.mulf %2572, %2571 : vector<8x8xf32>
    %2574 = arith.addf %2568, %2573 : vector<8x8xf32>
    %c121_1432 = arith.constant 121 : index
    %2575 = memref.load %arg5[%c121_1432] : memref<144xf32, #tpu.memory_space<smem>>
    %c1_1433 = arith.constant 1 : index
    %c1_1434 = arith.constant 1 : index
    %c1_1435 = arith.constant 1 : index
    %2576 = vector.load %arg12[%c1_1433, %c1_1434, %c1_1435] : memref<4x10x10xf32, #tpu.memory_space<vmem>>, vector<1x8x8xf32>
    %2577 = vector.shape_cast %2576 : vector<1x8x8xf32> to vector<8x8xf32>
    %2578 = vector.broadcast %2575 : f32 to vector<8x8xf32>
    %2579 = arith.mulf %2578, %2577 : vector<8x8xf32>
    %2580 = arith.addf %2574, %2579 : vector<8x8xf32>
    %c122_1436 = arith.constant 122 : index
    %2581 = memref.load %arg5[%c122_1436] : memref<144xf32, #tpu.memory_space<smem>>
    %c1_1437 = arith.constant 1 : index
    %c1_1438 = arith.constant 1 : index
    %c2_1439 = arith.constant 2 : index
    %2582 = vector.load %arg12[%c1_1437, %c1_1438, %c2_1439] : memref<4x10x10xf32, #tpu.memory_space<vmem>>, vector<1x8x8xf32>
    %2583 = vector.shape_cast %2582 : vector<1x8x8xf32> to vector<8x8xf32>
    %2584 = vector.broadcast %2581 : f32 to vector<8x8xf32>
    %2585 = arith.mulf %2584, %2583 : vector<8x8xf32>
    %2586 = arith.addf %2580, %2585 : vector<8x8xf32>
    %c123_1440 = arith.constant 123 : index
    %2587 = memref.load %arg5[%c123_1440] : memref<144xf32, #tpu.memory_space<smem>>
    %c1_1441 = arith.constant 1 : index
    %c2_1442 = arith.constant 2 : index
    %c0_1443 = arith.constant 0 : index
    %2588 = vector.load %arg12[%c1_1441, %c2_1442, %c0_1443] : memref<4x10x10xf32, #tpu.memory_space<vmem>>, vector<1x8x8xf32>
    %2589 = vector.shape_cast %2588 : vector<1x8x8xf32> to vector<8x8xf32>
    %2590 = vector.broadcast %2587 : f32 to vector<8x8xf32>
    %2591 = arith.mulf %2590, %2589 : vector<8x8xf32>
    %2592 = arith.addf %2586, %2591 : vector<8x8xf32>
    %c124_1444 = arith.constant 124 : index
    %2593 = memref.load %arg5[%c124_1444] : memref<144xf32, #tpu.memory_space<smem>>
    %c1_1445 = arith.constant 1 : index
    %c2_1446 = arith.constant 2 : index
    %c1_1447 = arith.constant 1 : index
    %2594 = vector.load %arg12[%c1_1445, %c2_1446, %c1_1447] : memref<4x10x10xf32, #tpu.memory_space<vmem>>, vector<1x8x8xf32>
    %2595 = vector.shape_cast %2594 : vector<1x8x8xf32> to vector<8x8xf32>
    %2596 = vector.broadcast %2593 : f32 to vector<8x8xf32>
    %2597 = arith.mulf %2596, %2595 : vector<8x8xf32>
    %2598 = arith.addf %2592, %2597 : vector<8x8xf32>
    %c125_1448 = arith.constant 125 : index
    %2599 = memref.load %arg5[%c125_1448] : memref<144xf32, #tpu.memory_space<smem>>
    %c1_1449 = arith.constant 1 : index
    %c2_1450 = arith.constant 2 : index
    %c2_1451 = arith.constant 2 : index
    %2600 = vector.load %arg12[%c1_1449, %c2_1450, %c2_1451] : memref<4x10x10xf32, #tpu.memory_space<vmem>>, vector<1x8x8xf32>
    %2601 = vector.shape_cast %2600 : vector<1x8x8xf32> to vector<8x8xf32>
    %2602 = vector.broadcast %2599 : f32 to vector<8x8xf32>
    %2603 = arith.mulf %2602, %2601 : vector<8x8xf32>
    %2604 = arith.addf %2598, %2603 : vector<8x8xf32>
    %c126_1452 = arith.constant 126 : index
    %2605 = memref.load %arg5[%c126_1452] : memref<144xf32, #tpu.memory_space<smem>>
    %c2_1453 = arith.constant 2 : index
    %c0_1454 = arith.constant 0 : index
    %c0_1455 = arith.constant 0 : index
    %2606 = vector.load %arg12[%c2_1453, %c0_1454, %c0_1455] : memref<4x10x10xf32, #tpu.memory_space<vmem>>, vector<1x8x8xf32>
    %2607 = vector.shape_cast %2606 : vector<1x8x8xf32> to vector<8x8xf32>
    %2608 = vector.broadcast %2605 : f32 to vector<8x8xf32>
    %2609 = arith.mulf %2608, %2607 : vector<8x8xf32>
    %2610 = arith.addf %2604, %2609 : vector<8x8xf32>
    %c127_1456 = arith.constant 127 : index
    %2611 = memref.load %arg5[%c127_1456] : memref<144xf32, #tpu.memory_space<smem>>
    %c2_1457 = arith.constant 2 : index
    %c0_1458 = arith.constant 0 : index
    %c1_1459 = arith.constant 1 : index
    %2612 = vector.load %arg12[%c2_1457, %c0_1458, %c1_1459] : memref<4x10x10xf32, #tpu.memory_space<vmem>>, vector<1x8x8xf32>
    %2613 = vector.shape_cast %2612 : vector<1x8x8xf32> to vector<8x8xf32>
    %2614 = vector.broadcast %2611 : f32 to vector<8x8xf32>
    %2615 = arith.mulf %2614, %2613 : vector<8x8xf32>
    %2616 = arith.addf %2610, %2615 : vector<8x8xf32>
    %c128_1460 = arith.constant 128 : index
    %2617 = memref.load %arg5[%c128_1460] : memref<144xf32, #tpu.memory_space<smem>>
    %c2_1461 = arith.constant 2 : index
    %c0_1462 = arith.constant 0 : index
    %c2_1463 = arith.constant 2 : index
    %2618 = vector.load %arg12[%c2_1461, %c0_1462, %c2_1463] : memref<4x10x10xf32, #tpu.memory_space<vmem>>, vector<1x8x8xf32>
    %2619 = vector.shape_cast %2618 : vector<1x8x8xf32> to vector<8x8xf32>
    %2620 = vector.broadcast %2617 : f32 to vector<8x8xf32>
    %2621 = arith.mulf %2620, %2619 : vector<8x8xf32>
    %2622 = arith.addf %2616, %2621 : vector<8x8xf32>
    %c129_1464 = arith.constant 129 : index
    %2623 = memref.load %arg5[%c129_1464] : memref<144xf32, #tpu.memory_space<smem>>
    %c2_1465 = arith.constant 2 : index
    %c1_1466 = arith.constant 1 : index
    %c0_1467 = arith.constant 0 : index
    %2624 = vector.load %arg12[%c2_1465, %c1_1466, %c0_1467] : memref<4x10x10xf32, #tpu.memory_space<vmem>>, vector<1x8x8xf32>
    %2625 = vector.shape_cast %2624 : vector<1x8x8xf32> to vector<8x8xf32>
    %2626 = vector.broadcast %2623 : f32 to vector<8x8xf32>
    %2627 = arith.mulf %2626, %2625 : vector<8x8xf32>
    %2628 = arith.addf %2622, %2627 : vector<8x8xf32>
    %c130_1468 = arith.constant 130 : index
    %2629 = memref.load %arg5[%c130_1468] : memref<144xf32, #tpu.memory_space<smem>>
    %c2_1469 = arith.constant 2 : index
    %c1_1470 = arith.constant 1 : index
    %c1_1471 = arith.constant 1 : index
    %2630 = vector.load %arg12[%c2_1469, %c1_1470, %c1_1471] : memref<4x10x10xf32, #tpu.memory_space<vmem>>, vector<1x8x8xf32>
    %2631 = vector.shape_cast %2630 : vector<1x8x8xf32> to vector<8x8xf32>
    %2632 = vector.broadcast %2629 : f32 to vector<8x8xf32>
    %2633 = arith.mulf %2632, %2631 : vector<8x8xf32>
    %2634 = arith.addf %2628, %2633 : vector<8x8xf32>
    %c131_1472 = arith.constant 131 : index
    %2635 = memref.load %arg5[%c131_1472] : memref<144xf32, #tpu.memory_space<smem>>
    %c2_1473 = arith.constant 2 : index
    %c1_1474 = arith.constant 1 : index
    %c2_1475 = arith.constant 2 : index
    %2636 = vector.load %arg12[%c2_1473, %c1_1474, %c2_1475] : memref<4x10x10xf32, #tpu.memory_space<vmem>>, vector<1x8x8xf32>
    %2637 = vector.shape_cast %2636 : vector<1x8x8xf32> to vector<8x8xf32>
    %2638 = vector.broadcast %2635 : f32 to vector<8x8xf32>
    %2639 = arith.mulf %2638, %2637 : vector<8x8xf32>
    %2640 = arith.addf %2634, %2639 : vector<8x8xf32>
    %c132_1476 = arith.constant 132 : index
    %2641 = memref.load %arg5[%c132_1476] : memref<144xf32, #tpu.memory_space<smem>>
    %c2_1477 = arith.constant 2 : index
    %c2_1478 = arith.constant 2 : index
    %c0_1479 = arith.constant 0 : index
    %2642 = vector.load %arg12[%c2_1477, %c2_1478, %c0_1479] : memref<4x10x10xf32, #tpu.memory_space<vmem>>, vector<1x8x8xf32>
    %2643 = vector.shape_cast %2642 : vector<1x8x8xf32> to vector<8x8xf32>
    %2644 = vector.broadcast %2641 : f32 to vector<8x8xf32>
    %2645 = arith.mulf %2644, %2643 : vector<8x8xf32>
    %2646 = arith.addf %2640, %2645 : vector<8x8xf32>
    %c133_1480 = arith.constant 133 : index
    %2647 = memref.load %arg5[%c133_1480] : memref<144xf32, #tpu.memory_space<smem>>
    %c2_1481 = arith.constant 2 : index
    %c2_1482 = arith.constant 2 : index
    %c1_1483 = arith.constant 1 : index
    %2648 = vector.load %arg12[%c2_1481, %c2_1482, %c1_1483] : memref<4x10x10xf32, #tpu.memory_space<vmem>>, vector<1x8x8xf32>
    %2649 = vector.shape_cast %2648 : vector<1x8x8xf32> to vector<8x8xf32>
    %2650 = vector.broadcast %2647 : f32 to vector<8x8xf32>
    %2651 = arith.mulf %2650, %2649 : vector<8x8xf32>
    %2652 = arith.addf %2646, %2651 : vector<8x8xf32>
    %c134_1484 = arith.constant 134 : index
    %2653 = memref.load %arg5[%c134_1484] : memref<144xf32, #tpu.memory_space<smem>>
    %c2_1485 = arith.constant 2 : index
    %c2_1486 = arith.constant 2 : index
    %c2_1487 = arith.constant 2 : index
    %2654 = vector.load %arg12[%c2_1485, %c2_1486, %c2_1487] : memref<4x10x10xf32, #tpu.memory_space<vmem>>, vector<1x8x8xf32>
    %2655 = vector.shape_cast %2654 : vector<1x8x8xf32> to vector<8x8xf32>
    %2656 = vector.broadcast %2653 : f32 to vector<8x8xf32>
    %2657 = arith.mulf %2656, %2655 : vector<8x8xf32>
    %2658 = arith.addf %2652, %2657 : vector<8x8xf32>
    %c135_1488 = arith.constant 135 : index
    %2659 = memref.load %arg5[%c135_1488] : memref<144xf32, #tpu.memory_space<smem>>
    %c3_1489 = arith.constant 3 : index
    %c0_1490 = arith.constant 0 : index
    %c0_1491 = arith.constant 0 : index
    %2660 = vector.load %arg12[%c3_1489, %c0_1490, %c0_1491] : memref<4x10x10xf32, #tpu.memory_space<vmem>>, vector<1x8x8xf32>
    %2661 = vector.shape_cast %2660 : vector<1x8x8xf32> to vector<8x8xf32>
    %2662 = vector.broadcast %2659 : f32 to vector<8x8xf32>
    %2663 = arith.mulf %2662, %2661 : vector<8x8xf32>
    %2664 = arith.addf %2658, %2663 : vector<8x8xf32>
    %c136_1492 = arith.constant 136 : index
    %2665 = memref.load %arg5[%c136_1492] : memref<144xf32, #tpu.memory_space<smem>>
    %c3_1493 = arith.constant 3 : index
    %c0_1494 = arith.constant 0 : index
    %c1_1495 = arith.constant 1 : index
    %2666 = vector.load %arg12[%c3_1493, %c0_1494, %c1_1495] : memref<4x10x10xf32, #tpu.memory_space<vmem>>, vector<1x8x8xf32>
    %2667 = vector.shape_cast %2666 : vector<1x8x8xf32> to vector<8x8xf32>
    %2668 = vector.broadcast %2665 : f32 to vector<8x8xf32>
    %2669 = arith.mulf %2668, %2667 : vector<8x8xf32>
    %2670 = arith.addf %2664, %2669 : vector<8x8xf32>
    %c137_1496 = arith.constant 137 : index
    %2671 = memref.load %arg5[%c137_1496] : memref<144xf32, #tpu.memory_space<smem>>
    %c3_1497 = arith.constant 3 : index
    %c0_1498 = arith.constant 0 : index
    %c2_1499 = arith.constant 2 : index
    %2672 = vector.load %arg12[%c3_1497, %c0_1498, %c2_1499] : memref<4x10x10xf32, #tpu.memory_space<vmem>>, vector<1x8x8xf32>
    %2673 = vector.shape_cast %2672 : vector<1x8x8xf32> to vector<8x8xf32>
    %2674 = vector.broadcast %2671 : f32 to vector<8x8xf32>
    %2675 = arith.mulf %2674, %2673 : vector<8x8xf32>
    %2676 = arith.addf %2670, %2675 : vector<8x8xf32>
    %c138_1500 = arith.constant 138 : index
    %2677 = memref.load %arg5[%c138_1500] : memref<144xf32, #tpu.memory_space<smem>>
    %c3_1501 = arith.constant 3 : index
    %c1_1502 = arith.constant 1 : index
    %c0_1503 = arith.constant 0 : index
    %2678 = vector.load %arg12[%c3_1501, %c1_1502, %c0_1503] : memref<4x10x10xf32, #tpu.memory_space<vmem>>, vector<1x8x8xf32>
    %2679 = vector.shape_cast %2678 : vector<1x8x8xf32> to vector<8x8xf32>
    %2680 = vector.broadcast %2677 : f32 to vector<8x8xf32>
    %2681 = arith.mulf %2680, %2679 : vector<8x8xf32>
    %2682 = arith.addf %2676, %2681 : vector<8x8xf32>
    %c139_1504 = arith.constant 139 : index
    %2683 = memref.load %arg5[%c139_1504] : memref<144xf32, #tpu.memory_space<smem>>
    %c3_1505 = arith.constant 3 : index
    %c1_1506 = arith.constant 1 : index
    %c1_1507 = arith.constant 1 : index
    %2684 = vector.load %arg12[%c3_1505, %c1_1506, %c1_1507] : memref<4x10x10xf32, #tpu.memory_space<vmem>>, vector<1x8x8xf32>
    %2685 = vector.shape_cast %2684 : vector<1x8x8xf32> to vector<8x8xf32>
    %2686 = vector.broadcast %2683 : f32 to vector<8x8xf32>
    %2687 = arith.mulf %2686, %2685 : vector<8x8xf32>
    %2688 = arith.addf %2682, %2687 : vector<8x8xf32>
    %c140_1508 = arith.constant 140 : index
    %2689 = memref.load %arg5[%c140_1508] : memref<144xf32, #tpu.memory_space<smem>>
    %c3_1509 = arith.constant 3 : index
    %c1_1510 = arith.constant 1 : index
    %c2_1511 = arith.constant 2 : index
    %2690 = vector.load %arg12[%c3_1509, %c1_1510, %c2_1511] : memref<4x10x10xf32, #tpu.memory_space<vmem>>, vector<1x8x8xf32>
    %2691 = vector.shape_cast %2690 : vector<1x8x8xf32> to vector<8x8xf32>
    %2692 = vector.broadcast %2689 : f32 to vector<8x8xf32>
    %2693 = arith.mulf %2692, %2691 : vector<8x8xf32>
    %2694 = arith.addf %2688, %2693 : vector<8x8xf32>
    %c141_1512 = arith.constant 141 : index
    %2695 = memref.load %arg5[%c141_1512] : memref<144xf32, #tpu.memory_space<smem>>
    %c3_1513 = arith.constant 3 : index
    %c2_1514 = arith.constant 2 : index
    %c0_1515 = arith.constant 0 : index
    %2696 = vector.load %arg12[%c3_1513, %c2_1514, %c0_1515] : memref<4x10x10xf32, #tpu.memory_space<vmem>>, vector<1x8x8xf32>
    %2697 = vector.shape_cast %2696 : vector<1x8x8xf32> to vector<8x8xf32>
    %2698 = vector.broadcast %2695 : f32 to vector<8x8xf32>
    %2699 = arith.mulf %2698, %2697 : vector<8x8xf32>
    %2700 = arith.addf %2694, %2699 : vector<8x8xf32>
    %c142_1516 = arith.constant 142 : index
    %2701 = memref.load %arg5[%c142_1516] : memref<144xf32, #tpu.memory_space<smem>>
    %c3_1517 = arith.constant 3 : index
    %c2_1518 = arith.constant 2 : index
    %c1_1519 = arith.constant 1 : index
    %2702 = vector.load %arg12[%c3_1517, %c2_1518, %c1_1519] : memref<4x10x10xf32, #tpu.memory_space<vmem>>, vector<1x8x8xf32>
    %2703 = vector.shape_cast %2702 : vector<1x8x8xf32> to vector<8x8xf32>
    %2704 = vector.broadcast %2701 : f32 to vector<8x8xf32>
    %2705 = arith.mulf %2704, %2703 : vector<8x8xf32>
    %2706 = arith.addf %2700, %2705 : vector<8x8xf32>
    %c143_1520 = arith.constant 143 : index
    %2707 = memref.load %arg5[%c143_1520] : memref<144xf32, #tpu.memory_space<smem>>
    %c3_1521 = arith.constant 3 : index
    %c2_1522 = arith.constant 2 : index
    %c2_1523 = arith.constant 2 : index
    %2708 = vector.load %arg12[%c3_1521, %c2_1522, %c2_1523] : memref<4x10x10xf32, #tpu.memory_space<vmem>>, vector<1x8x8xf32>
    %2709 = vector.shape_cast %2708 : vector<1x8x8xf32> to vector<8x8xf32>
    %2710 = vector.broadcast %2707 : f32 to vector<8x8xf32>
    %2711 = arith.mulf %2710, %2709 : vector<8x8xf32>
    %2712 = arith.addf %2706, %2711 : vector<8x8xf32>
    %c3_1524 = arith.constant 3 : index
    %2713 = memref.load %arg6[%c3_1524] : memref<4xf32, #tpu.memory_space<smem>>
    %2714 = vector.broadcast %2713 : f32 to vector<8x8xf32>
    %2715 = arith.mulf %2712, %2714 : vector<8x8xf32>
    %c3_1525 = arith.constant 3 : index
    %2716 = memref.load %arg7[%c3_1525] : memref<4xf32, #tpu.memory_space<smem>>
    %2717 = vector.broadcast %2716 : f32 to vector<8x8xf32>
    %2718 = arith.addf %2715, %2717 : vector<8x8xf32>
    %cst_1526 = arith.constant 0.000000e+00 : f32
    %2719 = vector.broadcast %cst_1526 : f32 to vector<8x8xf32>
    %2720 = arith.cmpf ogt, %2718, %2719 : vector<8x8xf32>
    %cst_1527 = arith.constant 0.00999999977 : f32
    %2721 = vector.broadcast %cst_1527 : f32 to vector<8x8xf32>
    %2722 = arith.mulf %2721, %2718 : vector<8x8xf32>
    %2723 = arith.select %2720, %2718, %2722 : vector<8x8xi1>, vector<8x8xf32>
    %cst_1528 = arith.constant dense<0.000000e+00> : vector<16x8xf32>
    %2724 = tpu.matmul %1795, %2723, %cst_1528 {dimension_numbers = #tpu.dot_dimension_numbers<[1], [0], [0], [1], [0, 0, 1, 1], [], []>} : vector<16x8xf32>, vector<8x8xf32>, vector<16x8xf32> -> vector<16x8xf32>
    %cst_1529 = arith.constant dense<0.000000e+00> : vector<16x16xf32>
    %2725 = tpu.matmul %2724, %1796, %cst_1529 {dimension_numbers = #tpu.dot_dimension_numbers<[1], [0], [0], [1], [0, 0, 1, 1], [], []>} : vector<16x8xf32>, vector<8x16xf32>, vector<16x16xf32> -> vector<16x16xf32>
    %c0_1530 = arith.constant 0 : index
    %c3_1531 = arith.constant 3 : index
    %c0_1532 = arith.constant 0 : index
    %c0_1533 = arith.constant 0 : index
    %2726 = vector.load %arg10[%c0_1530, %c3_1531, %c0_1532, %c0_1533] : memref<1x4x16x16xf32, #tpu.memory_space<vmem>>, vector<1x1x16x16xf32>
    %2727 = vector.shape_cast %2726 : vector<1x1x16x16xf32> to vector<16x16xf32>
    %2728 = vector.shape_cast %2725 : vector<16x16xf32> to vector<1x1x16x16xf32>
    tpu.vector_store %arg10[%c0_1530, %c3_1531, %c0_1532, %c0_1533], %2728 {strides = array<i32>} : memref<1x4x16x16xf32, #tpu.memory_space<vmem>>, vector<1x1x16x16xf32>,
    return
  }
  func.func @transform_0(%arg0: i32) -> (i32, i32, i32, i32) {
    %c0_i32 = arith.constant 0 : i32
    %c0_i32_0 = arith.constant 0 : i32
    %c0_i32_1 = arith.constant 0 : i32
    %c0_i32_2 = arith.constant 0 : i32
    return %arg0, %c0_i32, %c0_i32_0, %c0_i32_1 : i32, i32, i32, i32
  }
  func.func @transform_1(%arg0: i32) -> i32 {
    %c0_i32 = arith.constant 0 : i32
    %c0_i32_0 = arith.constant 0 : i32
    return %c0_i32 : i32
  }
  func.func @transform_2(%arg0: i32) -> i32 {
    %c0_i32 = arith.constant 0 : i32
    %c0_i32_0 = arith.constant 0 : i32
    return %c0_i32 : i32
  }
  func.func @transform_3(%arg0: i32) -> i32 {
    %c0_i32 = arith.constant 0 : i32
    %c0_i32_0 = arith.constant 0 : i32
    return %c0_i32 : i32
  }
  func.func @transform_4(%arg0: i32) -> i32 {
    %c0_i32 = arith.constant 0 : i32
    %c0_i32_0 = arith.constant 0 : i32
    return %c0_i32 : i32
  }
  func.func @transform_5(%arg0: i32) -> i32 {
    %c0_i32 = arith.constant 0 : i32
    %c0_i32_0 = arith.constant 0 : i32
    return %c0_i32 : i32
  }
  func.func @transform_6(%arg0: i32) -> i32 {
    %c0_i32 = arith.constant 0 : i32
    %c0_i32_0 = arith.constant 0 : i32
    return %c0_i32 : i32
  }
  func.func @transform_7(%arg0: i32) -> (i32, i32) {
    %c0_i32 = arith.constant 0 : i32
    %c0_i32_0 = arith.constant 0 : i32
    %c0_i32_1 = arith.constant 0 : i32
    return %c0_i32, %c0_i32_0 : i32, i32
  }
  func.func @transform_8(%arg0: i32) -> (i32, i32) {
    %c0_i32 = arith.constant 0 : i32
    %c0_i32_0 = arith.constant 0 : i32
    %c0_i32_1 = arith.constant 0 : i32
    return %c0_i32, %c0_i32_0 : i32, i32
  }
  func.func @transform_9(%arg0: i32) -> (i32, i32, i32, i32) {
    %c0_i32 = arith.constant 0 : i32
    %c0_i32_0 = arith.constant 0 : i32
    %c0_i32_1 = arith.constant 0 : i32
    %c0_i32_2 = arith.constant 0 : i32
    return %arg0, %c0_i32, %c0_i32_0, %c0_i32_1 : i32, i32, i32, i32
  }
}

</mosaic_0001>

<bundles_post_ra>
// kernel: tpu_custom_call.1
= control target key start
LH: loop header
LB: loop body
LE: loop exit
PB: predicated region body
PF: predicated region fallthrough
CT: control target
= control target key end

     0   :  { %s6877_s0 = inlined_call_operand.hbm [shape: f32[2,8,8,8], index: 0, kind: input, shape index: {}]   ;;  %s6878_s1 = inlined_call_operand.vmem [shape: f32[288], index: 1, kind: input, shape index: {}]   ;;  %s6879_s2 = inlined_call_operand.vmem [shape: f32[4], index: 2, kind: input, shape index: {}]   ;;  %s6880_s3 = inlined_call_operand.vmem [shape: f32[4], index: 3, kind: input, shape index: {}]   ;;  %s6881_s4 = inlined_call_operand.vmem [shape: f32[144], index: 4, kind: input, shape index: {}]   ;;  %s6882_s5 = inlined_call_operand.vmem [shape: f32[4], index: 5, kind: input, shape index: {}]   ;;  %s6883_s6 = inlined_call_operand.vmem [shape: f32[4], index: 6, kind: input, shape index: {}]   ;;  %s6884_s7 = inlined_call_operand.vmem [shape: f32[16,8], index: 7, kind: input, shape index: {}]   ;;  %s6885_s8 = inlined_call_operand.vmem [shape: f32[8,16], index: 8, kind: input, shape index: {}]   ;;  %s6886_s9 = inlined_call_operand.hbm [shape: f32[2,4,16,16], index: 9, kind: output, shape index: {}]  }
   0x1   :  { %6887 = sst [smem:[#allocation24_spill]] %s6878_s1 }
   0x2   :  { %6888 = sst [smem:[#allocation25_spill]] %s6879_s2 }
   0x3   :  { %6889 = sst [smem:[#allocation26_spill]] %s6880_s3 }
   0x4   :  { %6890 = sst [smem:[#allocation27_spill]] %s6881_s4 }
   0x5   :  { %14 = vsyncpa [#allocation5], 0 }
   0x6   :  { %16 = vsyncpa [#allocation5 + $0x1], 0 }
   0x7   :  { %17 = vsyncpa [#allocation7], 0 }
   0x8   :  { %18 = vsyncpa [#allocation10], 0 }
   0x9   :  { %19 = vsyncpa [#allocation13], 0 }
   0xa   :  { %20 = vsyncpa [#allocation16], 0 }
   0xb   :  { %21 = vsyncpa [#allocation6], 0 }
   0xc   :  { %23 = vsyncpa [#allocation6 + $0x1], 0  ;;  %s4913_s30 = smov 0   ;;  %s4915_s10 = smov 0  }
   0xd   :  { %s4917_s11 = smov 0   ;;  %s4919_s12 = smov 0  }
   0xe LB: > { %s6891_s2 = sld [smem:[#allocation25_spill]]  ;;  %s4937_s16 = sadd.s32 4294967295, %s4847_s12   ;;  %s4847_s12 = sphi %s4919_s12, %s6906_s12   ;;  %s4843_s11 = sphi %s4917_s11, %s6905_s11   ;;  %s4839_s10 = sphi %s4915_s10, %s6904_s10   ;;  %s4835_s30 = sphi %s4913_s30, %s6903_s30  }
   0xf   : > { %p4011_p0 = scmp.ge.s32.totalorder %s4847_s12, 1  ;;  %p50_p1 = scmp.eq.s32.totalorder %s4937_s16, 0 }
  0x10   : > { %p254_p2 = scmp.lt.s32.totalorder %s4847_s12, 3  ;;  %s6893_s4 = sld [smem:[#allocation27_spill]] }
  0x11   : > { %s6894_s1 = sld [smem:[#allocation24_spill]]  ;;  %s4849_s28 = smov [#allocation9]  }
  0x12   : > { %p4942_p3 = pnand %p4011_p0, %p254_p2  ;;  %s6896_s3 = sld [smem:[#allocation26_spill]] }
  0x13   : > { %s4850_s29 = smov [#allocation12]   ;;  %s4851_s13 = smov [#allocation8]  }
  0x14   : > { %s276_s15 = sshll.u32 %s6891_s2, 4  ;;  %p4530_p5 = pneg %p4942_p3  ;;  %s277_s15 = int_to_ptr.vmem [resolvable:$true] %s276_s15 }
  0x15   : > { %s4852_s14 = smov [#allocation11]   ;;  %s316_s22 = sshll.u32 %s6883_s6, 4  ;;  %s317_s22 = int_to_ptr.vmem [resolvable:$true] %s316_s22 }
  0x16   : > { %s296_s20 = sshll.u32 %s6893_s4, 4  ;;  %p4957_p6 = pnand %p4530_p5, %p50_p1  ;;  %s297_s20 = int_to_ptr.vmem [resolvable:$true] %s296_s20 }
  0x17   : > { %s266_s23 = sshll.u32 %s6894_s1, 4  ;;  %s4854_s25 = smov [#allocation15]   ;;  %s267_s23 = int_to_ptr.vmem [resolvable:$true] %s266_s23 }
  0x18   : > { %s286_s27 = sshll.u32 %s6896_s3, 4  ;;  %s4010_s26 = sadd.s32 4294967294, %s4847_s12   ;;  %s287_s27 = int_to_ptr.vmem [resolvable:$true] %s286_s27 }
  0x19   : > { %4536 = dma.vmem_to_smem (!%p4957_p6), %s277_s15, 16, %s4849_s28, [#allocation10]  }
  0x1a   : > { %4542 = dma.vmem_to_smem (!%p4957_p6), %s297_s20, 32, %s4850_s29, [#allocation13]  }
  0x1b   : > { %4533 = dma.vmem_to_smem (!%p4957_p6), %s267_s23, 48, %s4851_s13, [#allocation7]  }
  0x1c   : > { %4539 = dma.vmem_to_smem (!%p4957_p6), %s287_s27, 16, %s4852_s14, [#allocation10]  }
  0x1d   : > { %s306_s15 = sshll.u32 %s6882_s5, 4  ;;  %s4853_s23 = smov [#allocation14]   ;;  %s307_s15 = int_to_ptr.vmem [resolvable:$true] %s306_s15 }
  0x1e   : > { %4545 = dma.vmem_to_smem (!%p4957_p6), %s307_s15, 16, %s4853_s23, [#allocation13]  }
  0x1f   : > { %4548 = dma.vmem_to_smem (!%p4957_p6), %s317_s22, 16, %s4854_s25, [#allocation16]  }
  0x20   : > { %s4984_s27 = sadd.s32 1, %s4847_s12   ;;  %s36_s29 = sadd.s32 1, %s4843_s11 }
  0x21   : > { %s33_s28 = ssub.s32 %s4847_s12, %s4984_s27  ;;  %p43_p8 = scmp.ne.s32.totalorder %s4843_s11, %s4839_s10 }
  0x22   : > { %p34_p7 = scmp.eq.s32.totalorder %s33_s28, 0  ;;  %p44_p9 = scmp.eq.s32.totalorder %s4847_s12, 0 }
  0x23   : > { %p49_p10 = scmp.ne.s32.totalorder %s4839_s10, %s4835_s30  ;;  %p241_p13 = scmp.eq.s32.totalorder %s4937_s16, 1 }
  0x24   : > { %s4995_s13 = scalar_select %p34_p7, %s4843_s11, %s36_s29  }
  0x25   : > { %p4997_p11 = por %p44_p9, %p43_p8  ;;  %p5003_p12 = por %p50_p1, %p49_p10 }
  0x26   : > { %p247_p0 = scmp.eq.s32.totalorder %s4010_s26, 1  ;;  %p4563_p2 = scmp.lt.s32.totalorder %s4847_s12, 2 }
  0x27   : > { %s333_s18 = sand.u32 1, %s4843_s11   ;;  %p5010_p5 = por %p241_p13, %p43_p8 }
  0x28   : > { %p5014_p6 = por %p247_p0, %p49_p10  ;;  %s4019_s21 = sshll.u32 %s333_s18, 6 }
  0x29   : > { %s4500_s20 = sshll.u32 %s4847_s12, 6  ;;  %s337_s28 = scalar_lea.vmem [#allocation4], %s4019_s21 }
  0x2a   : > { %s342_s25 = scalar_lea.hbm %s6877_s0, %s4500_s20  ;;  %s345_s29 = sshll.u32 %s337_s28, 4  ;;  %s346_s29 = int_to_ptr.vmem [resolvable:$true] %s345_s29 }
  0x2b   : > { %s343_s1 = sshll.u32 %s342_s25, 4  ;;  %p5024_p7 = pnand %p4563_p2, %p4997_p11  ;;  %s344_s1 = int_to_ptr.hbm [resolvable:$true] %s343_s1 }
  0x2c   : > { %s334_s2 = scalar_lea.sflag [#allocation5], %s333_s18  ;;  %s4735_s3 = sshra.s32 %s344_s1, 4  ;;  %s4736_s3 = int_to_ptr.hbm [resolvable:$true] %s4735_s3 }
  0x2d   : > { %s4737_s4 = scalar_lea.hbm %s4736_s3, 64  ;;  %p4739_p9 = pneg %p5024_p7 }
  0x2e   : > { %p4738_p8 = scmp.ne.s32.totalorder %s4736_s3, %s4737_s4  ;;  %s4742_s22 = scalar_lea.hbm %s6877_s0, 128 }
  0x2f   : > { %p4743_p11 = scmp.lt.s32.totalorder %s4736_s3, %s6877_s0  ;;  %p4744_p0 = scmp.lt.s32.totalorder %s4742_s22, %s4737_s4 }
  0x30   : > { %p4740_p10 = pnand %p4739_p9, %p4738_p8 }
  0x31   : > { %p4745_p2 = por %p4744_p0, %p4743_p11 }
  0x32   : > { %p4741_p13 = pneg %p4740_p10 }
  0x34   : > { %p4746_p4 = pnand %p4745_p2, %p4741_p13 }
  0x36   : > { %4749 = shalt.err (!%p4746_p4)
}
  0x37   : > { %s4855_s18 = smov 128   ;;  %s4856_s25 = smov 8  }
  0x38   : > { %4552 = dma.hbm_to_vmem [thread:$0]  (!%p5024_p7), %s344_s1, 1024, %s346_s29, %s334_s2, %s4855_s18, %s4855_s18, %s4856_s25  }
  0x39   : > { %357 = sbr.rel (%p4942_p3) target bundleno = 1523 (0x5f3), region = 56  ;;  %s5041_s28 = sand.u32 (!%p4942_p3), 1, %s4839_s10  }
  0x3a   : > { %s4023_s3 = sshll.u32 (!%p4942_p3), %s5041_s28, 6  ;;  %s360_s4 = scalar_lea.sflag (!%p4942_p3), [#allocation5], %s5041_s28 }
  0x3b   : > { %s363_s21 = scalar_lea.vmem (!%p4942_p3), [#allocation4], %s4023_s3 }
  0x3e   : > { %4810 = dma.done.wait (%p5003_p12), %s360_s4, 1024  }
  0x3f   : > { %4812 = vsyncadd (%p5003_p12), %s360_s4, 4294966272 }
  0x40   : > { %4814 = dma.done.wait (%p50_p1), [#allocation7], 48  }
  0x41   : > { %4816 = vsyncadd (%p50_p1), [#allocation7], 4294967248 }
  0x42   : > { %4818 = dma.done.wait (%p50_p1), [#allocation10], 32  }
  0x43   : > { %4820 = vsyncadd (%p50_p1), [#allocation10], 4294967264 }
  0x44   : > { %4822 = dma.done.wait (%p50_p1), [#allocation13], 48  }
  0x45   : > { %4824 = vsyncadd (%p50_p1), [#allocation13], 4294967248 }
  0x46   : > { %4826 = dma.done.wait (%p50_p1), [#allocation16], 16  }
  0x47   : > { %4828 = vsyncadd (%p50_p1), [#allocation16], 4294967280 }
  0x48   : > { %399 = sfence }
  0x49   : > { %v448_v0 = vld [vmem:[%s363_s21] sm:$0xff]  ;;  %v450_v1 = vld [vmem:[%s363_s21 + $0x10] sm:$0xff]  ;;  %s4857_s1 = smov 1   ;;  %v449_v3 = vld [vmem:[%s363_s21 + $0x8] sm:$0xff]  ;;  %vm430_vm0 = vcmask 80896   ;;  %vm432_vm1 = vcmask 74752  }
  0x4a   : > { %464 = vrot.lane.b32.xlu0 %v448_v0, %s4857_s1  ;;  %468 = vrot.lane.b32.xlu1 %v450_v1, %s4857_s1  ;;  %v452_v2 = vld [vmem:[%s363_s21 + $0x20] sm:$0xff]  ;;  %v451_v4 = vld [vmem:[%s363_s21 + $0x18] sm:$0xff]  ;;  %v4858_v8 = vmov 0.0   ;;  %s4034_s2 = sld [smem:[#allocation8 + $0x4]]  ;;  %vm488_vm2 = vcmask 72712   ;;  %s4859_s22 = smov 127  }
  0x4b   : > { %472 = vrot.lane.b32.xlu2 %v452_v2, %s4857_s1  ;;  %v453_v5 = vld [vmem:[%s363_s21 + $0x28] sm:$0xff]  ;;  %v454_v6 = vld [vmem:[%s363_s21 + $0x30] sm:$0xff]  ;;  %v455_v7 = vld [vmem:[%s363_s21 + $0x38] sm:$0xff]  ;;  %431 = vst.msk [vmem:[#allocation2] sm:$0xff] %vm430_vm0, %v4858_v8  ;;  %s4032_s17 = sld [smem:[#allocation8 + $0x2]]  ;;  %s4860_s23 = smov 126  }
  0x4c   : > { %433 = vst.msk [vmem:[#allocation2 + $0x8] sm:$0x3] %vm432_vm1, %v4858_v8  ;;  %s4031_s24 = sld [smem:[#allocation8 + $0x1]]  ;;  %vm2851_vm9 = vcmask 64512   ;;  %vm2910_vm12 = vcmask 130048  }
  0x4d   : > { %434 = vst.msk [vmem:[#allocation2 + $0x10] sm:$0xff] %vm430_vm0, %v4858_v8  ;;  %s4038_s29 = sld [smem:[#allocation8 + $0x8]] }
  0x4e   : > { %435 = vst.msk [vmem:[#allocation2 + $0x18] sm:$0x3] %vm432_vm1, %v4858_v8  ;;  %s4037_s26 = sld [smem:[#allocation8 + $0x7]] }
  0x4f   : > { %436 = vst.msk [vmem:[#allocation2 + $0x20] sm:$0xff] %vm430_vm0, %v4858_v8  ;;  %s4035_s20 = sld [smem:[#allocation8 + $0x5]] }
  0x50   : > { %437 = vst.msk [vmem:[#allocation2 + $0x28] sm:$0x3] %vm432_vm1, %v4858_v8  ;;  %v532_v11 = vstv %s4034_s2  ;;  %s4043_s14 = sld [smem:[#allocation8 + $0xd]] }
  0x51   : > { %438 = vst.msk [vmem:[#allocation2 + $0x30] sm:$0xff] %vm430_vm0, %v4858_v8  ;;  %v519_v12 = vstv %s4032_s17  ;;  %s4041_s18 = sld [smem:[#allocation8 + $0xb]] }
  0x52   : > { %466 = vrot.lane.b32.xlu0 %v449_v3, %s4857_s1  ;;  %470 = vrot.lane.b32.xlu1 %v451_v4, %s4857_s1  ;;  %439 = vst.msk [vmem:[#allocation2 + $0x38] sm:$0x3] %vm432_vm1, %v4858_v8  ;;  %v511_v13 = vstv %s4031_s24  ;;  %s4040_s25 = sld [smem:[#allocation8 + $0xa]] }
  0x53   : > { %474 = vrot.lane.b32.xlu2 %v453_v5, %s4857_s1  ;;  %440 = vst.msk [vmem:[#allocation2 + $0x40] sm:$0xff] %vm430_vm0, %v4858_v8  ;;  %v561_v22 = vstv %s4038_s29  ;;  %s4047_s4 = sld [smem:[#allocation8 + $0x11]] }
  0x54   : > { %441 = vst.msk [vmem:[#allocation2 + $0x48] sm:$0x3] %vm432_vm1, %v4858_v8  ;;  %v553_v23 = vstv %s4037_s26  ;;  %s4046_s21 = sld [smem:[#allocation8 + $0x10]] }
  0x55   : > { %442 = vst.msk [vmem:[#allocation2 + $0x50] sm:$0xff] %vm430_vm0, %v4858_v8  ;;  %v540_v24 = vstv %s4035_s20  ;;  %s4044_s2 = sld [smem:[#allocation8 + $0xe]] }
  0x56   : > { %443 = vst.msk [vmem:[#allocation2 + $0x58] sm:$0x3] %vm432_vm1, %v4858_v8  ;;  %v596_v29 = vstv %s4043_s14  ;;  %s4052_s17 = sld [smem:[#allocation8 + $0x16]] }
  0x57   : > { %444 = vst.msk [vmem:[#allocation2 + $0x60] sm:$0xff] %vm430_vm0, %v4858_v8  ;;  %v583_v31 = vstv %s4041_s18  ;;  %s4050_s24 = sld [smem:[#allocation8 + $0x14]] }
  0x58   : > { %445 = vst.msk [vmem:[#allocation2 + $0x68] sm:$0x3] %vm432_vm1, %v4858_v8  ;;  %v575_v32 = vstv %s4040_s25  ;;  %s4049_s29 = sld [smem:[#allocation8 + $0x13]] }
  0x59   : > { %446 = vst.msk [vmem:[#allocation2 + $0x70] sm:$0xff] %vm430_vm0, %v4858_v8  ;;  %v625_v38 = vstv %s4047_s4  ;;  %s4056_s26 = sld [smem:[#allocation8 + $0x1a]] }
  0x5a   : > { %476 = vrot.lane.b32.xlu0 %v454_v6, %s4857_s1  ;;  %478 = vrot.lane.b32.xlu1 %v455_v7, %s4857_s1  ;;  %447 = vst.msk [vmem:[#allocation2 + $0x78] sm:$0x3] %vm432_vm1, %v4858_v8  ;;  %v617_v39 = vstv %s4046_s21  ;;  %s4055_s20 = sld [smem:[#allocation8 + $0x19]] }
  0x5b   : > { %497 = vst.msk [vmem:[#allocation3] sm:$0xff] %vm430_vm0, %v4858_v8  ;;  %v604_v40 = vstv %s4044_s2  ;;  %s4053_s14 = sld [smem:[#allocation8 + $0x17]] }
  0x5c   : > { %498 = vst.msk [vmem:[#allocation3 + $0x8] sm:$0x3] %vm432_vm1, %v4858_v8  ;;  %v660_v45 = vstv %s4052_s17  ;;  %s4061_s18 = sld [smem:[#allocation8 + $0x1f]] }
  0x5d   : > { %499 = vst.msk [vmem:[#allocation3 + $0x10] sm:$0xff] %vm430_vm0, %v4858_v8  ;;  %v647_v47 = vstv %s4050_s24  ;;  %s4059_s25 = sld [smem:[#allocation8 + $0x1d]] }
  0x5e   : > { %500 = vst.msk [vmem:[#allocation3 + $0x18] sm:$0x3] %vm432_vm1, %v4858_v8  ;;  %v639_v48 = vstv %s4049_s29  ;;  %s4058_s4 = sld [smem:[#allocation8 + $0x1c]] }
  0x5f   : > { %501 = vst.msk [vmem:[#allocation3 + $0x20] sm:$0xff] %vm430_vm0, %v4858_v8  ;;  %v689_v54 = vstv %s4056_s26  ;;  %s4065_s21 = sld [smem:[#allocation8 + $0x23]] }
  0x60   : > { %502 = vst.msk [vmem:[#allocation3 + $0x28] sm:$0x3] %vm432_vm1, %v4858_v8  ;;  %v681_v55 = vstv %s4055_s20  ;;  %s4064_s2 = sld [smem:[#allocation8 + $0x22]] }
  0x61   : > { %503 = vst.msk [vmem:[#allocation3 + $0x30] sm:$0xff] %vm430_vm0, %v4858_v8  ;;  %v668_v56 = vstv %s4053_s14  ;;  %s4062_s17 = sld [smem:[#allocation8 + $0x20]] }
  0x62   : > { %504 = vst.msk [vmem:[#allocation3 + $0x38] sm:$0x3] %vm432_vm1, %v4858_v8  ;;  %v724_v61 = vstv %s4061_s18  ;;  %s4070_s24 = sld [smem:[#allocation8 + $0x28]] }
  0x63   : > { %v711_v63 = vstv %s4059_s25  ;;  %s4068_s29 = sld [smem:[#allocation8 + $0x26]] }
  0x64   : > { %v703_v0 = vstv %s4058_s4  ;;  %s4067_s26 = sld [smem:[#allocation8 + $0x25]] }
  0x65   : > { %v753_v6 = vstv %s4065_s21  ;;  %s4074_s20 = sld [smem:[#allocation8 + $0x2c]] }
  0x66   : > { %v745_v7 = vstv %s4064_s2  ;;  %s4073_s14 = sld [smem:[#allocation8 + $0x2b]] }
  0x67   : > { %v732_v8 = vstv %s4062_s17  ;;  %s4071_s18 = sld [smem:[#allocation8 + $0x29]] }
  0x68   : > { %s4079_s25 = sld [smem:[#allocation8 + $0x31]] }
  0x69   : > { %s4077_s4 = sld [smem:[#allocation8 + $0x2f]] }
  0x6a   : > { %s4076_s21 = sld [smem:[#allocation8 + $0x2e]] }
  0x6b   : > { %s4083_s2 = sld [smem:[#allocation8 + $0x35]] }
  0x6c   : > { %s4082_s17 = sld [smem:[#allocation8 + $0x34]] }
  0xa5   : > { %v473_v36 = vpop.permute.xlu2 %472 }
  0xa6   : > { %493 = vst.msk [vmem:[#allocation2 + $0x41] sm:$0xff] %vm488_vm2, %v473_v36  ;;  %v839_v36 = vstv %s4077_s4  ;;  %s4097_s4 = sld [smem:[#allocation8 + $0x43]] }
  0xad   : > { %v475_v52 = vpop.permute.xlu2 %474 }
  0xae   : > { %494 = vst.msk [vmem:[#allocation2 + $0x51] sm:$0xff] %vm488_vm2, %v475_v52 }
  0xbc   : > { %v465_v9 = vpop.permute.xlu0 %464  ;;  %v469_v10 = vpop.permute.xlu1 %468 }
  0xbd   : > { %489 = vst.msk [vmem:[#allocation2 + $0x1] sm:$0xff] %vm488_vm2, %v465_v9 }
  0xbe   : > { %491 = vst.msk [vmem:[#allocation2 + $0x21] sm:$0xff] %vm488_vm2, %v469_v10 }
  0xc4   : > { %v5101_v14 = vld [vmem:[#allocation2 + $0x1] sm:$0xff]  ;;  %v467_v16 = vpop.permute.xlu0 %466  ;;  %v471_v20 = vpop.permute.xlu1 %470 }
  0xc5   : > { %v5103_v15 = vld [vmem:[#allocation2] sm:$0xff]  ;;  %v533_v17 = vmul.f32 %v532_v11, %v5101_v14  ;;  %490 = vst.msk [vmem:[#allocation2 + $0x11] sm:$0xff] %vm488_vm2, %v467_v16  ;;  %v541_v27 = vmul.f32 %v540_v24, %v5101_v14  ;;  %v817_v24 = vstv %s4074_s20  ;;  %s4085_s20 = sld [smem:[#allocation8 + $0x37]] }
  0xc6   : > { %v520_v18 = vmul.f32 %v519_v12, %v5103_v15  ;;  %v512_v19 = vmul.f32 %v511_v13, %v5103_v15  ;;  %492 = vst.msk [vmem:[#allocation2 + $0x31] sm:$0xff] %vm488_vm2, %v471_v20  ;;  %v5113_v21 = vld [vmem:[#allocation2 + $0x2] sm:$0xff]  ;;  %v788_v13 = vstv %s4070_s24  ;;  %s4080_s24 = sld [smem:[#allocation8 + $0x32]] }
  0xc7   : > { %535 = vrot.lane.b32.xlu1 %v533_v17, %s4859_s22  ;;  %v562_v25 = vmul.f32 %v561_v22, %v5113_v21  ;;  %v554_v26 = vmul.f32 %v553_v23, %v5113_v21  ;;  %v5140_v44 = vld [vmem:[#allocation2 + $0x21] sm:$0xff]  ;;  %v775_v17 = vstv %s4068_s29  ;;  %s4088_s29 = sld [smem:[#allocation8 + $0x3a]] }
  0xc8   : > { %522 = vrot.lane.b32.xlu0 %v520_v18, %s4860_s23  ;;  %514 = vrot.lane.b32.xlu2 %v512_v19, %s4859_s22  ;;  %v5142_v46 = vld [vmem:[#allocation2 + $0x20] sm:$0xff]  ;;  %v661_v49 = vmul.f32 %v660_v45, %v5140_v44  ;;  %v669_v59 = vmul.f32 %v668_v56, %v5140_v44  ;;  %v767_v18 = vstv %s4067_s26  ;;  %s4086_s26 = sld [smem:[#allocation8 + $0x38]]  ;;  %v873_v45 = vstv %s4082_s17 }
  0xc9   : > { %v648_v50 = vmul.f32 %v647_v47, %v5142_v46  ;;  %v640_v51 = vmul.f32 %v639_v48, %v5142_v46  ;;  %v5151_v53 = vld [vmem:[#allocation2 + $0x22] sm:$0xff]  ;;  %s505_s17 = sld [smem:[#allocation8]] }
  0xca   : > { %v690_v57 = vmul.f32 %v689_v54, %v5151_v53  ;;  %v682_v58 = vmul.f32 %v681_v55, %v5151_v53  ;;  %v5178_v12 = vld [vmem:[#allocation2 + $0x41] sm:$0xff] }
  0xcb   : > { %v5180_v16 = vld [vmem:[#allocation2 + $0x40] sm:$0xff]  ;;  %v789_v19 = vmul.f32 %v788_v13, %v5178_v12  ;;  %v895_v56 = vstv %s4085_s20  ;;  %s4098_s20 = sld [smem:[#allocation8 + $0x44]] }
  0xcc   : > { %v5121_v28 = vld [vmem:[#allocation2 + $0x11] sm:$0xff]  ;;  %v477_v4 = vpop.permute.xlu0 %476  ;;  %v776_v20 = vmul.f32 %v775_v17, %v5180_v16  ;;  %v768_v22 = vmul.f32 %v767_v18, %v5180_v16  ;;  %v5188_v23 = vld [vmem:[#allocation2 + $0x42] sm:$0xff]  ;;  %v860_v47 = vstv %s4080_s24  ;;  %s4033_s24 = sld [smem:[#allocation8 + $0x3]] }
  0xcd   : > { %v5123_v30 = vld [vmem:[#allocation2 + $0x10] sm:$0xff]  ;;  %v597_v33 = vmul.f32 %v596_v29, %v5121_v28  ;;  %v605_v43 = vmul.f32 %v604_v40, %v5121_v28  ;;  %495 = vst.msk [vmem:[#allocation2 + $0x61] sm:$0xff] %vm488_vm2, %v477_v4  ;;  %v818_v29 = vmul.f32 %v817_v24, %v5188_v23  ;;  %v916_v52 = vstv %s4088_s29  ;;  %s4101_s29 = sld [smem:[#allocation8 + $0x47]] }
  0xce   : > { %v584_v34 = vmul.f32 %v583_v31, %v5123_v30  ;;  %v576_v35 = vmul.f32 %v575_v32, %v5123_v30  ;;  %v5132_v37 = vld [vmem:[#allocation2 + $0x12] sm:$0xff]  ;;  %v903_v55 = vstv %s4086_s26  ;;  %s4100_s26 = sld [smem:[#allocation8 + $0x46]] }
  0xcf   : > { %564 = vrot.lane.b32.xlu1 %v562_v25, %s4860_s23  ;;  %v626_v41 = vmul.f32 %v625_v38, %v5132_v37  ;;  %v618_v42 = vmul.f32 %v617_v39, %v5132_v37  ;;  %v5159_v60 = vld [vmem:[#allocation2 + $0x31] sm:$0xff]  ;;  %v809_v25 = vstv %s4073_s14  ;;  %v831_v38 = vstv %s4076_s21  ;;  %s4092_s14 = sld [smem:[#allocation8 + $0x3e]] }
  0xd0   : > { %556 = vrot.lane.b32.xlu0 %v554_v26, %s4859_s22  ;;  %543 = vrot.lane.b32.xlu2 %v541_v27, %s4860_s23  ;;  %v5161_v62 = vld [vmem:[#allocation2 + $0x30] sm:$0xff]  ;;  %v725_v1 = vmul.f32 %v724_v61, %v5159_v60  ;;  %v733_v11 = vmul.f32 %v732_v8, %v5159_v60  ;;  %v479_v26 = vpop.permute.xlu1 %478  ;;  %v796_v27 = vstv %s4071_s18  ;;  %v810_v31 = vmul.f32 %v809_v25, %v5188_v23  ;;  %s4091_s18 = sld [smem:[#allocation8 + $0x3d]] }
  0xd1   : > { %v712_v2 = vmul.f32 %v711_v63, %v5161_v62  ;;  %v704_v3 = vmul.f32 %v703_v0, %v5161_v62  ;;  %v5170_v5 = vld [vmem:[#allocation2 + $0x32] sm:$0xff]  ;;  %496 = vst.msk [vmem:[#allocation2 + $0x71] sm:$0xff] %vm488_vm2, %v479_v26  ;;  %v797_v32 = vmul.f32 %v796_v27, %v5178_v12  ;;  %s4095_s21 = sld [smem:[#allocation8 + $0x41]]  ;;  %v507_v18 = vstv %s505_s17 }
  0xd2   : > { %v754_v9 = vmul.f32 %v753_v6, %v5170_v5  ;;  %v746_v10 = vmul.f32 %v745_v7, %v5170_v5  ;;  %v508_v24 = vmul.f32 %v507_v18, %v5103_v15  ;;  %v528_v25 = vstv %s4033_s24  ;;  %s5264_s17 = sld [smem:[#allocation8 + $0x4f]] }
  0xd3   : > { %s4107_s24 = sld [smem:[#allocation8 + $0x4d]] }
  0xd4   : > { %v5217_v54 = vld [vmem:[#allocation2 + $0x60] sm:$0xff] }
  0xd5   : > { %v896_v61 = vmul.f32 %v895_v56, %v5217_v54  ;;  %v5225_v0 = vld [vmem:[#allocation2 + $0x62] sm:$0xff] }
  0xd7   : > { %599 = vrot.lane.b32.xlu1 %v597_v33, %s4859_s22  ;;  %v5197_v33 = vld [vmem:[#allocation2 + $0x51] sm:$0xff] }
  0xd8   : > { %586 = vrot.lane.b32.xlu0 %v584_v34, %s4860_s23  ;;  %578 = vrot.lane.b32.xlu2 %v576_v35, %s4859_s22  ;;  %v852_v34 = vstv %s4079_s25  ;;  %v5199_v35 = vld [vmem:[#allocation2 + $0x50] sm:$0xff]  ;;  %s4089_s25 = sld [smem:[#allocation8 + $0x3b]] }
  0xd9   : > { %v853_v39 = vmul.f32 %v852_v34, %v5197_v33  ;;  %v840_v40 = vmul.f32 %v839_v36, %v5199_v35  ;;  %v5233_v8 = vld [vmem:[#allocation2 + $0x71] sm:$0xff] }
  0xda   : > { %v5253_v36 = vld [vmem:[#allocation2 + $0x72] sm:$0xff] }
  0xdf   : > { %628 = vrot.lane.b32.xlu1 %v626_v41, %s4860_s23  ;;  %v832_v41 = vmul.f32 %v831_v38, %v5199_v35  ;;  %v1009_v38 = vstv %s4101_s29  ;;  %s4110_s29 = sld [smem:[#allocation8 + $0x50]] }
  0xe0   : > { %620 = vrot.lane.b32.xlu0 %v618_v42, %s4859_s22  ;;  %607 = vrot.lane.b32.xlu2 %v605_v43, %s4860_s23  ;;  %v5207_v42 = vld [vmem:[#allocation2 + $0x52] sm:$0xff]  ;;  %v881_v43 = vstv %s4083_s2  ;;  %s4094_s2 = sld [smem:[#allocation8 + $0x40]] }
  0xe1   : > { %v882_v48 = vmul.f32 %v881_v43, %v5207_v42  ;;  %v1010_v43 = vmul.f32 %v1009_v38, %v5253_v36 }
  0xe6   : > { %v959_v13 = vstv %s4094_s2  ;;  %s5262_s2 = sld [smem:[#allocation8 + $0xc]] }
  0xe7   : > { %663 = vrot.lane.b32.xlu1 %v661_v49, %s4859_s22  ;;  %v874_v49 = vmul.f32 %v873_v45, %v5207_v42 }
  0xe8   : > { %650 = vrot.lane.b32.xlu0 %v648_v50, %s4860_s23  ;;  %642 = vrot.lane.b32.xlu2 %v640_v51, %s4859_s22  ;;  %v861_v50 = vmul.f32 %v860_v47, %v5197_v33  ;;  %v5215_v51 = vld [vmem:[#allocation2 + $0x61] sm:$0xff] }
  0xec   : > { %v592_v18 = vstv %s5262_s2  ;;  %s4116_s2 = sld [smem:[#allocation8 + $0x56]] }
  0xef   : > { %692 = vrot.lane.b32.xlu1 %v690_v57, %s4860_s23 }
  0xf0   : > { %684 = vrot.lane.b32.xlu0 %v682_v58, %s4859_s22  ;;  %671 = vrot.lane.b32.xlu2 %v669_v59, %s4860_s23  ;;  %v917_v58 = vmul.f32 %v916_v52, %v5215_v51  ;;  %v904_v59 = vmul.f32 %v903_v55, %v5217_v54 }
  0xf7   : > { %727 = vrot.lane.b32.xlu1 %v725_v1, %s4859_s22  ;;  %v945_v1 = vstv %s4092_s14  ;;  %s4036_s14 = sld [smem:[#allocation8 + $0x6]] }
  0xf8   : > { %714 = vrot.lane.b32.xlu0 %v712_v2, %s4860_s23  ;;  %706 = vrot.lane.b32.xlu2 %v704_v3, %s4859_s22  ;;  %v937_v2 = vstv %s4091_s18  ;;  %v924_v3 = vstv %s4089_s25  ;;  %v946_v4 = vmul.f32 %v945_v1, %v5225_v0  ;;  %s5246_s18 = sld [smem:[#allocation8 + $0x4a]] }
  0xf9   : > { %v938_v6 = vmul.f32 %v937_v2, %v5225_v0  ;;  %v925_v7 = vmul.f32 %v924_v3, %v5215_v51  ;;  %s5248_s25 = sld [smem:[#allocation8 + $0x49]] }
  0xfd   : > { %v549_v47 = vstv %s4036_s14  ;;  %s4112_s14 = sld [smem:[#allocation8 + $0x52]] }
  0xff   : > { %756 = vrot.lane.b32.xlu1 %v754_v9, %s4860_s23  ;;  %v980_v9 = vstv %s4097_s4  ;;  %s4106_s4 = sld [smem:[#allocation8 + $0x4c]] }
 0x100   : > { %748 = vrot.lane.b32.xlu0 %v746_v10, %s4859_s22  ;;  %735 = vrot.lane.b32.xlu2 %v733_v11, %s4860_s23  ;;  %v5235_v10 = vld [vmem:[#allocation2 + $0x70] sm:$0xff]  ;;  %v967_v11 = vstv %s4095_s21  ;;  %s4039_s21 = sld [smem:[#allocation8 + $0x9]] }
 0x105   : > { %v1057_v1 = vstv %s4106_s4  ;;  %s5293_s4 = sld [smem:[#allocation8 + $0x15]] }
 0x106   : > { %v571_v2 = vstv %s4039_s21  ;;  %s5295_s21 = sld [smem:[#allocation8 + $0x58]] }
 0x107   : > { %791 = vrot.lane.b32.xlu1 %v789_v19, %s4859_s22  ;;  %v981_v19 = vmul.f32 %v980_v9, %v5233_v8  ;;  %v572_v9 = vmul.f32 %v571_v2, %v5123_v30 }
 0x108   : > { %778 = vrot.lane.b32.xlu0 %v776_v20, %s4860_s23  ;;  %770 = vrot.lane.b32.xlu2 %v768_v22, %s4859_s22  ;;  %v968_v20 = vmul.f32 %v967_v11, %v5235_v10  ;;  %v960_v22 = vmul.f32 %v959_v13, %v5235_v10 }
 0x10f   : > { %820 = vrot.lane.b32.xlu1 %v818_v29, %s4860_s23 }
 0x110   : > { %812 = vrot.lane.b32.xlu0 %v810_v31, %s4859_s22  ;;  %799 = vrot.lane.b32.xlu2 %v797_v32, %s4860_s23  ;;  %v529_v31 = vmul.f32 %v528_v25, %v5101_v14  ;;  %v1086_v25 = vstv %s4110_s29  ;;  %s5312_s29 = sld [smem:[#allocation8 + $0x5c]] }
 0x117   : > { %855 = vrot.lane.b32.xlu1 %v853_v39, %s4859_s22  ;;  %v1001_v39 = vstv %s4100_s26  ;;  %s4045_s26 = sld [smem:[#allocation8 + $0xf]] }
 0x118   : > { %842 = vrot.lane.b32.xlu0 %v840_v40, %s4860_s23  ;;  %834 = vrot.lane.b32.xlu2 %v832_v41, %s4859_s22  ;;  %v988_v40 = vstv %s4098_s20  ;;  %v1002_v45 = vmul.f32 %v1001_v39, %v5253_v36  ;;  %s5278_s20 = sld [smem:[#allocation8 + $0x53]] }
 0x11d   : > { %v613_v38 = vstv %s4045_s26  ;;  %s4121_s26 = sld [smem:[#allocation8 + $0x5b]] }
 0x11f   : > { %884 = vrot.lane.b32.xlu1 %v882_v48, %s4860_s23 }
 0x120   : > { %876 = vrot.lane.b32.xlu0 %v874_v49, %s4859_s22  ;;  %863 = vrot.lane.b32.xlu2 %v861_v50, %s4860_s23  ;;  %v989_v49 = vmul.f32 %v988_v40, %v5233_v8  ;;  %v550_v50 = vmul.f32 %v549_v47, %v5113_v21  ;;  %v1099_v47 = vstv %s4112_s14  ;;  %s5325_s14 = sld [smem:[#allocation8 + $0x1b]] }
 0x122   : > { %v515_v57 = vpop.permute.xlu2 %514 }
 0x123   : > { %v517_v26 = vadd.f32 %v515_v57, %v508_v24  ;;  %v1065_v24 = vstv %s4107_s24  ;;  %s5310_s24 = sld [smem:[#allocation8 + $0x18]] }
 0x127   : > { %919 = vrot.lane.b32.xlu1 %v917_v58, %s4859_s22 }
 0x128   : > { %906 = vrot.lane.b32.xlu0 %v904_v59, %s4860_s23  ;;  %898 = vrot.lane.b32.xlu2 %v896_v61, %s4859_s22  ;;  %v1044_v59 = vstv %s5246_s18  ;;  %v1036_v61 = vstv %s5248_s25  ;;  %s4115_s18 = sld [smem:[#allocation8 + $0x55]] }
 0x129   : > { %s5287_s25 = sld [smem:[#allocation8 + $0x12]] }
 0x12a   : > { %v544_v63 = vpop.permute.xlu2 %543 }
 0x12f   : > { %948 = vrot.lane.b32.xlu1 %v946_v4, %s4860_s23  ;;  %v1045_v4 = vmul.f32 %v1044_v59, %v5103_v15 }
 0x130   : > { %940 = vrot.lane.b32.xlu0 %v938_v6, %s4859_s22  ;;  %927 = vrot.lane.b32.xlu2 %v925_v7, %s4860_s23  ;;  %v1058_v7 = vmul.f32 %v1057_v1, %v5101_v14 }
 0x132   : > { %v5237_v17 = vpop.permute.xlu2 %578 }
 0x137   : > { %983 = vrot.lane.b32.xlu1 %v981_v19, %s4859_s22 }
 0x138   : > { %970 = vrot.lane.b32.xlu0 %v968_v20, %s4860_s23  ;;  %962 = vrot.lane.b32.xlu2 %v960_v22, %s4859_s22  ;;  %v1078_v22 = vstv %s5264_s17  ;;  %s4119_s17 = sld [smem:[#allocation8 + $0x59]] }
 0x139   : > { %v536_v27 = vpop.permute.xlu1 %535 }
 0x13a   : > { %v523_v29 = vpop.permute.xlu0 %522  ;;  %v5251_v34 = vpop.permute.xlu2 %607 }
 0x13b   : > { %v525_v32 = vadd.f32 %v523_v29, %v517_v26  ;;  %v593_v26 = vmul.f32 %v592_v18, %v5121_v28  ;;  %v1079_v29 = vmul.f32 %v1078_v22, %v5113_v21  ;;  %v677_v22 = vstv %s5310_s24  ;;  %s4130_s24 = sld [smem:[#allocation8 + $0x64]] }
 0x13d   : > { %v530_v41 = vadd.f32 %v529_v31, %v525_v32  ;;  %v1066_v31 = vmul.f32 %v1065_v24, %v5101_v14  ;;  %v614_v14 = vmul.f32 %v613_v38, %v5132_v37 }
 0x13f   : > { %v538_v48 = vadd.f32 %v536_v27, %v530_v41  ;;  %1012 = vrot.lane.b32.xlu1 %v1010_v43, %s4860_s23 }
 0x140   : > { %1004 = vrot.lane.b32.xlu0 %v1002_v45, %s4859_s22  ;;  %991 = vrot.lane.b32.xlu2 %v989_v49, %s4860_s23  ;;  %v1107_v45 = vstv %s5278_s20  ;;  %s4124_s20 = sld [smem:[#allocation8 + $0x5e]] }
 0x141   : > { %v546_v52 = vadd.f32 %v544_v63, %v538_v48  ;;  %v565_v55 = vpop.permute.xlu1 %564  ;;  %v1037_v63 = vmul.f32 %v1036_v61, %v5103_v15  ;;  %v1120_v48 = vstv %s4115_s18  ;;  %s5329_s18 = sld [smem:[#allocation8 + $0x61]] }
 0x142   : > { %v557_v56 = vpop.permute.xlu0 %556  ;;  %v5266_v58 = vpop.permute.xlu2 %642 }
 0x143   : > { %v551_v57 = vadd.f32 %v550_v50, %v546_v52  ;;  %v1108_v50 = vmul.f32 %v1107_v45, %v5123_v30  ;;  %v1100_v52 = vmul.f32 %v1099_v47, %v5123_v30 }
 0x145   : > { %v559_v3 = vadd.f32 %v557_v56, %v551_v57  ;;  %v1121_v57 = vmul.f32 %v1120_v48, %v5121_v28 }
 0x147   : > { %v567_v6 = vadd.f32 %v565_v55, %v559_v3  ;;  %1047 = vrot.lane.b32.xlu1 %v1045_v4, %s4860_s23  ;;  %v635_v55 = vstv %s5287_s25  ;;  %v1141_v3 = vstv %s5295_s21  ;;  %v1128_v4 = vstv %s4116_s2  ;;  %s4125_s25 = sld [smem:[#allocation8 + $0x5f]] }
 0x148   : > { %1039 = vrot.lane.b32.xlu0 %v1037_v63, %s4859_s22  ;;  %1060 = vrot.lane.b32.xlu2 %v1058_v7, %s4859_s22  ;;  %v636_v59 = vmul.f32 %v635_v55, %v5142_v46  ;;  %v656_v63 = vstv %s5293_s4  ;;  %s4128_s4 = sld [smem:[#allocation8 + $0x62]]  ;;  %v1204_v47 = vstv %s5329_s18 }
 0x149   : > { %v573_v11 = vadd.f32 %v572_v9, %v567_v6  ;;  %v600_v13 = vpop.permute.xlu1 %599  ;;  %v1149_v6 = vstv %s4119_s17  ;;  %v1142_v9 = vmul.f32 %v1141_v3, %v5132_v37  ;;  %s4060_s21 = sld [smem:[#allocation8 + $0x1e]]  ;;  %v1205_v55 = vmul.f32 %v1204_v47, %v5151_v53 }
 0x14a   : > { %v587_v19 = vpop.permute.xlu0 %586  ;;  %v5281_v20 = vpop.permute.xlu2 %671  ;;  %s5343_s2 = sld [smem:[#allocation8 + $0x21]] }
 0x14b   : > { %v581_v15 = vadd.f32 %v5237_v17, %v573_v11  ;;  %v1087_v17 = vmul.f32 %v1086_v25, %v5113_v21  ;;  %v1129_v11 = vmul.f32 %v1128_v4, %v5121_v28  ;;  %s5345_s17 = sld [smem:[#allocation8 + $0x65]] }
 0x14c   : > { %s4137_s18 = sld [smem:[#allocation8 + $0x6b]] }
 0x14d   : > { %v589_v27 = vadd.f32 %v587_v19, %v581_v15  ;;  %v1150_v19 = vmul.f32 %v1149_v6, %v5132_v37  ;;  %v1162_v37 = vstv %s4121_s26  ;;  %v1191_v48 = vstv %s4125_s25  ;;  %s5359_s26 = sld [smem:[#allocation8 + $0x24]] }
 0x14e   : > { %s4069_s25 = sld [smem:[#allocation8 + $0x27]] }
 0x14f   : > { %v594_v32 = vadd.f32 %v593_v26, %v589_v27  ;;  %1081 = vrot.lane.b32.xlu1 %v1079_v29, %s4859_s22  ;;  %v1170_v26 = vstv %s5312_s29  ;;  %v1183_v27 = vstv %s4124_s20  ;;  %v678_v29 = vmul.f32 %v677_v22, %v5151_v53  ;;  %s4133_s29 = sld [smem:[#allocation8 + $0x67]] }
 0x150   : > { %1068 = vrot.lane.b32.xlu0 %v1066_v31, %s4860_s23  ;;  %1089 = vrot.lane.b32.xlu2 %v1087_v17, %s4860_s23  ;;  %v1163_v17 = vmul.f32 %v1162_v37, %v5142_v46  ;;  %s5361_s20 = sld [smem:[#allocation8 + $0x6a]]  ;;  %v741_v4 = vstv %s5343_s2 }
 0x151   : > { %v602_v39 = vadd.f32 %v600_v13, %v594_v32  ;;  %v629_v40 = vpop.permute.xlu1 %628  ;;  %v657_v13 = vmul.f32 %v656_v63, %v5140_v44  ;;  %v1171_v32 = vmul.f32 %v1170_v26, %v5142_v46  ;;  %v1233_v3 = vstv %s5345_s17  ;;  %s4142_s2 = sld [smem:[#allocation8 + $0x70]] }
 0x152   : > { %v621_v41 = vpop.permute.xlu0 %620  ;;  %v5299_v21 = vpop.permute.xlu2 %706  ;;  %v1275_v26 = vstv %s4137_s18  ;;  %s4072_s17 = sld [smem:[#allocation8 + $0x2a]] }
 0x153   : > { %v610_v43 = vadd.f32 %v5251_v34, %v602_v39  ;;  %v1184_v39 = vmul.f32 %v1183_v27, %v5140_v44  ;;  %s5407_s18 = sld [smem:[#allocation8 + $0x77]] }
 0x155   : > { %v615_v49 = vadd.f32 %v614_v14, %v610_v43  ;;  %v1246_v63 = vstv %s4133_s29  ;;  %s5391_s29 = sld [smem:[#allocation8 + $0x73]] }
 0x157   : > { %v623_v56 = vadd.f32 %v621_v41, %v615_v49  ;;  %1110 = vrot.lane.b32.xlu1 %v1108_v50, %s4860_s23  ;;  %v1212_v49 = vstv %s4128_s4  ;;  %s5376_s4 = sld [smem:[#allocation8 + $0x6e]] }
 0x158   : > { %1102 = vrot.lane.b32.xlu0 %v1100_v52, %s4859_s22  ;;  %1123 = vrot.lane.b32.xlu2 %v1121_v57, %s4859_s22  ;;  %v720_v52 = vstv %s4060_s21  ;;  %s4139_s21 = sld [smem:[#allocation8 + $0x6d]] }
 0x159   : > { %v631_v34 = vadd.f32 %v629_v40, %v623_v56  ;;  %v664_v61 = vpop.permute.xlu1 %663  ;;  %v699_v40 = vstv %s5325_s14  ;;  %v1192_v56 = vmul.f32 %v1191_v48, %v5140_v44  ;;  %s4134_s14 = sld [smem:[#allocation8 + $0x68]] }
 0x15a   : > { %v651_v1 = vpop.permute.xlu0 %650  ;;  %v5314_v2 = vpop.permute.xlu2 %735  ;;  %v700_v43 = vmul.f32 %v699_v40, %v5161_v62 }
 0x15b   : > { %v637_v30 = vadd.f32 %v636_v59, %v631_v34  ;;  %v1213_v34 = vmul.f32 %v1212_v49, %v5151_v53  ;;  %v721_v59 = vmul.f32 %v720_v52, %v5159_v60  ;;  %v1225_v53 = vstv %s4130_s24  ;;  %s5389_s24 = sld [smem:[#allocation8 + $0x2d]] }
 0x15d   : > { %v645_v7 = vadd.f32 %v5266_v58, %v637_v30 }
 0x15f   : > { %v653_v18 = vadd.f32 %v651_v1, %v645_v7  ;;  %1144 = vrot.lane.b32.xlu1 %v1142_v9, %s4859_s22  ;;  %v1234_v7 = vmul.f32 %v1233_v3, %v5161_v62  ;;  %v1226_v9 = vmul.f32 %v1225_v53, %v5161_v62 }
 0x160   : > { %1131 = vrot.lane.b32.xlu0 %v1129_v11, %s4860_s23  ;;  %1152 = vrot.lane.b32.xlu2 %v1150_v19, %s4860_s23  ;;  %v742_v11 = vmul.f32 %v741_v4, %v5170_v5 }
 0x161   : > { %v658_v15 = vadd.f32 %v657_v13, %v653_v18  ;;  %v693_v58 = vpop.permute.xlu1 %692  ;;  %v1247_v18 = vmul.f32 %v1246_v63, %v5159_v60 }
 0x162   : > { %v685_v24 = vpop.permute.xlu0 %684  ;;  %v5331_v25 = vpop.permute.xlu2 %770 }
 0x163   : > { %v666_v28 = vadd.f32 %v664_v61, %v658_v15 }
 0x165   : > { %v674_v31 = vadd.f32 %v5281_v20, %v666_v28  ;;  %v1267_v28 = vstv %s5361_s20  ;;  %s4146_s20 = sld [smem:[#allocation8 + $0x74]] }
 0x167   : > { %v679_v38 = vadd.f32 %v678_v29, %v674_v31  ;;  %1173 = vrot.lane.b32.xlu1 %v1171_v32, %s4860_s23  ;;  %v1268_v29 = vmul.f32 %v1267_v28, %v5170_v5 }
 0x168   : > { %1165 = vrot.lane.b32.xlu0 %v1163_v17, %s4859_s22  ;;  %1186 = vrot.lane.b32.xlu2 %v1184_v39, %s4859_s22  ;;  %v1276_v17 = vmul.f32 %v1275_v26, %v5170_v5  ;;  %v1296_v5 = vstv %s5376_s4  ;;  %s4151_s4 = sld [smem:[#allocation8 + $0x79]] }
 0x169   : > { %v687_v41 = vadd.f32 %v685_v24, %v679_v38  ;;  %v728_v20 = vpop.permute.xlu1 %727  ;;  %v784_v38 = vstv %s4069_s25  ;;  %v1297_v48 = vmul.f32 %v1296_v5, %v5180_v16  ;;  %s4148_s25 = sld [smem:[#allocation8 + $0x76]] }
 0x16a   : > { %v715_v14 = vpop.permute.xlu0 %714  ;;  %v5348_v45 = vpop.permute.xlu2 %799 }
 0x16b   : > { %v695_v46 = vadd.f32 %v693_v58, %v687_v41  ;;  %v763_v58 = vstv %s5359_s26  ;;  %s4143_s26 = sld [smem:[#allocation8 + $0x71]] }
 0x16c   : > { %v764_v27 = vmul.f32 %v763_v58, %v5180_v16 }
 0x16d   : > { %v701_v50 = vadd.f32 %v700_v43, %v695_v46  ;;  %v1288_v46 = vstv %s4139_s21  ;;  %v1309_v43 = vstv %s4142_s2  ;;  %s4081_s21 = sld [smem:[#allocation8 + $0x33]] }
 0x16e   : > { %v1289_v49 = vmul.f32 %v1288_v46, %v5180_v16  ;;  %v1310_v52 = vmul.f32 %v1309_v43, %v5178_v12  ;;  %s5421_s2 = sld [smem:[#allocation8 + $0x7c]] }
 0x16f   : > { %v709_v57 = vadd.f32 %v5299_v21, %v701_v50  ;;  %1207 = vrot.lane.b32.xlu1 %v1205_v55, %s4859_s22 }
 0x170   : > { %1194 = vrot.lane.b32.xlu0 %v1192_v56, %s4860_s23  ;;  %1215 = vrot.lane.b32.xlu2 %v1213_v34, %s4860_s23 }
 0x171   : > { %v717_v61 = vadd.f32 %v715_v14, %v709_v57  ;;  %v757_v1 = vpop.permute.xlu1 %756 }
 0x172   : > { %v749_v30 = vpop.permute.xlu0 %748  ;;  %v5363_v21 = vpop.permute.xlu2 %834 }
 0x173   : > { %v722_v44 = vadd.f32 %v721_v59, %v717_v61  ;;  %v1330_v61 = vstv %s5391_s29  ;;  %s4084_s29 = sld [smem:[#allocation8 + $0x36]] }
 0x175   : > { %v730_v6 = vadd.f32 %v728_v20, %v722_v44  ;;  %v1338_v44 = vstv %s4146_s20  ;;  %s5436_s20 = sld [smem:[#allocation8 + $0x80]] }
 0x177   : > { %v738_v13 = vadd.f32 %v5314_v2, %v730_v6  ;;  %1236 = vrot.lane.b32.xlu1 %v1234_v7, %s4860_s23  ;;  %v1254_v2 = vstv %s4134_s14  ;;  %s5405_s14 = sld [smem:[#allocation8 + $0x30]]  ;;  %v1339_v6 = vmul.f32 %v1338_v44, %v5188_v23 }
 0x178   : > { %1228 = vrot.lane.b32.xlu0 %v1226_v9, %s4859_s22  ;;  %1249 = vrot.lane.b32.xlu2 %v1247_v18, %s4859_s22  ;;  %v1255_v31 = vmul.f32 %v1254_v2, %v5159_v60  ;;  %v785_v60 = vmul.f32 %v784_v38, %v5178_v12 }
 0x179   : > { %v743_v19 = vadd.f32 %v742_v11, %v738_v13  ;;  %v792_v15 = vpop.permute.xlu1 %791 }
 0x17a   : > { %v779_v22 = vpop.permute.xlu0 %778  ;;  %v5378_v24 = vpop.permute.xlu2 %863 }
 0x17b   : > { %v751_v62 = vadd.f32 %v749_v30, %v743_v19  ;;  %v827_v30 = vstv %s5389_s24  ;;  %v1359_v19 = vstv %s5407_s18  ;;  %s4155_s24 = sld [smem:[#allocation8 + $0x7d]] }
 0x17c   : > { %v828_v63 = vmul.f32 %v827_v30, %v5199_v35  ;;  %s4160_s18 = sld [smem:[#allocation8 + $0x82]] }
 0x17d   : > { %v759_v37 = vadd.f32 %v757_v1, %v751_v62  ;;  %v1317_v1 = vstv %s4143_s26  ;;  %v848_v9 = vstv %s5405_s14  ;;  %v1360_v62 = vmul.f32 %v1359_v19, %v5199_v35  ;;  %s5434_s26 = sld [smem:[#allocation8 + $0x39]] }
 0x17e   : > { %v1318_v53 = vmul.f32 %v1317_v1, %v5178_v12  ;;  %v849_v58 = vmul.f32 %v848_v9, %v5197_v33  ;;  %s4157_s14 = sld [smem:[#allocation8 + $0x7f]] }
 0x17f   : > { %v765_v32 = vadd.f32 %v764_v27, %v759_v37  ;;  %1270 = vrot.lane.b32.xlu1 %v1268_v29, %s4859_s22 }
 0x180   : > { %1257 = vrot.lane.b32.xlu0 %v1255_v31, %s4860_s23  ;;  %1278 = vrot.lane.b32.xlu2 %v1276_v17, %s4860_s23  ;;  %v1393_v17 = vstv %s5421_s2  ;;  %s5460_s2 = sld [smem:[#allocation8 + $0x91]] }
 0x181   : > { %v773_v39 = vadd.f32 %v5331_v25, %v765_v32  ;;  %v821_v40 = vpop.permute.xlu1 %820  ;;  %v805_v25 = vstv %s4072_s17  ;;  %s4152_s17 = sld [smem:[#allocation8 + $0x7a]] }
 0x182   : > { %v813_v41 = vpop.permute.xlu0 %812  ;;  %v5394_v14 = vpop.permute.xlu2 %898  ;;  %v806_v55 = vmul.f32 %v805_v25, %v5188_v23 }
 0x183   : > { %v781_v20 = vadd.f32 %v779_v22, %v773_v39  ;;  %v1401_v39 = vstv %s4155_s24  ;;  %s5475_s24 = sld [smem:[#allocation8 + $0x94]] }
 0x184   : > { %v1402_v46 = vmul.f32 %v1401_v39, %v5207_v42 }
 0x185   : > { %v786_v47 = vadd.f32 %v785_v60, %v781_v20  ;;  %v1394_v60 = vmul.f32 %v1393_v17, %v5207_v42 }
 0x187   : > { %v794_v50 = vadd.f32 %v792_v15, %v786_v47  ;;  %1299 = vrot.lane.b32.xlu1 %v1297_v48, %s4860_s23  ;;  %v1351_v15 = vstv %s4148_s25  ;;  %v1380_v38 = vstv %s4152_s17  ;;  %s5450_s25 = sld [smem:[#allocation8 + $0x3c]] }
 0x188   : > { %1291 = vrot.lane.b32.xlu0 %v1289_v49, %s4859_s22  ;;  %1312 = vrot.lane.b32.xlu2 %v1310_v52, %s4859_s22  ;;  %v1352_v28 = vmul.f32 %v1351_v15, %v5199_v35  ;;  %v1381_v20 = vmul.f32 %v1380_v38, %v5197_v33  ;;  %v1422_v49 = vstv %s5436_s20  ;;  %v1435_v52 = vstv %s4160_s18  ;;  %s5469_s17 = sld [smem:[#allocation8 + $0x3f]]  ;;  %v4617_v38 = vld [vmem:[#allocation2] sm:$0xff] }
 0x189   : > { %v802_v56 = vadd.f32 %v5348_v45, %v794_v50  ;;  %v856_v57 = vpop.permute.xlu1 %855  ;;  %v1331_v45 = vmul.f32 %v1330_v61, %v5188_v23  ;;  %v1372_v23 = vstv %s4151_s4  ;;  %s5452_s4 = sld [smem:[#allocation8 + $0x85]]  ;;  %v912_v50 = vstv %s5434_s26 }
 0x18a   : > { %v843_v34 = vpop.permute.xlu0 %842  ;;  %v5409_v59 = vpop.permute.xlu2 %927  ;;  %v1373_v26 = vmul.f32 %v1372_v23, %v5197_v33  ;;  %v1436_v61 = vmul.f32 %v1435_v52, %v5215_v51  ;;  %s5486_s26 = sld [smem:[#allocation8 + $0x95]] }
 0x18b   : > { %v807_v16 = vadd.f32 %v806_v55, %v802_v56  ;;  %v1423_v56 = vmul.f32 %v1422_v49, %v5217_v54  ;;  %s5490_s20 = sld [smem:[#allocation8 + $0x42]] }
 0x18c   : > { %s5500_s18 = sld [smem:[#allocation8 + $0x45]] }
 0x18d   : > { %v815_v3 = vadd.f32 %v813_v41, %v807_v16  ;;  %v891_v41 = vstv %s4084_s29  ;;  %s5481_s29 = sld [smem:[#allocation8 + $0x92]] }
 0x18e   : > { %v892_v43 = vmul.f32 %v891_v41, %v5217_v54  ;;  %v955_v19 = vstv %s5469_s17  ;;  %s5531_s17 = sld [smem:[#allocation8 + $0x4e]] }
 0x18f   : > { %v823_v4 = vadd.f32 %v821_v40, %v815_v3  ;;  %1333 = vrot.lane.b32.xlu1 %v1331_v45, %s4859_s22  ;;  %v1456_v45 = vstv %s5452_s4  ;;  %s5509_s4 = sld [smem:[#allocation8 + $0x4b]]  ;;  %v956_v23 = vmul.f32 %v955_v19, %v5235_v10  ;;  %v4620_v19 = vld [vmem:[#allocation2 + $0x10] sm:$0xff] }
 0x190   : > { %1320 = vrot.lane.b32.xlu0 %v1318_v53, %s4860_s23  ;;  %1341 = vrot.lane.b32.xlu2 %v1339_v6, %s4860_s23  ;;  %v1457_v9 = vmul.f32 %v1456_v45, %v5225_v0 }
 0x191   : > { %v829_v7 = vadd.f32 %v828_v63, %v823_v4  ;;  %v885_v11 = vpop.permute.xlu1 %884  ;;  %v5483_v4 = vld [vmem:[#allocation2] sm:$0xff]  ;;  %v1555_v63 = vstv %s5460_s2  ;;  %s5521_s2 = sld [smem:[#allocation8 + $0x9a]] }
 0x192   : > { %v877_v13 = vpop.permute.xlu0 %876  ;;  %v5424_v18 = vpop.permute.xlu2 %962 }
 0x193   : > { %v837_v12 = vadd.f32 %v5363_v21, %v829_v7  ;;  %v869_v21 = vstv %s4081_s21  ;;  %s5457_s21 = sld [smem:[#allocation8 + $0x83]] }
 0x194   : > { %v870_v35 = vmul.f32 %v869_v21, %v5207_v42  ;;  %v1414_v42 = vstv %s4157_s14  ;;  %s5494_s14 = sld [smem:[#allocation8 + $0x48]]  ;;  %v976_v21 = vstv %s5490_s20 }
 0x195   : > { %v845_v22 = vadd.f32 %v843_v34, %v837_v12  ;;  %v913_v34 = vmul.f32 %v912_v50, %v5215_v51  ;;  %v1556_v12 = vmul.f32 %v1555_v63, %v5483_v4  ;;  %v1053_v41 = vstv %s5509_s4  ;;  %s5555_s20 = sld [smem:[#allocation8 + $0x51]] }
 0x196   : > { %s5578_s4 = sld [smem:[#allocation8 + $0x54]] }
 0x197   : > { %v850_v2 = vadd.f32 %v849_v58, %v845_v22  ;;  %1362 = vrot.lane.b32.xlu1 %v1360_v62, %s4860_s23  ;;  %v5514_v22 = vld [vmem:[#allocation2 + $0x1] sm:$0xff]  ;;  %v1576_v62 = vstv %s5475_s24  ;;  %s5536_s24 = sld [smem:[#allocation8 + $0x9b]] }
 0x198   : > { %1354 = vrot.lane.b32.xlu0 %v1352_v28, %s4859_s22  ;;  %1375 = vrot.lane.b32.xlu2 %v1373_v26, %s4859_s22  ;;  %v1563_v28 = vstv %s5481_s29  ;;  %s5544_s29 = sld [smem:[#allocation8 + $0xd9]] }
 0x199   : > { %v858_v37 = vadd.f32 %v856_v57, %v850_v2  ;;  %v920_v27 = vpop.permute.xlu1 %919  ;;  %v1415_v57 = vmul.f32 %v1414_v42, %v5217_v54  ;;  %v1443_v53 = vstv %s5457_s21  ;;  %s5518_s21 = sld [smem:[#allocation8 + $0x97]]  ;;  %v1584_v2 = vstv %s5486_s26  ;;  %v4618_v42 = vld [vmem:[#allocation2 + $0x1] sm:$0xff] }
 0x19a   : > { %v907_v29 = vpop.permute.xlu0 %906  ;;  %v5440_v32 = vpop.permute.xlu2 %991  ;;  %s5550_s26 = sld [smem:[#allocation8 + $0xda]]  ;;  %v1054_v50 = vmul.f32 %v4618_v42, %v1053_v41 }
 0x19b   : > { %v866_v31 = vadd.f32 %v5378_v24, %v858_v37  ;;  %v1577_v37 = vmul.f32 %v1576_v62, %v5514_v22 }
 0x19d   : > { %v871_v40 = vadd.f32 %v870_v35, %v866_v31  ;;  %v1585_v35 = vmul.f32 %v1584_v2, %v5514_v22  ;;  %v977_v31 = vmul.f32 %v976_v21, %v5233_v8  ;;  %v5595_v21 = vld [vmem:[#allocation2 + $0x11] sm:$0xff] }
 0x19e   : > { %v2074_v63 = vstv %s5544_s29  ;;  %s5609_s29 = sld [smem:[#allocation8 + $0x5a]] }
 0x19f   : > { %v879_v5 = vadd.f32 %v877_v13, %v871_v40  ;;  %1396 = vrot.lane.b32.xlu1 %v1394_v60, %s4859_s22  ;;  %v1597_v8 = vstv %s5518_s21  ;;  %s5588_s21 = sld [smem:[#allocation8 + $0x57]] }
 0x1a0   : > { %1383 = vrot.lane.b32.xlu0 %v1381_v20, %s4860_s23  ;;  %1404 = vrot.lane.b32.xlu2 %v1402_v46, %s4860_s23  ;;  %v5540_v46 = vld [vmem:[#allocation2 + $0x2] sm:$0xff] }
 0x1a1   : > { %v887_v24 = vadd.f32 %v885_v11, %v879_v5  ;;  %v949_v47 = vpop.permute.xlu1 %948  ;;  %v1444_v11 = vmul.f32 %v1443_v53, %v5215_v51  ;;  %v1626_v53 = vstv %s5536_s24  ;;  %s5602_s24 = sld [smem:[#allocation8 + $0xdf]] }
 0x1a2   : > { %v941_v25 = vpop.permute.xlu0 %940  ;;  %v5454_v48 = vpop.permute.xlu2 %1060 }
 0x1a3   : > { %v893_v33 = vadd.f32 %v892_v43, %v887_v24  ;;  %v997_v43 = vstv %s5500_s18  ;;  %s5569_s18 = sld [smem:[#allocation8 + $0x9d]] }
 0x1a5   : > { %v901_v55 = vadd.f32 %v5394_v14, %v893_v33  ;;  %v933_v14 = vstv %s5450_s25  ;;  %s5503_s25 = sld [smem:[#allocation8 + $0x98]]  ;;  %v1137_v41 = vstv %s5588_s21 }
 0x1a6   : > { %v934_v6 = vmul.f32 %v933_v14, %v5225_v0  ;;  %s4260_s21 = sld [smem:[#allocation8 + $0xe2]] }
 0x1a7   : > { %v909_v16 = vadd.f32 %v907_v29, %v901_v55  ;;  %1425 = vrot.lane.b32.xlu1 %v1423_v56, %s4860_s23  ;;  %v1032_v29 = vstv %s5494_s14  ;;  %v1598_v55 = vmul.f32 %v1597_v8, %v5540_v46  ;;  %v998_v56 = vmul.f32 %v997_v43, %v5253_v36  ;;  %s5567_s14 = sld [smem:[#allocation8 + $0xdc]]  ;;  %v5618_v8 = vld [vmem:[#allocation2 + $0x12] sm:$0xff] }
 0x1a8   : > { %1417 = vrot.lane.b32.xlu0 %v1415_v57, %s4859_s22  ;;  %1438 = vrot.lane.b32.xlu2 %v1436_v61, %s4859_s22  ;;  %v1033_v39 = vmul.f32 %v4617_v38, %v1032_v29  ;;  %v1074_v61 = vstv %s5531_s17  ;;  %s5598_s17 = sld [smem:[#allocation8 + $0xdd]]  ;;  %v1116_v29 = vstv %s5578_s4  ;;  %v4621_v38 = vld [vmem:[#allocation2 + $0x11] sm:$0xff] }
 0x1a9   : > { %v914_v1 = vadd.f32 %v913_v34, %v909_v16  ;;  %v5473_v30 = vpop.permute.xlu1 %983  ;;  %s5638_s4 = sld [smem:[#allocation8 + $0xa4]] }
 0x1aa   : > { %v971_v54 = vpop.permute.xlu0 %970  ;;  %v5477_v3 = vpop.permute.xlu2 %1089 }
 0x1ab   : > { %v922_v44 = vadd.f32 %v920_v27, %v914_v1  ;;  %v1564_v27 = vmul.f32 %v1563_v28, %v5483_v4  ;;  %v1605_v24 = vstv %s5503_s25  ;;  %s5575_s25 = sld [smem:[#allocation8 + $0x9e]] }
 0x1ac   : > { %v1606_v52 = vmul.f32 %v1605_v24, %v5540_v46 }
 0x1ad   : > { %v930_v7 = vadd.f32 %v5409_v59, %v922_v44 }
 0x1af   : > { %v935_v13 = vadd.f32 %v934_v6, %v930_v7  ;;  %1459 = vrot.lane.b32.xlu1 %v1457_v9, %s4859_s22  ;;  %v2082_v6 = vstv %s5550_s26  ;;  %v2075_v9 = vmul.f32 %v2074_v63, %v5483_v4  ;;  %s5613_s26 = sld [smem:[#allocation8 + $0xe0]] }
 0x1b0   : > { %1446 = vrot.lane.b32.xlu0 %v1444_v11, %s4860_s23  ;;  %1558 = vrot.lane.b32.xlu2 %v1556_v12, %s4859_s22  ;;  %v1095_v11 = vstv %s5555_s20  ;;  %v2083_v12 = vmul.f32 %v2082_v6, %v5483_v4  ;;  %s5622_s20 = sld [smem:[#allocation8 + $0xa1]] }
 0x1b1   : > { %v943_v59 = vadd.f32 %v941_v25, %v935_v13  ;;  %v5505_v51 = vpop.permute.xlu1 %1012  ;;  %v1618_v25 = vstv %s5521_s2  ;;  %s5590_s2 = sld [smem:[#allocation8 + $0xa0]] }
 0x1b2   : > { %v5507_v0 = vpop.permute.xlu0 %1004  ;;  %v5512_v58 = vpop.permute.xlu2 %1123 }
 0x1b3   : > { %v951_v15 = vadd.f32 %v949_v47, %v943_v59  ;;  %v5547_v47 = vld [vmem:[#allocation2 + $0x10] sm:$0xff]  ;;  %v1096_v59 = vmul.f32 %v4620_v19, %v1095_v11 }
 0x1b4   : > { %v1619_v34 = vmul.f32 %v1618_v25, %v5547_v47  ;;  %v1627_v7 = vmul.f32 %v1626_v53, %v5547_v47  ;;  %v2103_v25 = vstv %s5598_s17  ;;  %v5645_v53 = vld [vmem:[#allocation2 + $0x20] sm:$0xff]  ;;  %s5657_s17 = sld [smem:[#allocation8 + $0x63]] }
 0x1b5   : > { %v957_v26 = vadd.f32 %v956_v23, %v951_v15 }
 0x1b7   : > { %v965_v10 = vadd.f32 %v5424_v18, %v957_v26  ;;  %1579 = vrot.lane.b32.xlu1 %v1577_v37, %s4859_s22  ;;  %v2095_v26 = vstv %s5567_s14  ;;  %v1639_v37 = vstv %s5569_s18  ;;  %v1660_v43 = vstv %s5590_s2  ;;  %s5625_s14 = sld [smem:[#allocation8 + $0xa3]] }
 0x1b8   : > { %1566 = vrot.lane.b32.xlu0 %v1564_v27, %s4860_s23  ;;  %1587 = vrot.lane.b32.xlu2 %v1585_v35, %s4860_s23  ;;  %v1647_v27 = vstv %s5575_s25  ;;  %v1640_v35 = vmul.f32 %v1639_v37, %v5595_v21  ;;  %s5629_s18 = sld [smem:[#allocation8 + $0x5d]] }
 0x1b9   : > { %v973_v17 = vadd.f32 %v971_v54, %v965_v10  ;;  %v1048_v18 = vpop.permute.xlu1 %1047  ;;  %v2096_v10 = vmul.f32 %v2095_v26, %v5514_v22  ;;  %s5636_s25 = sld [smem:[#allocation8 + $0x60]]  ;;  %v2137_v26 = vstv %s4260_s21 }
 0x1ba   : > { %v1040_v40 = vpop.permute.xlu0 %1039  ;;  %v5538_v5 = vpop.permute.xlu2 %1152  ;;  %s5648_s2 = sld [smem:[#allocation8 + $0xe3]] }
 0x1bb   : > { %v978_v60 = vadd.f32 %v977_v31, %v973_v17  ;;  %v1042_v20 = vadd.f32 %v1040_v40, %v1033_v39  ;;  %v1648_v17 = vmul.f32 %v1647_v27, %v5595_v21  ;;  %v1117_v39 = vmul.f32 %v4621_v38, %v1116_v29  ;;  %s5703_s21 = sld [smem:[#allocation8 + $0x6c]] }
 0x1bd   : > { %v986_v33 = vadd.f32 %v5473_v30, %v978_v60  ;;  %v1050_v49 = vadd.f32 %v1048_v18, %v1042_v20  ;;  %v4619_v30 = vld [vmem:[#allocation2 + $0x2] sm:$0xff]  ;;  %v1681_v63 = vstv %s5625_s14  ;;  %s5680_s14 = sld [smem:[#allocation8 + $0xa9]] }
 0x1be   : > { %v1075_v54 = vmul.f32 %v4619_v30, %v1074_v61 }
 0x1bf   : > { %v994_v57 = vadd.f32 %v5440_v32, %v986_v33  ;;  %v1055_v16 = vadd.f32 %v1054_v50, %v1050_v49  ;;  %1608 = vrot.lane.b32.xlu1 %v1606_v52, %s4860_s23  ;;  %v2116_v33 = vstv %s5602_s24  ;;  %v4622_v49 = vld [vmem:[#allocation2 + $0x12] sm:$0xff]  ;;  %v1661_v52 = vmul.f32 %v1660_v43, %v5618_v8  ;;  %s5659_s24 = sld [smem:[#allocation8 + $0xe5]]  ;;  %v5685_v43 = vld [vmem:[#allocation2 + $0x21] sm:$0xff] }
 0x1c0   : > { %1600 = vrot.lane.b32.xlu0 %v1598_v55, %s4859_s22  ;;  %1621 = vrot.lane.b32.xlu2 %v1619_v34, %s4859_s22  ;;  %v1138_v42 = vmul.f32 %v4622_v49, %v1137_v41  ;;  %v2104_v55 = vmul.f32 %v2103_v25, %v5514_v22  ;;  %v1200_v37 = vstv %s5636_s25  ;;  %v2145_v27 = vstv %s5648_s2  ;;  %s5691_s25 = sld [smem:[#allocation8 + $0xe8]]  ;;  %v4626_v49 = vld [vmem:[#allocation2 + $0x30] sm:$0xff] }
 0x1c1   : > { %v5563_v1 = vadd.f32 %v998_v56, %v994_v57  ;;  %v1063_v14 = vadd.f32 %v5454_v48, %v1055_v16  ;;  %v1082_v36 = vpop.permute.xlu1 %1081  ;;  %v2117_v56 = vmul.f32 %v2116_v33, %v5540_v46  ;;  %v1158_v57 = vstv %s5609_s29  ;;  %s5664_s29 = sld [smem:[#allocation8 + $0xa6]] }
 0x1c2   : > { %v1069_v32 = vpop.permute.xlu0 %1068  ;;  %v5571_v45 = vpop.permute.xlu2 %1186  ;;  %v2146_v38 = vmul.f32 %v2145_v27, %v5547_v47  ;;  %s5705_s2 = sld [smem:[#allocation8 + $0xe9]]  ;;  %v1284_v27 = vstv %s5703_s21 }
 0x1c3   : > { %v1071_v44 = vadd.f32 %v1069_v32, %v1063_v14  ;;  %v4623_v14 = vld [vmem:[#allocation2 + $0x20] sm:$0xff]  ;;  %s5758_s21 = sld [smem:[#allocation8 + $0xb0]] }
 0x1c5   : > { %v1076_v48 = vadd.f32 %v1075_v54, %v1071_v44  ;;  %v2124_v54 = vstv %s5613_s26  ;;  %v1668_v44 = vstv %s5622_s20  ;;  %s5668_s26 = sld [smem:[#allocation8 + $0xa7]] }
 0x1c6   : > { %s5676_s20 = sld [smem:[#allocation8 + $0x66]] }
 0x1c7   : > { %v1084_v13 = vadd.f32 %v1082_v36, %v1076_v48  ;;  %1629 = vrot.lane.b32.xlu1 %v1627_v7, %s4860_s23  ;;  %v1159_v36 = vmul.f32 %v4623_v14, %v1158_v57  ;;  %v2125_v48 = vmul.f32 %v2124_v54, %v5540_v46  ;;  %v1669_v7 = vmul.f32 %v1668_v44, %v5618_v8  ;;  %v4627_v14 = vld [vmem:[#allocation2 + $0x31] sm:$0xff]  ;;  %v5709_v54 = vld [vmem:[#allocation2 + $0x22] sm:$0xff] }
 0x1c8   : > { %2077 = vrot.lane.b32.xlu0 %v2075_v9, %s4859_s22  ;;  %2085 = vrot.lane.b32.xlu2 %v2083_v12, %s4860_s23  ;;  %v1179_v9 = vstv %s5629_s18  ;;  %v4624_v12 = vld [vmem:[#allocation2 + $0x21] sm:$0xff]  ;;  %v1702_v25 = vstv %s5664_s29  ;;  %s5688_s18 = sld [smem:[#allocation8 + $0xe6]] }
 0x1c9   : > { %v1092_v15 = vadd.f32 %v5477_v3, %v1084_v13  ;;  %v1111_v23 = vpop.permute.xlu1 %1110  ;;  %v1180_v19 = vmul.f32 %v4624_v12, %v1179_v9  ;;  %v1723_v44 = vstv %s5680_s14  ;;  %v4628_v12 = vld [vmem:[#allocation2 + $0x32] sm:$0xff]  ;;  %s5724_s29 = sld [smem:[#allocation8 + $0x6f]] }
 0x1ca   : > { %v1103_v62 = vpop.permute.xlu0 %1102  ;;  %v5592_v2 = vpop.permute.xlu2 %1215  ;;  %v1724_v9 = vmul.f32 %v1723_v44, %v5709_v54  ;;  %s5737_s14 = sld [smem:[#allocation8 + $0xec]] }
 0x1cb   : > { %v1097_v28 = vadd.f32 %v1096_v59, %v1092_v15  ;;  %v1710_v33 = vstv %s5668_s26  ;;  %s5726_s26 = sld [smem:[#allocation8 + $0xad]] }
 0x1cc   : > { %v1242_v57 = vstv %s5676_s20  ;;  %s5731_s20 = sld [smem:[#allocation8 + $0xeb]] }
 0x1cd   : > { %v1105_v3 = vadd.f32 %v1103_v62, %v1097_v28  ;;  %v1689_v28 = vstv %s5638_s4  ;;  %s5696_s4 = sld [smem:[#allocation8 + $0x69]] }
 0x1cf   : > { %v1113_v31 = vadd.f32 %v1111_v23, %v1105_v3  ;;  %2098 = vrot.lane.b32.xlu1 %v2096_v10, %s4859_s22  ;;  %v1690_v3 = vmul.f32 %v1689_v28, %v5645_v53  ;;  %v2138_v10 = vmul.f32 %v2137_v26, %v5547_v47  ;;  %v2187_v26 = vstv %s5705_s2  ;;  %s5762_s2 = sld [smem:[#allocation8 + $0x75]] }
 0x1d0   : > { %1642 = vrot.lane.b32.xlu0 %v1640_v35, %s4859_s22  ;;  %1650 = vrot.lane.b32.xlu2 %v1648_v17, %s4860_s23  ;;  %v4625_v35 = vld [vmem:[#allocation2 + $0x22] sm:$0xff] }
 0x1d1   : > { %v1118_v18 = vadd.f32 %v1117_v39, %v1113_v31  ;;  %v1145_v40 = vpop.permute.xlu1 %1144  ;;  %v1201_v31 = vmul.f32 %v4625_v35, %v1200_v37  ;;  %v2188_v35 = vmul.f32 %v2187_v26, %v5618_v8 }
 0x1d2   : > { %v1132_v60 = vpop.permute.xlu0 %1131  ;;  %v5616_v24 = vpop.permute.xlu2 %1249 }
 0x1d3   : > { %v1126_v20 = vadd.f32 %v5512_v58, %v1118_v18  ;;  %v1221_v18 = vstv %s5657_s17  ;;  %s4202_s17 = sld [smem:[#allocation8 + $0xaa]] }
 0x1d5   : > { %v1134_v50 = vadd.f32 %v1132_v60, %v1126_v20  ;;  %v2158_v20 = vstv %s5659_s24  ;;  %s5714_s24 = sld [smem:[#allocation8 + $0xac]] }
 0x1d7   : > { %v1139_v58 = vadd.f32 %v1138_v42, %v1134_v50  ;;  %1663 = vrot.lane.b32.xlu1 %v1661_v52, %s4859_s22  ;;  %v1222_v42 = vmul.f32 %v4626_v49, %v1221_v18  ;;  %v2159_v52 = vmul.f32 %v2158_v20, %v5595_v21  ;;  %v2200_v49 = vstv %s5731_s20  ;;  %s5791_s20 = sld [smem:[#allocation8 + $0x7b]] }
 0x1d8   : > { %2106 = vrot.lane.b32.xlu0 %v2104_v55, %s4860_s23  ;;  %2119 = vrot.lane.b32.xlu2 %v2117_v56, %s4859_s22  ;;  %v1703_v55 = vmul.f32 %v1702_v25, %v5685_v43  ;;  %v1711_v56 = vmul.f32 %v1710_v33, %v5685_v43  ;;  %v1752_v33 = vstv %s5726_s26  ;;  %s5781_s26 = sld [smem:[#allocation8 + $0xf1]] }
 0x1d9   : > { %v1147_v34 = vadd.f32 %v1145_v40, %v1139_v58  ;;  %v1174_v16 = vpop.permute.xlu1 %1173  ;;  %v1731_v37 = vstv %s4202_s17  ;;  %s5770_s17 = sld [smem:[#allocation8 + $0x78]] }
 0x1da   : > { %v1166_v61 = vpop.permute.xlu0 %1165  ;;  %v5641_v30 = vpop.permute.xlu2 %1278 }
 0x1db   : > { %v1155_v32 = vadd.f32 %v5538_v5, %v1147_v34  ;;  %v1682_v5 = vmul.f32 %v1681_v63, %v5645_v53  ;;  %v2166_v63 = vstv %s5688_s18  ;;  %s5745_s18 = sld [smem:[#allocation8 + $0x72]] }
 0x1dd   : > { %v1160_v6 = vadd.f32 %v1159_v36, %v1155_v32  ;;  %v1243_v36 = vmul.f32 %v4627_v14, %v1242_v57 }
 0x1df   : > { %v1168_v11 = vadd.f32 %v1166_v61, %v1160_v6  ;;  %2127 = vrot.lane.b32.xlu1 %v2125_v48, %s4860_s23  ;;  %v2179_v6 = vstv %s5691_s25  ;;  %s5749_s25 = sld [smem:[#allocation8 + $0xee]] }
 0x1e0   : > { %1671 = vrot.lane.b32.xlu0 %v1669_v7, %s4860_s23  ;;  %1684 = vrot.lane.b32.xlu2 %v1682_v5, %s4859_s22  ;;  %v1263_v7 = vstv %s5696_s4  ;;  %s5755_s4 = sld [smem:[#allocation8 + $0xaf]] }
 0x1e1   : > { %v1176_v13 = vadd.f32 %v1174_v16, %v1168_v11  ;;  %v1208_v59 = vpop.permute.xlu1 %1207  ;;  %v2167_v11 = vmul.f32 %v2166_v63, %v5595_v21 }
 0x1e2   : > { %v1195_v15 = vpop.permute.xlu0 %1194  ;;  %v5661_v62 = vpop.permute.xlu2 %1312 }
 0x1e3   : > { %v1181_v23 = vadd.f32 %v1180_v19, %v1176_v13  ;;  %v2180_v13 = vmul.f32 %v2179_v6, %v5618_v8  ;;  %v1264_v19 = vmul.f32 %v4628_v12, %v1263_v7  ;;  %v5777_v7 = vld [vmem:[#allocation2 + $0x31] sm:$0xff] }
 0x1e5   : > { %v1189_v29 = vadd.f32 %v5571_v45, %v1181_v23 }
 0x1e7   : > { %v1197_v17 = vadd.f32 %v1195_v15, %v1189_v29  ;;  %1692 = vrot.lane.b32.xlu1 %v1690_v3, %s4860_s23  ;;  %v5734_v29 = vld [vmem:[#allocation2 + $0x30] sm:$0xff]  ;;  %v1744_v3 = vstv %s5714_s24  ;;  %s5772_s24 = sld [smem:[#allocation8 + $0xb2]] }
 0x1e8   : > { %2140 = vrot.lane.b32.xlu0 %v2138_v10, %s4859_s22  ;;  %2148 = vrot.lane.b32.xlu2 %v2146_v38, %s4860_s23 }
 0x1e9   : > { %v1202_v39 = vadd.f32 %v1201_v31, %v1197_v17  ;;  %v1237_v45 = vpop.permute.xlu1 %1236  ;;  %v1732_v31 = vmul.f32 %v1731_v37, %v5709_v54  ;;  %v4629_v17 = vld [vmem:[#allocation2 + $0x40] sm:$0xff] }
 0x1ea   : > { %v1229_v40 = vpop.permute.xlu0 %1228  ;;  %v5682_v60 = vpop.permute.xlu2 %1341  ;;  %v1285_v38 = vmul.f32 %v4629_v17, %v1284_v27  ;;  %v1368_v17 = vstv %s5770_s17  ;;  %s5824_s17 = sld [smem:[#allocation8 + $0xf4]] }
 0x1eb   : > { %v1210_v41 = vadd.f32 %v1208_v59, %v1202_v39 }
 0x1ed   : > { %v1218_v50 = vadd.f32 %v5592_v2, %v1210_v41  ;;  %v1305_v41 = vstv %s5724_s29  ;;  %s4273_s29 = sld [smem:[#allocation8 + $0xef]] }
 0x1ef   : > { %v1223_v58 = vadd.f32 %v1222_v42, %v1218_v50  ;;  %2161 = vrot.lane.b32.xlu1 %v2159_v52, %s4859_s22  ;;  %v2208_v42 = vstv %s5737_s14  ;;  %v4630_v52 = vld [vmem:[#allocation2 + $0x41] sm:$0xff]  ;;  %s5793_s14 = sld [smem:[#allocation8 + $0xf2]] }
 0x1f0   : > { %1705 = vrot.lane.b32.xlu0 %v1703_v55, %s4859_s22  ;;  %1713 = vrot.lane.b32.xlu2 %v1711_v56, %s4860_s23  ;;  %v1306_v55 = vmul.f32 %v4630_v52, %v1305_v41  ;;  %v2201_v56 = vmul.f32 %v2200_v49, %v5645_v53 }
 0x1f1   : > { %v1231_v34 = vadd.f32 %v1229_v40, %v1223_v58  ;;  %v1271_v2 = vpop.permute.xlu1 %1270  ;;  %v1753_v58 = vmul.f32 %v1752_v33, %v5734_v29  ;;  %v1389_v33 = vstv %s5791_s20  ;;  %s5841_s20 = sld [smem:[#allocation9]] }
 0x1f2   : > { %v1258_v16 = vpop.permute.xlu0 %1257  ;;  %v5707_v32 = vpop.permute.xlu2 %1375 }
 0x1f3   : > { %v1239_v61 = vadd.f32 %v1237_v45, %v1231_v34  ;;  %v1745_v45 = vmul.f32 %v1744_v3, %v5734_v29  ;;  %v2209_v34 = vmul.f32 %v2208_v42, %v5645_v53 }
 0x1f5   : > { %v1244_v48 = vadd.f32 %v1243_v36, %v1239_v61  ;;  %v4631_v36 = vld [vmem:[#allocation2 + $0x42] sm:$0xff] }
 0x1f7   : > { %v1252_v5 = vadd.f32 %v5616_v24, %v1244_v48  ;;  %1726 = vrot.lane.b32.xlu1 %v1724_v9, %s4859_s22  ;;  %v2221_v48 = vstv %s5749_s25  ;;  %v1765_v9 = vstv %s5755_s4  ;;  %s5804_s25 = sld [smem:[#allocation8 + $0xb5]] }
 0x1f8   : > { %2169 = vrot.lane.b32.xlu0 %v2167_v11, %s4860_s23  ;;  %2182 = vrot.lane.b32.xlu2 %v2180_v13, %s4859_s22  ;;  %v2222_v13 = vmul.f32 %v2221_v48, %v5685_v43  ;;  %v1766_v12 = vmul.f32 %v1765_v9, %v5777_v7  ;;  %s5811_s4 = sld [smem:[#allocation8 + $0x7e]] }
 0x1f9   : > { %v1260_v59 = vadd.f32 %v1258_v16, %v1252_v5  ;;  %v1300_v15 = vpop.permute.xlu1 %1299  ;;  %v1347_v5 = vstv %s5762_s2  ;;  %s5817_s2 = sld [smem:[#allocation8 + $0xb6]] }
 0x1fa   : > { %v1292_v23 = vpop.permute.xlu0 %1291  ;;  %v5728_v28 = vpop.permute.xlu2 %1404 }
 0x1fb   : > { %v1265_v24 = vadd.f32 %v1264_v19, %v1260_v59 }
 0x1fd   : > { %v1273_v10 = vadd.f32 %v1271_v2, %v1265_v24  ;;  %v1326_v2 = vstv %s5745_s18  ;;  %s5800_s18 = sld [smem:[#allocation8 + $0xb3]] }
 0x1fe   : > { %v1327_v44 = vmul.f32 %v4631_v36, %v1326_v2 }
 0x1ff   : > { %v1281_v39 = vadd.f32 %v5641_v30, %v1273_v10  ;;  %2190 = vrot.lane.b32.xlu1 %v2188_v35, %s4860_s23  ;;  %v5797_v10 = vld [vmem:[#allocation2 + $0x32] sm:$0xff]  ;;  %v1786_v35 = vstv %s5772_s24  ;;  %s5829_s24 = sld [smem:[#allocation8 + $0xf5]] }
 0x200   : > { %1734 = vrot.lane.b32.xlu0 %v1732_v31, %s4860_s23  ;;  %1747 = vrot.lane.b32.xlu2 %v1745_v45, %s4859_s22  ;;  %v2229_v31 = vstv %s4273_s29  ;;  %s5833_s29 = sld [smem:[#allocation8 + $0x81]] }
 0x201   : > { %v1286_v18 = vadd.f32 %v1285_v38, %v1281_v39  ;;  %v1334_v40 = vpop.permute.xlu1 %1333  ;;  %v1787_v39 = vmul.f32 %v1786_v35, %v5797_v10  ;;  %v2230_v45 = vmul.f32 %v2229_v31, %v5685_v43 }
 0x202   : > { %v1321_v20 = vpop.permute.xlu0 %1320  ;;  %v5751_v30 = vpop.permute.xlu2 %1438 }
 0x203   : > { %v1294_v25 = vadd.f32 %v1292_v23, %v1286_v18 }
 0x205   : > { %v1302_v50 = vadd.f32 %v1300_v15, %v1294_v25  ;;  %v4632_v15 = vld [vmem:[#allocation2 + $0x50] sm:$0xff] }
 0x206   : > { %v1348_v23 = vmul.f32 %v4632_v15, %v1347_v5 }
 0x207   : > { %v1307_v57 = vadd.f32 %v1306_v55, %v1302_v50  ;;  %1755 = vrot.lane.b32.xlu1 %v1753_v58, %s4860_s23  ;;  %v2250_v55 = vstv %s5793_s14  ;;  %v1794_v58 = vstv %s5800_s18  ;;  %s5848_s14 = sld [smem:[#allocation8 + $0xf7]] }
 0x208   : > { %2203 = vrot.lane.b32.xlu0 %v2201_v56, %s4859_s22  ;;  %2211 = vrot.lane.b32.xlu2 %v2209_v34, %s4860_s23  ;;  %v5826_v56 = vld [vmem:[#allocation2 + $0x40] sm:$0xff]  ;;  %v4634_v34 = vld [vmem:[#allocation2 + $0x52] sm:$0xff]  ;;  %s5855_s18 = sld [smem:[#allocation8 + $0xb8]] }
 0x209   : > { %v1315_v16 = vadd.f32 %v5661_v62, %v1307_v57  ;;  %v1363_v61 = vpop.permute.xlu1 %1362  ;;  %v1773_v62 = vstv %s5758_s21  ;;  %s5813_s21 = sld [smem:[#allocation8 + $0x90]]  ;;  %v1807_v57 = vstv %s5804_s25  ;;  %v1390_v2 = vmul.f32 %v4634_v34, %v1389_v33  ;;  %v5887_v33 = vld [vmem:[#allocation2 + $0x41] sm:$0xff] }
 0x20a   : > { %v1355_v14 = vpop.permute.xlu0 %1354  ;;  %v5774_v6 = vpop.permute.xlu2 %1558  ;;  %v1774_v59 = vmul.f32 %v1773_v62, %v5777_v7  ;;  %v1808_v36 = vmul.f32 %v1807_v57, %v5826_v56  ;;  %v4635_v62 = vld [vmem:[#allocation2 + $0x60] sm:$0xff]  ;;  %s5861_s25 = sld [smem:[#allocation8 + $0xb9]] }
 0x20b   : > { %v1323_v63 = vadd.f32 %v1321_v20, %v1315_v16 }
 0x20d   : > { %v1328_v11 = vadd.f32 %v1327_v44, %v1323_v63  ;;  %v1410_v44 = vstv %s5811_s4  ;;  %s5863_s4 = sld [smem:[#allocation11]] }
 0x20f   : > { %v1336_v19 = vadd.f32 %v1334_v40, %v1328_v11  ;;  %2224 = vrot.lane.b32.xlu1 %v2222_v13, %s4859_s22  ;;  %v4633_v40 = vld [vmem:[#allocation2 + $0x51] sm:$0xff]  ;;  %v1411_v11 = vmul.f32 %v4635_v62, %v1410_v44  ;;  %v1551_v15 = vstv %s5813_s21  ;;  %s5880_s21 = sld [smem:[#allocation8 + $0xbb]] }
 0x210   : > { %1768 = vrot.lane.b32.xlu0 %v1766_v12, %s4859_s22  ;;  %1776 = vrot.lane.b32.xlu2 %v1774_v59, %s4860_s23  ;;  %v1369_v41 = vmul.f32 %v4633_v40, %v1368_v17  ;;  %v1815_v12 = vstv %s5817_s2  ;;  %v1007_v59 = vadd.f32 %v5507_v0, %v5563_v1  ;;  %s5868_s2 = sld [smem:[#allocation8 + $0x96]]  ;;  %v1017_v17 = vstv %s5841_s20 }
 0x211   : > { %v1344_v24 = vadd.f32 %v5682_v60, %v1336_v19  ;;  %v1397_v26 = vpop.permute.xlu1 %1396  ;;  %v2242_v60 = vstv %s5781_s26  ;;  %s5836_s26 = sld [smem:[#allocation8 + $0x93]]  ;;  %v2263_v19 = vstv %s5824_s17 }
 0x212   : > { %v1384_v37 = vpop.permute.xlu0 %1383  ;;  %v5795_v3 = vpop.permute.xlu2 %1587  ;;  %v2243_v20 = vmul.f32 %v2242_v60, %v5709_v54  ;;  %v1015_v31 = vadd.f32 %v5505_v51, %v1007_v59  ;;  %s5890_s17 = sld [smem:[#allocation8 + $0xf8]] }
 0x213   : > { %v1349_v27 = vadd.f32 %v1348_v23, %v1344_v24  ;;  %v2271_v23 = vstv %s5829_s24  ;;  %s5897_s24 = sld [smem:[#allocation8 + $0xd8]] }
 0x214   : > { %v2272_v0 = vmul.f32 %v2271_v23, %v5734_v29  ;;  %s5909_s20 = sld [smem:[#allocation8 + $0xdb]] }
 0x215   : > { %v1357_v38 = vadd.f32 %v1355_v14, %v1349_v27  ;;  %v1795_v14 = vmul.f32 %v1794_v58, %v5797_v10  ;;  %v1552_v27 = vmul.f32 %v1551_v15, %v5483_v4  ;;  %v1020_v58 = vstv %s5863_s4  ;;  %s5932_s4 = sld [smem:[#allocation8 + $0xbf]] }
 0x216   : > { %v1593_v57 = vstv %s5868_s2  ;;  %s4287_s2 = sld [smem:[#allocation8 + $0xfd]] }
 0x217   : > { %v1365_v18 = vadd.f32 %v1363_v61, %v1357_v38  ;;  %1789 = vrot.lane.b32.xlu1 %v1787_v39, %s4859_s22  ;;  %v2251_v61 = vmul.f32 %v2250_v55, %v5709_v54  ;;  %v1572_v1 = vstv %s5836_s26  ;;  %v1561_v60 = vadd.f32 %v5774_v6, %v1552_v27  ;;  %v4636_v39 = vld [vmem:[#allocation2 + $0x61] sm:$0xff]  ;;  %s5907_s26 = sld [smem:[#allocation8 + $0xfb]] }
 0x218   : > { %2232 = vrot.lane.b32.xlu0 %v2230_v45, %s4860_s23  ;;  %2245 = vrot.lane.b32.xlu2 %v2243_v20, %s4859_s22  ;;  %v1573_v51 = vmul.f32 %v1572_v1, %v5514_v22  ;;  %v2284_v6 = vstv %s5848_s14  ;;  %s5917_s14 = sld [smem:[#allocation8 + $0xbc]] }
 0x219   : > { %v1370_v25 = vadd.f32 %v1369_v41, %v1365_v18  ;;  %v1426_v49 = vpop.permute.xlu1 %1425  ;;  %v2285_v34 = vmul.f32 %v2284_v6, %v5777_v7 }
 0x21a   : > { %v1418_v42 = vpop.permute.xlu0 %1417  ;;  %v5820_v52 = vpop.permute.xlu2 %1621  ;;  %v2091_v1 = vstv %s5909_s20  ;;  %s5963_s20 = sld [smem:[#allocation8 + $0x9f]] }
 0x21b   : > { %v1378_v50 = vadd.f32 %v5707_v32, %v1370_v25 }
 0x21d   : > { %v1386_v16 = vadd.f32 %v1384_v37, %v1378_v50  ;;  %v2264_v37 = vmul.f32 %v2263_v19, %v5734_v29  ;;  %v1836_v50 = vstv %s5861_s25  ;;  %v2292_v19 = vstv %s5890_s17  ;;  %s5929_s25 = sld [smem:[#allocation8 + $0x9c]] }
 0x21e   : > { %v2293_v23 = vmul.f32 %v2292_v19, %v5777_v7  ;;  %s4256_s17 = sld [smem:[#allocation8 + $0xde]] }
 0x21f   : > { %v1391_v32 = vadd.f32 %v1390_v2, %v1386_v16  ;;  %2253 = vrot.lane.b32.xlu1 %v2251_v61, %s4860_s23  ;;  %v1837_v61 = vmul.f32 %v1836_v50, %v5887_v33 }
 0x220   : > { %1797 = vrot.lane.b32.xlu0 %v1795_v14, %s4860_s23  ;;  %1810 = vrot.lane.b32.xlu2 %v1808_v36, %s4859_s22 }
 0x221   : > { %v1399_v63 = vadd.f32 %v1397_v26, %v1391_v32  ;;  %v5844_v48 = vpop.permute.xlu1 %1459  ;;  %v1431_v26 = vstv %s5833_s29  ;;  %s5902_s29 = sld [smem:[#allocation8 + $0x99]]  ;;  %v1594_v32 = vmul.f32 %v1593_v57, %v5540_v46  ;;  %v2326_v57 = vstv %s4287_s2 }
 0x222   : > { %v5846_v9 = vpop.permute.xlu0 %1446  ;;  %v5851_v13 = vpop.permute.xlu2 %2085  ;;  %v1432_v45 = vmul.f32 %v4636_v39, %v1431_v26  ;;  %v1857_v39 = vstv %s5917_s14  ;;  %s5971_s14 = sld [smem:[#allocation8 + $0xc4]] }
 0x223   : > { %v1407_v5 = vadd.f32 %v5728_v28, %v1399_v63  ;;  %v1816_v28 = vmul.f32 %v1815_v12, %v5826_v56  ;;  %v1849_v12 = vstv %s5880_s21  ;;  %s4222_s21 = sld [smem:[#allocation8 + $0xbe]] }
 0x224   : > { %s5989_s2 = sld [smem:[#allocation8 + $0xe1]] }
 0x225   : > { %v1412_v24 = vadd.f32 %v1411_v11, %v1407_v5  ;;  %v5913_v5 = vld [vmem:[#allocation2 + $0x42] sm:$0xff] }
 0x226   : > { %v1850_v15 = vmul.f32 %v1849_v12, %v5913_v5 }
 0x227   : > { %v1420_v35 = vadd.f32 %v1418_v42, %v1412_v24  ;;  %1818 = vrot.lane.b32.xlu1 %v1816_v28, %s4860_s23  ;;  %v1018_v42 = vmul.f32 %v1017_v17, %v1015_v31  ;;  %v2070_v24 = vstv %s5897_s24  ;;  %v1614_v26 = vstv %s5902_s29  ;;  %s5949_s24 = sld [smem:[#allocation8 + $0x100]] }
 0x228   : > { %2266 = vrot.lane.b32.xlu0 %v2264_v37, %s4859_s22  ;;  %2274 = vrot.lane.b32.xlu2 %v2272_v0, %s4860_s23  ;;  %v2071_v27 = vmul.f32 %v2070_v24, %v5483_v4  ;;  %v1615_v31 = vmul.f32 %v1614_v26, %v5547_v47  ;;  %s5956_s29 = sld [smem:[#allocation8 + $0xc1]]  ;;  %v5976_v24 = vld [vmem:[#allocation2 + $0x51] sm:$0xff] }
 0x229   : > { %v1428_v38 = vadd.f32 %v1426_v49, %v1420_v35  ;;  %v1580_v18 = vpop.permute.xlu1 %1579  ;;  %v1828_v49 = vstv %s5855_s18  ;;  %v1021_v14 = vadd.f32 %v1020_v58, %v1018_v42  ;;  %s5919_s18 = sld [smem:[#allocation8 + $0xfa]]  ;;  %v1878_v58 = vstv %s5932_s4 }
 0x22a   : > { %v1567_v40 = vpop.permute.xlu0 %1566  ;;  %v5884_v25 = vpop.permute.xlu2 %1650  ;;  %v1829_v2 = vmul.f32 %v1828_v49, %v5887_v33  ;;  %s4194_s4 = sld [smem:[#allocation8 + $0xa2]] }
 0x22b   : > { %v5882_v41 = vadd.f32 %v1432_v45, %v1428_v38  ;;  %v1569_v20 = vadd.f32 %v1567_v40, %v1561_v60  ;;  %vm1022_vm3 = vcmp.gt.f32.partialorder %v1021_v14, 0.0  ;;  %v2313_v38 = vstv %s5907_s26  ;;  %s5959_s26 = sld [smem:[#allocation8 + $0xfe]] }
 0x22c   : > { %v2314_v40 = vmul.f32 %v2313_v38, %v5797_v10 }
 0x22d   : > { %v1574_v55 = vadd.f32 %v1573_v51, %v1569_v20  ;;  %v2092_v51 = vmul.f32 %v2091_v1, %v5514_v22  ;;  %v1858_v20 = vmul.f32 %v1857_v39, %v5913_v5 }
 0x22e   : > { %v1891_v26 = vstv %s5956_s29  ;;  %s6005_s29 = sld [smem:[#allocation8 + $0xa5]] }
 0x22f   : > { %v1582_v16 = vadd.f32 %v1580_v18, %v1574_v55  ;;  %2287 = vrot.lane.b32.xlu1 %v2285_v34, %s4859_s22  ;;  %v2305_v45 = vstv %s5919_s18  ;;  %v5953_v55 = vld [vmem:[#allocation2 + $0x50] sm:$0xff]  ;;  %v1635_v34 = vstv %s5929_s25  ;;  %s4291_s18 = sld [smem:[#allocation8 + $0x101]] }
 0x230   : > { %1831 = vrot.lane.b32.xlu0 %v1829_v2, %s4859_s22  ;;  %1839 = vrot.lane.b32.xlu2 %v1837_v61, %s4860_s23  ;;  %v2306_v6 = vmul.f32 %v2305_v45, %v5797_v10  ;;  %v1870_v2 = vstv %s4222_s21  ;;  %v2327_v61 = vmul.f32 %v2326_v57, %v5826_v56  ;;  %s4226_s25 = sld [smem:[#allocation8 + $0xc2]] }
 0x231   : > { %v1590_v36 = vadd.f32 %v5795_v3, %v1582_v16  ;;  %v1609_v44 = vpop.permute.xlu1 %1608  ;;  %v1023_v3 = vmul.f32 0.01, %v1021_v14  ;;  %s5991_s21 = sld [smem:[#allocation8 + $0xc5]] }
 0x232   : > { %v1601_v63 = vpop.permute.xlu0 %1600  ;;  %v5911_v11 = vpop.permute.xlu2 %2119 }
 0x233   : > { %v1595_v62 = vadd.f32 %v1594_v32, %v1590_v36  ;;  %v1024_v28 = vsel %vm1022_vm3, %v1021_v14, %v1023_v3  ;;  %v1636_v14 = vmul.f32 %v1635_v34, %v5595_v21  ;;  %v1871_v32 = vmul.f32 %v1870_v2, %v5953_v55 }
 0x234   : > { %v2112_v36 = vstv %s4256_s17  ;;  %s4164_s17 = sld [smem:[#allocation8 + $0x86]] }
 0x235   : > { %v1603_v59 = vadd.f32 %v1601_v63, %v1595_v62  ;;  %v2113_v12 = vmul.f32 %v2112_v36, %v5540_v46  ;;  %v1892_v46 = vmul.f32 %v1891_v26, %v5976_v24 }
 0x237   : > { %1852 = vrot.lane.b32.xlu1 %v1850_v15, %s4859_s22  ;;  %v1611_v37 = vadd.f32 %v1609_v44, %v1603_v59 }
 0x238   : > { %2295 = vrot.lane.b32.xlu0 %v2293_v23, %s4860_s23  ;;  %1026 = vrot.lane.b32.xlu2 %v1024_v28, %s4857_s1  ;;  %v2347_v23 = vstv %s5949_s24  ;;  %v2334_v28 = vstv %s5959_s26  ;;  %s5998_s24 = sld [smem:[#allocation8 + $0x103]] }
 0x239   : > { %v1630_v35 = vpop.permute.xlu1 %1629  ;;  %v1616_v18 = vadd.f32 %v1615_v31, %v1611_v37  ;;  %v2335_v1 = vmul.f32 %v2334_v28, %v5826_v56  ;;  %s6009_s26 = sld [smem:[#allocation8 + $0xc7]] }
 0x23a   : > { %v2078_v0 = vpop.permute.xlu0 %2077  ;;  %v5935_v60 = vpop.permute.xlu2 %1684 }
 0x23b   : > { %v2080_v17 = vadd.f32 %v2078_v0, %v2071_v27  ;;  %v1624_v42 = vadd.f32 %v5820_v52, %v1616_v18  ;;  %v1879_v52 = vmul.f32 %v1878_v58, %v5953_v55  ;;  %v1656_v27 = vstv %s5963_s20  ;;  %s6015_s20 = sld [smem:[#allocation8 + $0x88]] }
 0x23c   : > { %v1657_v31 = vmul.f32 %v1656_v27, %v5618_v8  ;;  %v1912_v18 = vstv %s5971_s14  ;;  %s6019_s14 = sld [smem:[#allocation8 + $0x104]]  ;;  %v6041_v27 = vld [vmem:[#allocation2 + $0x60] sm:$0xff] }
 0x23d   : > { %v2088_v4 = vadd.f32 %v5851_v13, %v2080_v17  ;;  %v1632_v16 = vadd.f32 %v1630_v35, %v1624_v42  ;;  %v2348_v35 = vmul.f32 %v2347_v23, %v5887_v33 }
 0x23f   : > { %v2093_v49 = vadd.f32 %v2092_v51, %v2088_v4  ;;  %2316 = vrot.lane.b32.xlu1 %v2314_v40, %s4860_s23  ;;  %v1637_v63 = vadd.f32 %v1636_v14, %v1632_v16  ;;  %v2355_v4 = vstv %s4291_s18  ;;  %v1899_v51 = vstv %s4226_s25  ;;  %s6025_s18 = sld [smem:[#allocation8 + $0xe4]] }
 0x240   : > { %1860 = vrot.lane.b32.xlu0 %v1858_v20, %s4860_s23  ;;  %2308 = vrot.lane.b32.xlu2 %v2306_v6, %s4859_s22  ;;  %v1677_v20 = vstv %s4194_s4  ;;  %v2133_v14 = vstv %s5989_s2  ;;  %s6034_s25 = sld [smem:[#allocation8 + $0xa8]] }
 0x241   : > { %v2099_v13 = vpop.permute.xlu1 %2098  ;;  %s6036_s4 = sld [smem:[#allocation8 + $0xc8]] }
 0x242   : > { %v1643_v50 = vpop.permute.xlu0 %1642  ;;  %v5951_v22 = vpop.permute.xlu2 %2148  ;;  %v2101_v44 = vadd.f32 %v2099_v13, %v2093_v49  ;;  %v2356_v49 = vmul.f32 %v2355_v4, %v5887_v33  ;;  %v1900_v13 = vmul.f32 %v1899_v51, %v5976_v24  ;;  %s6047_s2 = sld [smem:[#allocation8 + $0x89]] }
 0x243   : > { %v1645_v3 = vadd.f32 %v1643_v50, %v1637_v63  ;;  %v1678_v50 = vmul.f32 %v1677_v20, %v5645_v53  ;;  %v6022_v63 = vld [vmem:[#allocation2 + $0x62] sm:$0xff] }
 0x245   : > { %v1653_v0 = vadd.f32 %v5884_v25, %v1645_v3  ;;  %v5995_v25 = vld [vmem:[#allocation2 + $0x52] sm:$0xff]  ;;  %v1698_v3 = vstv %s6005_s29  ;;  %s6066_s29 = sld [smem:[#allocation8 + $0xca]] }
 0x246   : > { %v1913_v6 = vmul.f32 %v1912_v18, %v5995_v25  ;;  %v1699_v28 = vmul.f32 %v1698_v3, %v5685_v43  ;;  %v1719_v20 = vstv %s6034_s25  ;;  %s6093_s25 = sld [smem:[#allocation8 + $0xcb]] }
 0x247   : > { %1881 = vrot.lane.b32.xlu1 %v1879_v52, %s4860_s23  ;;  %v1658_v39 = vadd.f32 %v1657_v31, %v1653_v0  ;;  %v1920_v52 = vstv %s5991_s21  ;;  %v1477_v0 = vstv %s6015_s20  ;;  %s6050_s21 = sld [smem:[#allocation8 + $0x106]] }
 0x248   : > { %2329 = vrot.lane.b32.xlu0 %v2327_v61, %s4859_s22  ;;  %1873 = vrot.lane.b32.xlu2 %v1871_v32, %s4859_s22  ;;  %v1464_v61 = vstv %s4164_s17  ;;  %v2368_v32 = vstv %s5998_s24  ;;  %s6055_s17 = sld [smem:[#allocation8 + $0xe7]] }
 0x249   : > { %v1664_v62 = vpop.permute.xlu1 %1663  ;;  %s6059_s24 = sld [smem:[#allocation8 + $0xab]] }
 0x24a   : > { %v2107_v19 = vpop.permute.xlu0 %2106  ;;  %v5973_v15 = vpop.permute.xlu2 %1713  ;;  %v1666_v40 = vadd.f32 %v1664_v62, %v1658_v39  ;;  %v1465_v62 = vmul.f32 %v6022_v63, %v1464_v61  ;;  %s6076_s20 = sld [smem:[#allocation8 + $0x107]] }
 0x24b   : > { %v2109_v59 = vadd.f32 %v2107_v19, %v2101_v44  ;;  %v1921_v44 = vmul.f32 %v1920_v52, %v5995_v25  ;;  %v2369_v19 = vmul.f32 %v2368_v32, %v5913_v5 }
 0x24d   : > { %v2114_v37 = vadd.f32 %v2113_v12, %v2109_v59  ;;  %v2134_v12 = vmul.f32 %v2133_v14, %v5547_v47 }
 0x24f   : > { %2350 = vrot.lane.b32.xlu1 %v2348_v35, %s4859_s22  ;;  %v2122_v34 = vadd.f32 %v5911_v11, %v2114_v37  ;;  %v1933_v35 = vstv %s6009_s26  ;;  %s6073_s26 = sld [smem:[#allocation8 + $0x8b]] }
 0x250   : > { %1894 = vrot.lane.b32.xlu0 %v1892_v46, %s4859_s22  ;;  %2337 = vrot.lane.b32.xlu2 %v2335_v1, %s4860_s23  ;;  %v6044_v46 = vld [vmem:[#allocation2 + $0x70] sm:$0xff]  ;;  %v2376_v1 = vstv %s6019_s14  ;;  %s6084_s14 = sld [smem:[#allocation8 + $0xea]] }
 0x251   : > { %v2128_v17 = vpop.permute.xlu1 %2127  ;;  %v1478_v39 = vmul.f32 %v1477_v0, %v6044_v46  ;;  %v2377_v51 = vmul.f32 %v2376_v1, %v5913_v5 }
 0x252   : > { %v1672_v38 = vpop.permute.xlu0 %1671  ;;  %v5993_v45 = vpop.permute.xlu2 %2182  ;;  %v2130_v36 = vadd.f32 %v2128_v17, %v2122_v34  ;;  %v2154_v17 = vstv %s6025_s18  ;;  %v1720_v34 = vmul.f32 %v1719_v20, %v5709_v54  ;;  %s6088_s18 = sld [smem:[#allocation8 + $0xae]] }
 0x253   : > { %v1674_v42 = vadd.f32 %v1672_v38, %v1666_v40  ;;  %v1934_v38 = vmul.f32 %v1933_v35, %v6041_v27  ;;  %v2155_v40 = vmul.f32 %v2154_v17, %v5595_v21 }
 0x254   : > { %v2135_v23 = vadd.f32 %v2134_v12, %v2130_v36  ;;  %v1740_v36 = vstv %s6059_s24  ;;  %s6123_s24 = sld [smem:[#allocation8 + $0xb1]] }
 0x255   : > { %v1679_v2 = vadd.f32 %v1678_v50, %v1674_v42  ;;  %v1941_v50 = vstv %s6036_s4  ;;  %v1741_v12 = vmul.f32 %v1740_v36, %v5734_v29  ;;  %s6103_s4 = sld [smem:[#allocation8 + $0x8c]] }
 0x256   : > { %v1942_v52 = vmul.f32 %v1941_v50, %v6041_v27 }
 0x257   : > { %1915 = vrot.lane.b32.xlu1 %v1913_v6, %s4859_s22  ;;  %v1687_v11 = vadd.f32 %v5935_v60, %v1679_v2  ;;  %v2175_v2 = vstv %s6055_s17  ;;  %s6120_s17 = sld [smem:[#allocation8 + $0xcd]] }
 0x258   : > { %2358 = vrot.lane.b32.xlu0 %v2356_v49, %s4860_s23  ;;  %1902 = vrot.lane.b32.xlu2 %v1900_v13, %s4860_s23 }
 0x259   : > { %v1693_v58 = vpop.permute.xlu1 %1692 }
 0x25a   : > { %v2141_v57 = vpop.permute.xlu0 %2140  ;;  %v6012_v16 = vpop.permute.xlu2 %1747  ;;  %v1695_v59 = vadd.f32 %v1693_v58, %v1687_v11  ;;  %v1485_v58 = vstv %s6047_s2  ;;  %s6106_s2 = sld [smem:[#allocation8 + $0x109]] }
 0x25b   : > { %v2143_v47 = vadd.f32 %v2141_v57, %v2135_v23  ;;  %v2389_v57 = vstv %s6050_s21  ;;  %v1486_v61 = vmul.f32 %v1485_v58, %v6044_v46  ;;  %s6115_s21 = sld [smem:[#allocation8 + $0xed]] }
 0x25c   : > { %v1700_v31 = vadd.f32 %v1699_v28, %v1695_v59  ;;  %v2397_v28 = vstv %s6076_s20  ;;  %s6141_s20 = sld [smem:[#allocation8 + $0xf0]] }
 0x25d   : > { %v2151_v18 = vadd.f32 %v5951_v22, %v2143_v47  ;;  %v6100_v47 = vld [vmem:[#allocation2 + $0x71] sm:$0xff]  ;;  %v2398_v17 = vmul.f32 %v2397_v28, %v5953_v55 }
 0x25f   : > { %1923 = vrot.lane.b32.xlu1 %v1921_v44, %s4860_s23  ;;  %v2156_v22 = vadd.f32 %v2155_v40, %v2151_v18 }
 0x260   : > { %1467 = vrot.lane.b32.xlu0 %v1465_v62, %s4860_s23  ;;  %2371 = vrot.lane.b32.xlu2 %v2369_v19, %s4859_s22  ;;  %v2176_v62 = vmul.f32 %v2175_v2, %v5618_v8  ;;  %v1498_v8 = vstv %s6073_s26  ;;  %s6133_s26 = sld [smem:[#allocation8 + $0x10a]] }
 0x261   : > { %v2162_v60 = vpop.permute.xlu1 %2161  ;;  %v1499_v1 = vmul.f32 %v1498_v8, %v6100_v47  ;;  %v2217_v2 = vstv %s6115_s21  ;;  %s6169_s21 = sld [smem:[#allocation8 + $0xd0]] }
 0x262   : > { %v1706_v26 = vpop.permute.xlu0 %1705  ;;  %v6039_v37 = vpop.permute.xlu2 %2211  ;;  %v2164_v21 = vadd.f32 %v2162_v60, %v2156_v22  ;;  %v6097_v60 = vld [vmem:[#allocation2 + $0x61] sm:$0xff]  ;;  %v1506_v22 = vstv %s6103_s4  ;;  %s4212_s4 = sld [smem:[#allocation8 + $0xb4]] }
 0x263   : > { %v1708_v4 = vadd.f32 %v1706_v26, %v1700_v31  ;;  %v1954_v26 = vstv %s6066_s29  ;;  %s6130_s29 = sld [smem:[#allocation8 + $0x8e]] }
 0x264   : > { %v1955_v0 = vmul.f32 %v1954_v26, %v6097_v60 }
 0x265   : > { %v1716_v42 = vadd.f32 %v5973_v15, %v1708_v4  ;;  %v2390_v15 = vmul.f32 %v2389_v57, %v5953_v55  ;;  %v1507_v57 = vmul.f32 %v1506_v22, %v6100_v47 }
 0x267   : > { %1936 = vrot.lane.b32.xlu1 %v1934_v38, %s4859_s22  ;;  %v1721_v14 = vadd.f32 %v1720_v34, %v1716_v42  ;;  %v2196_v38 = vstv %s6084_s14  ;;  %s6145_s14 = sld [smem:[#allocation8 + $0xce]] }
 0x268   : > { %1480 = vrot.lane.b32.xlu0 %v1478_v39, %s4859_s22  ;;  %2379 = vrot.lane.b32.xlu2 %v2377_v51, %s4860_s23  ;;  %v1761_v39 = vstv %s6088_s18  ;;  %v2197_v51 = vmul.f32 %v2196_v38, %v5645_v53  ;;  %s4173_s18 = sld [smem:[#allocation8 + $0x8f]]  ;;  %v1803_v22 = vstv %s4212_s4 }
 0x269   : > { %v1727_v6 = vpop.permute.xlu1 %1726  ;;  %v1762_v42 = vmul.f32 %v1761_v39, %v5777_v7  ;;  %s6215_s4 = sld [smem:[#allocation8 + $0xba]] }
 0x26a   : > { %v2170_v49 = vpop.permute.xlu0 %2169  ;;  %v6069_v13 = vpop.permute.xlu2 %1776  ;;  %v1729_v44 = vadd.f32 %v1727_v6, %v1721_v14  ;;  %v1782_v14 = vstv %s6123_s24  ;;  %s6176_s24 = sld [smem:[#allocation8 + $0xf3]] }
 0x26b   : > { %v2172_v32 = vadd.f32 %v2170_v49, %v2164_v21  ;;  %v1962_v49 = vstv %s6093_s25  ;;  %s4302_s25 = sld [smem:[#allocation8 + $0x10c]]  ;;  %v1783_v26 = vmul.f32 %v1782_v14, %v5797_v10 }
 0x26c   : > { %v1963_v53 = vmul.f32 %v1962_v49, %v6097_v60 }
 0x26d   : > { %v2177_v3 = vadd.f32 %v2176_v62, %v2172_v32  ;;  %v1975_v62 = vstv %s6120_s17  ;;  %v1983_v39 = vstv %s6145_s14  ;;  %s6174_s17 = sld [smem:[#allocation8 + $0x10d]] }
 0x26e   : > { %s6195_s14 = sld [smem:[#allocation8 + $0x110]] }
 0x26f   : > { %1944 = vrot.lane.b32.xlu1 %v1942_v52, %s4860_s23  ;;  %v2185_v31 = vadd.f32 %v5993_v45, %v2177_v3  ;;  %v2218_v3 = vmul.f32 %v2217_v2, %v5685_v43 }
 0x270   : > { %1488 = vrot.lane.b32.xlu0 %v1486_v61, %s4860_s23  ;;  %2392 = vrot.lane.b32.xlu2 %v2390_v15, %s4859_s22 }
 0x271   : > { %v2191_v11 = vpop.permute.xlu1 %2190 }
 0x272   : > { %v1735_v19 = vpop.permute.xlu0 %1734  ;;  %v6095_v23 = vpop.permute.xlu2 %2245  ;;  %v2193_v18 = vadd.f32 %v2191_v11, %v2185_v31  ;;  %v6153_v11 = vld [vmem:[#allocation2 + $0x72] sm:$0xff] }
 0x273   : > { %v1737_v59 = vadd.f32 %v1735_v19, %v1729_v44  ;;  %v6150_v44 = vld [vmem:[#allocation2 + $0x62] sm:$0xff]  ;;  %v2418_v19 = vstv %s6133_s26  ;;  %s6187_s26 = sld [smem:[#allocation8 + $0xd3]]  ;;  %v2439_v2 = vstv %s6174_s17 }
 0x274   : > { %v2198_v50 = vadd.f32 %v2197_v51, %v2193_v18  ;;  %v1527_v18 = vstv %s4173_s18  ;;  %v1984_v51 = vmul.f32 %v1983_v39, %v6150_v44  ;;  %s6200_s18 = sld [smem:[#allocation8 + $0xd1]] }
 0x275   : > { %v1742_v35 = vadd.f32 %v1741_v12, %v1737_v59  ;;  %v1519_v12 = vstv %s6130_s29  ;;  %s6182_s29 = sld [smem:[#allocation8 + $0xb7]] }
 0x276   : > { %v1520_v8 = vmul.f32 %v1519_v12, %v6153_v11  ;;  %s4283_s17 = sld [smem:[#allocation8 + $0xf9]] }
 0x277   : > { %1957 = vrot.lane.b32.xlu1 %v1955_v0, %s4859_s22  ;;  %v1750_v4 = vadd.f32 %v6012_v16, %v1742_v35  ;;  %v2410_v16 = vstv %s6106_s2  ;;  %v2419_v35 = vmul.f32 %v2418_v19, %v5976_v24  ;;  %s6166_s2 = sld [smem:[#allocation8 + $0x10f]] }
 0x278   : > { %1501 = vrot.lane.b32.xlu0 %v1499_v1, %s4859_s22  ;;  %2400 = vrot.lane.b32.xlu2 %v2398_v17, %s4860_s23  ;;  %v2411_v34 = vmul.f32 %v2410_v16, %v5976_v24  ;;  %v1804_v16 = vmul.f32 %v1803_v22, %v5826_v56 }
 0x279   : > { %v1756_v45 = vpop.permute.xlu1 %1755 }
 0x27a   : > { %v2204_v40 = vpop.permute.xlu0 %2203  ;;  %v1758_v20 = vadd.f32 %v1756_v45, %v1750_v4  ;;  %v6125_v6 = vpop.permute.xlu2 %1810  ;;  %v2431_v4 = vstv %s4302_s25  ;;  %s6211_s25 = sld [smem:[#allocation8 + $0x113]] }
 0x27b   : > { %v2206_v21 = vadd.f32 %v2204_v40, %v2198_v50  ;;  %v1528_v40 = vmul.f32 %v1527_v18, %v6153_v11  ;;  %v2432_v49 = vmul.f32 %v2431_v4, %v5995_v25  ;;  %v1824_v12 = vstv %s6182_s29  ;;  %s4311_s29 = sld [smem:[#allocation8 + $0x115]] }
 0x27c   : > { %v1763_v58 = vadd.f32 %v1762_v42, %v1758_v20 }
 0x27d   : > { %v2214_v32 = vadd.f32 %v6039_v37, %v2206_v21  ;;  %v1976_v37 = vmul.f32 %v1975_v62, %v6150_v44  ;;  %v2452_v21 = vstv %s6166_s2  ;;  %s4244_s2 = sld [smem:[#allocation8 + $0xd4]] }
 0x27f   : > { %1965 = vrot.lane.b32.xlu1 %v1963_v53, %s4860_s23  ;;  %v2219_v28 = vadd.f32 %v2218_v3, %v2214_v32  ;;  %v2453_v32 = vmul.f32 %v2452_v21, %v6041_v27 }
 0x280   : > { %1509 = vrot.lane.b32.xlu0 %v1507_v57, %s4860_s23  ;;  %2413 = vrot.lane.b32.xlu2 %v2411_v34, %s4859_s22  ;;  %v1996_v34 = vstv %s6169_s21  ;;  %s4308_s21 = sld [smem:[#allocation8 + $0x112]] }
 0x281   : > { %v2225_v52 = vpop.permute.xlu1 %2224 }
 0x282   : > { %v1769_v61 = vpop.permute.xlu0 %1768  ;;  %v6148_v36 = vpop.permute.xlu2 %2274  ;;  %v2227_v1 = vadd.f32 %v2225_v52, %v2219_v28  ;;  %v2259_v52 = vstv %s6176_s24  ;;  %s6231_s24 = sld [smem:[#allocation8 + $0xd7]] }
 0x283   : > { %v1771_v15 = vadd.f32 %v1769_v61, %v1763_v58  ;;  %v2260_v62 = vmul.f32 %v2259_v52, %v5734_v29  ;;  %v1825_v29 = vmul.f32 %v1824_v12, %v5887_v33 }
 0x285   : > { %v1779_v59 = vadd.f32 %v6069_v13, %v1771_v15  ;;  %v2238_v13 = vstv %s6141_s20  ;;  %s6190_s20 = sld [smem:[#allocation8 + $0xf6]]  ;;  %v2440_v15 = vmul.f32 %v2439_v2, %v5995_v25 }
 0x286   : > { %v2239_v45 = vmul.f32 %v2238_v13, %v5709_v54  ;;  %v2473_v22 = vstv %s4308_s21  ;;  %s6267_s21 = sld [smem:[#allocation8 + $0x11e]] }
 0x287   : > { %v1784_v0 = vadd.f32 %v1783_v26, %v1779_v59  ;;  %1978 = vrot.lane.b32.xlu1 %v1976_v37, %s4859_s22 }
 0x288   : > { %1522 = vrot.lane.b32.xlu0 %v1520_v8, %s4859_s22  ;;  %2421 = vrot.lane.b32.xlu2 %v2419_v35, %s4860_s23 }
 0x289   : > { %v1790_v43 = vpop.permute.xlu1 %1789 }
 0x28a   : > { %v2233_v31 = vpop.permute.xlu0 %2232  ;;  %v6171_v38 = vpop.permute.xlu2 %1839  ;;  %v1792_v42 = vadd.f32 %v1790_v43, %v1784_v0  ;;  %v2017_v0 = vstv %s6187_s26  ;;  %v2004_v43 = vstv %s6200_s18  ;;  %s4246_s26 = sld [smem:[#allocation8 + $0xd6]] }
 0x28b   : > { %v2235_v17 = vadd.f32 %v2233_v31, %v2227_v1  ;;  %v2280_v37 = vstv %s6190_s20  ;;  %v2460_v1 = vstv %s6195_s14  ;;  %v2005_v18 = vmul.f32 %v2004_v43, %v6044_v46  ;;  %s6240_s20 = sld [smem:[#allocation8 + $0xbd]] }
 0x28c   : > { %v2281_v13 = vmul.f32 %v2280_v37, %v5777_v7  ;;  %v2461_v39 = vmul.f32 %v2460_v1, %v6041_v27  ;;  %s6243_s14 = sld [smem:[#allocation8 + $0xfc]] }
 0x28d   : > { %v2240_v20 = vadd.f32 %v2239_v45, %v2235_v17  ;;  %v2018_v17 = vmul.f32 %v2017_v0, %v6100_v47  ;;  %s6248_s18 = sld [smem:[#allocation8 + $0x119]] }
 0x28f   : > { %1986 = vrot.lane.b32.xlu1 %v1984_v51, %s4860_s23  ;;  %v2248_v58 = vadd.f32 %v6095_v23, %v2240_v20  ;;  %v1997_v23 = vmul.f32 %v1996_v34, %v6044_v46  ;;  %v1845_v51 = vstv %s6215_s4  ;;  %v2481_v20 = vstv %s6211_s25  ;;  %s6252_s25 = sld [smem:[#allocation8 + $0x118]] }
 0x290   : > { %1530 = vrot.lane.b32.xlu0 %v1528_v40, %s4860_s23  ;;  %2434 = vrot.lane.b32.xlu2 %v2432_v49, %s4859_s22  ;;  %v2025_v49 = vstv %s4244_s2  ;;  %s6254_s4 = sld [smem:[#allocation8 + $0x116]] }
 0x291   : > { %v2254_v54 = vpop.permute.xlu1 %2253  ;;  %s6261_s2 = sld [smem:[#allocation8 + $0xc0]] }
 0x292   : > { %v1798_v50 = vpop.permute.xlu0 %1797  ;;  %v1027_v57 = vpop.permute.xlu2 %1026  ;;  %v2256_v61 = vadd.f32 %v2254_v54, %v2248_v58  ;;  %v1846_v54 = vmul.f32 %v1845_v51, %v5913_v5  ;;  %v2474_v58 = vmul.f32 %v2473_v22, %v6097_v60 }
 0x293   : > { %v1800_v53 = vadd.f32 %v1798_v50, %v1792_v42  ;;  %1029 = vst.msk [vmem:[#allocation3 + $0x1] sm:$0xff] %vm488_vm2, %v1027_v57  ;;  %v2026_v50 = vmul.f32 %v2025_v49, %v6100_v47  ;;  %v2301_v57 = vstv %s4283_s17  ;;  %s6271_s17 = sld [smem:[#allocation8 + $0xff]] }
 0x294   : > { %v2261_v3 = vadd.f32 %v2260_v62, %v2256_v61  ;;  %v2302_v2 = vmul.f32 %v2301_v57, %v5797_v10 }
 0x295   : > { %v1805_v14 = vadd.f32 %v1804_v16, %v1800_v53  ;;  %v2482_v16 = vmul.f32 %v2481_v20, %v6097_v60 }
 0x297   : > { %2455 = vrot.lane.b32.xlu1 %v2453_v32, %s4859_s22  ;;  %v1813_v19 = vadd.f32 %v6125_v6, %v1805_v14  ;;  %v2046_v14 = vstv %s6231_s24  ;;  %v2494_v32 = vstv %s4311_s29  ;;  %s4318_s24 = sld [smem:[#allocation8 + $0x11c]] }
 0x298   : > { %1999 = vrot.lane.b32.xlu0 %v1997_v23, %s4859_s22  ;;  %2442 = vrot.lane.b32.xlu2 %v2440_v15, %s4860_s23  ;;  %v2038_v23 = vstv %s4246_s26  ;;  %v2047_v62 = vmul.f32 %v2046_v14, %v6153_v11  ;;  %v2495_v12 = vmul.f32 %v2494_v32, %v6150_v44  ;;  %s4317_s29 = sld [smem:[#allocation8 + $0x11b]] }
 0x299   : > { %v1819_v59 = vpop.permute.xlu1 %1818  ;;  %s4227_s26 = sld [smem:[#allocation8 + $0xc3]] }
 0x29a   : > { %v2267_v26 = vpop.permute.xlu0 %2266  ;;  %v1821_v8 = vadd.f32 %v1819_v59, %v1813_v19  ;;  %v6217_v35 = vpop.permute.xlu2 %2308  ;;  %v2039_v19 = vmul.f32 %v2038_v23, %v6153_v11  ;;  %v2322_v59 = vstv %s6243_s14  ;;  %s4162_s14 = sld [smem:[#allocation8 + $0x84]]  ;;  %v1441_v23 = vadd.f32 %v5751_v30, %v5882_v41 }
 0x29b   : > { %v2269_v28 = vadd.f32 %v2267_v26, %v2261_v3  ;;  %v1866_v3 = vstv %s6240_s20  ;;  %s4321_s20 = sld [smem:[#allocation8 + $0x11f]] }
 0x29c   : > { %v1826_v31 = vadd.f32 %v1825_v29, %v1821_v8  ;;  %v1867_v29 = vmul.f32 %v1866_v3, %v5953_v55 }
 0x29d   : > { %v2277_v6 = vadd.f32 %v6148_v36, %v2269_v28  ;;  %v2323_v28 = vmul.f32 %v2322_v59, %v5826_v56 }
 0x29f   : > { %v2282_v4 = vadd.f32 %v2281_v13, %v2277_v6  ;;  %2020 = vrot.lane.b32.xlu1 %v2018_v17, %s4859_s22  ;;  %v2523_v6 = vstv %s6248_s18  ;;  %v2515_v13 = vstv %s6252_s25  ;;  %s4292_s18 = sld [smem:[#allocation8 + $0x102]] }
 0x2a0   : > { %2463 = vrot.lane.b32.xlu0 %v2461_v39, %s4860_s23  ;;  %2007 = vrot.lane.b32.xlu2 %v2005_v18, %s4860_s23  ;;  %v2524_v39 = vmul.f32 %v2523_v6, %v6044_v46  ;;  %v2516_v18 = vmul.f32 %v2515_v13, %v6044_v46  ;;  %s4364_s25 = sld [smem:[#allocation12 + $0x25]]  ;;  %v1452_v3 = vstv %s4162_s14 }
 0x2a1   : > { %v2288_v45 = vpop.permute.xlu1 %2287  ;;  %v2565_v32 = vstv %s4321_s20  ;;  %s4168_s20 = sld [smem:[#allocation8 + $0x8a]] }
 0x2a2   : > { %v1832_v36 = vpop.permute.xlu0 %1831  ;;  %v6233_v40 = vpop.permute.xlu2 %1873  ;;  %s4301_s14 = sld [smem:[#allocation8 + $0x10b]] }
 0x2a3   : > { %v1834_v7 = vadd.f32 %v1832_v36, %v1826_v31  ;;  %v2502_v31 = vstv %s6254_s4  ;;  %s4295_s4 = sld [smem:[#allocation8 + $0x105]] }
 0x2a4   : > { %v2503_v56 = vmul.f32 %v2502_v31, %v6150_v44 }
 0x2a5   : > { %v1842_v42 = vadd.f32 %v6171_v38, %v1834_v7  ;;  %v2290_v38 = vadd.f32 %v2288_v45, %v2282_v4  ;;  %v1887_v4 = vstv %s6261_s2  ;;  %v2343_v7 = vstv %s6271_s17  ;;  %s6298_s2 = sld [smem:[#allocation8 + $0xc6]] }
 0x2a6   : > { %v1888_v20 = vmul.f32 %v1887_v4, %v5976_v24  ;;  %v2364_v59 = vstv %s4292_s18  ;;  %s6306_s17 = sld [smem:[#allocation8 + $0x108]] }
 0x2a7   : > { %v1847_v53 = vadd.f32 %v1846_v54, %v1842_v42  ;;  %2484 = vrot.lane.b32.xlu1 %v2482_v16, %s4860_s23  ;;  %v2557_v54 = vstv %s6267_s21  ;;  %v2544_v16 = vstv %s4318_s24  ;;  %s6300_s21 = sld [smem:[#allocation8 + $0x87]] }
 0x2a8   : > { %2028 = vrot.lane.b32.xlu0 %v2026_v50, %s4860_s23  ;;  %2476 = vrot.lane.b32.xlu2 %v2474_v58, %s4859_s22  ;;  %v2536_v50 = vstv %s4317_s29  ;;  %s4367_s24 = sld [smem:[#allocation12 + $0x28]] }
 0x2a9   : > { %v1853_v21 = vpop.permute.xlu1 %1852  ;;  %v2385_v6 = vstv %s4295_s4  ;;  %s4370_s29 = sld [smem:[#allocation12 + $0x2b]] }
 0x2aa   : > { %v2296_v34 = vpop.permute.xlu0 %2295  ;;  %v2338_v61 = vpop.permute.xlu2 %2337  ;;  %v1855_v10 = vadd.f32 %v1853_v21, %v1847_v53  ;;  %v2344_v53 = vmul.f32 %v2343_v7, %v5887_v33  ;;  %v2537_v21 = vmul.f32 %v2536_v50, %v6100_v47  ;;  %s4452_s18 = sld [smem:[#allocation12 + $0x6d]] }
 0x2ab   : > { %v2298_v52 = vadd.f32 %v2296_v34, %v2290_v38  ;;  %v2558_v38 = vmul.f32 %v2557_v54, %v6153_v11  ;;  %s4236_s4 = sld [smem:[#allocation8 + $0xcc]] }
 0x2ac   : > { %v2406_v54 = vstv %s6306_s17  ;;  %s4455_s17 = sld [smem:[#allocation12 + $0x70]] }
 0x2ad   : > { %v2303_v15 = vadd.f32 %v2302_v2, %v2298_v52 }
 0x2af   : > { %2049 = vrot.lane.b32.xlu1 %v2047_v62, %s4860_s23  ;;  %v2311_v26 = vadd.f32 %v6217_v35, %v2303_v15 }
 0x2b0   : > { %2497 = vrot.lane.b32.xlu0 %v2495_v12, %s4859_s22  ;;  %2041 = vrot.lane.b32.xlu2 %v2039_v19, %s4859_s22  ;;  %v2566_v12 = vmul.f32 %v2565_v32, %v6153_v11 }
 0x2b1   : > { %v2317_v37 = vpop.permute.xlu1 %2316 }
 0x2b2   : > { %v1861_v8 = vpop.permute.xlu0 %1860  ;;  %v2319_v0 = vadd.f32 %v2317_v37, %v2311_v26  ;;  %v1903_v43 = vpop.permute.xlu2 %1902  ;;  %v1453_v37 = vmul.f32 %v6022_v63, %v1452_v3 }
 0x2b3   : > { %v1863_v1 = vadd.f32 %v1861_v8, %v1855_v10  ;;  %v1449_v10 = vadd.f32 %v5846_v9, %v1441_v23 }
 0x2b4   : > { %v2324_v17 = vadd.f32 %v2323_v28, %v2319_v0  ;;  %v6308_v0 = vld [vmem:[#allocation3] sm:$0xff] }
 0x2b5   : > { %v1868_v35 = vadd.f32 %v1867_v29, %v1863_v1  ;;  %v2365_v29 = vmul.f32 %v2364_v59, %v5913_v5  ;;  %v2919_v1 = vstv %s4364_s25  ;;  %v1454_v9 = vadd.f32 %v1453_v37, %v1449_v10  ;;  %s4453_s25 = sld [smem:[#allocation12 + $0x6e]] }
 0x2b6   : > { %v2920_v31 = vmul.f32 %v2919_v1, %v6308_v0  ;;  %v2386_v5 = vmul.f32 %v2385_v6, %v5953_v55 }
 0x2b7   : > { %2526 = vrot.lane.b32.xlu1 %v2524_v39, %s4860_s23  ;;  %v1876_v45 = vadd.f32 %v6233_v40, %v1868_v35  ;;  %v2545_v40 = vmul.f32 %v2544_v16, %v6100_v47  ;;  %v1929_v35 = vstv %s6298_s2  ;;  %s4171_s2 = sld [smem:[#allocation8 + $0x8d]] }
 0x2b8   : > { %2518 = vrot.lane.b32.xlu0 %v2516_v18, %s4859_s22  ;;  %2505 = vrot.lane.b32.xlu2 %v2503_v56, %s4860_s23  ;;  %v1462_v18 = vadd.f32 %v5844_v48, %v1454_v9 }
 0x2b9   : > { %v1882_v36 = vpop.permute.xlu1 %1881 }
 0x2ba   : > { %v2330_v51 = vpop.permute.xlu0 %2329  ;;  %v1884_v49 = vadd.f32 %v1882_v36, %v1876_v45  ;;  %v2372_v42 = vpop.permute.xlu2 %2371  ;;  %v1930_v45 = vmul.f32 %v1929_v35, %v6041_v27 }
 0x2bb   : > { %v2332_v22 = vadd.f32 %v2330_v51, %v2324_v17  ;;  %v1473_v17 = vstv %s6300_s21  ;;  %s4304_s21 = sld [smem:[#allocation8 + $0x10e]]  ;;  %v3559_v6 = vstv %s4453_s25 }
 0x2bc   : > { %v1889_v57 = vadd.f32 %v1888_v20, %v1884_v49  ;;  %v1474_v49 = vmul.f32 %v1473_v17, %v6044_v46  ;;  %s4365_s25 = sld [smem:[#allocation12 + $0x26]] }
 0x2bd   : > { %v2340_v58 = vadd.f32 %v2338_v61, %v2332_v22  ;;  %v1908_v61 = vstv %s4227_s26  ;;  %v6318_v22 = vld [vmem:[#allocation3 + $0x1] sm:$0xff]  ;;  %s4233_s26 = sld [smem:[#allocation8 + $0xc9]] }
 0x2be   : > { %v1909_v62 = vmul.f32 %v1908_v61, %v5995_v25 }
 0x2bf   : > { %v2345_v34 = vadd.f32 %v2344_v53, %v2340_v58  ;;  %2560 = vrot.lane.b32.xlu1 %v2558_v38, %s4859_s22  ;;  %v2407_v53 = vmul.f32 %v2406_v54, %v5976_v24  ;;  %v2427_v24 = vstv %s4301_s14  ;;  %s4175_s14 = sld [smem:[#allocation11 + $0x1]] }
 0x2c0   : > { %2547 = vrot.lane.b32.xlu0 %v2545_v40, %s4860_s23  ;;  %2539 = vrot.lane.b32.xlu2 %v2537_v21, %s4859_s22 }
 0x2c1   : > { %v2351_v2 = vpop.permute.xlu1 %2350 }
 0x2c2   : > { %v1895_v52 = vpop.permute.xlu0 %1894  ;;  %v2380_v14 = vpop.permute.xlu2 %2379  ;;  %v2353_v26 = vadd.f32 %v2351_v2, %v2345_v34  ;;  %v6324_v34 = vld [vmem:[#allocation3 + $0x2] sm:$0xff]  ;;  %v2961_v2 = vstv %s4370_s29  ;;  %s4239_s29 = sld [smem:[#allocation8 + $0xcf]] }
 0x2c3   : > { %v1897_v33 = vadd.f32 %v1895_v52, %v1889_v57  ;;  %v2962_v52 = vmul.f32 %v2961_v2, %v6324_v34  ;;  %v1950_v61 = vstv %s4233_s26  ;;  %s4174_s26 = sld [smem:[#allocation9 + $0x1]] }
 0x2c4   : > { %v1951_v59 = vmul.f32 %v1950_v61, %v6097_v60 }
 0x2c5   : > { %v1905_v15 = vadd.f32 %v1903_v43, %v1897_v33  ;;  %v1494_v33 = vstv %s4168_s20  ;;  %s4408_s20 = sld [smem:[#allocation12 + $0x49]] }
 0x2c6   : > { %v1495_v10 = vmul.f32 %v1494_v33, %v6100_v47 }
 0x2c7   : > { %v1910_v19 = vadd.f32 %v1909_v62, %v1905_v15 }
 0x2c8   : > { %2568 = vrot.lane.b32.xlu2 %v2566_v12, %s4860_s23 }
 0x2c9   : > { %v1916_v30 = vpop.permute.xlu1 %1915  ;;  %v1535_v2 = vstv %s4174_s26  ;;  %s4248_s26 = sld [smem:[#allocation9 + $0x2]] }
 0x2ca   : > { %v2359_v41 = vpop.permute.xlu0 %2358  ;;  %v2393_v28 = vpop.permute.xlu2 %2392  ;;  %v1918_v63 = vadd.f32 %v1916_v30, %v1910_v19  ;;  %v3551_v30 = vstv %s4452_s18  ;;  %s4242_s18 = sld [smem:[#allocation8 + $0xd2]] }
 0x2cb   : > { %v2361_v8 = vadd.f32 %v2359_v41, %v2353_v26  ;;  %v2428_v41 = vmul.f32 %v2427_v24, %v5995_v25  ;;  %v1515_v25 = vstv %s4171_s2  ;;  %v1538_v24 = vstv %s4175_s14  ;;  %s4245_s2 = sld [smem:[#allocation8 + $0xd5]] }
 0x2cc   : > { %s4363_s14 = sld [smem:[#allocation12 + $0x24]] }
 0x2cd   : > { %v2366_v43 = vadd.f32 %v2365_v29, %v2361_v8 }
 0x2cf   : > { %v2374_v13 = vadd.f32 %v2372_v42, %v2366_v43  ;;  %v2940_v42 = vstv %s4367_s24  ;;  %s4456_s24 = sld [smem:[#allocation12 + $0x71]] }
 0x2d0   : > { %2922 = vrot.lane.b32.xlu2 %v2920_v31, %s4859_s22  ;;  %v2941_v48 = vmul.f32 %v2940_v42, %v6318_v22  ;;  %v1971_v31 = vstv %s4236_s4  ;;  %s4307_s4 = sld [smem:[#allocation8 + $0x111]] }
 0x2d1   : > { %v2382_v39 = vadd.f32 %v2380_v14, %v2374_v13  ;;  %v1924_v56 = vpop.permute.xlu1 %1923  ;;  %v3560_v13 = vmul.f32 %v3559_v6, %v6308_v0 }
 0x2d2   : > { %v1468_v4 = vpop.permute.xlu0 %1467  ;;  %v1926_v51 = vadd.f32 %v1924_v56, %v1918_v63  ;;  %v2401_v20 = vpop.permute.xlu2 %2400  ;;  %v2448_v63 = vstv %s4304_s21  ;;  %s4368_s21 = sld [smem:[#allocation12 + $0x29]] }
 0x2d3   : > { %v2387_v36 = vadd.f32 %v2386_v5, %v2382_v39  ;;  %v1470_v7 = vadd.f32 %v1468_v4, %v1462_v18 }
 0x2d4   : > { %v1931_v16 = vadd.f32 %v1930_v45, %v1926_v51  ;;  %v1516_v51 = vmul.f32 %v1515_v25, %v6153_v11 }
 0x2d5   : > { %v2395_v55 = vadd.f32 %v2393_v28, %v2387_v36  ;;  %v1475_v50 = vadd.f32 %v1474_v49, %v1470_v7  ;;  %v3552_v28 = vmul.f32 %v3551_v30, %v6308_v0  ;;  %v1972_v36 = vmul.f32 %v1971_v31, %v6150_v44 }
 0x2d6   : > { %v2449_v49 = vmul.f32 %v2448_v63, %v6041_v27 }
 0x2d7   : > { %v2403_v58 = vadd.f32 %v2401_v20, %v2395_v55  ;;  %v3572_v20 = vstv %s4455_s17  ;;  %s4310_s17 = sld [smem:[#allocation8 + $0x114]] }
 0x2d8   : > { %2943 = vrot.lane.b32.xlu2 %v2941_v48, %s4859_s22  ;;  %v2948_v63 = vstv %s4368_s21  ;;  %s4330_s21 = sld [smem:[#allocation12 + $0x7]] }
 0x2d9   : > { %v2408_v57 = vadd.f32 %v2407_v53, %v2403_v58  ;;  %v1937_v38 = vpop.permute.xlu1 %1936  ;;  %v3580_v53 = vstv %s4456_s24  ;;  %s4325_s24 = sld [smem:[#allocation12 + $0x2]] }
 0x2da   : > { %v1481_v40 = vpop.permute.xlu0 %1480  ;;  %v2414_v21 = vpop.permute.xlu2 %2413  ;;  %v1939_v14 = vadd.f32 %v1937_v38, %v1931_v16  ;;  %v3573_v16 = vmul.f32 %v3572_v20, %v6318_v22  ;;  %v1992_v38 = vstv %s4239_s29  ;;  %s6350_s29 = sld [smem:[#allocation8 + $0x117]] }
 0x2db   : > { %v1483_v32 = vadd.f32 %v1481_v40, %v1475_v50  ;;  %v2416_v23 = vadd.f32 %v2414_v21, %v2408_v57  ;;  %v3581_v57 = vmul.f32 %v3580_v53, %v6318_v22 }
 0x2e0   : > { %2964 = vrot.lane.b32.xlu2 %v2962_v52, %s4859_s22 }
 0x2e1   : > { %v1945_v15 = vpop.permute.xlu1 %1944 }
 0x2e2   : > { %v1489_v62 = vpop.permute.xlu0 %1488  ;;  %v1947_v12 = vadd.f32 %v1945_v15, %v1939_v14  ;;  %v2422_v3 = vpop.permute.xlu2 %2421 }
 0x2e3   : > { %v1491_v19 = vadd.f32 %v1489_v62, %v1483_v32  ;;  %v2424_v26 = vadd.f32 %v2422_v3, %v2416_v23  ;;  %v1993_v32 = vmul.f32 %v1992_v38, %v6044_v46  ;;  %v3235_v23 = vstv %s4408_s20  ;;  %s4249_s20 = sld [smem:[#allocation11 + $0x2]] }
 0x2e4   : > { %v1952_v37 = vadd.f32 %v1951_v59, %v1947_v12 }
 0x2e5   : > { %v1496_v29 = vadd.f32 %v1495_v10, %v1491_v19  ;;  %v2429_v8 = vadd.f32 %v2428_v41, %v2424_v26  ;;  %v3236_v19 = vmul.f32 %v3235_v23, %v6308_v0  ;;  %v2013_v26 = vstv %s4242_s18  ;;  %s4327_s18 = sld [smem:[#allocation12 + $0x4]] }
 0x2e8   : > { %3554 = vrot.lane.b32.xlu2 %v3552_v28, %s4859_s22  ;;  %v2927_v28 = vstv %s4365_s25  ;;  %s4316_s25 = sld [smem:[#allocation8 + $0x11a]] }
 0x2e9   : > { %v1958_v1 = vpop.permute.xlu1 %1957 }
 0x2ea   : > { %v1502_v9 = vpop.permute.xlu0 %1501  ;;  %v2435_v43 = vpop.permute.xlu2 %2434  ;;  %v1960_v35 = vadd.f32 %v1958_v1, %v1952_v37  ;;  %v2469_v1 = vstv %s4307_s4  ;;  %s4328_s4 = sld [smem:[#allocation12 + $0x5]] }
 0x2eb   : > { %v1504_v17 = vadd.f32 %v1502_v9, %v1496_v29  ;;  %v2437_v39 = vadd.f32 %v2435_v43, %v2429_v8  ;;  %v2014_v29 = vmul.f32 %v2013_v26, %v6100_v47  ;;  %v2470_v31 = vmul.f32 %v2469_v1, %v6097_v60 }
 0x2f0   : > { %3562 = vrot.lane.b32.xlu2 %v3560_v13, %s4860_s23  ;;  %v2928_v13 = vmul.f32 %v2927_v28, %v6308_v0 }
 0x2f1   : > { %v1966_v5 = vpop.permute.xlu1 %1965 }
 0x2f2   : > { %v1510_v18 = vpop.permute.xlu0 %1509  ;;  %v1968_v56 = vadd.f32 %v1966_v5, %v1960_v35  ;;  %v2443_v45 = vpop.permute.xlu2 %2442  ;;  %v2490_v5 = vstv %s4310_s17  ;;  %s4322_s17 = sld [smem:[#allocation9 + $0x3]] }
 0x2f3   : > { %v1512_v4 = vadd.f32 %v1510_v18, %v1504_v17  ;;  %v2445_v7 = vadd.f32 %v2443_v45, %v2437_v39  ;;  %v2034_v39 = vstv %s4245_s2  ;;  %s4319_s2 = sld [smem:[#allocation8 + $0x11d]] }
 0x2f4   : > { %v1973_v42 = vadd.f32 %v1972_v36, %v1968_v56  ;;  %v2949_v36 = vmul.f32 %v2948_v63, %v6318_v22  ;;  %v2035_v60 = vmul.f32 %v2034_v39, %v6153_v11 }
 0x2f5   : > { %v1517_v54 = vadd.f32 %v1516_v51, %v1512_v4  ;;  %v2450_v55 = vadd.f32 %v2449_v49, %v2445_v7  ;;  %v2491_v49 = vmul.f32 %v2490_v5, %v6150_v44  ;;  %v2057_v44 = vstv %s4249_s20  ;;  %s4324_s20 = sld [smem:[#allocation12 + $0x1]] }
 0x2f8   : > { %3575 = vrot.lane.b32.xlu2 %v3573_v16, %s4859_s22 }
 0x2f9   : > { %v1979_v50 = vpop.permute.xlu1 %1978 }
 0x2fa   : > { %v1523_v58 = vpop.permute.xlu0 %1522  ;;  %v2008_v48 = vpop.permute.xlu2 %2007  ;;  %v1981_v40 = vadd.f32 %v1979_v50, %v1973_v42  ;;  %v2054_v50 = vstv %s4248_s26  ;;  %s4331_s26 = sld [smem:[#allocation12 + $0x8]] }
 0x2fb   : > { %v1525_v27 = vadd.f32 %v1523_v58, %v1517_v54 }
 0x300   : > { %3583 = vrot.lane.b32.xlu2 %v3581_v57, %s4860_s23  ;;  %v2511_v57 = vstv %s6350_s29  ;;  %s4451_s29 = sld [smem:[#allocation12 + $0x6c]] }
 0x301   : > { %v1987_v21 = vpop.permute.xlu1 %1986 }
 0x302   : > { %v1531_v52 = vpop.permute.xlu0 %1530  ;;  %v1989_v61 = vadd.f32 %v1987_v21, %v1981_v40  ;;  %v2477_v14 = vpop.permute.xlu2 %2476 }
 0x303   : > { %v1533_v33 = vadd.f32 %v1531_v52, %v1525_v27  ;;  %v4638_v52 = vld [vmem:[#allocation2 + $0x70] sm:$0xff] }
 0x304   : > { %v1994_v62 = vadd.f32 %v1993_v32, %v1989_v61  ;;  %v2512_v61 = vmul.f32 %v4638_v52, %v2511_v57  ;;  %v2915_v32 = vstv %s4363_s14  ;;  %s4458_s14 = sld [smem:[#allocation12 + $0x73]] }
 0x305   : > { %v1536_v15 = vmul.f32 %v1535_v2, %v1533_v33 }
 0x307   : > { %v1539_v12 = vadd.f32 %v1538_v24, %v1536_v15  ;;  %v2617_v24 = vstv %s4327_s18  ;;  %s4454_s18 = sld [smem:[#allocation12 + $0x6f]] }
 0x308   : > { %3238 = vrot.lane.b32.xlu2 %v3236_v19, %s4859_s22  ;;  %v2532_v19 = vstv %s4316_s25  ;;  %s4371_s25 = sld [smem:[#allocation12 + $0x2c]] }
 0x309   : > { %vm1540_vm4 = vcmp.gt.f32.partialorder %v1539_v12, 0.0  ;;  %v1541_v3 = vmul.f32 0.01, %v1539_v12  ;;  %v2456_v59 = vpop.permute.xlu1 %2455 }
 0x30a   : > { %v2000_v10 = vpop.permute.xlu0 %1999  ;;  %v2042_v41 = vpop.permute.xlu2 %2041  ;;  %v2458_v9 = vadd.f32 %v2456_v59, %v2450_v55  ;;  %v2604_v55 = vstv %s4325_s24  ;;  %s4323_s24 = sld [smem:[#allocation11 + $0x3]] }
 0x30b   : > { %v2002_v30 = vadd.f32 %v2000_v10, %v1994_v62  ;;  %v1542_v37 = vsel %vm1540_vm4, %v1539_v12, %v1541_v3  ;;  %v2605_v53 = vmul.f32 %v6308_v0, %v2604_v55  ;;  %v2916_v62 = vmul.f32 %v2915_v32, %v6308_v0 }
 0x30c   : > { %1544 = vrot.lane.b32.xlu0 %v1542_v37, %s4857_s1  ;;  %v2618_v12 = vmul.f32 %v6318_v22, %v2617_v24  ;;  %v2533_v37 = vmul.f32 %v2532_v19, %v6100_v47 }
 0x30d   : > { %v2010_v46 = vadd.f32 %v2008_v48, %v2002_v30 }
 0x30e   : > { %v2969_v57 = vstv %s4371_s25  ;;  %s4462_s25 = sld [smem:[#allocation12 + $0x77]] }
 0x30f   : > { %v2015_v8 = vadd.f32 %v2014_v29, %v2010_v46  ;;  %v2625_v29 = vstv %s4328_s4  ;;  %s4409_s4 = sld [smem:[#allocation12 + $0x4a]] }
 0x310   : > { %v2576_v5 = vstv %s4323_s24  ;;  %s6389_s24 = sld [smem:[#allocation12 + $0x2a]] }
 0x311   : > { %v2021_v43 = vpop.permute.xlu1 %2020 }
 0x312   : > { %v2464_v6 = vpop.permute.xlu0 %2463  ;;  %v2506_v35 = vpop.permute.xlu2 %2505  ;;  %v2023_v18 = vadd.f32 %v2021_v43, %v2015_v8  ;;  %v2553_v8 = vstv %s4319_s2  ;;  %s4379_s2 = sld [smem:[#allocation12 + $0x34]] }
 0x313   : > { %v2466_v25 = vadd.f32 %v2464_v6, %v2458_v9  ;;  %v2626_v9 = vmul.f32 %v6318_v22, %v2625_v29  ;;  %v2554_v43 = vmul.f32 %v2553_v8, %v6153_v11 }
 0x314   : > { %2930 = vrot.lane.b32.xlu0 %v2928_v13, %s4860_s23 }
 0x315   : > { %v2471_v17 = vadd.f32 %v2470_v31, %v2466_v25 }
 0x317   : > { %v2479_v56 = vadd.f32 %v2477_v14, %v2471_v17  ;;  %v2573_v17 = vstv %s4322_s17  ;;  %s4373_s17 = sld [smem:[#allocation12 + $0x2e]] }
 0x318   : > { %v3024_v32 = vstv %s4379_s2  ;;  %s4414_s2 = sld [smem:[#allocation12 + $0x4f]] }
 0x319   : > { %v2485_v4 = vpop.permute.xlu1 %2484 }
 0x31a   : > { %v2029_v45 = vpop.permute.xlu0 %2028  ;;  %v2487_v51 = vadd.f32 %v2485_v4, %v2479_v56  ;;  %v2540_v20 = vpop.permute.xlu2 %2539 }
 0x31b   : > { %v2031_v7 = vadd.f32 %v2029_v45, %v2023_v18  ;;  %v3547_v45 = vstv %s4451_s29  ;;  %s6391_s29 = sld [smem:[#allocation12 + $0xb]] }
 0x31c   : > { %2951 = vrot.lane.b32.xlu0 %v2949_v36, %s4860_s23  ;;  %v2492_v54 = vadd.f32 %v2491_v49, %v2487_v51  ;;  %v2646_v36 = vstv %s4331_s26  ;;  %s4336_s26 = sld [smem:[#allocation12 + $0xd]] }
 0x31d   : > { %v2036_v42 = vadd.f32 %v2035_v60, %v2031_v7  ;;  %v3548_v60 = vmul.f32 %v3547_v45, %v6308_v0  ;;  %v2647_v7 = vmul.f32 %v6324_v34, %v2646_v36 }
 0x31f   : > { %v2044_v16 = vadd.f32 %v2042_v41, %v2036_v42  ;;  %v2596_v42 = vstv %s4324_s20  ;;  %s4374_s20 = sld [smem:[#allocation12 + $0x2f]] }
 0x320   : > { %v2597_v55 = vmul.f32 %v6308_v0, %v2596_v42 }
 0x321   : > { %v2050_v58 = vpop.permute.xlu1 %2049 }
 0x322   : > { %v2498_v48 = vpop.permute.xlu0 %2497  ;;  %v2052_v38 = vadd.f32 %v2050_v58, %v2044_v16  ;;  %v2569_v27 = vpop.permute.xlu2 %2568  ;;  %v3568_v16 = vstv %s4454_s18  ;;  %s4461_s18 = sld [smem:[#allocation12 + $0x76]] }
 0x323   : > { %v2500_v40 = vadd.f32 %v2498_v48, %v2492_v54  ;;  %v3593_v54 = vstv %s4458_s14  ;;  %s6405_s14 = sld [smem:[#allocation12 + $0x72]] }
 0x324   : > { %2607 = vrot.lane.b32.xlu0 %v2605_v53, %s4860_s23  ;;  %v2055_v21 = vmul.f32 %v2054_v50, %v2052_v38  ;;  %v3594_v50 = vmul.f32 %v3593_v54, %v6324_v34  ;;  %v3569_v53 = vmul.f32 %v3568_v16, %v6318_v22 }
 0x325   : > { %v2508_v2 = vadd.f32 %v2506_v35, %v2500_v40  ;;  %v2638_v35 = vstv %s4330_s21  ;;  %v3243_v40 = vstv %s4409_s4  ;;  %s4380_s21 = sld [smem:[#allocation12 + $0x35]] }
 0x326   : > { %v2058_v33 = vadd.f32 %v2057_v44, %v2055_v21  ;;  %v2639_v39 = vmul.f32 %v6324_v34, %v2638_v35  ;;  %v3244_v44 = vmul.f32 %v3243_v40, %v6308_v0  ;;  %s4376_s4 = sld [smem:[#allocation12 + $0x31]]  ;;  %v3622_v35 = vstv %s4462_s25 }
 0x327   : > { %v2513_v14 = vadd.f32 %v2512_v61, %v2508_v2  ;;  %s4465_s25 = sld [smem:[#allocation12 + $0x7a]] }
 0x328   : > { %vm2059_vm5 = vcmp.gt.f32.partialorder %v2058_v33, 0.0  ;;  %v2060_v23 = vmul.f32 0.01, %v2058_v33 }
 0x329   : > { %v2527_v26 = vpop.permute.xlu1 %2526 }
 0x32a   : > { %v2519_v15 = vpop.permute.xlu0 %2518  ;;  %v2923_v59 = vpop.permute.xlu2 %2922  ;;  %v2061_v10 = vsel %vm2059_vm5, %v2058_v33, %v2060_v23  ;;  %v2982_v23 = vstv %s4373_s17  ;;  %s4385_s17 = sld [smem:[#allocation12 + $0x3a]] }
 0x32b   : > { %v2521_v3 = vadd.f32 %v2519_v15, %v2513_v14  ;;  %v6361_v30 = vadd.f32 %v2923_v59, %v2916_v62  ;;  %2063 = vrot.lane.b32.xlu1 %v2061_v10, %s4857_s1  ;;  %v3032_v24 = vstv %s4380_s21  ;;  %s4377_s21 = sld [smem:[#allocation12 + $0x32]] }
 0x32c   : > { %2620 = vrot.lane.b32.xlu0 %v2618_v12, %s4859_s22 }
 0x32d   : > { %v2529_v41 = vadd.f32 %v2527_v26, %v2521_v3 }
 0x32f   : > { %v2534_v46 = vadd.f32 %v2533_v37, %v2529_v41  ;;  %v2957_v37 = vstv %s6389_s24  ;;  %s4383_s24 = sld [smem:[#allocation12 + $0x38]] }
 0x331   : > { %v2542_v28 = vadd.f32 %v2540_v20, %v2534_v46  ;;  %v2561_v25 = vpop.permute.xlu1 %2560  ;;  %v2667_v46 = vstv %s6391_s29  ;;  %s4333_s29 = sld [smem:[#allocation12 + $0xa]] }
 0x332   : > { %v2548_v1 = vpop.permute.xlu0 %2547  ;;  %v6368_v13 = vpop.permute.xlu2 %2943 }
 0x333   : > { %v2550_v6 = vadd.f32 %v2548_v1, %v2542_v28  ;;  %v2990_v28 = vstv %s4374_s20  ;;  %s4339_s20 = sld [smem:[#allocation12 + $0x10]] }
 0x334   : > { %2628 = vrot.lane.b32.xlu0 %v2626_v9, %s4860_s23  ;;  %v2958_v9 = vmul.f32 %v2957_v37, %v6324_v34 }
 0x335   : > { %v2555_v31 = vadd.f32 %v2554_v43, %v2550_v6  ;;  %v3053_v16 = vstv %s4383_s24  ;;  %s4382_s24 = sld [smem:[#allocation12 + $0x37]] }
 0x337   : > { %v2563_v47 = vadd.f32 %v2561_v25, %v2555_v31 }
 0x339   : > { %v2571_v63 = vadd.f32 %v2569_v27, %v2563_v47  ;;  %v2970_v27 = vmul.f32 %v2969_v57, %v6324_v34 }
 0x33a   : > { %v6372_v56 = vpop.permute.xlu2 %2964 }
 0x33b   : > { %v2574_v18 = vmul.f32 %v2573_v17, %v2571_v63  ;;  %v3003_v17 = vstv %s4376_s4  ;;  %v3589_v63 = vstv %s6405_s14  ;;  %s4459_s14 = sld [smem:[#allocation12 + $0x74]] }
 0x33c   : > { %2641 = vrot.lane.b32.xlu0 %v2639_v39, %s4859_s22  ;;  %s4411_s4 = sld [smem:[#allocation12 + $0x4c]] }
 0x33d   : > { %v2577_v11 = vadd.f32 %v2576_v5, %v2574_v18 }
 0x33f   : > { %vm2578_vm6 = vcmp.gt.f32.partialorder %v2577_v11, 0.0  ;;  %v2579_v4 = vmul.f32 0.01, %v2577_v11 }
 0x341   : > { %v2580_v51 = vsel %vm2578_vm6, %v2577_v11, %v2579_v4  ;;  %v3590_v4 = vmul.f32 %v3589_v63, %v6324_v34 }
 0x342   : > { %2582 = vrot.lane.b32.xlu1 %v2580_v51, %s4857_s1  ;;  %v3555_v20 = vpop.permute.xlu2 %3554  ;;  %s4366_s1 = sld [smem:[#allocation12 + $0x27]]  ;;  %v3277_v51 = vstv %s4414_s2 }
 0x343   : > { %v3557_v49 = vadd.f32 %v3555_v20, %v3548_v60  ;;  %v3011_v60 = vstv %s4377_s21  ;;  %v3278_v42 = vmul.f32 %v3277_v51, %v6324_v34  ;;  %s4326_s2 = sld [smem:[#allocation12 + $0x3]] }
 0x344   : > { %2649 = vrot.lane.b32.xlu0 %v2647_v7, %s4860_s23  ;;  %s6462_s21 = sld [smem:[#allocation12 + $0x53]] }
 0x348   : > { %v2936_v14 = vstv %s4366_s1  ;;  %s4412_s1 = sld [smem:[#allocation12 + $0x4d]] }
 0x349   : > { %v2937_v15 = vmul.f32 %v2936_v14, %v6318_v22 }
 0x34a   : > { %2599 = vrot.lane.b32.xlu1 %v2597_v55, %s4859_s22  ;;  %v3563_v58 = vpop.permute.xlu2 %3562  ;;  %v3066_v55 = vstv %s4385_s17  ;;  %s4417_s17 = sld [smem:[#allocation12 + $0x52]] }
 0x34b   : > { %v3565_v48 = vadd.f32 %v3563_v58, %v3557_v49 }
 0x34c   : > { %3596 = vrot.lane.b32.xlu0 %v3594_v50, %s4859_s22  ;;  %v2659_v50 = vstv %s4333_s29  ;;  %s4407_s29 = sld [smem:[#allocation12 + $0x48]] }
 0x34d   : > { %v3570_v38 = vadd.f32 %v3569_v53, %v3565_v48 }
 0x34e   : > { %v3264_v36 = vstv %s4412_s1  ;;  %s2590_s1 = sld [smem:[#allocation12]] }
 0x34f   : > { %v3265_v49 = vmul.f32 %v3264_v36, %v6318_v22 }
 0x352   : > { %2972 = vrot.lane.b32.xlu1 %v2970_v27, %s4860_s23  ;;  %v3576_v21 = vpop.permute.xlu2 %3575 }
 0x353   : > { %v3578_v2 = vadd.f32 %v3576_v21, %v3570_v38  ;;  %v3601_v21 = vstv %s4459_s14  ;;  %s6479_s14 = sld [smem:[#allocation12 + $0xe]] }
 0x354   : > { %3246 = vrot.lane.b32.xlu0 %v3244_v44, %s4860_s23  ;;  %v2701_v44 = vstv %s4339_s20  ;;  %s6477_s20 = sld [smem:[#allocation12 + $0x3d]] }
 0x35a   : > { %v3584_v52 = vpop.permute.xlu2 %3583 }
 0x35b   : > { %v3586_v61 = vadd.f32 %v3584_v52, %v3578_v2 }
 0x35d   : > { %v6431_v45 = vadd.f32 %v3590_v4, %v3586_v61 }
 0x37e   : > { %v1545_v33 = vpop.permute.xlu0 %1544 }
 0x37f   : > { %1548 = vst.msk [vmem:[#allocation3 + $0x11] sm:$0xff] %vm488_vm2, %v1545_v33  ;;  %v3602_v33 = vmul.f32 %v3601_v21, %v6324_v34 }
 0x386   : > { %v2931_v62 = vpop.permute.xlu0 %2930  ;;  %v6394_v12 = vld [vmem:[#allocation3 + $0x12] sm:$0xff] }
 0x387   : > { %v6396_v19 = vld [vmem:[#allocation3 + $0x10] sm:$0xff]  ;;  %v2933_v3 = vadd.f32 %v2931_v62, %v6361_v30  ;;  %v3025_v59 = vmul.f32 %v3024_v32, %v6394_v12  ;;  %v3033_v10 = vmul.f32 %v3032_v24, %v6394_v12  ;;  %v2680_v30 = vstv %s4336_s26  ;;  %s4340_s26 = sld [smem:[#allocation12 + $0x11]] }
 0x388   : > { %v2983_v26 = vmul.f32 %v2982_v23, %v6396_v19  ;;  %v6409_v29 = vld [vmem:[#allocation3 + $0x11] sm:$0xff]  ;;  %v2668_v6 = vmul.f32 %v6396_v19, %v2667_v46  ;;  %v2991_v25 = vmul.f32 %v2990_v28, %v6396_v19  ;;  %v3623_v18 = vmul.f32 %v3622_v35, %v6396_v19 }
 0x389   : > { %v2938_v41 = vadd.f32 %v2937_v15, %v2933_v3  ;;  %3027 = vrot.lane.b32.xlu2 %v3025_v59, %s4859_s22  ;;  %3035 = vrot.lane.b32.xlu0 %v3033_v10, %s4860_s23  ;;  %v2681_v31 = vmul.f32 %v2680_v30, %v6409_v29  ;;  %v3004_v11 = vmul.f32 %v3003_v17, %v6409_v29  ;;  %v3643_v24 = vstv %s4465_s25  ;;  %s4343_s25 = sld [smem:[#allocation12 + $0x14]] }
 0x38a   : > { %2985 = vrot.lane.b32.xlu1 %v2983_v26, %s4859_s22  ;;  %v3012_v54 = vmul.f32 %v3011_v60, %v6409_v29  ;;  %v2660_v40 = vmul.f32 %v6396_v19, %v2659_v50  ;;  %v2702_v61 = vmul.f32 %v6394_v12, %v2701_v44  ;;  %v3256_v23 = vstv %s4411_s4  ;;  %s4464_s4 = sld [smem:[#allocation12 + $0x79]] }
 0x38b   : > { %v2946_v8 = vadd.f32 %v6368_v13, %v2938_v41  ;;  %v3614_v13 = vstv %s4461_s18  ;;  %s4467_s18 = sld [smem:[#allocation12 + $0x7c]]  ;;  %v3644_v3 = vmul.f32 %v3643_v24, %v6409_v29  ;;  %v3257_v59 = vmul.f32 %v3256_v23, %v6318_v22 }
 0x38c   : > { %v3615_v5 = vmul.f32 %v3614_v13, %v6396_v19  ;;  %v2592_v10 = vstv %s2590_s1  ;;  %v2613_v41 = vstv %s4326_s2  ;;  %v3306_v46 = vstv %s6462_s21  ;;  %s4471_s1 = sld [smem:[#allocation12 + $0x80]] }
 0x38d   : > { %v2709_v27 = vstv %s4340_s26  ;;  %v2593_v26 = vmul.f32 %v6308_v0, %v2592_v10  ;;  %s6474_s26 = sld [smem:[#allocation12 + $0x3e]]  ;;  %v3298_v30 = vstv %s4417_s17  ;;  %v3045_v28 = vstv %s4382_s24 }
 0x38e   : > { %v2952_v1 = vpop.permute.xlu0 %2951  ;;  %v2710_v52 = vmul.f32 %v6394_v12, %v2709_v27  ;;  %v3231_v13 = vstv %s4407_s29  ;;  %s4470_s2 = sld [smem:[#allocation12 + $0x7f]] }
 0x38f   : > { %v2954_v43 = vadd.f32 %v2952_v1, %v2946_v8  ;;  %v2614_v1 = vmul.f32 %v6318_v22, %v2613_v41  ;;  %v3239_v22 = vpop.permute.xlu2 %3238  ;;  %v3232_v63 = vmul.f32 %v3231_v13, %v6308_v0  ;;  %s4415_s21 = sld [smem:[#allocation12 + $0x50]] }
 0x390   : > { %s4423_s17 = sld [smem:[#allocation12 + $0x58]] }
 0x391   : > { %v6416_v47 = vadd.f32 %v2958_v9, %v2954_v43  ;;  %2670 = vrot.lane.b32.xlu2 %v2668_v6, %s4860_s23  ;;  %2683 = vrot.lane.b32.xlu0 %v2681_v31, %s4859_s22  ;;  %v3656_v32 = vstv %s4467_s18  ;;  %v3307_v31 = vmul.f32 %v3306_v46, %v6396_v19  ;;  %s4345_s18 = sld [smem:[#allocation12 + $0x16]]  ;;  %v3241_v36 = vadd.f32 %v3239_v22, %v3232_v63 }
 0x392   : > { %2993 = vrot.lane.b32.xlu1 %v2991_v25, %s4860_s23  ;;  %v3657_v62 = vmul.f32 %v3656_v32, %v6394_v12  ;;  %v3299_v25 = vmul.f32 %v3298_v30, %v6396_v19  ;;  %s4421_s24 = sld [smem:[#allocation12 + $0x56]] }
 0x393   : > { %v3095_v4 = vstv %s6474_s26  ;;  %s4386_s29 = sld [smem:[#allocation12 + $0x3b]] }
 0x394   : > { %s4394_s26 = sld [smem:[#allocation12 + $0x43]] }
 0x396   : > { %v6422_v39 = vpop.permute.xlu0 %2607 }
 0x399   : > { %3617 = vrot.lane.b32.xlu2 %v3615_v5, %s4859_s22  ;;  %3625 = vrot.lane.b32.xlu0 %v3623_v18, %s4860_s23  ;;  %v2967_v5 = vadd.f32 %v6372_v56, %v6416_v47 }
 0x39a   : > { %3006 = vrot.lane.b32.xlu1 %v3004_v11, %s4859_s22 }
 0x39d   : > { %v2064_v20 = vpop.permute.xlu1 %2063 }
 0x39e   : > { %v6433_v7 = vpop.permute.xlu0 %2620  ;;  %2067 = vst.msk [vmem:[#allocation3 + $0x21] sm:$0xff] %vm488_vm2, %v2064_v20  ;;  %v2688_v20 = vstv %s6479_s14  ;;  %s4342_s14 = sld [smem:[#allocation12 + $0x13]] }
 0x3a1   : > { %3267 = vrot.lane.b32.xlu2 %v3265_v49, %s4860_s23  ;;  %3280 = vrot.lane.b32.xlu0 %v3278_v42, %s4859_s22  ;;  %v2689_v49 = vmul.f32 %v2688_v20, %v6409_v29  ;;  %v2743_v42 = vstv %s4345_s18  ;;  %s4349_s18 = sld [smem:[#allocation12 + $0x1a]] }
 0x3a2   : > { %3014 = vrot.lane.b32.xlu1 %v3012_v54, %s4860_s23  ;;  %v2730_v54 = vstv %s4343_s25  ;;  %s4348_s25 = sld [smem:[#allocation12 + $0x19]] }
 0x3a5   : > { %v6444_v48 = vld [vmem:[#allocation3 + $0x21] sm:$0xff] }
 0x3a6   : > { %v6442_v58 = vpop.permute.xlu0 %2628  ;;  %v6446_v53 = vld [vmem:[#allocation3 + $0x20] sm:$0xff]  ;;  %v3067_v57 = vmul.f32 %v3066_v55, %v6444_v48  ;;  %v3635_v55 = vstv %s4464_s4  ;;  %s4468_s4 = sld [smem:[#allocation12 + $0x7d]] }
 0x3a7   : > { %v3054_v38 = vmul.f32 %v3053_v16, %v6446_v53  ;;  %v3046_v35 = vmul.f32 %v3045_v28, %v6446_v53  ;;  %v6496_v11 = vld [vmem:[#allocation3 + $0x22] sm:$0xff]  ;;  %v2744_v16 = vmul.f32 %v6444_v48, %v2743_v42  ;;  %v2731_v50 = vmul.f32 %v6446_v53, %v2730_v54 }
 0x3a8   : > { %v3096_v56 = vmul.f32 %v3095_v4, %v6496_v11  ;;  %v2772_v30 = vstv %s4349_s18  ;;  %s6565_s18 = sld [smem:[#allocation12 + $0x47]] }
 0x3a9   : > { %3069 = vrot.lane.b32.xlu0 %v3067_v57, %s4859_s22  ;;  %3056 = vrot.lane.b32.xlu2 %v3054_v38, %s4860_s23  ;;  %v3685_v57 = vstv %s4471_s1  ;;  %v3677_v38 = vstv %s4470_s2  ;;  %s4329_s1 = sld [smem:[#allocation12 + $0x6]] }
 0x3aa   : > { %2662 = vrot.lane.b32.xlu1 %v2660_v40, %s4859_s22  ;;  %v3285_v40 = vstv %s4415_s21  ;;  %v3686_v27 = vmul.f32 %v3685_v57, %v6446_v53  ;;  %v3678_v44 = vmul.f32 %v3677_v38, %v6446_v53  ;;  %s4476_s2 = sld [smem:[#allocation12 + $0x85]] }
 0x3ab   : > { %v3286_v21 = vmul.f32 %v3285_v40, %v6324_v34  ;;  %s4474_s21 = sld [smem:[#allocation12 + $0x83]] }
 0x3ae   : > { %v6454_v2 = vpop.permute.xlu0 %2641  ;;  %v3158_v38 = vstv %s6565_s18  ;;  %s6608_s18 = sld [smem:[#allocation12 + $0xc]] }
 0x3af   : > { %v2634_v22 = vstv %s4329_s1  ;;  %s4375_s1 = sld [smem:[#allocation12 + $0x30]] }
 0x3b1   : > { %2712 = vrot.lane.b32.xlu0 %v2710_v52, %s4860_s23  ;;  %2704 = vrot.lane.b32.xlu2 %v2702_v61, %s4859_s22  ;;  %v3340_v52 = vstv %s4423_s17  ;;  %v3327_v61 = vstv %s4421_s24  ;;  %s4420_s17 = sld [smem:[#allocation12 + $0x55]] }
 0x3b2   : > { %3604 = vrot.lane.b32.xlu1 %v3602_v33, %s4860_s23  ;;  %v3074_v33 = vstv %s4386_s29  ;;  %v3328_v32 = vmul.f32 %v3327_v61, %v6409_v29  ;;  %s4372_s24 = sld [smem:[#allocation12 + $0x2d]]  ;;  %v3706_v13 = vstv %s4474_s21 }
 0x3b3   : > { %v3075_v24 = vmul.f32 %v3074_v33, %v6444_v48  ;;  %s4427_s29 = sld [smem:[#allocation12 + $0x5c]] }
 0x3b4   : > { %v2583_v14 = vpop.permute.xlu1 %2582  ;;  %s4352_s21 = sld [smem:[#allocation12 + $0x1d]] }
 0x3b5   : > { %2586 = vst.msk [vmem:[#allocation3 + $0x31] sm:$0xff] %vm488_vm2, %v2583_v14  ;;  %v3341_v14 = vmul.f32 %v3340_v52, %v6394_v12  ;;  %v2999_v61 = vstv %s4375_s1  ;;  %s4395_s1 = sld [smem:[#allocation12 + $0x44]] }
 0x3b6   : > { %v6465_v15 = vpop.permute.xlu0 %2649 }
 0x3b9   : > { %3659 = vrot.lane.b32.xlu0 %v3657_v62, %s4859_s22  ;;  %3646 = vrot.lane.b32.xlu2 %v3644_v3, %s4860_s23  ;;  %v3129_v3 = vstv %s4394_s26  ;;  %s4426_s26 = sld [smem:[#allocation12 + $0x5b]] }
 0x3ba   : > { %3259 = vrot.lane.b32.xlu1 %v3257_v59, %s4859_s22 }
 0x3bc   : > { %v2600_v37 = vpop.permute.xlu1 %2599  ;;  %v6534_v62 = vld [vmem:[#allocation3 + $0x31] sm:$0xff] }
 0x3bd   : > { %v2602_v8 = vadd.f32 %v2600_v37, %v2593_v26  ;;  %v6536_v59 = vld [vmem:[#allocation3 + $0x30] sm:$0xff]  ;;  %v2722_v26 = vstv %s4342_s14  ;;  %v3130_v41 = vmul.f32 %v3129_v3, %v6534_v62  ;;  %s4410_s14 = sld [smem:[#allocation12 + $0x4b]]  ;;  %v3000_v3 = vmul.f32 %v2999_v61, %v6409_v29 }
 0x3be   : > { %v3597_v9 = vpop.permute.xlu0 %3596  ;;  %v2723_v46 = vmul.f32 %v6446_v53, %v2722_v26  ;;  %v6580_v57 = vld [vmem:[#allocation3 + $0x32] sm:$0xff] }
 0x3bf   : > { %v2610_v43 = vadd.f32 %v6422_v39, %v2602_v8  ;;  %v6484_v6 = vadd.f32 %v3597_v9, %v6431_v45  ;;  %v3087_v45 = vstv %s6477_s20  ;;  %s4392_s20 = sld [smem:[#allocation12 + $0x41]]  ;;  %v2764_v8 = vstv %s4348_s25 }
 0x3c0   : > { %v3088_v47 = vmul.f32 %v3087_v45, %v6496_v11  ;;  %v2773_v9 = vmul.f32 %v6496_v11, %v2772_v30  ;;  %v2635_v45 = vmul.f32 %v6324_v34, %v2634_v22  ;;  %s4397_s25 = sld [smem:[#allocation12 + $0x46]] }
 0x3c1   : > { %v2615_v17 = vadd.f32 %v2614_v1, %v2610_v43  ;;  %3309 = vrot.lane.b32.xlu0 %v3307_v31, %s4860_s23  ;;  %3301 = vrot.lane.b32.xlu2 %v3299_v25, %s4859_s22  ;;  %v3664_v1 = vstv %s4468_s4  ;;  %v2765_v43 = vmul.f32 %v6496_v11, %v2764_v8  ;;  %v3719_v25 = vstv %s4476_s2  ;;  %s4346_s4 = sld [smem:[#allocation12 + $0x17]] }
 0x3c2   : > { %3048 = vrot.lane.b32.xlu1 %v3046_v35, %s4859_s22  ;;  %v3665_v31 = vmul.f32 %v3664_v1, %v6394_v12  ;;  %v3319_v35 = vstv %s4420_s17  ;;  %s6578_s2 = sld [smem:[#allocation12 + $0x1f]] }
 0x3c3   : > { %v2623_v39 = vadd.f32 %v6433_v7, %v2615_v17  ;;  %v2978_v17 = vstv %s4372_s24  ;;  %s4473_s17 = sld [smem:[#allocation12 + $0x82]] }
 0x3c4   : > { %v2973_v18 = vpop.permute.xlu1 %2972  ;;  %v2979_v4 = vmul.f32 %v2978_v17, %v6396_v19  ;;  %s4378_s24 = sld [smem:[#allocation12 + $0x33]] }
 0x3c5   : > { %v6501_v51 = vadd.f32 %v6442_v58, %v2623_v39  ;;  %v6503_v60 = vadd.f32 %v2973_v18, %v2967_v5  ;;  %v3636_v58 = vmul.f32 %v3635_v55, %v6409_v29  ;;  %v3116_v10 = vstv %s4392_s20  ;;  %s4391_s20 = sld [smem:[#allocation12 + $0x40]] }
 0x3c6   : > { %v3247_v0 = vpop.permute.xlu0 %3246  ;;  %v3117_v37 = vmul.f32 %v3116_v10, %v6536_v59  ;;  %v3720_v39 = vmul.f32 %v3719_v25, %v6496_v11  ;;  %v3707_v5 = vmul.f32 %v3706_v13, %v6444_v48  ;;  %v3320_v18 = vmul.f32 %v3319_v35, %v6409_v29 }
 0x3c7   : > { %v6506_v7 = vadd.f32 %v3247_v0, %v3241_v36  ;;  %v2980_v20 = vadd.f32 %v2979_v4, %v6503_v60  ;;  %v2636_v0 = vadd.f32 %v2635_v45, %v6501_v51  ;;  %v3252_v51 = vstv %s4410_s14  ;;  %s6600_s14 = sld [smem:[#allocation12 + $0x9]] }
 0x3c8   : > { %v3150_v40 = vstv %s4397_s25  ;;  %v2751_v52 = vstv %s4346_s4  ;;  %s6613_s25 = sld [smem:[#allocation12 + $0x22]] }
 0x3c9   : > { %3098 = vrot.lane.b32.xlu0 %v3096_v56, %s4860_s23  ;;  %3090 = vrot.lane.b32.xlu2 %v3088_v47, %s4859_s22  ;;  %v3369_v47 = vstv %s4427_s29  ;;  %s6597_s29 = sld [smem:[#allocation12 + $0x20]]  ;;  %v3698_v8 = vstv %s4473_s17  ;;  %v2644_v13 = vadd.f32 %v6454_v2, %v2636_v0 }
 0x3ca   : > { %2691 = vrot.lane.b32.xlu1 %v2689_v49, %s4860_s23  ;;  %v3361_v49 = vstv %s4426_s26  ;;  %v3370_v34 = vmul.f32 %v3369_v47, %v6446_v53  ;;  %s4479_s26 = sld [smem:[#allocation12 + $0x88]] }
 0x3cb   : > { %v3108_v54 = vstv %s4391_s20  ;;  %v3362_v55 = vmul.f32 %v3361_v49, %v6446_v53  ;;  %s4424_s20 = sld [smem:[#allocation12 + $0x59]]  ;;  %v2652_v0 = vadd.f32 %v6465_v15, %v2644_v13 }
 0x3cc   : > { %s6616_s4 = sld [smem:[#allocation12 + $0x89]] }
 0x3cd   : > { %v2655_v45 = vstv %s6600_s14  ;;  %s6642_s17 = sld [smem:[#allocation12 + $0x8b]] }
 0x3ce   : > { %s4477_s14 = sld [smem:[#allocation12 + $0x86]] }
 0x3cf   : > { %v2814_v17 = vstv %s6597_s29  ;;  %s6656_s29 = sld [smem:[#allocation12 + $0x4e]] }
 0x3d0   : > { %v3740_v22 = vstv %s4479_s26  ;;  %s6660_s26 = sld [smem:[#allocation12 + $0x65]] }
 0x3d1   : > { %2746 = vrot.lane.b32.xlu0 %v2744_v16, %s4859_s22  ;;  %2733 = vrot.lane.b32.xlu2 %v2731_v50, %s4860_s23  ;;  %v3109_v16 = vmul.f32 %v3108_v54, %v6536_v59  ;;  %v3348_v4 = vstv %s4424_s20  ;;  %v3741_v2 = vmul.f32 %v3740_v22, %v6536_v59  ;;  %s4483_s20 = sld [smem:[#allocation12 + $0x8c]] }
 0x3d2   : > { %3638 = vrot.lane.b32.xlu1 %v3636_v58, %s4859_s22  ;;  %v3349_v47 = vmul.f32 %v3348_v4, %v6394_v12 }
 0x3d9   : > { %3688 = vrot.lane.b32.xlu0 %v3686_v27, %s4860_s23  ;;  %3680 = vrot.lane.b32.xlu2 %v3678_v44, %s4859_s22  ;;  %v4639_v27 = vld [vmem:[#allocation3 + $0x1] sm:$0xff] }
 0x3da   : > { %3288 = vrot.lane.b32.xlu1 %v3286_v21, %s4860_s23  ;;  %v3253_v44 = vmul.f32 %v4639_v27, %v3252_v51  ;;  %v2676_v51 = vstv %s6608_s18  ;;  %s6669_s18 = sld [smem:[#allocation12 + $0x36]] }
 0x3dc   : > { %v6584_v33 = vadd.f32 %v3253_v44, %v6506_v7 }
 0x3e1   : > { %3343 = vrot.lane.b32.xlu0 %v3341_v14, %s4859_s22  ;;  %3330 = vrot.lane.b32.xlu2 %v3328_v32, %s4860_s23  ;;  %v3159_v14 = vmul.f32 %v3158_v38, %v6580_v57  ;;  %v3151_v32 = vmul.f32 %v3150_v40, %v6580_v57  ;;  %v3137_v38 = vstv %s4395_s1  ;;  %s6690_s1 = sld [smem:[#allocation12 + $0x8e]] }
 0x3e2   : > { %3077 = vrot.lane.b32.xlu1 %v3075_v24, %s4860_s23  ;;  %v2752_v24 = vmul.f32 %v6444_v48, %v2751_v52  ;;  %v3138_v52 = vmul.f32 %v3137_v38, %v6534_v62 }
 0x3e3   : > { %v6532_v23 = vpop.permute.xlu2 %3027 }
 0x3e9   : > { %3132 = vrot.lane.b32.xlu0 %v3130_v41, %s4859_s22  ;;  %3119 = vrot.lane.b32.xlu2 %v3117_v37, %s4860_s23  ;;  %v2806_v37 = vstv %s6578_s2  ;;  %s6631_s2 = sld [smem:[#allocation12 + $0x75]] }
 0x3ea   : > { %2725 = vrot.lane.b32.xlu1 %v2723_v46, %s4859_s22  ;;  %v2793_v46 = vstv %s4352_s21  ;;  %v2807_v1 = vmul.f32 %v6534_v62, %v2806_v37  ;;  %s6635_s21 = sld [smem:[#allocation12 + $0x23]] }
 0x3eb   : > { %v6544_v28 = vpop.permute.xlu2 %2670 }
 0x3f1   : > { %2775 = vrot.lane.b32.xlu0 %v2773_v9, %s4860_s23  ;;  %2767 = vrot.lane.b32.xlu2 %v2765_v43, %s4859_s22  ;;  %v2794_v9 = vmul.f32 %v6536_v59, %v2793_v46  ;;  %v3699_v43 = vmul.f32 %v3698_v8, %v6444_v48 }
 0x3f2   : > { %3667 = vrot.lane.b32.xlu1 %v3665_v31, %s4860_s23  ;;  %v3020_v31 = vstv %s4378_s24  ;;  %s4351_s24 = sld [smem:[#allocation12 + $0x1c]] }
 0x3f3   : > { %v6552_v63 = vpop.permute.xlu2 %3617 }
 0x3f8   : > { %v2785_v46 = vstv %s4351_s24  ;;  %s4430_s24 = sld [smem:[#allocation12 + $0x5f]] }
 0x3f9   : > { %3722 = vrot.lane.b32.xlu0 %v3720_v39, %s4859_s22  ;;  %3709 = vrot.lane.b32.xlu2 %v3707_v5, %s4860_s23  ;;  %v3021_v5 = vmul.f32 %v3020_v31, %v6394_v12 }
 0x3fa   : > { %3322 = vrot.lane.b32.xlu1 %v3320_v18, %s4859_s22 }
 0x3fb   : > { %v6562_v36 = vpop.permute.xlu0 %3035  ;;  %v6571_v60 = vpop.permute.xlu2 %3267 }
 0x3fc   : > { %v2986_v56 = vpop.permute.xlu1 %2985 }
 0x3fd   : > { %v2988_v42 = vadd.f32 %v2986_v56, %v2980_v20  ;;  %v2815_v56 = vmul.f32 %v6534_v62, %v2814_v17  ;;  %v3769_v17 = vstv %s4483_s20  ;;  %s4442_s20 = sld [smem:[#allocation12 + $0x6b]] }
 0x401   : > { %3372 = vrot.lane.b32.xlu0 %v3370_v34, %s4860_s23  ;;  %3364 = vrot.lane.b32.xlu2 %v3362_v55, %s4859_s22 }
 0x402   : > { %3111 = vrot.lane.b32.xlu1 %v3109_v16, %s4859_s22  ;;  %v3748_v16 = vstv %s6616_s4  ;;  %s6684_s4 = sld [smem:[#allocation12 + $0x68]] }
 0x403   : > { %v6576_v50 = vpop.permute.xlu0 %2683  ;;  %v6593_v10 = vpop.permute.xlu2 %3056 }
 0x404   : > { %v2994_v58 = vpop.permute.xlu1 %2993 }
 0x405   : > { %v2996_v21 = vadd.f32 %v2994_v58, %v2988_v42  ;;  %v2656_v42 = vmul.f32 %v6396_v19, %v2655_v45 }
 0x407   : > { %v3001_v7 = vadd.f32 %v3000_v3, %v2996_v21  ;;  %v2657_v34 = vadd.f32 %v2656_v42, %v2652_v0  ;;  %v2677_v21 = vmul.f32 %v2676_v51, %v6409_v29  ;;  %v2835_v3 = vstv %s6635_s21  ;;  %s6705_s21 = sld [smem:[#allocation12 + $0xf]] }
 0x408   : > { %v2836_v8 = vmul.f32 %v6580_v57, %v2835_v3 }
 0x409   : > { %3161 = vrot.lane.b32.xlu0 %v3159_v14, %s4860_s23  ;;  %3153 = vrot.lane.b32.xlu2 %v3151_v32, %s4859_s22  ;;  %v3610_v14 = vstv %s6631_s2  ;;  %s6694_s2 = sld [smem:[#allocation12 + $0x5e]] }
 0x40a   : > { %2754 = vrot.lane.b32.xlu1 %v2752_v24, %s4860_s23 }
 0x40b   : > { %v6595_v26 = vpop.permute.xlu0 %3625  ;;  %v6618_v39 = vpop.permute.xlu2 %2704 }
 0x40c   : > { %v3007_v41 = vpop.permute.xlu1 %3006 }
 0x40d   : > { %v3009_v30 = vadd.f32 %v3007_v41, %v3001_v7  ;;  %v3761_v7 = vstv %s6642_s17  ;;  %v3611_v41 = vmul.f32 %v3610_v14, %v6396_v19  ;;  %s4438_s17 = sld [smem:[#allocation12 + $0x67]] }
 0x411   : > { %2809 = vrot.lane.b32.xlu0 %v2807_v1, %s4859_s22  ;;  %2796 = vrot.lane.b32.xlu2 %v2794_v9, %s4860_s23  ;;  %v2786_v1 = vmul.f32 %v6536_v59, %v2785_v46 }
 0x412   : > { %3701 = vrot.lane.b32.xlu1 %v3699_v43, %s4859_s22 }
 0x413   : > { %v6610_v25 = vpop.permute.xlu0 %3280  ;;  %v6645_v40 = vpop.permute.xlu2 %3646  ;;  %v3445_v14 = vstv %s4438_s17  ;;  %s4469_s17 = sld [smem:[#allocation12 + $0x7e]] }
 0x414   : > { %v3015_v35 = vpop.permute.xlu1 %3014 }
 0x415   : > { %v3017_v18 = vadd.f32 %v3015_v35, %v3009_v30  ;;  %v3432_v35 = vstv %s6660_s26  ;;  %s4466_s26 = sld [smem:[#allocation12 + $0x7b]] }
 0x416   : > { %v3433_v45 = vmul.f32 %v3432_v35, %v6536_v59  ;;  %v3474_v35 = vstv %s4442_s20  ;;  %s4422_s20 = sld [smem:[#allocation12 + $0x57]] }
 0x417   : > { %v3022_v20 = vadd.f32 %v3021_v5, %v3017_v18  ;;  %v3727_v5 = vstv %s4477_s14  ;;  %v3041_v18 = vstv %s6669_s18  ;;  %s4432_s14 = sld [smem:[#allocation12 + $0x61]] }
 0x418   : > { %s4416_s18 = sld [smem:[#allocation12 + $0x51]] }
 0x419   : > { %v3030_v49 = vadd.f32 %v6532_v23, %v3022_v20  ;;  %2817 = vrot.lane.b32.xlu0 %v2815_v56, %s4860_s23  ;;  %3743 = vrot.lane.b32.xlu2 %v3741_v2, %s4859_s22  ;;  %v2827_v23 = vstv %s6613_s25  ;;  %s6680_s25 = sld [smem:[#allocation12 + $0x39]]  ;;  %v4640_v20 = vld [vmem:[#allocation3 + $0x2] sm:$0xff]  ;;  %v3728_v2 = vmul.f32 %v3727_v5, %v6496_v11 }
 0x41a   : > { %3351 = vrot.lane.b32.xlu1 %v3349_v47, %s4860_s23  ;;  %v2828_v44 = vmul.f32 %v6580_v57, %v2827_v23  ;;  %v3782_v23 = vstv %s6690_s1  ;;  %s4435_s1 = sld [smem:[#allocation12 + $0x64]] }
 0x41b   : > { %v6633_v54 = vpop.permute.xlu0 %3069  ;;  %v6638_v15 = vadd.f32 %v6562_v36, %v3030_v49  ;;  %v3749_v36 = vmul.f32 %v3748_v16, %v6536_v59  ;;  %v6674_v9 = vpop.permute.xlu2 %3301 }
 0x41c   : > { %v2663_v55 = vpop.permute.xlu1 %2662 }
 0x41d   : > { %v2665_v58 = vadd.f32 %v2663_v55, %v2657_v34  ;;  %v3453_v55 = vstv %s6684_s4  ;;  %s4387_s4 = sld [smem:[#allocation12 + $0x3c]] }
 0x41f   : > { %v2673_v27 = vadd.f32 %v6544_v28, %v2665_v58  ;;  %v3062_v16 = vstv %s6680_s25  ;;  %v3382_v58 = vstv %s6694_s2  ;;  %s4433_s25 = sld [smem:[#allocation12 + $0x62]] }
 0x420   : > { %s4390_s2 = sld [smem:[#allocation12 + $0x3f]] }
 0x421   : > { %2830 = vrot.lane.b32.xlu0 %v2828_v44, %s4859_s22  ;;  %3751 = vrot.lane.b32.xlu2 %v3749_v36, %s4860_s23  ;;  %v2678_v61 = vadd.f32 %v2677_v21, %v2673_v27  ;;  %v3454_v27 = vmul.f32 %v3453_v55, %v6534_v62  ;;  %v3783_v44 = vmul.f32 %v3782_v23, %v6580_v57  ;;  %v2697_v21 = vstv %s6705_s21  ;;  %s4486_s21 = sld [smem:[#allocation12 + $0x8f]] }
 0x422   : > { %3140 = vrot.lane.b32.xlu1 %v3138_v52, %s4860_s23  ;;  %v2698_v3 = vmul.f32 %v6394_v12, %v2697_v21 }
 0x423   : > { %v6658_v28 = vpop.permute.xlu0 %2712  ;;  %v6663_v32 = vadd.f32 %v6576_v50, %v2678_v61  ;;  %v3762_v50 = vmul.f32 %v3761_v7, %v6534_v62  ;;  %v3083_v55 = vstv %s4387_s4  ;;  %s4475_s4 = sld [smem:[#allocation12 + $0x84]] }
 0x424   : > { %v3605_v24 = vpop.permute.xlu1 %3604 }
 0x425   : > { %v3607_v37 = vadd.f32 %v3605_v24, %v6484_v6 }
 0x427   : > { %v3612_v30 = vadd.f32 %v3611_v41, %v3607_v37  ;;  %v3390_v41 = vstv %s4430_s24  ;;  %v3790_v21 = vstv %s4486_s21  ;;  %s4441_s24 = sld [smem:[#allocation12 + $0x6a]] }
 0x428   : > { %s4353_s21 = sld [smem:[#allocation12 + $0x1e]] }
 0x429   : > { %v3620_v43 = vadd.f32 %v6552_v63, %v3612_v30  ;;  %2838 = vrot.lane.b32.xlu0 %v2836_v8, %s4860_s23  ;;  %3764 = vrot.lane.b32.xlu2 %v3762_v50, %s4859_s22  ;;  %v3273_v63 = vstv %s6656_s29  ;;  %s4463_s29 = sld [smem:[#allocation12 + $0x78]]  ;;  %v3446_v30 = vmul.f32 %v3445_v14, %v6534_v62  ;;  %v3391_v8 = vmul.f32 %v3390_v41, %v6444_v48 }
 0x42a   : > { %2788 = vrot.lane.b32.xlu1 %v2786_v1, %s4859_s22  ;;  %v3274_v56 = vmul.f32 %v4640_v20, %v3273_v63 }
 0x42b   : > { %v6682_v6 = vpop.permute.xlu0 %3659  ;;  %v6687_v31 = vadd.f32 %v6595_v26, %v3620_v43  ;;  %v3770_v26 = vmul.f32 %v3769_v17, %v6534_v62  ;;  %v3652_v17 = vstv %s4466_s26  ;;  %s4341_s26 = sld [smem:[#allocation12 + $0x12]] }
 0x42c   : > { %v3260_v13 = vpop.permute.xlu1 %3259 }
 0x42d   : > { %v3262_v22 = vadd.f32 %v3260_v13, %v6584_v33  ;;  %v3042_v33 = vmul.f32 %v3041_v18, %v6446_v53  ;;  %v3475_v18 = vmul.f32 %v3474_v35, %v6580_v57 }
 0x42f   : > { %v3270_v4 = vadd.f32 %v6571_v60, %v3262_v22  ;;  %v6707_v60 = vpop.permute.xlu2 %3090  ;;  %v3043_v49 = vadd.f32 %v3042_v33, %v6638_v15  ;;  %v3063_v15 = vmul.f32 %v3062_v16, %v6444_v48  ;;  %v3631_v37 = vstv %s4463_s29  ;;  %s4419_s29 = sld [smem:[#allocation12 + $0x54]] }
 0x430   : > { %v3632_v50 = vmul.f32 %v3631_v37, %v6409_v29  ;;  %v3403_v22 = vstv %s4432_s14  ;;  %v3411_v33 = vstv %s4433_s25  ;;  %s4393_s14 = sld [smem:[#allocation12 + $0x42]] }
 0x431   : > { %3435 = vrot.lane.b32.xlu0 %v3433_v45, %s4860_s23  ;;  %3772 = vrot.lane.b32.xlu2 %v3770_v26, %s4860_s23  ;;  %v3275_v0 = vadd.f32 %v3274_v56, %v3270_v4  ;;  %v3653_v4 = vmul.f32 %v3652_v17, %v6394_v12  ;;  %v3404_v45 = vmul.f32 %v3403_v22, %v6496_v11  ;;  %v3336_v22 = vstv %s4422_s20  ;;  %s4350_s25 = sld [smem:[#allocation12 + $0x1b]] }
 0x432   : > { %3730 = vrot.lane.b32.xlu1 %v3728_v2, %s4860_s23  ;;  %s4481_s20 = sld [smem:[#allocation12 + $0x8a]] }
 0x433   : > { %v6709_v47 = vpop.permute.xlu0 %3309  ;;  %v6713_v42 = vadd.f32 %v6610_v25, %v3275_v0  ;;  %v3383_v25 = vmul.f32 %v3382_v58, %v6444_v48  ;;  %v3412_v0 = vmul.f32 %v3411_v33, %v6496_v11 }
 0x434   : > { %v3049_v34 = vpop.permute.xlu1 %3048 }
 0x435   : > { %v3051_v51 = vadd.f32 %v3049_v34, %v3043_v49 }
 0x437   : > { %v3059_v38 = vadd.f32 %v6593_v10, %v3051_v51  ;;  %v6731_v24 = vpop.permute.xlu2 %2733 }
 0x439   : > { %3456 = vrot.lane.b32.xlu0 %v3454_v27, %s4860_s23  ;;  %3785 = vrot.lane.b32.xlu2 %v3783_v44, %s4859_s22  ;;  %v3064_v36 = vadd.f32 %v3063_v15, %v3059_v38  ;;  %v3104_v27 = vstv %s4390_s2  ;;  %s4399_s2 = sld [smem:[#allocation14 + $0x1]] }
 0x43a   : > { %3385 = vrot.lane.b32.xlu1 %v3383_v25, %s4859_s22 }
 0x43b   : > { %v6728_v52 = vpop.permute.xlu0 %3098  ;;  %v3072_v10 = vadd.f32 %v6633_v54, %v3064_v36 }
 0x43c   : > { %v2692_v61 = vpop.permute.xlu1 %2691 }
 0x43d   : > { %v2694_v7 = vadd.f32 %v2692_v61, %v6663_v32  ;;  %v3633_v32 = vadd.f32 %v3632_v50, %v6687_v31  ;;  %v3791_v61 = vmul.f32 %v3790_v21, %v6580_v57 }
 0x43f   : > { %v2699_v46 = vadd.f32 %v2698_v3, %v2694_v7 }
 0x441   : > { %v2707_v54 = vadd.f32 %v6618_v39, %v2699_v46  ;;  %3448 = vrot.lane.b32.xlu2 %v3446_v30, %s4859_s22  ;;  %v3681_v39 = vpop.permute.xlu2 %3680  ;;  %v3466_v46 = vstv %s4441_s24  ;;  %s4356_s24 = sld [smem:[#allocation12 + $0x21]] }
 0x442   : > { %3393 = vrot.lane.b32.xlu1 %v3391_v8, %s4860_s23  ;;  %v2718_v8 = vstv %s4341_s26  ;;  %s6792_s26 = sld [smem:[#allocation12 + $0x5a]] }
 0x443   : > { %v6741_v1 = vpop.permute.xlu0 %2746  ;;  %v6745_v43 = vadd.f32 %v6658_v28, %v2707_v54  ;;  %v3294_v28 = vstv %s4416_s18  ;;  %v3467_v54 = vmul.f32 %v3466_v46, %v6580_v57  ;;  %s4472_s18 = sld [smem:[#allocation12 + $0x81]] }
 0x444   : > { %v3639_v13 = vpop.permute.xlu1 %3638  ;;  %v3295_v2 = vmul.f32 %v3294_v28, %v6396_v19  ;;  %v3084_v19 = vmul.f32 %v3083_v55, %v6496_v11 }
 0x445   : > { %v3641_v63 = vadd.f32 %v3639_v13, %v3633_v32  ;;  %v2719_v13 = vmul.f32 %v6446_v53, %v2718_v8 }
 0x447   : > { %v3649_v5 = vadd.f32 %v6645_v40, %v3641_v63 }
 0x449   : > { %3477 = vrot.lane.b32.xlu2 %v3475_v18, %s4860_s23  ;;  %v3654_v31 = vadd.f32 %v3653_v4, %v3649_v5  ;;  %v3331_v49 = vpop.permute.xlu2 %3330  ;;  %v2720_v5 = vadd.f32 %v2719_v13, %v6745_v43 }
 0x44a   : > { %3406 = vrot.lane.b32.xlu1 %v3404_v45, %s4859_s22 }
 0x44b   : > { %v3689_v26 = vpop.permute.xlu0 %3688  ;;  %v3662_v20 = vadd.f32 %v6682_v6, %v3654_v31 }
 0x44c   : > { %v3289_v56 = vpop.permute.xlu1 %3288 }
 0x44d   : > { %v3291_v40 = vadd.f32 %v3289_v56, %v6713_v42  ;;  %v3424_v42 = vstv %s4435_s1  ;;  %s4396_s1 = sld [smem:[#allocation12 + $0x45]] }
 0x44e   : > { %v3425_v38 = vmul.f32 %v3424_v42, %v6536_v59  ;;  %v3694_v42 = vstv %s4472_s18  ;;  %s4428_s18 = sld [smem:[#allocation12 + $0x5d]] }
 0x44f   : > { %v3296_v12 = vadd.f32 %v3295_v2, %v3291_v40  ;;  %v3125_v40 = vstv %s4393_s14  ;;  %s2845_s14 = sld [smem:[#allocation15]] }
 0x451   : > { %v3304_v34 = vadd.f32 %v6674_v9, %v3296_v12  ;;  %v3120_v9 = vpop.permute.xlu2 %3119 }
 0x452   : > { %3414 = vrot.lane.b32.xlu1 %v3412_v0, %s4860_s23 }
 0x453   : > { %v3344_v23 = vpop.permute.xlu0 %3343  ;;  %v3312_v6 = vadd.f32 %v6709_v47, %v3304_v34  ;;  %v3105_v47 = vmul.f32 %v3104_v27, %v6536_v59  ;;  %v3126_v34 = vmul.f32 %v3125_v40, %v6534_v62 }
 0x454   : > { %v3078_v16 = vpop.permute.xlu1 %3077 }
 0x455   : > { %v3080_v51 = vadd.f32 %v3078_v16, %v3072_v10 }
 0x457   : > { %v3085_v58 = vadd.f32 %v3084_v19, %v3080_v51 }
 0x459   : > { %v3093_v44 = vadd.f32 %v6707_v60, %v3085_v58  ;;  %v3673_v60 = vstv %s4469_s17  ;;  %v2768_v7 = vpop.permute.xlu2 %2767  ;;  %s4400_s17 = sld [smem:[#allocation15 + $0x1]] }
 0x45a   : > { %3427 = vrot.lane.b32.xlu1 %v3425_v38, %s4859_s22  ;;  %v3674_v41 = vmul.f32 %v3673_v60, %v6446_v53  ;;  %v2781_v38 = vstv %s4350_s25  ;;  %s4431_s25 = sld [smem:[#allocation12 + $0x60]] }
 0x45b   : > { %v6764_v15 = vpop.permute.xlu0 %3132  ;;  %v3101_v25 = vadd.f32 %v6728_v52, %v3093_v44  ;;  %v3315_v52 = vstv %s4419_s29  ;;  %v3695_v44 = vmul.f32 %v3694_v42, %v6444_v48  ;;  %s4478_s29 = sld [smem:[#allocation12 + $0x87]] }
 0x45c   : > { %v2726_v36 = vpop.permute.xlu1 %2725  ;;  %v3316_v32 = vmul.f32 %v3315_v52, %v6409_v29 }
 0x45d   : > { %v3106_v10 = vadd.f32 %v3105_v47, %v3101_v25  ;;  %v2728_v31 = vadd.f32 %v2726_v36, %v2720_v5  ;;  %v2782_v36 = vmul.f32 %v6536_v59, %v2781_v38 }
 0x45e   : > { %v3317_v35 = vadd.f32 %v3316_v32, %v3312_v6 }
 0x45f   : > { %v2736_v2 = vadd.f32 %v6731_v24, %v2728_v31 }
 0x461   : > { %v3710_v45 = vpop.permute.xlu2 %3709 }
 0x462   : > { %3793 = vrot.lane.b32.xlu1 %v3791_v61, %s4860_s23  ;;  %s4344_s23 = sld [smem:[#allocation12 + $0x15]]  ;;  %v3715_v61 = vstv %s4475_s4 }
 0x463   : > { %v2776_v14 = vpop.permute.xlu0 %2775  ;;  %s4434_s4 = sld [smem:[#allocation12 + $0x63]] }
 0x464   : > { %v3668_v3 = vpop.permute.xlu1 %3667 }
 0x465   : > { %v3670_v37 = vadd.f32 %v3668_v3, %v3662_v20 }
 0x467   : > { %v3675_v30 = vadd.f32 %v3674_v41, %v3670_v37  ;;  %v3716_v41 = vmul.f32 %v3715_v61, %v6496_v11  ;;  %v2846_v61 = vstv %s2845_s14  ;;  %s4444_s14 = sld [smem:[#allocation15 + $0x2]] }
 0x468   : > { %v2739_v56 = vstv %s4344_s23  ;;  %s6795_s23 = sld [smem:[#allocation14]] }
 0x469   : > { %v3683_v50 = vadd.f32 %v3681_v39, %v3675_v30  ;;  %v4641_v39 = vld [vmem:[#allocation3 + $0x12] sm:$0xff]  ;;  %v2740_v12 = vmul.f32 %v6444_v48, %v2739_v56  ;;  %v6783_v55 = vpop.permute.xlu2 %3364  ;;  %v3146_v48 = vstv %s4396_s1 }
 0x46a   : > { %3469 = vrot.lane.b32.xlu1 %v3467_v54, %s4859_s22  ;;  %v3337_v20 = vmul.f32 %v4641_v39, %v3336_v22  ;;  %s4347_s22 = sld [smem:[#allocation12 + $0x18]]  ;;  %v2802_v22 = vstv %s4353_s21 }
 0x46b   : > { %v3691_v17 = vadd.f32 %v3689_v26, %v3683_v50  ;;  %v3723_v4 = vpop.permute.xlu0 %3722  ;;  %v2741_v0 = vadd.f32 %v2740_v12, %v2736_v2  ;;  %v2823_v2 = vstv %s4356_s24  ;;  %s4437_s21 = sld [smem:[#allocation12 + $0x66]] }
 0x46c   : > { %v3323_v63 = vpop.permute.xlu1 %3322 }
 0x46d   : > { %v3325_v18 = vadd.f32 %v3323_v63, %v3317_v35  ;;  %v2749_v24 = vadd.f32 %v6741_v1, %v2741_v0  ;;  %v3696_v25 = vadd.f32 %v3695_v44, %v3691_v17  ;;  %v3166_v17 = vstv %s4399_s2 }
 0x46f   : > { %v3333_v28 = vadd.f32 %v3331_v49, %v3325_v18  ;;  %v3169_v18 = vstv %s4400_s17 }
 0x470   : > { %v2760_v16 = vstv %s4347_s22  ;;  %s4484_s22 = sld [smem:[#allocation12 + $0x8d]] }
 0x471   : > { %v3338_v29 = vadd.f32 %v3337_v20, %v3333_v28  ;;  %v2761_v19 = vmul.f32 %v6496_v11, %v2760_v16  ;;  %v3154_v47 = vpop.permute.xlu2 %3153 }
 0x473   : > { %v6777_v53 = vadd.f32 %v3344_v23, %v3338_v29  ;;  %v6781_v49 = vpop.permute.xlu0 %3372 }
 0x474   : > { %v3112_v26 = vpop.permute.xlu1 %3111 }
 0x475   : > { %v3114_v33 = vadd.f32 %v3112_v26, %v3106_v10  ;;  %v3736_v26 = vstv %s4478_s29  ;;  %s4440_s29 = sld [smem:[#allocation12 + $0x69]] }
 0x477   : > { %v3122_v43 = vadd.f32 %v3120_v9, %v3114_v33 }
 0x479   : > { %v3127_v6 = vadd.f32 %v3126_v34, %v3122_v43  ;;  %v2797_v30 = vpop.permute.xlu2 %2796  ;;  %v2824_v43 = vmul.f32 %v6580_v57, %v2823_v2  ;;  %v3737_v34 = vmul.f32 %v3736_v26, %v6536_v59  ;;  %v3441_v26 = vstv %s4437_s21 }
 0x47b   : > { %v3162_v9 = vpop.permute.xlu0 %3161  ;;  %v3135_v8 = vadd.f32 %v6764_v15, %v3127_v6  ;;  %v2803_v15 = vmul.f32 %v6534_v62, %v2802_v22 }
 0x47c   : > { %v2755_v23 = vpop.permute.xlu1 %2754 }
 0x47d   : > { %v2757_v51 = vadd.f32 %v2755_v23, %v2749_v24  ;;  %v3357_v23 = vstv %s6792_s26  ;;  %s4487_s26 = sld [smem:[#allocation14 + $0x3]] }
 0x47f   : > { %v2762_v58 = vadd.f32 %v2761_v19, %v2757_v51  ;;  %v3757_v19 = vstv %s4481_s20  ;;  %s4488_s20 = sld [smem:[#allocation15 + $0x3]] }
 0x481   : > { %v2770_v27 = vadd.f32 %v2768_v7, %v2762_v58  ;;  %v3744_v13 = vpop.permute.xlu2 %3743 }
 0x483   : > { %v2778_v21 = vadd.f32 %v2776_v14, %v2770_v27  ;;  %v2810_v52 = vpop.permute.xlu0 %2809  ;;  %v3147_v14 = vmul.f32 %v3146_v48, %v6580_v57  ;;  %v2843_v27 = vstv %s6795_s23  ;;  %s4443_s23 = sld [smem:[#allocation14 + $0x2]] }
 0x484   : > { %v3702_v10 = vpop.permute.xlu1 %3701 }
 0x485   : > { %v3704_v1 = vadd.f32 %v3702_v10, %v3696_v25  ;;  %v2783_v60 = vadd.f32 %v2782_v36, %v2778_v21  ;;  %v3758_v25 = vmul.f32 %v3757_v19, %v6534_v62 }
 0x487   : > { %v3712_v3 = vadd.f32 %v3710_v45, %v3704_v1 }
 0x489   : > { %v3717_v37 = vadd.f32 %v3716_v41, %v3712_v3  ;;  %v3752_v20 = vpop.permute.xlu2 %3751 }
 0x48b   : > { %v3725_v46 = vadd.f32 %v3723_v4, %v3717_v37  ;;  %v2818_v32 = vpop.permute.xlu0 %2817 }
 0x48c   : > { %v3352_v7 = vpop.permute.xlu1 %3351 }
 0x48d   : > { %v3354_v51 = vadd.f32 %v3352_v7, %v6777_v53  ;;  %v3378_v7 = vstv %s4428_s18 }
 0x491   : > { %v3765_v44 = vpop.permute.xlu2 %3764 }
 0x493   : > { %v2831_v39 = vpop.permute.xlu0 %2830 }
 0x494   : > { %v3141_v54 = vpop.permute.xlu1 %3140 }
 0x495   : > { %v3143_v50 = vadd.f32 %v3141_v54, %v3135_v8 }
 0x497   : > { %v3148_v35 = vadd.f32 %v3147_v14, %v3143_v50 }
 0x499   : > { %v3156_v11 = vadd.f32 %v3154_v47, %v3148_v35  ;;  %v3773_v8 = vpop.permute.xlu2 %3772 }
 0x49b   : > { %v3164_v63 = vadd.f32 %v3162_v9, %v3156_v11  ;;  %v2839_v38 = vpop.permute.xlu0 %2838  ;;  %v4642_v9 = vld [vmem:[#allocation3 + $0x20] sm:$0xff] }
 0x49c   : > { %v2789_v5 = vpop.permute.xlu1 %2788  ;;  %v3358_v47 = vmul.f32 %v4642_v9, %v3357_v23  ;;  %v3798_v23 = vstv %s4487_s26 }
 0x49d   : > { %v2791_v4 = vadd.f32 %v2789_v5, %v2783_v60  ;;  %v3167_v45 = vmul.f32 %v3166_v17, %v3164_v63  ;;  %v3399_v17 = vstv %s4431_s25  ;;  %v4644_v5 = vld [vmem:[#allocation3 + $0x22] sm:$0xff]  ;;  %s429_s25 = scalar_lea.vmem [#allocation17], %s4023_s3 }
 0x49e   : > { %v3359_v1 = vadd.f32 %v3358_v47, %v3354_v51  ;;  %s3874_s21 = sshll.u32 %s429_s25, 4  ;;  %s3875_s21 = int_to_ptr.vmem [resolvable:$true] %s3874_s21 }
 0x49f   : > { %v2799_v31 = vadd.f32 %v2797_v30, %v2791_v4  ;;  %v3170_v28 = vadd.f32 %v3169_v18, %v3167_v45  ;;  %v3400_v18 = vmul.f32 %v4644_v5, %v3399_v17  ;;  %v2587_v45 = vld [vmem:[%s6884_s7] sm:$0xff] }
 0x4a0   : > { %v3367_v53 = vadd.f32 %v6783_v55, %v3359_v1  ;;  %v3485_v1 = vstv %s4444_s14 }
 0x4a1   : > { %v2804_v29 = vadd.f32 %v2803_v15, %v2799_v31  ;;  %vm3171_vm7 = vcmp.gt.f32.partialorder %v3170_v28, 0.0  ;;  %v3172_v56 = vmul.f32 0.01, %v3170_v28 }
 0x4a2   : > { %v3375_v54 = vadd.f32 %v6781_v49, %v3367_v53  ;;  %v3420_v49 = vstv %s4434_s4  ;;  %v2589_v53 = vld [vmem:[%s6885_s8] sm:$0xff]  ;;  %s4501_s4 = sshll.u32 %s4937_s16, 6  ;;  %s3862_s16 = scalar_lea.sflag [#allocation6], %s5041_s28 }
 0x4a3   : > { %v2812_v40 = vadd.f32 %v2810_v52, %v2804_v29  ;;  %v3173_v33 = vsel %vm3171_vm7, %v3170_v28, %v3172_v56  ;;  %v3778_v52 = vstv %s4484_s22  ;;  %v2588_v29 = vld [vmem:[%s6884_s7 + $0x8] sm:$0xff]  ;;  %v3786_v56 = vpop.permute.xlu2 %3785  ;;  %v3436_v2 = vpop.permute.xlu0 %3435  ;;  %3218 = vmatpush.msra.mxu3 %v2589_v53  ;;  %2902 = vmatpush.msra.mxu1 %v2589_v53  ;;  %s3873_s3 = scalar_lea.hbm %s6886_s9, %s4501_s4 }
 0x4a4   : > { %v3731_v12 = vpop.permute.xlu1 %3730  ;;  %3189 = vmatpush.msra.mxu2 %v3173_v33  ;;  %v3779_v14 = vmul.f32 %v3778_v52, %v6580_v57  ;;  %s3876_s17 = sshll.u32 %s3873_s3, 4  ;;  %s3877_s17 = int_to_ptr.hbm [resolvable:$true] %s3876_s17 }
 0x4a5   : > { %v2820_v0 = vadd.f32 %v2818_v32, %v2812_v40  ;;  %v3733_v6 = vadd.f32 %v3731_v12, %v3725_v46  ;;  %v4643_v32 = vld [vmem:[#allocation3 + $0x21] sm:$0xff]  ;;  %4401 = vmatmul.msk.f32.vlgmr.msra.gmra.mxu2 %vm2851_vm9, %v2587_v45  ;;  %v3442_v12 = vmul.f32 %v3441_v26, %v6534_v62  ;;  %3850 = vmatpush.msrb.mxu3 %v2589_v53  ;;  %s4779_s24 = sshra.s32 %s3877_s17, 4  ;;  %s4780_s24 = int_to_ptr.hbm [resolvable:$true] %s4779_s24 }
 0x4a6   : > { %3534 = vmatpush.msrb.mxu1 %v2589_v53  ;;  %p4786_p12 = scmp.lt.s32.totalorder %s4780_s24, %s6886_s9 }
 0x4a7   : > { %v2825_v16 = vadd.f32 %v2824_v43, %v2820_v0  ;;  %v3738_v24 = vadd.f32 %v3737_v34, %v3733_v6  ;;  %v3462_v34 = vstv %s4440_s29  ;;  %s4781_s29 = scalar_lea.hbm %s4780_s24, 64 }
 0x4a8   : > { %p4782_p1 = scmp.ne.s32.totalorder %s4780_s24, %s4781_s29 }
 0x4a9   : > { %v3746_v42 = vadd.f32 %v3744_v13, %v3738_v24  ;;  %v2833_v58 = vadd.f32 %v2831_v39, %v2825_v16  ;;  %v3379_v13 = vmul.f32 %v4643_v32, %v3378_v7  ;;  %v3421_v39 = vmul.f32 %v3420_v49, %v6536_v59 }
 0x4aa   : > { %p4783_p3 = pnand %p4782_p1, %p5010_p5 }
 0x4ab   : > { %v3754_v36 = vadd.f32 %v3752_v20, %v3746_v42  ;;  %v2841_v21 = vadd.f32 %v2839_v38, %v2833_v58  ;;  %v3380_v11 = vadd.f32 %v3379_v13, %v3375_v54  ;;  %v3449_v0 = vpop.permute.xlu2 %3448  ;;  %v3457_v24 = vpop.permute.xlu0 %3456  ;;  %v3463_v42 = vmul.f32 %v3462_v34, %v6580_v57 }
 0x4ac   : > { %v3386_v10 = vpop.permute.xlu1 %3385  ;;  %v3801_v38 = vstv %s4488_s20  ;;  %p4784_p4 = pneg %p4783_p3 }
 0x4ad   : > { %v3759_v60 = vadd.f32 %v3758_v25, %v3754_v36  ;;  %v2844_v3 = vmul.f32 %v2843_v27, %v2841_v21  ;;  %v3388_v55 = vadd.f32 %v3386_v10, %v3380_v11  ;;  %4402 = vmatmul.msk.f32.gmra.mxu2 %vm2851_vm9, %v2588_v29  ;;  %v3482_v10 = vstv %s4443_s23  ;;  %s4785_s23 = scalar_lea.hbm %s6886_s9, 128 }
 0x4ae   : > { %p4787_p7 = scmp.lt.s32.totalorder %s4785_s23, %s4781_s29 }
 0x4af   : > { %v2847_v41 = vadd.f32 %v2846_v61, %v2844_v3  ;;  %v3767_v48 = vadd.f32 %v3765_v44, %v3759_v60 }
 0x4b0   : > { %p4788_p8 = por %p4787_p7, %p4786_p12 }
 0x4b1   : > { %vm2848_vm8 = vcmp.gt.f32.partialorder %v2847_v41, 0.0  ;;  %v2849_v37 = vmul.f32 0.01, %v2847_v41  ;;  %v3775_v50 = vadd.f32 %v3773_v8, %v3767_v48 }
 0x4b2   : > { %p4789_p9 = pnand %p4788_p8, %p4784_p4 }
 0x4b3   : > { %v2850_v46 = vsel %vm2848_vm8, %v2847_v41, %v2849_v37  ;;  %v3780_v35 = vadd.f32 %v3779_v14, %v3775_v50  ;;  %v3478_v21 = vpop.permute.xlu2 %3477 }
 0x4b4   : > { %v3394_v30 = vpop.permute.xlu1 %3393  ;;  %2873 = vmatpush.msra.mxu0 %v2850_v46 }
 0x4b5   : > { %v3396_v22 = vadd.f32 %v3394_v30, %v3388_v55  ;;  %4359 = vmatmul.msk.f32.vlgmr.msra.gmra.mxu0 %vm2851_vm9, %v2587_v45  ;;  %v3788_v6 = vadd.f32 %v3786_v56, %v3780_v35 }
 0x4b7   : > { %v3401_v4 = vadd.f32 %v3400_v18, %v3396_v22 }
 0x4bc   : > { %v3407_v63 = vpop.permute.xlu1 %3406 }
 0x4bd   : > { %v3409_v15 = vadd.f32 %v3407_v63, %v3401_v4  ;;  %4360 = vmatmul.msk.f32.gmra.mxu0 %vm2851_vm9, %v2588_v29 }
 0x4c4   : > { %v3415_v31 = vpop.permute.xlu1 %3414 }
 0x4c5   : > { %v3417_v28 = vadd.f32 %v3415_v31, %v3409_v15 }
 0x4c7   : > { %v3422_v20 = vadd.f32 %v3421_v39, %v3417_v28 }
 0x4cc   : > { %v3428_v40 = vpop.permute.xlu1 %3427 }
 0x4cd   : > { %v3430_v33 = vadd.f32 %v3428_v40, %v3422_v20 }
 0x4cf   : > { %v3438_v59 = vadd.f32 %v3436_v2, %v3430_v33 }
 0x4d1   : > { %v3443_v43 = vadd.f32 %v3442_v12, %v3438_v59 }
 0x4d3   : > { %v3451_v16 = vadd.f32 %v3449_v0, %v3443_v43 }
 0x4d4   : > { %v3794_v19 = vpop.permute.xlu1 %3793 }
 0x4d5   : > { %v3796_v51 = vadd.f32 %v3794_v19, %v3788_v6  ;;  %v3459_v58 = vadd.f32 %v3457_v24, %v3451_v16 }
 0x4d7   : > { %v3799_v27 = vmul.f32 %v3798_v23, %v3796_v51  ;;  %v3464_v44 = vadd.f32 %v3463_v42, %v3459_v58 }
 0x4d9   : > { %v3802_v9 = vadd.f32 %v3801_v38, %v3799_v27 }
 0x4db   : > { %vm3803_vm10 = vcmp.gt.f32.partialorder %v3802_v9, 0.0  ;;  %v3804_v62 = vmul.f32 0.01, %v3802_v9 }
 0x4dc   : > { %v3470_v47 = vpop.permute.xlu1 %3469 }
 0x4dd   : > { %v3472_v25 = vadd.f32 %v3470_v47, %v3464_v44  ;;  %v3805_v36 = vsel %vm3803_vm10, %v3802_v9, %v3804_v62 }
 0x4de   : > { %3821 = vmatpush.msrb.mxu2 %v3805_v36 }
 0x4df   : > { %v3480_v61 = vadd.f32 %v3478_v21, %v3472_v25  ;;  %4489 = vmatmul.msk.f32.vlgmr.msrb.gmra.mxu2 %vm2851_vm9, %v2587_v45 }
 0x4e1   : > { %v3483_v57 = vmul.f32 %v3482_v10, %v3480_v61 }
 0x4e3   : > { %v3486_v60 = vadd.f32 %v3485_v1, %v3483_v57 }
 0x4e5   : > { %vm3487_vm11 = vcmp.gt.f32.partialorder %v3486_v60, 0.0  ;;  %v3488_v3 = vmul.f32 0.01, %v3486_v60 }
 0x4e7   : > { %v3489_v41 = vsel %vm3487_vm11, %v3486_v60, %v3488_v3  ;;  %4490 = vmatmul.msk.f32.gmra.mxu2 %vm2851_vm9, %v2588_v29 }
 0x4e8   : > { %3505 = vmatpush.msrb.mxu0 %v3489_v41 }
 0x4e9   : > { %4445 = vmatmul.msk.f32.vlgmr.msrb.gmra.mxu0 %vm2851_vm9, %v2587_v45 }
 0x4f1   : > { %4446 = vmatmul.msk.f32.gmra.mxu0 %vm2851_vm9, %v2588_v29 }
 0x528   : > { %v3191_v46 = vpop.f32.mrf.mxu2 }
 0x529   : > { %4403 = vmatmul.msk.f32.vlgmr.msra.gmra.mxu3 %vm2851_vm9, %v3191_v46 }
 0x530   : > { %v3194_v7 = vpop.f32.mrf.mxu2 }
 0x531   : > { %4404 = vmatmul.msk.f32.gmra.mxu3 %vm2851_vm9, %v3194_v7 }
 0x532   : > { %v2875_v37 = vpop.f32.mrf.mxu0 }
 0x533   : > { %4361 = vmatmul.msk.f32.vlgmr.msra.gmra.mxu1 %vm2851_vm9, %v2875_v37 }
 0x53a   : > { %v2878_v52 = vpop.f32.mrf.mxu0 }
 0x53b   : > { %4362 = vmatmul.msk.f32.gmra.mxu1 %vm2851_vm9, %v2878_v52 }
 0x562   : > { %v3823_v30 = vpop.f32.mrf.mxu2 }
 0x563   : > { %4491 = vmatmul.msk.f32.vlgmr.msrb.gmra.mxu3 %vm2851_vm9, %v3823_v30 }
 0x566   : > { %v3507_v48 = vpop.f32.mrf.mxu0 }
 0x567   : > { %4447 = vmatmul.msk.f32.vlgmr.msrb.gmra.mxu1 %vm2851_vm9, %v3507_v48 }
 0x56a   : > { %v3826_v8 = vpop.f32.mrf.mxu2 }
 0x56b   : > { %4492 = vmatmul.msk.f32.gmra.mxu3 %vm2851_vm9, %v3826_v8 }
 0x56e   : > { %v3510_v54 = vpop.f32.mrf.mxu0 }
 0x56f   : > { %4448 = vmatmul.msk.f32.gmra.mxu1 %vm2851_vm9, %v3510_v54 }
 0x5ac   : > { %v3220_v32 = vpop.f32.mrf.mxu3 }
 0x5ad   : > { %4405 = vst.msk [vmem:[%s429_s25 + $0x10] sm:$0xff] %vm2910_vm12, %v3220_v32 }
 0x5b0   : > { %v2904_v14 = vpop.f32.mrf.mxu1 }
 0x5b1   : > { %2911 = vst.msk [vmem:[%s429_s25] sm:$0xff] %vm2910_vm12, %v2904_v14 }
 0x5b4   : > { %v3223_v13 = vpop.f32.mrf.mxu3 }
 0x5b5   : > { %4406 = vst.msk [vmem:[%s429_s25 + $0x18] sm:$0xff] %vm2910_vm12, %v3223_v13 }
 0x5b8   : > { %v2907_v50 = vpop.f32.mrf.mxu1 }
 0x5b9   : > { %2912 = vst.msk [vmem:[%s429_s25 + $0x8] sm:$0xff] %vm2910_vm12, %v2907_v50 }
 0x5e4   : > { %v3536_v35 = vpop.f32.mrf.mxu1 }
 0x5e5   : > { %4449 = vst.msk [vmem:[%s429_s25 + $0x20] sm:$0xff] %vm2910_vm12, %v3536_v35 }
 0x5e6   : > { %v3852_v11 = vpop.f32.mrf.mxu3 }
 0x5e7   : > { %4493 = vst.msk [vmem:[%s429_s25 + $0x30] sm:$0xff] %vm2910_vm12, %v3852_v11 }
 0x5ec   : > { %v3539_v55 = vpop.f32.mrf.mxu1 }
 0x5ed   : > { %4450 = vst.msk [vmem:[%s429_s25 + $0x28] sm:$0xff] %vm2910_vm12, %v3539_v55 }
 0x5ee   : > { %v3855_v17 = vpop.f32.mrf.mxu3 }
 0x5ef   : > { %4494 = vst.msk [vmem:[%s429_s25 + $0x38] sm:$0xff] %vm2910_vm12, %v3855_v17 }
 0x5f0   : > { %4792 = shalt.err (!%p4789_p9)
}
 0x5f1   : > { %s4861_s28 = smov 128   ;;  %s4862_s18 = smov 8  }
 0x5f2   : > { %4528 = dma.vmem_to_hbm [thread:$0]  (%p5010_p5), %s3875_s21, 1024, %s3877_s17, %s3862_s16, %s4861_s28, %s4861_s28, %s4862_s18  }
 0x5f3 PF: > { %s3891_s25 = sand.u32 1, %s4835_s30   ;;  %p6902_p10 = scmp.ge.s32.totalorder %s4847_s12, 2 }
 0x5f4   : > { %s3892_s4 = scalar_lea.sflag [#allocation6], %s3891_s25 }
 0x5f5   : > { %p4554_p13 = pnand %p6902_p10, %p5014_p6 }
 0x5f7   : > { %p4555_p11 = pneg %p4554_p13 }
 0x5f9   : > { %4830 = dma.done.wait (%p4555_p11), %s3892_s4, 1024  }
 0x5fa   : > { %4832 = vsyncadd (%p4555_p11), %s3892_s4, 4294966272  ;;  %p26_p0 = scmp.ge.s32.totalorder %s4984_s27, 4   ;;  %s6903_s30 = smov %s4839_s10 }
 0x5fb   : > { %s6904_s10 = smov %s4843_s11  ;;  %s6905_s11 = smov %s4995_s13 }
 0x5fc   : > { %s6906_s12 = smov %s4984_s27  ;;  %28 = sbr.rel (!%p26_p0) target bundleno = 14 (0xe), region = 139 }
 0x601   :  { %3898 = vsyncpa [#allocation5], 1 }
 0x602   :  { %3900 = vsyncpa [#allocation5 + $0x1], 1 }
 0x603   :  { %3901 = vsyncpa [#allocation6], 1 }
 0x604   :  { %3903 = vsyncpa [#allocation6 + $0x1], 1 }
 0x605   :  { %3904 = vsyncpa [#allocation7], 1 }
 0x606   :  { %3906 = vsyncpa [#allocation7 + $0x1], 1 }
 0x607   :  { %3907 = vsyncpa [#allocation10], 1 }
 0x608   :  { %3908 = vsyncpa [#allocation13], 1 }
 0x609   :  { %3909 = vsyncpa [#allocation16], 1 }

</bundles_post_ra>
